<compile_context>
chip_gen: v7x
topology: tpu7x:2x2x1
jax: 0.10.0
libtpu: 0.0.40
codegen_flags: <defaults>
</compile_context>

<pallas_src>
import math
from functools import partial

import jax
import jax.numpy as jnp
from jax.experimental import pallas as pl
from jax.experimental.pallas import tpu as pltpu


def _round_up(x, m):
    return ((x + m - 1) // m) * m


# ---------------------------- tiled matmul (+ fused ReLU) ----------------------------

def _mm_kernel(a_ref, b_ref, o_ref, acc_ref, *, relu):
    """Tiled matmul, bf16 operands on the MXU, f32 VMEM accumulator, fused ReLU."""
    @pl.when(pl.program_id(2) == 0)
    def _():
        acc_ref[...] = jnp.zeros_like(acc_ref)

    acc_ref[...] += jnp.dot(a_ref[...], b_ref[...],
                            preferred_element_type=jnp.float32)

    @pl.when(pl.program_id(2) == pl.num_programs(2) - 1)
    def _():
        r = acc_ref[...]
        if relu:
            r = jnp.maximum(r, 0.0)                     # ReLU on the f32 accumulator
        o_ref[...] = r.astype(o_ref.dtype)


def matmul_relu(a, b, relu=False):
    """a: (M, K), b: (K, N) -> (M, N) float32.  Tiles adapt to the real M/K/N:
    full-K / full-N blocks when small (SqueezeNet K,N are often 16..96), 512-row
    M tiles when M is large so the grid has a real parallel axis."""
    M, K = a.shape
    K2, N = b.shape
    assert K == K2
    a = a.astype(jnp.bfloat16)
    b = b.astype(jnp.bfloat16)

    if K <= 1024:                                       # full-K block: no K padding
        tk, Kp = K, K
    else:
        tk = 512
        Kp = _round_up(K, tk)
    if N <= 512:                                        # full-N block: no N padding
        tn, Np = N, N
    else:
        tn = 256
        Np = _round_up(N, tn)
    M8 = _round_up(M, 8)
    if M8 <= 512:
        tm, Mp = M8, M8
    else:
        tm = 512
        Mp = _round_up(M, tm)

    if (Mp, Kp) != (M, K):
        a = jnp.pad(a, ((0, Mp - M), (0, Kp - K)))
    if (Kp, Np) != (K, N):
        b = jnp.pad(b, ((0, Kp - K), (0, Np - N)))

    out = pl.pallas_call(
        partial(_mm_kernel, relu=relu),
        out_shape=jax.ShapeDtypeStruct((Mp, Np), jnp.float32),
        grid_spec=pltpu.PrefetchScalarGridSpec(
            num_scalar_prefetch=0,
            grid=(Mp // tm, Np // tn, Kp // tk),
            in_specs=[pl.BlockSpec((tm, tk), lambda i, j, k: (i, k)),
                      pl.BlockSpec((tk, tn), lambda i, j, k: (k, j))],
            out_specs=pl.BlockSpec((tm, tn), lambda i, j, k: (i, j)),
            scratch_shapes=[pltpu.VMEM((tm, tn), jnp.float32)]),
        compiler_params=pltpu.CompilerParams(
            dimension_semantics=("parallel", "parallel", "arbitrary")),
    )(a, b)
    if (Mp, Np) != (M, N):
        out = out[:M, :N]
    return out


# ------------------- 3x3 stride-1 pad-1 conv: in-kernel 9-tap accumulation -------------------

def _conv3x3_kernel(x_ref, w_ref, o_ref, *, H, W, relu):
    # x_ref: (1, (H+3)*(W+4), Cin)  flattened zero-padded image (bf16)
    # w_ref: (9, Cin, Cout)          taps in (di, dj) order (bf16)
    # o_ref: (1, H*(W+4), Cout)      f32; the 4 right-most columns of each row are
    #                                garbage and are cropped by the caller.
    Wp = W + 4
    M = H * Wp
    Cout = o_ref.shape[-1]
    acc = jnp.zeros((M, Cout), jnp.float32)
    for di in range(3):
        for dj in range(3):
            a = x_ref[0, pl.ds(di * Wp + dj, M), :]      # shifted view, stays in VMEM
            acc = acc + jnp.dot(a, w_ref[di * 3 + dj],
                                preferred_element_type=jnp.float32)
    if relu:
        acc = jnp.maximum(acc, 0.0)
    o_ref[0] = acc


def conv3x3_s1p1(x, w, relu=False):
    """3x3 / stride 1 / pad 1 conv, NHWC activations, OIHW weights, no bias.
    The 9 taps are accumulated in-kernel from shifted slices of a single flattened
    padded copy of the image (no 9x im2col materialization in HBM)."""
    N, H, W, C = x.shape
    Cout = w.shape[0]
    Wp, Hp = W + 4, H + 3                                # pad: 1 left/3 right, 1 top/2 bottom
    xp = jnp.pad(x, ((0, 0), (1, 2), (1, 3), (0, 0))).astype(jnp.bfloat16)
    xf = xp.reshape(N, Hp * Wp, C)
    wf = jnp.transpose(w, (2, 3, 1, 0)).reshape(9, C, Cout).astype(jnp.bfloat16)
    out = pl.pallas_call(
        partial(_conv3x3_kernel, H=H, W=W, relu=relu),
        out_shape=jax.ShapeDtypeStruct((N, H * Wp, Cout), jnp.float32),
        grid_spec=pltpu.PrefetchScalarGridSpec(
            num_scalar_prefetch=0,
            grid=(N,),
            in_specs=[pl.BlockSpec((1, Hp * Wp, C), lambda b: (b, 0, 0)),
                      pl.BlockSpec((9, C, Cout), lambda b: (0, 0, 0))],
            out_specs=pl.BlockSpec((1, H * Wp, Cout), lambda b: (b, 0, 0))),
        compiler_params=pltpu.CompilerParams(
            dimension_semantics=("parallel",)),
    )(xf, wf)
    return out.reshape(N, H, Wp, Cout)[:, :, :W, :]


# ---------------------------- pooling kernels ----------------------------

def _max9_kernel(x_ref, o_ref):
    # x_ref: (9, bm, C) stacked pooling windows -> elementwise max over window axis.
    o_ref[...] = jnp.max(x_ref[...], axis=0)


def maxpool3x3s2(x):
    """PyTorch MaxPool2d(kernel_size=3, stride=2), no padding, floor mode."""
    N, H, W, C = x.shape
    Ho = (H - 3) // 2 + 1
    Wo = (W - 3) // 2 + 1
    wins = [x[:, i:i + 2 * Ho:2, j:j + 2 * Wo:2, :]
            for i in range(3) for j in range(3)]
    stacked = jnp.stack(wins, axis=0).reshape(9, N * Ho * Wo, C)
    # TODO(synk): the 9 strided window copies are still materialized by XLA; an
    #             in-kernel strided read could cut this pooling HBM traffic further.
    M = N * Ho * Wo
    bm = min(256, _round_up(M, 8))
    Mp = _round_up(M, bm)
    if Mp != M:
        stacked = jnp.pad(stacked, ((0, 0), (0, Mp - M), (0, 0)))
    out = pl.pallas_call(
        _max9_kernel,
        out_shape=jax.ShapeDtypeStruct((Mp, C), x.dtype),
        grid_spec=pltpu.PrefetchScalarGridSpec(
            num_scalar_prefetch=0,
            grid=(Mp // bm,),
            in_specs=[pl.BlockSpec((9, bm, C), lambda i: (0, i, 0))],
            out_specs=pl.BlockSpec((bm, C), lambda i: (i, 0))),
        compiler_params=pltpu.CompilerParams(
            dimension_semantics=("parallel",)),
    )(stacked)
    if Mp != M:
        out = out[:M]
    return out.reshape(N, Ho, Wo, C)


def _avgpool_kernel(x_ref, o_ref):
    # x_ref: (1, HW, C) -> o_ref: (1, 1, C): mean over spatial positions.
    o_ref[...] = jnp.mean(x_ref[...], axis=1, keepdims=True)


def global_avgpool(x):
    """AdaptiveAvgPool2d(1): NHWC -> (N, C)."""
    N, H, W, C = x.shape
    out = pl.pallas_call(
        _avgpool_kernel,
        out_shape=jax.ShapeDtypeStruct((N, 1, C), x.dtype),
        grid_spec=pltpu.PrefetchScalarGridSpec(
            num_scalar_prefetch=0,
            grid=(N,),
            in_specs=[pl.BlockSpec((1, H * W, C), lambda b: (b, 0, 0))],
            out_specs=pl.BlockSpec((1, 1, C), lambda b: (b, 0, 0))),
        compiler_params=pltpu.CompilerParams(
            dimension_semantics=("parallel",)),
    )(x.reshape(N, H * W, C))
    return out.reshape(N, C)


# -------------------- conv wrappers (layout glue) --------------------

def _im2col(x, kh, kw, stride, pad):
    """x: NHWC -> (N*Ho*Wo, kh*kw*C) patches (feature order: (ki, kj, c)). Used only
    for conv1 (7x7 s2, Cin=3), where the expansion is cheap."""
    xp = jnp.pad(x, ((0, 0), (pad, pad), (pad, pad), (0, 0)))
    N, Hp, Wp, C = xp.shape
    Ho = (Hp - kh) // stride + 1
    Wo = (Wp - kw) // stride + 1
    cols = [xp[:, i:i + stride * Ho:stride, j:j + stride * Wo:stride, :]
            for i in range(kh) for j in range(kw)]
    p = jnp.stack(cols, axis=3)                          # (N, Ho, Wo, kh*kw, C)
    return p.reshape(N * Ho * Wo, kh * kw * C), (N, Ho, Wo)


def conv2d(x, w, stride=1, pad=0, relu=False):
    """x: NHWC, w: (Cout, Cin, kh, kw) PyTorch OIHW order, no bias."""
    Cout, Cin, kh, kw = w.shape
    N, H, W, C = x.shape
    if kh == 1 and kw == 1 and stride == 1 and pad == 0:
        a = x.reshape(N * H * W, C)
        b = jnp.transpose(w.reshape(Cout, Cin))          # (Cin, Cout)
        y = matmul_relu(a, b, relu=relu)
        return y.reshape(N, H, W, Cout)
    if kh == 3 and kw == 3 and stride == 1 and pad == 1:
        return conv3x3_s1p1(x, w, relu=relu)
    a, (N2, Ho, Wo) = _im2col(x, kh, kw, stride, pad)
    b = jnp.transpose(w, (2, 3, 1, 0)).reshape(kh * kw * Cin, Cout)
    y = matmul_relu(a, b, relu=relu)
    return y.reshape(N2, Ho, Wo, Cout)


# ---------------------------- parameters ----------------------------

OUTPUT_CHANNELS = [128, 128, 256, 256, 384, 384, 512, 512]


def init_params(key, num_classes=16):
    def conv_w(k, cout, cin, kh, kw):
        std = math.sqrt(2.0 / (cin * kh * kw))           # He init (deterministic)
        return jax.random.normal(k, (cout, cin, kh, kw), jnp.float32) * std

    keys = jax.random.split(key, 1 + 8 * 3 + 1)
    ki = 0
    params = {'conv1': conv_w(keys[ki], 96, 3, 7, 7)}
    ki += 1
    inp = 96
    fires = []
    for i in range(8):
        oup = OUTPUT_CHANNELS[i]
        exp_c = oup // 2
        sq_c = exp_c // 4
        fires.append({
            'squeeze':    conv_w(keys[ki + 0], sq_c, inp, 1, 1),
            'expand_1x1': conv_w(keys[ki + 1], exp_c, sq_c, 1, 1),
            'expand_3x3': conv_w(keys[ki + 2], exp_c, sq_c, 3, 3),
        })
        ki += 3
        inp = oup
    params['fires'] = fires
    params['conv10'] = conv_w(keys[ki], num_classes, 512, 1, 1)
    return params


# ---------------------------- forward pass ----------------------------

def fire_module(x, p):
    s = conv2d(x, p['squeeze'], stride=1, pad=0, relu=True)
    # relu(cat([a, b], C)) == cat([relu(a), relu(b)], C): ReLU fused into each expand.
    e1 = conv2d(s, p['expand_1x1'], stride=1, pad=0, relu=True)
    e3 = conv2d(s, p['expand_3x3'], stride=1, pad=1, relu=True)
    return jnp.concatenate([e1, e3], axis=-1)


def squeezenet_forward(params, x_nchw):
    x = jnp.transpose(x_nchw, (0, 2, 3, 1))              # NCHW -> NHWC
    x = conv2d(x, params['conv1'], stride=2, pad=2, relu=True)
    x = maxpool3x3s2(x)
    for i, p in enumerate(params['fires']):
        x = fire_module(x, p)
        if i == 2 or i == 6:
            x = maxpool3x3s2(x)
    # TODO(synk): nn.Dropout(p=0.5) is treated as identity (inference semantics).
    # conv10 is a bias-free 1x1 conv (linear), so avgpool-then-conv10 is exactly
    # equivalent to conv10-then-avgpool and shrinks the final matmul to (N, 512).
    pooled = global_avgpool(x)                            # (N, 512)
    w10 = params['conv10']                                # (num_classes, 512, 1, 1)
    logits = matmul_relu(
        pooled, jnp.transpose(w10.reshape(w10.shape[0], w10.shape[1])), relu=False)
    return logits[:, :, None, None]                       # NCHW: (N, num_classes, 1, 1)


if __name__ == "__main__":
    key = jax.random.PRNGKey(0)
    pkey, xkey = jax.random.split(key)
    num_classes = 16
    params = init_params(pkey, num_classes=num_classes)
    x = jax.random.normal(xkey, (2, 3, 32, 32), jnp.float32)   # small NCHW input
    fwd = jax.jit(squeezenet_forward)
    out = jax.block_until_ready(fwd(params, x))
    assert out.shape == (2, num_classes, 1, 1), out.shape
    assert bool(jnp.all(jnp.isfinite(out)))
    print("KERNEL_OK")
</pallas_src>

<mosaic_0001>
module attributes {stable_mosaic.version = 11 : i64} {
  func.func @_mm_kernel(%arg0: i32, %arg1: i32, %arg2: i32, %arg3: memref<456x147xbf16, #tpu.memory_space<vmem>>, %arg4: memref<147x96xbf16, #tpu.memory_space<vmem>>, %arg5: memref<456x96xf32, #tpu.memory_space<vmem>>, %arg6: memref<456x96xf32, #tpu.memory_space<vmem>>) attributes {dimension_semantics = [#tpu.dimension_semantics<parallel>, #tpu.dimension_semantics<parallel>, #tpu.dimension_semantics<arbitrary>], iteration_bounds = array<i64: 1, 1, 1>, scalar_prefetch = 0 : i64, scratch_operands = 1 : i64, tpu.core_type = #tpu.core_type<tc>, window_params = [{transform_indices = @transform_0, window_bounds = array<i64: 456, 147>}, {transform_indices = @transform_1, window_bounds = array<i64: 147, 96>}, {transform_indices = @transform_2, window_bounds = array<i64: 456, 96>}]} {
    %c0_i32 = arith.constant 0 : i32
    %0 = arith.cmpi eq, %arg2, %c0_i32 : i32
    %1 = arith.extui %0 : i1 to i32
    %c0_i32_0 = arith.constant 0 : i32
    %2 = arith.cmpi ne, %1, %c0_i32_0 : i32
    scf.if %2 {
      %cst_10 = arith.constant 0.000000e+00 : f32
      %12 = vector.broadcast %cst_10 : f32 to vector<456x96xf32>
      %c0_11 = arith.constant 0 : index
      %c0_12 = arith.constant 0 : index
      %13 = vector.load %arg6[%c0_11, %c0_12] : memref<456x96xf32, #tpu.memory_space<vmem>>, vector<456x96xf32>
      tpu.vector_store %arg6[%c0_11, %c0_12], %12 {strides = array<i32>} : memref<456x96xf32, #tpu.memory_space<vmem>>, vector<456x96xf32>,
    } else {
    }
    %c0 = arith.constant 0 : index
    %c0_1 = arith.constant 0 : index
    %3 = vector.load %arg6[%c0, %c0_1] : memref<456x96xf32, #tpu.memory_space<vmem>>, vector<456x96xf32>
    %c0_2 = arith.constant 0 : index
    %c0_3 = arith.constant 0 : index
    %4 = vector.load %arg3[%c0_2, %c0_3] : memref<456x147xbf16, #tpu.memory_space<vmem>>, vector<456x147xbf16>
    %c0_4 = arith.constant 0 : index
    %c0_5 = arith.constant 0 : index
    %5 = vector.load %arg4[%c0_4, %c0_5] : memref<147x96xbf16, #tpu.memory_space<vmem>>, vector<147x96xbf16>
    %cst = arith.constant dense<0.000000e+00> : vector<456x96xf32>
    %6 = tpu.matmul %4, %5, %cst {dimension_numbers = #tpu.dot_dimension_numbers<[1], [0], [0], [1], [0, 0, 1, 1], [], []>} : vector<456x147xbf16>, vector<147x96xbf16>, vector<456x96xf32> -> vector<456x96xf32>
    %7 = arith.addf %3, %6 : vector<456x96xf32>
    %c0_6 = arith.constant 0 : index
    %c0_7 = arith.constant 0 : index
    %8 = vector.load %arg6[%c0_6, %c0_7] : memref<456x96xf32, #tpu.memory_space<vmem>>, vector<456x96xf32>
    tpu.vector_store %arg6[%c0_6, %c0_7], %7 {strides = array<i32>} : memref<456x96xf32, #tpu.memory_space<vmem>>, vector<456x96xf32>,
    %c0_i32_8 = arith.constant 0 : i32
    %9 = arith.cmpi eq, %arg2, %c0_i32_8 : i32
    %10 = arith.extui %9 : i1 to i32
    %c0_i32_9 = arith.constant 0 : i32
    %11 = arith.cmpi ne, %10, %c0_i32_9 : i32
    scf.if %11 {
      %c0_10 = arith.constant 0 : index
      %c0_11 = arith.constant 0 : index
      %12 = vector.load %arg6[%c0_10, %c0_11] : memref<456x96xf32, #tpu.memory_space<vmem>>, vector<456x96xf32>
      %cst_12 = arith.constant 0.000000e+00 : f32
      %13 = vector.broadcast %cst_12 : f32 to vector<456x96xf32>
      %14 = arith.maximumf %12, %13 : vector<456x96xf32>
      %c0_13 = arith.constant 0 : index
      %c0_14 = arith.constant 0 : index
      %15 = vector.load %arg5[%c0_13, %c0_14] : memref<456x96xf32, #tpu.memory_space<vmem>>, vector<456x96xf32>
      tpu.vector_store %arg5[%c0_13, %c0_14], %14 {strides = array<i32>} : memref<456x96xf32, #tpu.memory_space<vmem>>, vector<456x96xf32>,
    } else {
    }
    return
  }
  func.func @transform_0(%arg0: i32, %arg1: i32, %arg2: i32) -> (i32, i32) {
    %c0_i32 = arith.constant 0 : i32
    return %arg0, %arg2 : i32, i32
  }
  func.func @transform_1(%arg0: i32, %arg1: i32, %arg2: i32) -> (i32, i32) {
    %c0_i32 = arith.constant 0 : i32
    return %arg2, %arg1 : i32, i32
  }
  func.func @transform_2(%arg0: i32, %arg1: i32, %arg2: i32) -> (i32, i32) {
    %c0_i32 = arith.constant 0 : i32
    return %arg0, %arg1 : i32, i32
  }
}

module attributes {stable_mosaic.version = 11 : i64} {
  func.func @_max9_kernel(%arg0: i32, %arg1: memref<9x104x96xf32, #tpu.memory_space<vmem>>, %arg2: memref<104x96xf32, #tpu.memory_space<vmem>>) attributes {dimension_semantics = [#tpu.dimension_semantics<parallel>], iteration_bounds = array<i64: 1>, scalar_prefetch = 0 : i64, scratch_operands = 0 : i64, tpu.core_type = #tpu.core_type<tc>, window_params = [{transform_indices = @transform_0, window_bounds = array<i64: 9, 104, 96>}, {transform_indices = @transform_1, window_bounds = array<i64: 104, 96>}]} {
    %c0 = arith.constant 0 : index
    %c0_0 = arith.constant 0 : index
    %c0_1 = arith.constant 0 : index
    %0 = vector.load %arg1[%c0, %c0_0, %c0_1] : memref<9x104x96xf32, #tpu.memory_space<vmem>>, vector<9x104x96xf32>
    %cst = arith.constant dense<0xFF800000> : vector<104x96xf32>
    %1 = vector.multi_reduction <maximumf>, %0, %cst [0] : vector<9x104x96xf32> to vector<104x96xf32>
    %c0_2 = arith.constant 0 : index
    %c0_3 = arith.constant 0 : index
    %2 = vector.load %arg2[%c0_2, %c0_3] : memref<104x96xf32, #tpu.memory_space<vmem>>, vector<104x96xf32>
    tpu.vector_store %arg2[%c0_2, %c0_3], %1 {strides = array<i32>} : memref<104x96xf32, #tpu.memory_space<vmem>>, vector<104x96xf32>,
    return
  }
  func.func @transform_0(%arg0: i32) -> (i32, i32, i32) {
    %c0_i32 = arith.constant 0 : i32
    %c0_i32_0 = arith.constant 0 : i32
    %c0_i32_1 = arith.constant 0 : i32
    return %c0_i32, %arg0, %c0_i32_0 : i32, i32, i32
  }
  func.func @transform_1(%arg0: i32) -> (i32, i32) {
    %c0_i32 = arith.constant 0 : i32
    %c0_i32_0 = arith.constant 0 : i32
    return %arg0, %c0_i32 : i32, i32
  }
}

module attributes {stable_mosaic.version = 11 : i64} {
  func.func @_mm_kernel(%arg0: i32, %arg1: i32, %arg2: i32, %arg3: memref<104x96xbf16, #tpu.memory_space<vmem>>, %arg4: memref<96x16xbf16, #tpu.memory_space<vmem>>, %arg5: memref<104x16xf32, #tpu.memory_space<vmem>>, %arg6: memref<104x16xf32, #tpu.memory_space<vmem>>) attributes {dimension_semantics = [#tpu.dimension_semantics<parallel>, #tpu.dimension_semantics<parallel>, #tpu.dimension_semantics<arbitrary>], iteration_bounds = array<i64: 1, 1, 1>, scalar_prefetch = 0 : i64, scratch_operands = 1 : i64, tpu.core_type = #tpu.core_type<tc>, window_params = [{transform_indices = @transform_0, window_bounds = array<i64: 104, 96>}, {transform_indices = @transform_1, window_bounds = array<i64: 96, 16>}, {transform_indices = @transform_2, window_bounds = array<i64: 104, 16>}]} {
    %c0_i32 = arith.constant 0 : i32
    %0 = arith.cmpi eq, %arg2, %c0_i32 : i32
    %1 = arith.extui %0 : i1 to i32
    %c0_i32_0 = arith.constant 0 : i32
    %2 = arith.cmpi ne, %1, %c0_i32_0 : i32
    scf.if %2 {
      %cst_10 = arith.constant 0.000000e+00 : f32
      %12 = vector.broadcast %cst_10 : f32 to vector<104x16xf32>
      %c0_11 = arith.constant 0 : index
      %c0_12 = arith.constant 0 : index
      %13 = vector.load %arg6[%c0_11, %c0_12] : memref<104x16xf32, #tpu.memory_space<vmem>>, vector<104x16xf32>
      tpu.vector_store %arg6[%c0_11, %c0_12], %12 {strides = array<i32>} : memref<104x16xf32, #tpu.memory_space<vmem>>, vector<104x16xf32>,
    } else {
    }
    %c0 = arith.constant 0 : index
    %c0_1 = arith.constant 0 : index
    %3 = vector.load %arg6[%c0, %c0_1] : memref<104x16xf32, #tpu.memory_space<vmem>>, vector<104x16xf32>
    %c0_2 = arith.constant 0 : index
    %c0_3 = arith.constant 0 : index
    %4 = vector.load %arg3[%c0_2, %c0_3] : memref<104x96xbf16, #tpu.memory_space<vmem>>, vector<104x96xbf16>
    %c0_4 = arith.constant 0 : index
    %c0_5 = arith.constant 0 : index
    %5 = vector.load %arg4[%c0_4, %c0_5] : memref<96x16xbf16, #tpu.memory_space<vmem>>, vector<96x16xbf16>
    %cst = arith.constant dense<0.000000e+00> : vector<104x16xf32>
    %6 = tpu.matmul %4, %5, %cst {dimension_numbers = #tpu.dot_dimension_numbers<[1], [0], [0], [1], [0, 0, 1, 1], [], []>} : vector<104x96xbf16>, vector<96x16xbf16>, vector<104x16xf32> -> vector<104x16xf32>
    %7 = arith.addf %3, %6 : vector<104x16xf32>
    %c0_6 = arith.constant 0 : index
    %c0_7 = arith.constant 0 : index
    %8 = vector.load %arg6[%c0_6, %c0_7] : memref<104x16xf32, #tpu.memory_space<vmem>>, vector<104x16xf32>
    tpu.vector_store %arg6[%c0_6, %c0_7], %7 {strides = array<i32>} : memref<104x16xf32, #tpu.memory_space<vmem>>, vector<104x16xf32>,
    %c0_i32_8 = arith.constant 0 : i32
    %9 = arith.cmpi eq, %arg2, %c0_i32_8 : i32
    %10 = arith.extui %9 : i1 to i32
    %c0_i32_9 = arith.constant 0 : i32
    %11 = arith.cmpi ne, %10, %c0_i32_9 : i32
    scf.if %11 {
      %c0_10 = arith.constant 0 : index
      %c0_11 = arith.constant 0 : index
      %12 = vector.load %arg6[%c0_10, %c0_11] : memref<104x16xf32, #tpu.memory_space<vmem>>, vector<104x16xf32>
      %cst_12 = arith.constant 0.000000e+00 : f32
      %13 = vector.broadcast %cst_12 : f32 to vector<104x16xf32>
      %14 = arith.maximumf %12, %13 : vector<104x16xf32>
      %c0_13 = arith.constant 0 : index
      %c0_14 = arith.constant 0 : index
      %15 = vector.load %arg5[%c0_13, %c0_14] : memref<104x16xf32, #tpu.memory_space<vmem>>, vector<104x16xf32>
      tpu.vector_store %arg5[%c0_13, %c0_14], %14 {strides = array<i32>} : memref<104x16xf32, #tpu.memory_space<vmem>>, vector<104x16xf32>,
    } else {
    }
    return
  }
  func.func @transform_0(%arg0: i32, %arg1: i32, %arg2: i32) -> (i32, i32) {
    %c0_i32 = arith.constant 0 : i32
    return %arg0, %arg2 : i32, i32
  }
  func.func @transform_1(%arg0: i32, %arg1: i32, %arg2: i32) -> (i32, i32) {
    %c0_i32 = arith.constant 0 : i32
    return %arg2, %arg1 : i32, i32
  }
  func.func @transform_2(%arg0: i32, %arg1: i32, %arg2: i32) -> (i32, i32) {
    %c0_i32 = arith.constant 0 : i32
    return %arg0, %arg1 : i32, i32
  }
}

module attributes {stable_mosaic.version = 11 : i64} {
  func.func @_conv3x3_kernel(%arg0: i32, %arg1: memref<1x110x16xbf16, #tpu.memory_space<vmem>>, %arg2: memref<9x16x64xbf16, #tpu.memory_space<vmem>>, %arg3: memref<1x77x64xf32, #tpu.memory_space<vmem>>) attributes {dimension_semantics = [#tpu.dimension_semantics<parallel>], iteration_bounds = array<i64: 2>, scalar_prefetch = 0 : i64, scratch_operands = 0 : i64, tpu.core_type = #tpu.core_type<tc>, window_params = [{transform_indices = @transform_0, window_bounds = array<i64: 1, 110, 16>}, {pipeline_mode = #tpu.pipeline_mode<synchronous>, transform_indices = @transform_1, window_bounds = array<i64: 9, 16, 64>}, {transform_indices = @transform_2, window_bounds = array<i64: 1, 77, 64>}]} {
    %cst = arith.constant 0.000000e+00 : f32
    %0 = vector.broadcast %cst : f32 to vector<77x64xf32>
    %c0 = arith.constant 0 : index
    %c0_0 = arith.constant 0 : index
    %c0_1 = arith.constant 0 : index
    %1 = vector.load %arg1[%c0, %c0_0, %c0_1] : memref<1x110x16xbf16, #tpu.memory_space<vmem>>, vector<1x77x16xbf16>
    %2 = vector.shape_cast %1 : vector<1x77x16xbf16> to vector<77x16xbf16>
    %c0_2 = arith.constant 0 : index
    %c0_3 = arith.constant 0 : index
    %c0_4 = arith.constant 0 : index
    %3 = vector.load %arg2[%c0_2, %c0_3, %c0_4] : memref<9x16x64xbf16, #tpu.memory_space<vmem>>, vector<1x16x64xbf16>
    %4 = vector.shape_cast %3 : vector<1x16x64xbf16> to vector<16x64xbf16>
    %cst_5 = arith.constant dense<0.000000e+00> : vector<77x64xf32>
    %5 = tpu.matmul %2, %4, %cst_5 {dimension_numbers = #tpu.dot_dimension_numbers<[1], [0], [0], [1], [0, 0, 1, 1], [], []>} : vector<77x16xbf16>, vector<16x64xbf16>, vector<77x64xf32> -> vector<77x64xf32>
    %6 = arith.addf %0, %5 : vector<77x64xf32>
    %c0_6 = arith.constant 0 : index
    %c1 = arith.constant 1 : index
    %c0_7 = arith.constant 0 : index
    %7 = vector.load %arg1[%c0_6, %c1, %c0_7] : memref<1x110x16xbf16, #tpu.memory_space<vmem>>, vector<1x77x16xbf16>
    %8 = vector.shape_cast %7 : vector<1x77x16xbf16> to vector<77x16xbf16>
    %c1_8 = arith.constant 1 : index
    %c0_9 = arith.constant 0 : index
    %c0_10 = arith.constant 0 : index
    %9 = vector.load %arg2[%c1_8, %c0_9, %c0_10] : memref<9x16x64xbf16, #tpu.memory_space<vmem>>, vector<1x16x64xbf16>
    %10 = vector.shape_cast %9 : vector<1x16x64xbf16> to vector<16x64xbf16>
    %cst_11 = arith.constant dense<0.000000e+00> : vector<77x64xf32>
    %11 = tpu.matmul %8, %10, %cst_11 {dimension_numbers = #tpu.dot_dimension_numbers<[1], [0], [0], [1], [0, 0, 1, 1], [], []>} : vector<77x16xbf16>, vector<16x64xbf16>, vector<77x64xf32> -> vector<77x64xf32>
    %12 = arith.addf %6, %11 : vector<77x64xf32>
    %c0_12 = arith.constant 0 : index
    %c2 = arith.constant 2 : index
    %c0_13 = arith.constant 0 : index
    %13 = vector.load %arg1[%c0_12, %c2, %c0_13] : memref<1x110x16xbf16, #tpu.memory_space<vmem>>, vector<1x77x16xbf16>
    %14 = vector.shape_cast %13 : vector<1x77x16xbf16> to vector<77x16xbf16>
    %c2_14 = arith.constant 2 : index
    %c0_15 = arith.constant 0 : index
    %c0_16 = arith.constant 0 : index
    %15 = vector.load %arg2[%c2_14, %c0_15, %c0_16] : memref<9x16x64xbf16, #tpu.memory_space<vmem>>, vector<1x16x64xbf16>
    %16 = vector.shape_cast %15 : vector<1x16x64xbf16> to vector<16x64xbf16>
    %cst_17 = arith.constant dense<0.000000e+00> : vector<77x64xf32>
    %17 = tpu.matmul %14, %16, %cst_17 {dimension_numbers = #tpu.dot_dimension_numbers<[1], [0], [0], [1], [0, 0, 1, 1], [], []>} : vector<77x16xbf16>, vector<16x64xbf16>, vector<77x64xf32> -> vector<77x64xf32>
    %18 = arith.addf %12, %17 : vector<77x64xf32>
    %c0_18 = arith.constant 0 : index
    %c11 = arith.constant 11 : index
    %c0_19 = arith.constant 0 : index
    %19 = vector.load %arg1[%c0_18, %c11, %c0_19] : memref<1x110x16xbf16, #tpu.memory_space<vmem>>, vector<1x77x16xbf16>
    %20 = vector.shape_cast %19 : vector<1x77x16xbf16> to vector<77x16xbf16>
    %c3 = arith.constant 3 : index
    %c0_20 = arith.constant 0 : index
    %c0_21 = arith.constant 0 : index
    %21 = vector.load %arg2[%c3, %c0_20, %c0_21] : memref<9x16x64xbf16, #tpu.memory_space<vmem>>, vector<1x16x64xbf16>
    %22 = vector.shape_cast %21 : vector<1x16x64xbf16> to vector<16x64xbf16>
    %cst_22 = arith.constant dense<0.000000e+00> : vector<77x64xf32>
    %23 = tpu.matmul %20, %22, %cst_22 {dimension_numbers = #tpu.dot_dimension_numbers<[1], [0], [0], [1], [0, 0, 1, 1], [], []>} : vector<77x16xbf16>, vector<16x64xbf16>, vector<77x64xf32> -> vector<77x64xf32>
    %24 = arith.addf %18, %23 : vector<77x64xf32>
    %c0_23 = arith.constant 0 : index
    %c12 = arith.constant 12 : index
    %c0_24 = arith.constant 0 : index
    %25 = vector.load %arg1[%c0_23, %c12, %c0_24] : memref<1x110x16xbf16, #tpu.memory_space<vmem>>, vector<1x77x16xbf16>
    %26 = vector.shape_cast %25 : vector<1x77x16xbf16> to vector<77x16xbf16>
    %c4 = arith.constant 4 : index
    %c0_25 = arith.constant 0 : index
    %c0_26 = arith.constant 0 : index
    %27 = vector.load %arg2[%c4, %c0_25, %c0_26] : memref<9x16x64xbf16, #tpu.memory_space<vmem>>, vector<1x16x64xbf16>
    %28 = vector.shape_cast %27 : vector<1x16x64xbf16> to vector<16x64xbf16>
    %cst_27 = arith.constant dense<0.000000e+00> : vector<77x64xf32>
    %29 = tpu.matmul %26, %28, %cst_27 {dimension_numbers = #tpu.dot_dimension_numbers<[1], [0], [0], [1], [0, 0, 1, 1], [], []>} : vector<77x16xbf16>, vector<16x64xbf16>, vector<77x64xf32> -> vector<77x64xf32>
    %30 = arith.addf %24, %29 : vector<77x64xf32>
    %c0_28 = arith.constant 0 : index
    %c13 = arith.constant 13 : index
    %c0_29 = arith.constant 0 : index
    %31 = vector.load %arg1[%c0_28, %c13, %c0_29] : memref<1x110x16xbf16, #tpu.memory_space<vmem>>, vector<1x77x16xbf16>
    %32 = vector.shape_cast %31 : vector<1x77x16xbf16> to vector<77x16xbf16>
    %c5 = arith.constant 5 : index
    %c0_30 = arith.constant 0 : index
    %c0_31 = arith.constant 0 : index
    %33 = vector.load %arg2[%c5, %c0_30, %c0_31] : memref<9x16x64xbf16, #tpu.memory_space<vmem>>, vector<1x16x64xbf16>
    %34 = vector.shape_cast %33 : vector<1x16x64xbf16> to vector<16x64xbf16>
    %cst_32 = arith.constant dense<0.000000e+00> : vector<77x64xf32>
    %35 = tpu.matmul %32, %34, %cst_32 {dimension_numbers = #tpu.dot_dimension_numbers<[1], [0], [0], [1], [0, 0, 1, 1], [], []>} : vector<77x16xbf16>, vector<16x64xbf16>, vector<77x64xf32> -> vector<77x64xf32>
    %36 = arith.addf %30, %35 : vector<77x64xf32>
    %c0_33 = arith.constant 0 : index
    %c22 = arith.constant 22 : index
    %c0_34 = arith.constant 0 : index
    %37 = vector.load %arg1[%c0_33, %c22, %c0_34] : memref<1x110x16xbf16, #tpu.memory_space<vmem>>, vector<1x77x16xbf16>
    %38 = vector.shape_cast %37 : vector<1x77x16xbf16> to vector<77x16xbf16>
    %c6 = arith.constant 6 : index
    %c0_35 = arith.constant 0 : index
    %c0_36 = arith.constant 0 : index
    %39 = vector.load %arg2[%c6, %c0_35, %c0_36] : memref<9x16x64xbf16, #tpu.memory_space<vmem>>, vector<1x16x64xbf16>
    %40 = vector.shape_cast %39 : vector<1x16x64xbf16> to vector<16x64xbf16>
    %cst_37 = arith.constant dense<0.000000e+00> : vector<77x64xf32>
    %41 = tpu.matmul %38, %40, %cst_37 {dimension_numbers = #tpu.dot_dimension_numbers<[1], [0], [0], [1], [0, 0, 1, 1], [], []>} : vector<77x16xbf16>, vector<16x64xbf16>, vector<77x64xf32> -> vector<77x64xf32>
    %42 = arith.addf %36, %41 : vector<77x64xf32>
    %c0_38 = arith.constant 0 : index
    %c23 = arith.constant 23 : index
    %c0_39 = arith.constant 0 : index
    %43 = vector.load %arg1[%c0_38, %c23, %c0_39] : memref<1x110x16xbf16, #tpu.memory_space<vmem>>, vector<1x77x16xbf16>
    %44 = vector.shape_cast %43 : vector<1x77x16xbf16> to vector<77x16xbf16>
    %c7 = arith.constant 7 : index
    %c0_40 = arith.constant 0 : index
    %c0_41 = arith.constant 0 : index
    %45 = vector.load %arg2[%c7, %c0_40, %c0_41] : memref<9x16x64xbf16, #tpu.memory_space<vmem>>, vector<1x16x64xbf16>
    %46 = vector.shape_cast %45 : vector<1x16x64xbf16> to vector<16x64xbf16>
    %cst_42 = arith.constant dense<0.000000e+00> : vector<77x64xf32>
    %47 = tpu.matmul %44, %46, %cst_42 {dimension_numbers = #tpu.dot_dimension_numbers<[1], [0], [0], [1], [0, 0, 1, 1], [], []>} : vector<77x16xbf16>, vector<16x64xbf16>, vector<77x64xf32> -> vector<77x64xf32>
    %48 = arith.addf %42, %47 : vector<77x64xf32>
    %c0_43 = arith.constant 0 : index
    %c24 = arith.constant 24 : index
    %c0_44 = arith.constant 0 : index
    %49 = vector.load %arg1[%c0_43, %c24, %c0_44] : memref<1x110x16xbf16, #tpu.memory_space<vmem>>, vector<1x77x16xbf16>
    %50 = vector.shape_cast %49 : vector<1x77x16xbf16> to vector<77x16xbf16>
    %c8 = arith.constant 8 : index
    %c0_45 = arith.constant 0 : index
    %c0_46 = arith.constant 0 : index
    %51 = vector.load %arg2[%c8, %c0_45, %c0_46] : memref<9x16x64xbf16, #tpu.memory_space<vmem>>, vector<1x16x64xbf16>
    %52 = vector.shape_cast %51 : vector<1x16x64xbf16> to vector<16x64xbf16>
    %cst_47 = arith.constant dense<0.000000e+00> : vector<77x64xf32>
    %53 = tpu.matmul %50, %52, %cst_47 {dimension_numbers = #tpu.dot_dimension_numbers<[1], [0], [0], [1], [0, 0, 1, 1], [], []>} : vector<77x16xbf16>, vector<16x64xbf16>, vector<77x64xf32> -> vector<77x64xf32>
    %54 = arith.addf %48, %53 : vector<77x64xf32>
    %cst_48 = arith.constant 0.000000e+00 : f32
    %55 = vector.broadcast %cst_48 : f32 to vector<77x64xf32>
    %56 = arith.maximumf %54, %55 : vector<77x64xf32>
    %c0_49 = arith.constant 0 : index
    %c0_50 = arith.constant 0 : index
    %c0_51 = arith.constant 0 : index
    %57 = vector.load %arg3[%c0_49, %c0_50, %c0_51] : memref<1x77x64xf32, #tpu.memory_space<vmem>>, vector<1x77x64xf32>
    %58 = vector.shape_cast %57 : vector<1x77x64xf32> to vector<77x64xf32>
    %59 = vector.shape_cast %56 : vector<77x64xf32> to vector<1x77x64xf32>
    tpu.vector_store %arg3[%c0_49, %c0_50, %c0_51], %59 {strides = array<i32>} : memref<1x77x64xf32, #tpu.memory_space<vmem>>, vector<1x77x64xf32>,
    return
  }
  func.func @transform_0(%arg0: i32) -> (i32, i32, i32) {
    %c0_i32 = arith.constant 0 : i32
    %c0_i32_0 = arith.constant 0 : i32
    %c0_i32_1 = arith.constant 0 : i32
    return %arg0, %c0_i32, %c0_i32_0 : i32, i32, i32
  }
  func.func @transform_1(%arg0: i32) -> (i32, i32, i32) {
    %c0_i32 = arith.constant 0 : i32
    %c0_i32_0 = arith.constant 0 : i32
    %c0_i32_1 = arith.constant 0 : i32
    %c0_i32_2 = arith.constant 0 : i32
    return %c0_i32, %c0_i32_0, %c0_i32_1 : i32, i32, i32
  }
  func.func @transform_2(%arg0: i32) -> (i32, i32, i32) {
    %c0_i32 = arith.constant 0 : i32
    %c0_i32_0 = arith.constant 0 : i32
    %c0_i32_1 = arith.constant 0 : i32
    return %arg0, %c0_i32, %c0_i32_0 : i32, i32, i32
  }
}

module attributes {stable_mosaic.version = 11 : i64} {
  func.func @_mm_kernel(%arg0: i32, %arg1: i32, %arg2: i32, %arg3: memref<104x16xbf16, #tpu.memory_space<vmem>>, %arg4: memref<16x64xbf16, #tpu.memory_space<vmem>>, %arg5: memref<104x64xf32, #tpu.memory_space<vmem>>, %arg6: memref<104x64xf32, #tpu.memory_space<vmem>>) attributes {dimension_semantics = [#tpu.dimension_semantics<parallel>, #tpu.dimension_semantics<parallel>, #tpu.dimension_semantics<arbitrary>], iteration_bounds = array<i64: 1, 1, 1>, scalar_prefetch = 0 : i64, scratch_operands = 1 : i64, tpu.core_type = #tpu.core_type<tc>, window_params = [{transform_indices = @transform_0, window_bounds = array<i64: 104, 16>}, {transform_indices = @transform_1, window_bounds = array<i64: 16, 64>}, {transform_indices = @transform_2, window_bounds = array<i64: 104, 64>}]} {
    %c0_i32 = arith.constant 0 : i32
    %0 = arith.cmpi eq, %arg2, %c0_i32 : i32
    %1 = arith.extui %0 : i1 to i32
    %c0_i32_0 = arith.constant 0 : i32
    %2 = arith.cmpi ne, %1, %c0_i32_0 : i32
    scf.if %2 {
      %cst_10 = arith.constant 0.000000e+00 : f32
      %12 = vector.broadcast %cst_10 : f32 to vector<104x64xf32>
      %c0_11 = arith.constant 0 : index
      %c0_12 = arith.constant 0 : index
      %13 = vector.load %arg6[%c0_11, %c0_12] : memref<104x64xf32, #tpu.memory_space<vmem>>, vector<104x64xf32>
      tpu.vector_store %arg6[%c0_11, %c0_12], %12 {strides = array<i32>} : memref<104x64xf32, #tpu.memory_space<vmem>>, vector<104x64xf32>,
    } else {
    }
    %c0 = arith.constant 0 : index
    %c0_1 = arith.constant 0 : index
    %3 = vector.load %arg6[%c0, %c0_1] : memref<104x64xf32, #tpu.memory_space<vmem>>, vector<104x64xf32>
    %c0_2 = arith.constant 0 : index
    %c0_3 = arith.constant 0 : index
    %4 = vector.load %arg3[%c0_2, %c0_3] : memref<104x16xbf16, #tpu.memory_space<vmem>>, vector<104x16xbf16>
    %c0_4 = arith.constant 0 : index
    %c0_5 = arith.constant 0 : index
    %5 = vector.load %arg4[%c0_4, %c0_5] : memref<16x64xbf16, #tpu.memory_space<vmem>>, vector<16x64xbf16>
    %cst = arith.constant dense<0.000000e+00> : vector<104x64xf32>
    %6 = tpu.matmul %4, %5, %cst {dimension_numbers = #tpu.dot_dimension_numbers<[1], [0], [0], [1], [0, 0, 1, 1], [], []>} : vector<104x16xbf16>, vector<16x64xbf16>, vector<104x64xf32> -> vector<104x64xf32>
    %7 = arith.addf %3, %6 : vector<104x64xf32>
    %c0_6 = arith.constant 0 : index
    %c0_7 = arith.constant 0 : index
    %8 = vector.load %arg6[%c0_6, %c0_7] : memref<104x64xf32, #tpu.memory_space<vmem>>, vector<104x64xf32>
    tpu.vector_store %arg6[%c0_6, %c0_7], %7 {strides = array<i32>} : memref<104x64xf32, #tpu.memory_space<vmem>>, vector<104x64xf32>,
    %c0_i32_8 = arith.constant 0 : i32
    %9 = arith.cmpi eq, %arg2, %c0_i32_8 : i32
    %10 = arith.extui %9 : i1 to i32
    %c0_i32_9 = arith.constant 0 : i32
    %11 = arith.cmpi ne, %10, %c0_i32_9 : i32
    scf.if %11 {
      %c0_10 = arith.constant 0 : index
      %c0_11 = arith.constant 0 : index
      %12 = vector.load %arg6[%c0_10, %c0_11] : memref<104x64xf32, #tpu.memory_space<vmem>>, vector<104x64xf32>
      %cst_12 = arith.constant 0.000000e+00 : f32
      %13 = vector.broadcast %cst_12 : f32 to vector<104x64xf32>
      %14 = arith.maximumf %12, %13 : vector<104x64xf32>
      %c0_13 = arith.constant 0 : index
      %c0_14 = arith.constant 0 : index
      %15 = vector.load %arg5[%c0_13, %c0_14] : memref<104x64xf32, #tpu.memory_space<vmem>>, vector<104x64xf32>
      tpu.vector_store %arg5[%c0_13, %c0_14], %14 {strides = array<i32>} : memref<104x64xf32, #tpu.memory_space<vmem>>, vector<104x64xf32>,
    } else {
    }
    return
  }
  func.func @transform_0(%arg0: i32, %arg1: i32, %arg2: i32) -> (i32, i32) {
    %c0_i32 = arith.constant 0 : i32
    return %arg0, %arg2 : i32, i32
  }
  func.func @transform_1(%arg0: i32, %arg1: i32, %arg2: i32) -> (i32, i32) {
    %c0_i32 = arith.constant 0 : i32
    return %arg2, %arg1 : i32, i32
  }
  func.func @transform_2(%arg0: i32, %arg1: i32, %arg2: i32) -> (i32, i32) {
    %c0_i32 = arith.constant 0 : i32
    return %arg0, %arg1 : i32, i32
  }
}

module attributes {stable_mosaic.version = 11 : i64} {
  func.func @_mm_kernel(%arg0: i32, %arg1: i32, %arg2: i32, %arg3: memref<104x128xbf16, #tpu.memory_space<vmem>>, %arg4: memref<128x16xbf16, #tpu.memory_space<vmem>>, %arg5: memref<104x16xf32, #tpu.memory_space<vmem>>, %arg6: memref<104x16xf32, #tpu.memory_space<vmem>>) attributes {dimension_semantics = [#tpu.dimension_semantics<parallel>, #tpu.dimension_semantics<parallel>, #tpu.dimension_semantics<arbitrary>], iteration_bounds = array<i64: 1, 1, 1>, scalar_prefetch = 0 : i64, scratch_operands = 1 : i64, tpu.core_type = #tpu.core_type<tc>, window_params = [{transform_indices = @transform_0, window_bounds = array<i64: 104, 128>}, {transform_indices = @transform_1, window_bounds = array<i64: 128, 16>}, {transform_indices = @transform_2, window_bounds = array<i64: 104, 16>}]} {
    %c0_i32 = arith.constant 0 : i32
    %0 = arith.cmpi eq, %arg2, %c0_i32 : i32
    %1 = arith.extui %0 : i1 to i32
    %c0_i32_0 = arith.constant 0 : i32
    %2 = arith.cmpi ne, %1, %c0_i32_0 : i32
    scf.if %2 {
      %cst_10 = arith.constant 0.000000e+00 : f32
      %12 = vector.broadcast %cst_10 : f32 to vector<104x16xf32>
      %c0_11 = arith.constant 0 : index
      %c0_12 = arith.constant 0 : index
      %13 = vector.load %arg6[%c0_11, %c0_12] : memref<104x16xf32, #tpu.memory_space<vmem>>, vector<104x16xf32>
      tpu.vector_store %arg6[%c0_11, %c0_12], %12 {strides = array<i32>} : memref<104x16xf32, #tpu.memory_space<vmem>>, vector<104x16xf32>,
    } else {
    }
    %c0 = arith.constant 0 : index
    %c0_1 = arith.constant 0 : index
    %3 = vector.load %arg6[%c0, %c0_1] : memref<104x16xf32, #tpu.memory_space<vmem>>, vector<104x16xf32>
    %c0_2 = arith.constant 0 : index
    %c0_3 = arith.constant 0 : index
    %4 = vector.load %arg3[%c0_2, %c0_3] : memref<104x128xbf16, #tpu.memory_space<vmem>>, vector<104x128xbf16>
    %c0_4 = arith.constant 0 : index
    %c0_5 = arith.constant 0 : index
    %5 = vector.load %arg4[%c0_4, %c0_5] : memref<128x16xbf16, #tpu.memory_space<vmem>>, vector<128x16xbf16>
    %cst = arith.constant dense<0.000000e+00> : vector<104x16xf32>
    %6 = tpu.matmul %4, %5, %cst {dimension_numbers = #tpu.dot_dimension_numbers<[1], [0], [0], [1], [0, 0, 1, 1], [], []>} : vector<104x128xbf16>, vector<128x16xbf16>, vector<104x16xf32> -> vector<104x16xf32>
    %7 = arith.addf %3, %6 : vector<104x16xf32>
    %c0_6 = arith.constant 0 : index
    %c0_7 = arith.constant 0 : index
    %8 = vector.load %arg6[%c0_6, %c0_7] : memref<104x16xf32, #tpu.memory_space<vmem>>, vector<104x16xf32>
    tpu.vector_store %arg6[%c0_6, %c0_7], %7 {strides = array<i32>} : memref<104x16xf32, #tpu.memory_space<vmem>>, vector<104x16xf32>,
    %c0_i32_8 = arith.constant 0 : i32
    %9 = arith.cmpi eq, %arg2, %c0_i32_8 : i32
    %10 = arith.extui %9 : i1 to i32
    %c0_i32_9 = arith.constant 0 : i32
    %11 = arith.cmpi ne, %10, %c0_i32_9 : i32
    scf.if %11 {
      %c0_10 = arith.constant 0 : index
      %c0_11 = arith.constant 0 : index
      %12 = vector.load %arg6[%c0_10, %c0_11] : memref<104x16xf32, #tpu.memory_space<vmem>>, vector<104x16xf32>
      %cst_12 = arith.constant 0.000000e+00 : f32
      %13 = vector.broadcast %cst_12 : f32 to vector<104x16xf32>
      %14 = arith.maximumf %12, %13 : vector<104x16xf32>
      %c0_13 = arith.constant 0 : index
      %c0_14 = arith.constant 0 : index
      %15 = vector.load %arg5[%c0_13, %c0_14] : memref<104x16xf32, #tpu.memory_space<vmem>>, vector<104x16xf32>
      tpu.vector_store %arg5[%c0_13, %c0_14], %14 {strides = array<i32>} : memref<104x16xf32, #tpu.memory_space<vmem>>, vector<104x16xf32>,
    } else {
    }
    return
  }
  func.func @transform_0(%arg0: i32, %arg1: i32, %arg2: i32) -> (i32, i32) {
    %c0_i32 = arith.constant 0 : i32
    return %arg0, %arg2 : i32, i32
  }
  func.func @transform_1(%arg0: i32, %arg1: i32, %arg2: i32) -> (i32, i32) {
    %c0_i32 = arith.constant 0 : i32
    return %arg2, %arg1 : i32, i32
  }
  func.func @transform_2(%arg0: i32, %arg1: i32, %arg2: i32) -> (i32, i32) {
    %c0_i32 = arith.constant 0 : i32
    return %arg0, %arg1 : i32, i32
  }
}

module attributes {stable_mosaic.version = 11 : i64} {
  func.func @_mm_kernel(%arg0: i32, %arg1: i32, %arg2: i32, %arg3: memref<104x128xbf16, #tpu.memory_space<vmem>>, %arg4: memref<128x32xbf16, #tpu.memory_space<vmem>>, %arg5: memref<104x32xf32, #tpu.memory_space<vmem>>, %arg6: memref<104x32xf32, #tpu.memory_space<vmem>>) attributes {dimension_semantics = [#tpu.dimension_semantics<parallel>, #tpu.dimension_semantics<parallel>, #tpu.dimension_semantics<arbitrary>], iteration_bounds = array<i64: 1, 1, 1>, scalar_prefetch = 0 : i64, scratch_operands = 1 : i64, tpu.core_type = #tpu.core_type<tc>, window_params = [{transform_indices = @transform_0, window_bounds = array<i64: 104, 128>}, {transform_indices = @transform_1, window_bounds = array<i64: 128, 32>}, {transform_indices = @transform_2, window_bounds = array<i64: 104, 32>}]} {
    %c0_i32 = arith.constant 0 : i32
    %0 = arith.cmpi eq, %arg2, %c0_i32 : i32
    %1 = arith.extui %0 : i1 to i32
    %c0_i32_0 = arith.constant 0 : i32
    %2 = arith.cmpi ne, %1, %c0_i32_0 : i32
    scf.if %2 {
      %cst_10 = arith.constant 0.000000e+00 : f32
      %12 = vector.broadcast %cst_10 : f32 to vector<104x32xf32>
      %c0_11 = arith.constant 0 : index
      %c0_12 = arith.constant 0 : index
      %13 = vector.load %arg6[%c0_11, %c0_12] : memref<104x32xf32, #tpu.memory_space<vmem>>, vector<104x32xf32>
      tpu.vector_store %arg6[%c0_11, %c0_12], %12 {strides = array<i32>} : memref<104x32xf32, #tpu.memory_space<vmem>>, vector<104x32xf32>,
    } else {
    }
    %c0 = arith.constant 0 : index
    %c0_1 = arith.constant 0 : index
    %3 = vector.load %arg6[%c0, %c0_1] : memref<104x32xf32, #tpu.memory_space<vmem>>, vector<104x32xf32>
    %c0_2 = arith.constant 0 : index
    %c0_3 = arith.constant 0 : index
    %4 = vector.load %arg3[%c0_2, %c0_3] : memref<104x128xbf16, #tpu.memory_space<vmem>>, vector<104x128xbf16>
    %c0_4 = arith.constant 0 : index
    %c0_5 = arith.constant 0 : index
    %5 = vector.load %arg4[%c0_4, %c0_5] : memref<128x32xbf16, #tpu.memory_space<vmem>>, vector<128x32xbf16>
    %cst = arith.constant dense<0.000000e+00> : vector<104x32xf32>
    %6 = tpu.matmul %4, %5, %cst {dimension_numbers = #tpu.dot_dimension_numbers<[1], [0], [0], [1], [0, 0, 1, 1], [], []>} : vector<104x128xbf16>, vector<128x32xbf16>, vector<104x32xf32> -> vector<104x32xf32>
    %7 = arith.addf %3, %6 : vector<104x32xf32>
    %c0_6 = arith.constant 0 : index
    %c0_7 = arith.constant 0 : index
    %8 = vector.load %arg6[%c0_6, %c0_7] : memref<104x32xf32, #tpu.memory_space<vmem>>, vector<104x32xf32>
    tpu.vector_store %arg6[%c0_6, %c0_7], %7 {strides = array<i32>} : memref<104x32xf32, #tpu.memory_space<vmem>>, vector<104x32xf32>,
    %c0_i32_8 = arith.constant 0 : i32
    %9 = arith.cmpi eq, %arg2, %c0_i32_8 : i32
    %10 = arith.extui %9 : i1 to i32
    %c0_i32_9 = arith.constant 0 : i32
    %11 = arith.cmpi ne, %10, %c0_i32_9 : i32
    scf.if %11 {
      %c0_10 = arith.constant 0 : index
      %c0_11 = arith.constant 0 : index
      %12 = vector.load %arg6[%c0_10, %c0_11] : memref<104x32xf32, #tpu.memory_space<vmem>>, vector<104x32xf32>
      %cst_12 = arith.constant 0.000000e+00 : f32
      %13 = vector.broadcast %cst_12 : f32 to vector<104x32xf32>
      %14 = arith.maximumf %12, %13 : vector<104x32xf32>
      %c0_13 = arith.constant 0 : index
      %c0_14 = arith.constant 0 : index
      %15 = vector.load %arg5[%c0_13, %c0_14] : memref<104x32xf32, #tpu.memory_space<vmem>>, vector<104x32xf32>
      tpu.vector_store %arg5[%c0_13, %c0_14], %14 {strides = array<i32>} : memref<104x32xf32, #tpu.memory_space<vmem>>, vector<104x32xf32>,
    } else {
    }
    return
  }
  func.func @transform_0(%arg0: i32, %arg1: i32, %arg2: i32) -> (i32, i32) {
    %c0_i32 = arith.constant 0 : i32
    return %arg0, %arg2 : i32, i32
  }
  func.func @transform_1(%arg0: i32, %arg1: i32, %arg2: i32) -> (i32, i32) {
    %c0_i32 = arith.constant 0 : i32
    return %arg2, %arg1 : i32, i32
  }
  func.func @transform_2(%arg0: i32, %arg1: i32, %arg2: i32) -> (i32, i32) {
    %c0_i32 = arith.constant 0 : i32
    return %arg0, %arg1 : i32, i32
  }
}

module attributes {stable_mosaic.version = 11 : i64} {
  func.func @_conv3x3_kernel(%arg0: i32, %arg1: memref<1x110x32xbf16, #tpu.memory_space<vmem>>, %arg2: memref<9x32x128xbf16, #tpu.memory_space<vmem>>, %arg3: memref<1x77x128xf32, #tpu.memory_space<vmem>>) attributes {dimension_semantics = [#tpu.dimension_semantics<parallel>], iteration_bounds = array<i64: 2>, scalar_prefetch = 0 : i64, scratch_operands = 0 : i64, tpu.core_type = #tpu.core_type<tc>, window_params = [{transform_indices = @transform_0, window_bounds = array<i64: 1, 110, 32>}, {pipeline_mode = #tpu.pipeline_mode<synchronous>, transform_indices = @transform_1, window_bounds = array<i64: 9, 32, 128>}, {transform_indices = @transform_2, window_bounds = array<i64: 1, 77, 128>}]} {
    %cst = arith.constant 0.000000e+00 : f32
    %0 = vector.broadcast %cst : f32 to vector<77x128xf32>
    %c0 = arith.constant 0 : index
    %c0_0 = arith.constant 0 : index
    %c0_1 = arith.constant 0 : index
    %1 = vector.load %arg1[%c0, %c0_0, %c0_1] : memref<1x110x32xbf16, #tpu.memory_space<vmem>>, vector<1x77x32xbf16>
    %2 = vector.shape_cast %1 : vector<1x77x32xbf16> to vector<77x32xbf16>
    %c0_2 = arith.constant 0 : index
    %c0_3 = arith.constant 0 : index
    %c0_4 = arith.constant 0 : index
    %3 = vector.load %arg2[%c0_2, %c0_3, %c0_4] : memref<9x32x128xbf16, #tpu.memory_space<vmem>>, vector<1x32x128xbf16>
    %4 = vector.shape_cast %3 : vector<1x32x128xbf16> to vector<32x128xbf16>
    %cst_5 = arith.constant dense<0.000000e+00> : vector<77x128xf32>
    %5 = tpu.matmul %2, %4, %cst_5 {dimension_numbers = #tpu.dot_dimension_numbers<[1], [0], [0], [1], [0, 0, 1, 1], [], []>} : vector<77x32xbf16>, vector<32x128xbf16>, vector<77x128xf32> -> vector<77x128xf32>
    %6 = arith.addf %0, %5 : vector<77x128xf32>
    %c0_6 = arith.constant 0 : index
    %c1 = arith.constant 1 : index
    %c0_7 = arith.constant 0 : index
    %7 = vector.load %arg1[%c0_6, %c1, %c0_7] : memref<1x110x32xbf16, #tpu.memory_space<vmem>>, vector<1x77x32xbf16>
    %8 = vector.shape_cast %7 : vector<1x77x32xbf16> to vector<77x32xbf16>
    %c1_8 = arith.constant 1 : index
    %c0_9 = arith.constant 0 : index
    %c0_10 = arith.constant 0 : index
    %9 = vector.load %arg2[%c1_8, %c0_9, %c0_10] : memref<9x32x128xbf16, #tpu.memory_space<vmem>>, vector<1x32x128xbf16>
    %10 = vector.shape_cast %9 : vector<1x32x128xbf16> to vector<32x128xbf16>
    %cst_11 = arith.constant dense<0.000000e+00> : vector<77x128xf32>
    %11 = tpu.matmul %8, %10, %cst_11 {dimension_numbers = #tpu.dot_dimension_numbers<[1], [0], [0], [1], [0, 0, 1, 1], [], []>} : vector<77x32xbf16>, vector<32x128xbf16>, vector<77x128xf32> -> vector<77x128xf32>
    %12 = arith.addf %6, %11 : vector<77x128xf32>
    %c0_12 = arith.constant 0 : index
    %c2 = arith.constant 2 : index
    %c0_13 = arith.constant 0 : index
    %13 = vector.load %arg1[%c0_12, %c2, %c0_13] : memref<1x110x32xbf16, #tpu.memory_space<vmem>>, vector<1x77x32xbf16>
    %14 = vector.shape_cast %13 : vector<1x77x32xbf16> to vector<77x32xbf16>
    %c2_14 = arith.constant 2 : index
    %c0_15 = arith.constant 0 : index
    %c0_16 = arith.constant 0 : index
    %15 = vector.load %arg2[%c2_14, %c0_15, %c0_16] : memref<9x32x128xbf16, #tpu.memory_space<vmem>>, vector<1x32x128xbf16>
    %16 = vector.shape_cast %15 : vector<1x32x128xbf16> to vector<32x128xbf16>
    %cst_17 = arith.constant dense<0.000000e+00> : vector<77x128xf32>
    %17 = tpu.matmul %14, %16, %cst_17 {dimension_numbers = #tpu.dot_dimension_numbers<[1], [0], [0], [1], [0, 0, 1, 1], [], []>} : vector<77x32xbf16>, vector<32x128xbf16>, vector<77x128xf32> -> vector<77x128xf32>
    %18 = arith.addf %12, %17 : vector<77x128xf32>
    %c0_18 = arith.constant 0 : index
    %c11 = arith.constant 11 : index
    %c0_19 = arith.constant 0 : index
    %19 = vector.load %arg1[%c0_18, %c11, %c0_19] : memref<1x110x32xbf16, #tpu.memory_space<vmem>>, vector<1x77x32xbf16>
    %20 = vector.shape_cast %19 : vector<1x77x32xbf16> to vector<77x32xbf16>
    %c3 = arith.constant 3 : index
    %c0_20 = arith.constant 0 : index
    %c0_21 = arith.constant 0 : index
    %21 = vector.load %arg2[%c3, %c0_20, %c0_21] : memref<9x32x128xbf16, #tpu.memory_space<vmem>>, vector<1x32x128xbf16>
    %22 = vector.shape_cast %21 : vector<1x32x128xbf16> to vector<32x128xbf16>
    %cst_22 = arith.constant dense<0.000000e+00> : vector<77x128xf32>
    %23 = tpu.matmul %20, %22, %cst_22 {dimension_numbers = #tpu.dot_dimension_numbers<[1], [0], [0], [1], [0, 0, 1, 1], [], []>} : vector<77x32xbf16>, vector<32x128xbf16>, vector<77x128xf32> -> vector<77x128xf32>
    %24 = arith.addf %18, %23 : vector<77x128xf32>
    %c0_23 = arith.constant 0 : index
    %c12 = arith.constant 12 : index
    %c0_24 = arith.constant 0 : index
    %25 = vector.load %arg1[%c0_23, %c12, %c0_24] : memref<1x110x32xbf16, #tpu.memory_space<vmem>>, vector<1x77x32xbf16>
    %26 = vector.shape_cast %25 : vector<1x77x32xbf16> to vector<77x32xbf16>
    %c4 = arith.constant 4 : index
    %c0_25 = arith.constant 0 : index
    %c0_26 = arith.constant 0 : index
    %27 = vector.load %arg2[%c4, %c0_25, %c0_26] : memref<9x32x128xbf16, #tpu.memory_space<vmem>>, vector<1x32x128xbf16>
    %28 = vector.shape_cast %27 : vector<1x32x128xbf16> to vector<32x128xbf16>
    %cst_27 = arith.constant dense<0.000000e+00> : vector<77x128xf32>
    %29 = tpu.matmul %26, %28, %cst_27 {dimension_numbers = #tpu.dot_dimension_numbers<[1], [0], [0], [1], [0, 0, 1, 1], [], []>} : vector<77x32xbf16>, vector<32x128xbf16>, vector<77x128xf32> -> vector<77x128xf32>
    %30 = arith.addf %24, %29 : vector<77x128xf32>
    %c0_28 = arith.constant 0 : index
    %c13 = arith.constant 13 : index
    %c0_29 = arith.constant 0 : index
    %31 = vector.load %arg1[%c0_28, %c13, %c0_29] : memref<1x110x32xbf16, #tpu.memory_space<vmem>>, vector<1x77x32xbf16>
    %32 = vector.shape_cast %31 : vector<1x77x32xbf16> to vector<77x32xbf16>
    %c5 = arith.constant 5 : index
    %c0_30 = arith.constant 0 : index
    %c0_31 = arith.constant 0 : index
    %33 = vector.load %arg2[%c5, %c0_30, %c0_31] : memref<9x32x128xbf16, #tpu.memory_space<vmem>>, vector<1x32x128xbf16>
    %34 = vector.shape_cast %33 : vector<1x32x128xbf16> to vector<32x128xbf16>
    %cst_32 = arith.constant dense<0.000000e+00> : vector<77x128xf32>
    %35 = tpu.matmul %32, %34, %cst_32 {dimension_numbers = #tpu.dot_dimension_numbers<[1], [0], [0], [1], [0, 0, 1, 1], [], []>} : vector<77x32xbf16>, vector<32x128xbf16>, vector<77x128xf32> -> vector<77x128xf32>
    %36 = arith.addf %30, %35 : vector<77x128xf32>
    %c0_33 = arith.constant 0 : index
    %c22 = arith.constant 22 : index
    %c0_34 = arith.constant 0 : index
    %37 = vector.load %arg1[%c0_33, %c22, %c0_34] : memref<1x110x32xbf16, #tpu.memory_space<vmem>>, vector<1x77x32xbf16>
    %38 = vector.shape_cast %37 : vector<1x77x32xbf16> to vector<77x32xbf16>
    %c6 = arith.constant 6 : index
    %c0_35 = arith.constant 0 : index
    %c0_36 = arith.constant 0 : index
    %39 = vector.load %arg2[%c6, %c0_35, %c0_36] : memref<9x32x128xbf16, #tpu.memory_space<vmem>>, vector<1x32x128xbf16>
    %40 = vector.shape_cast %39 : vector<1x32x128xbf16> to vector<32x128xbf16>
    %cst_37 = arith.constant dense<0.000000e+00> : vector<77x128xf32>
    %41 = tpu.matmul %38, %40, %cst_37 {dimension_numbers = #tpu.dot_dimension_numbers<[1], [0], [0], [1], [0, 0, 1, 1], [], []>} : vector<77x32xbf16>, vector<32x128xbf16>, vector<77x128xf32> -> vector<77x128xf32>
    %42 = arith.addf %36, %41 : vector<77x128xf32>
    %c0_38 = arith.constant 0 : index
    %c23 = arith.constant 23 : index
    %c0_39 = arith.constant 0 : index
    %43 = vector.load %arg1[%c0_38, %c23, %c0_39] : memref<1x110x32xbf16, #tpu.memory_space<vmem>>, vector<1x77x32xbf16>
    %44 = vector.shape_cast %43 : vector<1x77x32xbf16> to vector<77x32xbf16>
    %c7 = arith.constant 7 : index
    %c0_40 = arith.constant 0 : index
    %c0_41 = arith.constant 0 : index
    %45 = vector.load %arg2[%c7, %c0_40, %c0_41] : memref<9x32x128xbf16, #tpu.memory_space<vmem>>, vector<1x32x128xbf16>
    %46 = vector.shape_cast %45 : vector<1x32x128xbf16> to vector<32x128xbf16>
    %cst_42 = arith.constant dense<0.000000e+00> : vector<77x128xf32>
    %47 = tpu.matmul %44, %46, %cst_42 {dimension_numbers = #tpu.dot_dimension_numbers<[1], [0], [0], [1], [0, 0, 1, 1], [], []>} : vector<77x32xbf16>, vector<32x128xbf16>, vector<77x128xf32> -> vector<77x128xf32>
    %48 = arith.addf %42, %47 : vector<77x128xf32>
    %c0_43 = arith.constant 0 : index
    %c24 = arith.constant 24 : index
    %c0_44 = arith.constant 0 : index
    %49 = vector.load %arg1[%c0_43, %c24, %c0_44] : memref<1x110x32xbf16, #tpu.memory_space<vmem>>, vector<1x77x32xbf16>
    %50 = vector.shape_cast %49 : vector<1x77x32xbf16> to vector<77x32xbf16>
    %c8 = arith.constant 8 : index
    %c0_45 = arith.constant 0 : index
    %c0_46 = arith.constant 0 : index
    %51 = vector.load %arg2[%c8, %c0_45, %c0_46] : memref<9x32x128xbf16, #tpu.memory_space<vmem>>, vector<1x32x128xbf16>
    %52 = vector.shape_cast %51 : vector<1x32x128xbf16> to vector<32x128xbf16>
    %cst_47 = arith.constant dense<0.000000e+00> : vector<77x128xf32>
    %53 = tpu.matmul %50, %52, %cst_47 {dimension_numbers = #tpu.dot_dimension_numbers<[1], [0], [0], [1], [0, 0, 1, 1], [], []>} : vector<77x32xbf16>, vector<32x128xbf16>, vector<77x128xf32> -> vector<77x128xf32>
    %54 = arith.addf %48, %53 : vector<77x128xf32>
    %cst_48 = arith.constant 0.000000e+00 : f32
    %55 = vector.broadcast %cst_48 : f32 to vector<77x128xf32>
    %56 = arith.maximumf %54, %55 : vector<77x128xf32>
    %c0_49 = arith.constant 0 : index
    %c0_50 = arith.constant 0 : index
    %c0_51 = arith.constant 0 : index
    %57 = vector.load %arg3[%c0_49, %c0_50, %c0_51] : memref<1x77x128xf32, #tpu.memory_space<vmem>>, vector<1x77x128xf32>
    %58 = vector.shape_cast %57 : vector<1x77x128xf32> to vector<77x128xf32>
    %59 = vector.shape_cast %56 : vector<77x128xf32> to vector<1x77x128xf32>
    tpu.vector_store %arg3[%c0_49, %c0_50, %c0_51], %59 {strides = array<i32>} : memref<1x77x128xf32, #tpu.memory_space<vmem>>, vector<1x77x128xf32>,
    return
  }
  func.func @transform_0(%arg0: i32) -> (i32, i32, i32) {
    %c0_i32 = arith.constant 0 : i32
    %c0_i32_0 = arith.constant 0 : i32
    %c0_i32_1 = arith.constant 0 : i32
    return %arg0, %c0_i32, %c0_i32_0 : i32, i32, i32
  }
  func.func @transform_1(%arg0: i32) -> (i32, i32, i32) {
    %c0_i32 = arith.constant 0 : i32
    %c0_i32_0 = arith.constant 0 : i32
    %c0_i32_1 = arith.constant 0 : i32
    %c0_i32_2 = arith.constant 0 : i32
    return %c0_i32, %c0_i32_0, %c0_i32_1 : i32, i32, i32
  }
  func.func @transform_2(%arg0: i32) -> (i32, i32, i32) {
    %c0_i32 = arith.constant 0 : i32
    %c0_i32_0 = arith.constant 0 : i32
    %c0_i32_1 = arith.constant 0 : i32
    return %arg0, %c0_i32, %c0_i32_0 : i32, i32, i32
  }
}

module attributes {stable_mosaic.version = 11 : i64} {
  func.func @_mm_kernel(%arg0: i32, %arg1: i32, %arg2: i32, %arg3: memref<104x32xbf16, #tpu.memory_space<vmem>>, %arg4: memref<32x128xbf16, #tpu.memory_space<vmem>>, %arg5: memref<104x128xf32, #tpu.memory_space<vmem>>, %arg6: memref<104x128xf32, #tpu.memory_space<vmem>>) attributes {dimension_semantics = [#tpu.dimension_semantics<parallel>, #tpu.dimension_semantics<parallel>, #tpu.dimension_semantics<arbitrary>], iteration_bounds = array<i64: 1, 1, 1>, scalar_prefetch = 0 : i64, scratch_operands = 1 : i64, tpu.core_type = #tpu.core_type<tc>, window_params = [{transform_indices = @transform_0, window_bounds = array<i64: 104, 32>}, {transform_indices = @transform_1, window_bounds = array<i64: 32, 128>}, {transform_indices = @transform_2, window_bounds = array<i64: 104, 128>}]} {
    %c0_i32 = arith.constant 0 : i32
    %0 = arith.cmpi eq, %arg2, %c0_i32 : i32
    %1 = arith.extui %0 : i1 to i32
    %c0_i32_0 = arith.constant 0 : i32
    %2 = arith.cmpi ne, %1, %c0_i32_0 : i32
    scf.if %2 {
      %cst_10 = arith.constant 0.000000e+00 : f32
      %12 = vector.broadcast %cst_10 : f32 to vector<104x128xf32>
      %c0_11 = arith.constant 0 : index
      %c0_12 = arith.constant 0 : index
      %13 = vector.load %arg6[%c0_11, %c0_12] : memref<104x128xf32, #tpu.memory_space<vmem>>, vector<104x128xf32>
      tpu.vector_store %arg6[%c0_11, %c0_12], %12 {strides = array<i32>} : memref<104x128xf32, #tpu.memory_space<vmem>>, vector<104x128xf32>,
    } else {
    }
    %c0 = arith.constant 0 : index
    %c0_1 = arith.constant 0 : index
    %3 = vector.load %arg6[%c0, %c0_1] : memref<104x128xf32, #tpu.memory_space<vmem>>, vector<104x128xf32>
    %c0_2 = arith.constant 0 : index
    %c0_3 = arith.constant 0 : index
    %4 = vector.load %arg3[%c0_2, %c0_3] : memref<104x32xbf16, #tpu.memory_space<vmem>>, vector<104x32xbf16>
    %c0_4 = arith.constant 0 : index
    %c0_5 = arith.constant 0 : index
    %5 = vector.load %arg4[%c0_4, %c0_5] : memref<32x128xbf16, #tpu.memory_space<vmem>>, vector<32x128xbf16>
    %cst = arith.constant dense<0.000000e+00> : vector<104x128xf32>
    %6 = tpu.matmul %4, %5, %cst {dimension_numbers = #tpu.dot_dimension_numbers<[1], [0], [0], [1], [0, 0, 1, 1], [], []>} : vector<104x32xbf16>, vector<32x128xbf16>, vector<104x128xf32> -> vector<104x128xf32>
    %7 = arith.addf %3, %6 : vector<104x128xf32>
    %c0_6 = arith.constant 0 : index
    %c0_7 = arith.constant 0 : index
    %8 = vector.load %arg6[%c0_6, %c0_7] : memref<104x128xf32, #tpu.memory_space<vmem>>, vector<104x128xf32>
    tpu.vector_store %arg6[%c0_6, %c0_7], %7 {strides = array<i32>} : memref<104x128xf32, #tpu.memory_space<vmem>>, vector<104x128xf32>,
    %c0_i32_8 = arith.constant 0 : i32
    %9 = arith.cmpi eq, %arg2, %c0_i32_8 : i32
    %10 = arith.extui %9 : i1 to i32
    %c0_i32_9 = arith.constant 0 : i32
    %11 = arith.cmpi ne, %10, %c0_i32_9 : i32
    scf.if %11 {
      %c0_10 = arith.constant 0 : index
      %c0_11 = arith.constant 0 : index
      %12 = vector.load %arg6[%c0_10, %c0_11] : memref<104x128xf32, #tpu.memory_space<vmem>>, vector<104x128xf32>
      %cst_12 = arith.constant 0.000000e+00 : f32
      %13 = vector.broadcast %cst_12 : f32 to vector<104x128xf32>
      %14 = arith.maximumf %12, %13 : vector<104x128xf32>
      %c0_13 = arith.constant 0 : index
      %c0_14 = arith.constant 0 : index
      %15 = vector.load %arg5[%c0_13, %c0_14] : memref<104x128xf32, #tpu.memory_space<vmem>>, vector<104x128xf32>
      tpu.vector_store %arg5[%c0_13, %c0_14], %14 {strides = array<i32>} : memref<104x128xf32, #tpu.memory_space<vmem>>, vector<104x128xf32>,
    } else {
    }
    return
  }
  func.func @transform_0(%arg0: i32, %arg1: i32, %arg2: i32) -> (i32, i32) {
    %c0_i32 = arith.constant 0 : i32
    return %arg0, %arg2 : i32, i32
  }
  func.func @transform_1(%arg0: i32, %arg1: i32, %arg2: i32) -> (i32, i32) {
    %c0_i32 = arith.constant 0 : i32
    return %arg2, %arg1 : i32, i32
  }
  func.func @transform_2(%arg0: i32, %arg1: i32, %arg2: i32) -> (i32, i32) {
    %c0_i32 = arith.constant 0 : i32
    return %arg0, %arg1 : i32, i32
  }
}

module attributes {stable_mosaic.version = 11 : i64} {
  func.func @_max9_kernel(%arg0: i32, %arg1: memref<9x24x256xf32, #tpu.memory_space<vmem>>, %arg2: memref<24x256xf32, #tpu.memory_space<vmem>>) attributes {dimension_semantics = [#tpu.dimension_semantics<parallel>], iteration_bounds = array<i64: 1>, scalar_prefetch = 0 : i64, scratch_operands = 0 : i64, tpu.core_type = #tpu.core_type<tc>, window_params = [{transform_indices = @transform_0, window_bounds = array<i64: 9, 24, 256>}, {transform_indices = @transform_1, window_bounds = array<i64: 24, 256>}]} {
    %c0 = arith.constant 0 : index
    %c0_0 = arith.constant 0 : index
    %c0_1 = arith.constant 0 : index
    %0 = vector.load %arg1[%c0, %c0_0, %c0_1] : memref<9x24x256xf32, #tpu.memory_space<vmem>>, vector<9x24x256xf32>
    %cst = arith.constant dense<0xFF800000> : vector<24x256xf32>
    %1 = vector.multi_reduction <maximumf>, %0, %cst [0] : vector<9x24x256xf32> to vector<24x256xf32>
    %c0_2 = arith.constant 0 : index
    %c0_3 = arith.constant 0 : index
    %2 = vector.load %arg2[%c0_2, %c0_3] : memref<24x256xf32, #tpu.memory_space<vmem>>, vector<24x256xf32>
    tpu.vector_store %arg2[%c0_2, %c0_3], %1 {strides = array<i32>} : memref<24x256xf32, #tpu.memory_space<vmem>>, vector<24x256xf32>,
    return
  }
  func.func @transform_0(%arg0: i32) -> (i32, i32, i32) {
    %c0_i32 = arith.constant 0 : i32
    %c0_i32_0 = arith.constant 0 : i32
    %c0_i32_1 = arith.constant 0 : i32
    return %c0_i32, %arg0, %c0_i32_0 : i32, i32, i32
  }
  func.func @transform_1(%arg0: i32) -> (i32, i32) {
    %c0_i32 = arith.constant 0 : i32
    %c0_i32_0 = arith.constant 0 : i32
    return %arg0, %c0_i32 : i32, i32
  }
}

module attributes {stable_mosaic.version = 11 : i64} {
  func.func @_mm_kernel(%arg0: i32, %arg1: i32, %arg2: i32, %arg3: memref<24x256xbf16, #tpu.memory_space<vmem>>, %arg4: memref<256x32xbf16, #tpu.memory_space<vmem>>, %arg5: memref<24x32xf32, #tpu.memory_space<vmem>>, %arg6: memref<24x32xf32, #tpu.memory_space<vmem>>) attributes {dimension_semantics = [#tpu.dimension_semantics<parallel>, #tpu.dimension_semantics<parallel>, #tpu.dimension_semantics<arbitrary>], iteration_bounds = array<i64: 1, 1, 1>, scalar_prefetch = 0 : i64, scratch_operands = 1 : i64, tpu.core_type = #tpu.core_type<tc>, window_params = [{transform_indices = @transform_0, window_bounds = array<i64: 24, 256>}, {transform_indices = @transform_1, window_bounds = array<i64: 256, 32>}, {transform_indices = @transform_2, window_bounds = array<i64: 24, 32>}]} {
    %c0_i32 = arith.constant 0 : i32
    %0 = arith.cmpi eq, %arg2, %c0_i32 : i32
    %1 = arith.extui %0 : i1 to i32
    %c0_i32_0 = arith.constant 0 : i32
    %2 = arith.cmpi ne, %1, %c0_i32_0 : i32
    scf.if %2 {
      %cst_10 = arith.constant 0.000000e+00 : f32
      %12 = vector.broadcast %cst_10 : f32 to vector<24x32xf32>
      %c0_11 = arith.constant 0 : index
      %c0_12 = arith.constant 0 : index
      %13 = vector.load %arg6[%c0_11, %c0_12] : memref<24x32xf32, #tpu.memory_space<vmem>>, vector<24x32xf32>
      tpu.vector_store %arg6[%c0_11, %c0_12], %12 {strides = array<i32>} : memref<24x32xf32, #tpu.memory_space<vmem>>, vector<24x32xf32>,
    } else {
    }
    %c0 = arith.constant 0 : index
    %c0_1 = arith.constant 0 : index
    %3 = vector.load %arg6[%c0, %c0_1] : memref<24x32xf32, #tpu.memory_space<vmem>>, vector<24x32xf32>
    %c0_2 = arith.constant 0 : index
    %c0_3 = arith.constant 0 : index
    %4 = vector.load %arg3[%c0_2, %c0_3] : memref<24x256xbf16, #tpu.memory_space<vmem>>, vector<24x256xbf16>
    %c0_4 = arith.constant 0 : index
    %c0_5 = arith.constant 0 : index
    %5 = vector.load %arg4[%c0_4, %c0_5] : memref<256x32xbf16, #tpu.memory_space<vmem>>, vector<256x32xbf16>
    %cst = arith.constant dense<0.000000e+00> : vector<24x32xf32>
    %6 = tpu.matmul %4, %5, %cst {dimension_numbers = #tpu.dot_dimension_numbers<[1], [0], [0], [1], [0, 0, 1, 1], [], []>} : vector<24x256xbf16>, vector<256x32xbf16>, vector<24x32xf32> -> vector<24x32xf32>
    %7 = arith.addf %3, %6 : vector<24x32xf32>
    %c0_6 = arith.constant 0 : index
    %c0_7 = arith.constant 0 : index
    %8 = vector.load %arg6[%c0_6, %c0_7] : memref<24x32xf32, #tpu.memory_space<vmem>>, vector<24x32xf32>
    tpu.vector_store %arg6[%c0_6, %c0_7], %7 {strides = array<i32>} : memref<24x32xf32, #tpu.memory_space<vmem>>, vector<24x32xf32>,
    %c0_i32_8 = arith.constant 0 : i32
    %9 = arith.cmpi eq, %arg2, %c0_i32_8 : i32
    %10 = arith.extui %9 : i1 to i32
    %c0_i32_9 = arith.constant 0 : i32
    %11 = arith.cmpi ne, %10, %c0_i32_9 : i32
    scf.if %11 {
      %c0_10 = arith.constant 0 : index
      %c0_11 = arith.constant 0 : index
      %12 = vector.load %arg6[%c0_10, %c0_11] : memref<24x32xf32, #tpu.memory_space<vmem>>, vector<24x32xf32>
      %cst_12 = arith.constant 0.000000e+00 : f32
      %13 = vector.broadcast %cst_12 : f32 to vector<24x32xf32>
      %14 = arith.maximumf %12, %13 : vector<24x32xf32>
      %c0_13 = arith.constant 0 : index
      %c0_14 = arith.constant 0 : index
      %15 = vector.load %arg5[%c0_13, %c0_14] : memref<24x32xf32, #tpu.memory_space<vmem>>, vector<24x32xf32>
      tpu.vector_store %arg5[%c0_13, %c0_14], %14 {strides = array<i32>} : memref<24x32xf32, #tpu.memory_space<vmem>>, vector<24x32xf32>,
    } else {
    }
    return
  }
  func.func @transform_0(%arg0: i32, %arg1: i32, %arg2: i32) -> (i32, i32) {
    %c0_i32 = arith.constant 0 : i32
    return %arg0, %arg2 : i32, i32
  }
  func.func @transform_1(%arg0: i32, %arg1: i32, %arg2: i32) -> (i32, i32) {
    %c0_i32 = arith.constant 0 : i32
    return %arg2, %arg1 : i32, i32
  }
  func.func @transform_2(%arg0: i32, %arg1: i32, %arg2: i32) -> (i32, i32) {
    %c0_i32 = arith.constant 0 : i32
    return %arg0, %arg1 : i32, i32
  }
}

module attributes {stable_mosaic.version = 11 : i64} {
  func.func @_conv3x3_kernel(%arg0: i32, %arg1: memref<1x42x32xbf16, #tpu.memory_space<vmem>>, %arg2: memref<9x32x128xbf16, #tpu.memory_space<vmem>>, %arg3: memref<1x21x128xf32, #tpu.memory_space<vmem>>) attributes {dimension_semantics = [#tpu.dimension_semantics<parallel>], iteration_bounds = array<i64: 2>, scalar_prefetch = 0 : i64, scratch_operands = 0 : i64, tpu.core_type = #tpu.core_type<tc>, window_params = [{transform_indices = @transform_0, window_bounds = array<i64: 1, 42, 32>}, {pipeline_mode = #tpu.pipeline_mode<synchronous>, transform_indices = @transform_1, window_bounds = array<i64: 9, 32, 128>}, {transform_indices = @transform_2, window_bounds = array<i64: 1, 21, 128>}]} {
    %cst = arith.constant 0.000000e+00 : f32
    %0 = vector.broadcast %cst : f32 to vector<21x128xf32>
    %c0 = arith.constant 0 : index
    %c0_0 = arith.constant 0 : index
    %c0_1 = arith.constant 0 : index
    %1 = vector.load %arg1[%c0, %c0_0, %c0_1] : memref<1x42x32xbf16, #tpu.memory_space<vmem>>, vector<1x21x32xbf16>
    %2 = vector.shape_cast %1 : vector<1x21x32xbf16> to vector<21x32xbf16>
    %c0_2 = arith.constant 0 : index
    %c0_3 = arith.constant 0 : index
    %c0_4 = arith.constant 0 : index
    %3 = vector.load %arg2[%c0_2, %c0_3, %c0_4] : memref<9x32x128xbf16, #tpu.memory_space<vmem>>, vector<1x32x128xbf16>
    %4 = vector.shape_cast %3 : vector<1x32x128xbf16> to vector<32x128xbf16>
    %cst_5 = arith.constant dense<0.000000e+00> : vector<21x128xf32>
    %5 = tpu.matmul %2, %4, %cst_5 {dimension_numbers = #tpu.dot_dimension_numbers<[1], [0], [0], [1], [0, 0, 1, 1], [], []>} : vector<21x32xbf16>, vector<32x128xbf16>, vector<21x128xf32> -> vector<21x128xf32>
    %6 = arith.addf %0, %5 : vector<21x128xf32>
    %c0_6 = arith.constant 0 : index
    %c1 = arith.constant 1 : index
    %c0_7 = arith.constant 0 : index
    %7 = vector.load %arg1[%c0_6, %c1, %c0_7] : memref<1x42x32xbf16, #tpu.memory_space<vmem>>, vector<1x21x32xbf16>
    %8 = vector.shape_cast %7 : vector<1x21x32xbf16> to vector<21x32xbf16>
    %c1_8 = arith.constant 1 : index
    %c0_9 = arith.constant 0 : index
    %c0_10 = arith.constant 0 : index
    %9 = vector.load %arg2[%c1_8, %c0_9, %c0_10] : memref<9x32x128xbf16, #tpu.memory_space<vmem>>, vector<1x32x128xbf16>
    %10 = vector.shape_cast %9 : vector<1x32x128xbf16> to vector<32x128xbf16>
    %cst_11 = arith.constant dense<0.000000e+00> : vector<21x128xf32>
    %11 = tpu.matmul %8, %10, %cst_11 {dimension_numbers = #tpu.dot_dimension_numbers<[1], [0], [0], [1], [0, 0, 1, 1], [], []>} : vector<21x32xbf16>, vector<32x128xbf16>, vector<21x128xf32> -> vector<21x128xf32>
    %12 = arith.addf %6, %11 : vector<21x128xf32>
    %c0_12 = arith.constant 0 : index
    %c2 = arith.constant 2 : index
    %c0_13 = arith.constant 0 : index
    %13 = vector.load %arg1[%c0_12, %c2, %c0_13] : memref<1x42x32xbf16, #tpu.memory_space<vmem>>, vector<1x21x32xbf16>
    %14 = vector.shape_cast %13 : vector<1x21x32xbf16> to vector<21x32xbf16>
    %c2_14 = arith.constant 2 : index
    %c0_15 = arith.constant 0 : index
    %c0_16 = arith.constant 0 : index
    %15 = vector.load %arg2[%c2_14, %c0_15, %c0_16] : memref<9x32x128xbf16, #tpu.memory_space<vmem>>, vector<1x32x128xbf16>
    %16 = vector.shape_cast %15 : vector<1x32x128xbf16> to vector<32x128xbf16>
    %cst_17 = arith.constant dense<0.000000e+00> : vector<21x128xf32>
    %17 = tpu.matmul %14, %16, %cst_17 {dimension_numbers = #tpu.dot_dimension_numbers<[1], [0], [0], [1], [0, 0, 1, 1], [], []>} : vector<21x32xbf16>, vector<32x128xbf16>, vector<21x128xf32> -> vector<21x128xf32>
    %18 = arith.addf %12, %17 : vector<21x128xf32>
    %c0_18 = arith.constant 0 : index
    %c7 = arith.constant 7 : index
    %c0_19 = arith.constant 0 : index
    %19 = vector.load %arg1[%c0_18, %c7, %c0_19] : memref<1x42x32xbf16, #tpu.memory_space<vmem>>, vector<1x21x32xbf16>
    %20 = vector.shape_cast %19 : vector<1x21x32xbf16> to vector<21x32xbf16>
    %c3 = arith.constant 3 : index
    %c0_20 = arith.constant 0 : index
    %c0_21 = arith.constant 0 : index
    %21 = vector.load %arg2[%c3, %c0_20, %c0_21] : memref<9x32x128xbf16, #tpu.memory_space<vmem>>, vector<1x32x128xbf16>
    %22 = vector.shape_cast %21 : vector<1x32x128xbf16> to vector<32x128xbf16>
    %cst_22 = arith.constant dense<0.000000e+00> : vector<21x128xf32>
    %23 = tpu.matmul %20, %22, %cst_22 {dimension_numbers = #tpu.dot_dimension_numbers<[1], [0], [0], [1], [0, 0, 1, 1], [], []>} : vector<21x32xbf16>, vector<32x128xbf16>, vector<21x128xf32> -> vector<21x128xf32>
    %24 = arith.addf %18, %23 : vector<21x128xf32>
    %c0_23 = arith.constant 0 : index
    %c8 = arith.constant 8 : index
    %c0_24 = arith.constant 0 : index
    %25 = vector.load %arg1[%c0_23, %c8, %c0_24] : memref<1x42x32xbf16, #tpu.memory_space<vmem>>, vector<1x21x32xbf16>
    %26 = vector.shape_cast %25 : vector<1x21x32xbf16> to vector<21x32xbf16>
    %c4 = arith.constant 4 : index
    %c0_25 = arith.constant 0 : index
    %c0_26 = arith.constant 0 : index
    %27 = vector.load %arg2[%c4, %c0_25, %c0_26] : memref<9x32x128xbf16, #tpu.memory_space<vmem>>, vector<1x32x128xbf16>
    %28 = vector.shape_cast %27 : vector<1x32x128xbf16> to vector<32x128xbf16>
    %cst_27 = arith.constant dense<0.000000e+00> : vector<21x128xf32>
    %29 = tpu.matmul %26, %28, %cst_27 {dimension_numbers = #tpu.dot_dimension_numbers<[1], [0], [0], [1], [0, 0, 1, 1], [], []>} : vector<21x32xbf16>, vector<32x128xbf16>, vector<21x128xf32> -> vector<21x128xf32>
    %30 = arith.addf %24, %29 : vector<21x128xf32>
    %c0_28 = arith.constant 0 : index
    %c9 = arith.constant 9 : index
    %c0_29 = arith.constant 0 : index
    %31 = vector.load %arg1[%c0_28, %c9, %c0_29] : memref<1x42x32xbf16, #tpu.memory_space<vmem>>, vector<1x21x32xbf16>
    %32 = vector.shape_cast %31 : vector<1x21x32xbf16> to vector<21x32xbf16>
    %c5 = arith.constant 5 : index
    %c0_30 = arith.constant 0 : index
    %c0_31 = arith.constant 0 : index
    %33 = vector.load %arg2[%c5, %c0_30, %c0_31] : memref<9x32x128xbf16, #tpu.memory_space<vmem>>, vector<1x32x128xbf16>
    %34 = vector.shape_cast %33 : vector<1x32x128xbf16> to vector<32x128xbf16>
    %cst_32 = arith.constant dense<0.000000e+00> : vector<21x128xf32>
    %35 = tpu.matmul %32, %34, %cst_32 {dimension_numbers = #tpu.dot_dimension_numbers<[1], [0], [0], [1], [0, 0, 1, 1], [], []>} : vector<21x32xbf16>, vector<32x128xbf16>, vector<21x128xf32> -> vector<21x128xf32>
    %36 = arith.addf %30, %35 : vector<21x128xf32>
    %c0_33 = arith.constant 0 : index
    %c14 = arith.constant 14 : index
    %c0_34 = arith.constant 0 : index
    %37 = vector.load %arg1[%c0_33, %c14, %c0_34] : memref<1x42x32xbf16, #tpu.memory_space<vmem>>, vector<1x21x32xbf16>
    %38 = vector.shape_cast %37 : vector<1x21x32xbf16> to vector<21x32xbf16>
    %c6 = arith.constant 6 : index
    %c0_35 = arith.constant 0 : index
    %c0_36 = arith.constant 0 : index
    %39 = vector.load %arg2[%c6, %c0_35, %c0_36] : memref<9x32x128xbf16, #tpu.memory_space<vmem>>, vector<1x32x128xbf16>
    %40 = vector.shape_cast %39 : vector<1x32x128xbf16> to vector<32x128xbf16>
    %cst_37 = arith.constant dense<0.000000e+00> : vector<21x128xf32>
    %41 = tpu.matmul %38, %40, %cst_37 {dimension_numbers = #tpu.dot_dimension_numbers<[1], [0], [0], [1], [0, 0, 1, 1], [], []>} : vector<21x32xbf16>, vector<32x128xbf16>, vector<21x128xf32> -> vector<21x128xf32>
    %42 = arith.addf %36, %41 : vector<21x128xf32>
    %c0_38 = arith.constant 0 : index
    %c15 = arith.constant 15 : index
    %c0_39 = arith.constant 0 : index
    %43 = vector.load %arg1[%c0_38, %c15, %c0_39] : memref<1x42x32xbf16, #tpu.memory_space<vmem>>, vector<1x21x32xbf16>
    %44 = vector.shape_cast %43 : vector<1x21x32xbf16> to vector<21x32xbf16>
    %c7_40 = arith.constant 7 : index
    %c0_41 = arith.constant 0 : index
    %c0_42 = arith.constant 0 : index
    %45 = vector.load %arg2[%c7_40, %c0_41, %c0_42] : memref<9x32x128xbf16, #tpu.memory_space<vmem>>, vector<1x32x128xbf16>
    %46 = vector.shape_cast %45 : vector<1x32x128xbf16> to vector<32x128xbf16>
    %cst_43 = arith.constant dense<0.000000e+00> : vector<21x128xf32>
    %47 = tpu.matmul %44, %46, %cst_43 {dimension_numbers = #tpu.dot_dimension_numbers<[1], [0], [0], [1], [0, 0, 1, 1], [], []>} : vector<21x32xbf16>, vector<32x128xbf16>, vector<21x128xf32> -> vector<21x128xf32>
    %48 = arith.addf %42, %47 : vector<21x128xf32>
    %c0_44 = arith.constant 0 : index
    %c16 = arith.constant 16 : index
    %c0_45 = arith.constant 0 : index
    %49 = vector.load %arg1[%c0_44, %c16, %c0_45] : memref<1x42x32xbf16, #tpu.memory_space<vmem>>, vector<1x21x32xbf16>
    %50 = vector.shape_cast %49 : vector<1x21x32xbf16> to vector<21x32xbf16>
    %c8_46 = arith.constant 8 : index
    %c0_47 = arith.constant 0 : index
    %c0_48 = arith.constant 0 : index
    %51 = vector.load %arg2[%c8_46, %c0_47, %c0_48] : memref<9x32x128xbf16, #tpu.memory_space<vmem>>, vector<1x32x128xbf16>
    %52 = vector.shape_cast %51 : vector<1x32x128xbf16> to vector<32x128xbf16>
    %cst_49 = arith.constant dense<0.000000e+00> : vector<21x128xf32>
    %53 = tpu.matmul %50, %52, %cst_49 {dimension_numbers = #tpu.dot_dimension_numbers<[1], [0], [0], [1], [0, 0, 1, 1], [], []>} : vector<21x32xbf16>, vector<32x128xbf16>, vector<21x128xf32> -> vector<21x128xf32>
    %54 = arith.addf %48, %53 : vector<21x128xf32>
    %cst_50 = arith.constant 0.000000e+00 : f32
    %55 = vector.broadcast %cst_50 : f32 to vector<21x128xf32>
    %56 = arith.maximumf %54, %55 : vector<21x128xf32>
    %c0_51 = arith.constant 0 : index
    %c0_52 = arith.constant 0 : index
    %c0_53 = arith.constant 0 : index
    %57 = vector.load %arg3[%c0_51, %c0_52, %c0_53] : memref<1x21x128xf32, #tpu.memory_space<vmem>>, vector<1x21x128xf32>
    %58 = vector.shape_cast %57 : vector<1x21x128xf32> to vector<21x128xf32>
    %59 = vector.shape_cast %56 : vector<21x128xf32> to vector<1x21x128xf32>
    tpu.vector_store %arg3[%c0_51, %c0_52, %c0_53], %59 {strides = array<i32>} : memref<1x21x128xf32, #tpu.memory_space<vmem>>, vector<1x21x128xf32>,
    return
  }
  func.func @transform_0(%arg0: i32) -> (i32, i32, i32) {
    %c0_i32 = arith.constant 0 : i32
    %c0_i32_0 = arith.constant 0 : i32
    %c0_i32_1 = arith.constant 0 : i32
    return %arg0, %c0_i32, %c0_i32_0 : i32, i32, i32
  }
  func.func @transform_1(%arg0: i32) -> (i32, i32, i32) {
    %c0_i32 = arith.constant 0 : i32
    %c0_i32_0 = arith.constant 0 : i32
    %c0_i32_1 = arith.constant 0 : i32
    %c0_i32_2 = arith.constant 0 : i32
    return %c0_i32, %c0_i32_0, %c0_i32_1 : i32, i32, i32
  }
  func.func @transform_2(%arg0: i32) -> (i32, i32, i32) {
    %c0_i32 = arith.constant 0 : i32
    %c0_i32_0 = arith.constant 0 : i32
    %c0_i32_1 = arith.constant 0 : i32
    return %arg0, %c0_i32, %c0_i32_0 : i32, i32, i32
  }
}

module attributes {stable_mosaic.version = 11 : i64} {
  func.func @_mm_kernel(%arg0: i32, %arg1: i32, %arg2: i32, %arg3: memref<24x32xbf16, #tpu.memory_space<vmem>>, %arg4: memref<32x128xbf16, #tpu.memory_space<vmem>>, %arg5: memref<24x128xf32, #tpu.memory_space<vmem>>, %arg6: memref<24x128xf32, #tpu.memory_space<vmem>>) attributes {dimension_semantics = [#tpu.dimension_semantics<parallel>, #tpu.dimension_semantics<parallel>, #tpu.dimension_semantics<arbitrary>], iteration_bounds = array<i64: 1, 1, 1>, scalar_prefetch = 0 : i64, scratch_operands = 1 : i64, tpu.core_type = #tpu.core_type<tc>, window_params = [{transform_indices = @transform_0, window_bounds = array<i64: 24, 32>}, {transform_indices = @transform_1, window_bounds = array<i64: 32, 128>}, {transform_indices = @transform_2, window_bounds = array<i64: 24, 128>}]} {
    %c0_i32 = arith.constant 0 : i32
    %0 = arith.cmpi eq, %arg2, %c0_i32 : i32
    %1 = arith.extui %0 : i1 to i32
    %c0_i32_0 = arith.constant 0 : i32
    %2 = arith.cmpi ne, %1, %c0_i32_0 : i32
    scf.if %2 {
      %cst_10 = arith.constant 0.000000e+00 : f32
      %12 = vector.broadcast %cst_10 : f32 to vector<24x128xf32>
      %c0_11 = arith.constant 0 : index
      %c0_12 = arith.constant 0 : index
      %13 = vector.load %arg6[%c0_11, %c0_12] : memref<24x128xf32, #tpu.memory_space<vmem>>, vector<24x128xf32>
      tpu.vector_store %arg6[%c0_11, %c0_12], %12 {strides = array<i32>} : memref<24x128xf32, #tpu.memory_space<vmem>>, vector<24x128xf32>,
    } else {
    }
    %c0 = arith.constant 0 : index
    %c0_1 = arith.constant 0 : index
    %3 = vector.load %arg6[%c0, %c0_1] : memref<24x128xf32, #tpu.memory_space<vmem>>, vector<24x128xf32>
    %c0_2 = arith.constant 0 : index
    %c0_3 = arith.constant 0 : index
    %4 = vector.load %arg3[%c0_2, %c0_3] : memref<24x32xbf16, #tpu.memory_space<vmem>>, vector<24x32xbf16>
    %c0_4 = arith.constant 0 : index
    %c0_5 = arith.constant 0 : index
    %5 = vector.load %arg4[%c0_4, %c0_5] : memref<32x128xbf16, #tpu.memory_space<vmem>>, vector<32x128xbf16>
    %cst = arith.constant dense<0.000000e+00> : vector<24x128xf32>
    %6 = tpu.matmul %4, %5, %cst {dimension_numbers = #tpu.dot_dimension_numbers<[1], [0], [0], [1], [0, 0, 1, 1], [], []>} : vector<24x32xbf16>, vector<32x128xbf16>, vector<24x128xf32> -> vector<24x128xf32>
    %7 = arith.addf %3, %6 : vector<24x128xf32>
    %c0_6 = arith.constant 0 : index
    %c0_7 = arith.constant 0 : index
    %8 = vector.load %arg6[%c0_6, %c0_7] : memref<24x128xf32, #tpu.memory_space<vmem>>, vector<24x128xf32>
    tpu.vector_store %arg6[%c0_6, %c0_7], %7 {strides = array<i32>} : memref<24x128xf32, #tpu.memory_space<vmem>>, vector<24x128xf32>,
    %c0_i32_8 = arith.constant 0 : i32
    %9 = arith.cmpi eq, %arg2, %c0_i32_8 : i32
    %10 = arith.extui %9 : i1 to i32
    %c0_i32_9 = arith.constant 0 : i32
    %11 = arith.cmpi ne, %10, %c0_i32_9 : i32
    scf.if %11 {
      %c0_10 = arith.constant 0 : index
      %c0_11 = arith.constant 0 : index
      %12 = vector.load %arg6[%c0_10, %c0_11] : memref<24x128xf32, #tpu.memory_space<vmem>>, vector<24x128xf32>
      %cst_12 = arith.constant 0.000000e+00 : f32
      %13 = vector.broadcast %cst_12 : f32 to vector<24x128xf32>
      %14 = arith.maximumf %12, %13 : vector<24x128xf32>
      %c0_13 = arith.constant 0 : index
      %c0_14 = arith.constant 0 : index
      %15 = vector.load %arg5[%c0_13, %c0_14] : memref<24x128xf32, #tpu.memory_space<vmem>>, vector<24x128xf32>
      tpu.vector_store %arg5[%c0_13, %c0_14], %14 {strides = array<i32>} : memref<24x128xf32, #tpu.memory_space<vmem>>, vector<24x128xf32>,
    } else {
    }
    return
  }
  func.func @transform_0(%arg0: i32, %arg1: i32, %arg2: i32) -> (i32, i32) {
    %c0_i32 = arith.constant 0 : i32
    return %arg0, %arg2 : i32, i32
  }
  func.func @transform_1(%arg0: i32, %arg1: i32, %arg2: i32) -> (i32, i32) {
    %c0_i32 = arith.constant 0 : i32
    return %arg2, %arg1 : i32, i32
  }
  func.func @transform_2(%arg0: i32, %arg1: i32, %arg2: i32) -> (i32, i32) {
    %c0_i32 = arith.constant 0 : i32
    return %arg0, %arg1 : i32, i32
  }
}

module attributes {stable_mosaic.version = 11 : i64} {
  func.func @_mm_kernel(%arg0: i32, %arg1: i32, %arg2: i32, %arg3: memref<24x256xbf16, #tpu.memory_space<vmem>>, %arg4: memref<256x48xbf16, #tpu.memory_space<vmem>>, %arg5: memref<24x48xf32, #tpu.memory_space<vmem>>, %arg6: memref<24x48xf32, #tpu.memory_space<vmem>>) attributes {dimension_semantics = [#tpu.dimension_semantics<parallel>, #tpu.dimension_semantics<parallel>, #tpu.dimension_semantics<arbitrary>], iteration_bounds = array<i64: 1, 1, 1>, scalar_prefetch = 0 : i64, scratch_operands = 1 : i64, tpu.core_type = #tpu.core_type<tc>, window_params = [{transform_indices = @transform_0, window_bounds = array<i64: 24, 256>}, {transform_indices = @transform_1, window_bounds = array<i64: 256, 48>}, {transform_indices = @transform_2, window_bounds = array<i64: 24, 48>}]} {
    %c0_i32 = arith.constant 0 : i32
    %0 = arith.cmpi eq, %arg2, %c0_i32 : i32
    %1 = arith.extui %0 : i1 to i32
    %c0_i32_0 = arith.constant 0 : i32
    %2 = arith.cmpi ne, %1, %c0_i32_0 : i32
    scf.if %2 {
      %cst_10 = arith.constant 0.000000e+00 : f32
      %12 = vector.broadcast %cst_10 : f32 to vector<24x48xf32>
      %c0_11 = arith.constant 0 : index
      %c0_12 = arith.constant 0 : index
      %13 = vector.load %arg6[%c0_11, %c0_12] : memref<24x48xf32, #tpu.memory_space<vmem>>, vector<24x48xf32>
      tpu.vector_store %arg6[%c0_11, %c0_12], %12 {strides = array<i32>} : memref<24x48xf32, #tpu.memory_space<vmem>>, vector<24x48xf32>,
    } else {
    }
    %c0 = arith.constant 0 : index
    %c0_1 = arith.constant 0 : index
    %3 = vector.load %arg6[%c0, %c0_1] : memref<24x48xf32, #tpu.memory_space<vmem>>, vector<24x48xf32>
    %c0_2 = arith.constant 0 : index
    %c0_3 = arith.constant 0 : index
    %4 = vector.load %arg3[%c0_2, %c0_3] : memref<24x256xbf16, #tpu.memory_space<vmem>>, vector<24x256xbf16>
    %c0_4 = arith.constant 0 : index
    %c0_5 = arith.constant 0 : index
    %5 = vector.load %arg4[%c0_4, %c0_5] : memref<256x48xbf16, #tpu.memory_space<vmem>>, vector<256x48xbf16>
    %cst = arith.constant dense<0.000000e+00> : vector<24x48xf32>
    %6 = tpu.matmul %4, %5, %cst {dimension_numbers = #tpu.dot_dimension_numbers<[1], [0], [0], [1], [0, 0, 1, 1], [], []>} : vector<24x256xbf16>, vector<256x48xbf16>, vector<24x48xf32> -> vector<24x48xf32>
    %7 = arith.addf %3, %6 : vector<24x48xf32>
    %c0_6 = arith.constant 0 : index
    %c0_7 = arith.constant 0 : index
    %8 = vector.load %arg6[%c0_6, %c0_7] : memref<24x48xf32, #tpu.memory_space<vmem>>, vector<24x48xf32>
    tpu.vector_store %arg6[%c0_6, %c0_7], %7 {strides = array<i32>} : memref<24x48xf32, #tpu.memory_space<vmem>>, vector<24x48xf32>,
    %c0_i32_8 = arith.constant 0 : i32
    %9 = arith.cmpi eq, %arg2, %c0_i32_8 : i32
    %10 = arith.extui %9 : i1 to i32
    %c0_i32_9 = arith.constant 0 : i32
    %11 = arith.cmpi ne, %10, %c0_i32_9 : i32
    scf.if %11 {
      %c0_10 = arith.constant 0 : index
      %c0_11 = arith.constant 0 : index
      %12 = vector.load %arg6[%c0_10, %c0_11] : memref<24x48xf32, #tpu.memory_space<vmem>>, vector<24x48xf32>
      %cst_12 = arith.constant 0.000000e+00 : f32
      %13 = vector.broadcast %cst_12 : f32 to vector<24x48xf32>
      %14 = arith.maximumf %12, %13 : vector<24x48xf32>
      %c0_13 = arith.constant 0 : index
      %c0_14 = arith.constant 0 : index
      %15 = vector.load %arg5[%c0_13, %c0_14] : memref<24x48xf32, #tpu.memory_space<vmem>>, vector<24x48xf32>
      tpu.vector_store %arg5[%c0_13, %c0_14], %14 {strides = array<i32>} : memref<24x48xf32, #tpu.memory_space<vmem>>, vector<24x48xf32>,
    } else {
    }
    return
  }
  func.func @transform_0(%arg0: i32, %arg1: i32, %arg2: i32) -> (i32, i32) {
    %c0_i32 = arith.constant 0 : i32
    return %arg0, %arg2 : i32, i32
  }
  func.func @transform_1(%arg0: i32, %arg1: i32, %arg2: i32) -> (i32, i32) {
    %c0_i32 = arith.constant 0 : i32
    return %arg2, %arg1 : i32, i32
  }
  func.func @transform_2(%arg0: i32, %arg1: i32, %arg2: i32) -> (i32, i32) {
    %c0_i32 = arith.constant 0 : i32
    return %arg0, %arg1 : i32, i32
  }
}

module attributes {stable_mosaic.version = 11 : i64} {
  func.func @_conv3x3_kernel(%arg0: i32, %arg1: memref<1x42x48xbf16, #tpu.memory_space<vmem>>, %arg2: memref<9x48x192xbf16, #tpu.memory_space<vmem>>, %arg3: memref<1x21x192xf32, #tpu.memory_space<vmem>>) attributes {dimension_semantics = [#tpu.dimension_semantics<parallel>], iteration_bounds = array<i64: 2>, scalar_prefetch = 0 : i64, scratch_operands = 0 : i64, tpu.core_type = #tpu.core_type<tc>, window_params = [{transform_indices = @transform_0, window_bounds = array<i64: 1, 42, 48>}, {pipeline_mode = #tpu.pipeline_mode<synchronous>, transform_indices = @transform_1, window_bounds = array<i64: 9, 48, 192>}, {transform_indices = @transform_2, window_bounds = array<i64: 1, 21, 192>}]} {
    %cst = arith.constant 0.000000e+00 : f32
    %0 = vector.broadcast %cst : f32 to vector<21x192xf32>
    %c0 = arith.constant 0 : index
    %c0_0 = arith.constant 0 : index
    %c0_1 = arith.constant 0 : index
    %1 = vector.load %arg1[%c0, %c0_0, %c0_1] : memref<1x42x48xbf16, #tpu.memory_space<vmem>>, vector<1x21x48xbf16>
    %2 = vector.shape_cast %1 : vector<1x21x48xbf16> to vector<21x48xbf16>
    %c0_2 = arith.constant 0 : index
    %c0_3 = arith.constant 0 : index
    %c0_4 = arith.constant 0 : index
    %3 = vector.load %arg2[%c0_2, %c0_3, %c0_4] : memref<9x48x192xbf16, #tpu.memory_space<vmem>>, vector<1x48x192xbf16>
    %4 = vector.shape_cast %3 : vector<1x48x192xbf16> to vector<48x192xbf16>
    %cst_5 = arith.constant dense<0.000000e+00> : vector<21x192xf32>
    %5 = tpu.matmul %2, %4, %cst_5 {dimension_numbers = #tpu.dot_dimension_numbers<[1], [0], [0], [1], [0, 0, 1, 1], [], []>} : vector<21x48xbf16>, vector<48x192xbf16>, vector<21x192xf32> -> vector<21x192xf32>
    %6 = arith.addf %0, %5 : vector<21x192xf32>
    %c0_6 = arith.constant 0 : index
    %c1 = arith.constant 1 : index
    %c0_7 = arith.constant 0 : index
    %7 = vector.load %arg1[%c0_6, %c1, %c0_7] : memref<1x42x48xbf16, #tpu.memory_space<vmem>>, vector<1x21x48xbf16>
    %8 = vector.shape_cast %7 : vector<1x21x48xbf16> to vector<21x48xbf16>
    %c1_8 = arith.constant 1 : index
    %c0_9 = arith.constant 0 : index
    %c0_10 = arith.constant 0 : index
    %9 = vector.load %arg2[%c1_8, %c0_9, %c0_10] : memref<9x48x192xbf16, #tpu.memory_space<vmem>>, vector<1x48x192xbf16>
    %10 = vector.shape_cast %9 : vector<1x48x192xbf16> to vector<48x192xbf16>
    %cst_11 = arith.constant dense<0.000000e+00> : vector<21x192xf32>
    %11 = tpu.matmul %8, %10, %cst_11 {dimension_numbers = #tpu.dot_dimension_numbers<[1], [0], [0], [1], [0, 0, 1, 1], [], []>} : vector<21x48xbf16>, vector<48x192xbf16>, vector<21x192xf32> -> vector<21x192xf32>
    %12 = arith.addf %6, %11 : vector<21x192xf32>
    %c0_12 = arith.constant 0 : index
    %c2 = arith.constant 2 : index
    %c0_13 = arith.constant 0 : index
    %13 = vector.load %arg1[%c0_12, %c2, %c0_13] : memref<1x42x48xbf16, #tpu.memory_space<vmem>>, vector<1x21x48xbf16>
    %14 = vector.shape_cast %13 : vector<1x21x48xbf16> to vector<21x48xbf16>
    %c2_14 = arith.constant 2 : index
    %c0_15 = arith.constant 0 : index
    %c0_16 = arith.constant 0 : index
    %15 = vector.load %arg2[%c2_14, %c0_15, %c0_16] : memref<9x48x192xbf16, #tpu.memory_space<vmem>>, vector<1x48x192xbf16>
    %16 = vector.shape_cast %15 : vector<1x48x192xbf16> to vector<48x192xbf16>
    %cst_17 = arith.constant dense<0.000000e+00> : vector<21x192xf32>
    %17 = tpu.matmul %14, %16, %cst_17 {dimension_numbers = #tpu.dot_dimension_numbers<[1], [0], [0], [1], [0, 0, 1, 1], [], []>} : vector<21x48xbf16>, vector<48x192xbf16>, vector<21x192xf32> -> vector<21x192xf32>
    %18 = arith.addf %12, %17 : vector<21x192xf32>
    %c0_18 = arith.constant 0 : index
    %c7 = arith.constant 7 : index
    %c0_19 = arith.constant 0 : index
    %19 = vector.load %arg1[%c0_18, %c7, %c0_19] : memref<1x42x48xbf16, #tpu.memory_space<vmem>>, vector<1x21x48xbf16>
    %20 = vector.shape_cast %19 : vector<1x21x48xbf16> to vector<21x48xbf16>
    %c3 = arith.constant 3 : index
    %c0_20 = arith.constant 0 : index
    %c0_21 = arith.constant 0 : index
    %21 = vector.load %arg2[%c3, %c0_20, %c0_21] : memref<9x48x192xbf16, #tpu.memory_space<vmem>>, vector<1x48x192xbf16>
    %22 = vector.shape_cast %21 : vector<1x48x192xbf16> to vector<48x192xbf16>
    %cst_22 = arith.constant dense<0.000000e+00> : vector<21x192xf32>
    %23 = tpu.matmul %20, %22, %cst_22 {dimension_numbers = #tpu.dot_dimension_numbers<[1], [0], [0], [1], [0, 0, 1, 1], [], []>} : vector<21x48xbf16>, vector<48x192xbf16>, vector<21x192xf32> -> vector<21x192xf32>
    %24 = arith.addf %18, %23 : vector<21x192xf32>
    %c0_23 = arith.constant 0 : index
    %c8 = arith.constant 8 : index
    %c0_24 = arith.constant 0 : index
    %25 = vector.load %arg1[%c0_23, %c8, %c0_24] : memref<1x42x48xbf16, #tpu.memory_space<vmem>>, vector<1x21x48xbf16>
    %26 = vector.shape_cast %25 : vector<1x21x48xbf16> to vector<21x48xbf16>
    %c4 = arith.constant 4 : index
    %c0_25 = arith.constant 0 : index
    %c0_26 = arith.constant 0 : index
    %27 = vector.load %arg2[%c4, %c0_25, %c0_26] : memref<9x48x192xbf16, #tpu.memory_space<vmem>>, vector<1x48x192xbf16>
    %28 = vector.shape_cast %27 : vector<1x48x192xbf16> to vector<48x192xbf16>
    %cst_27 = arith.constant dense<0.000000e+00> : vector<21x192xf32>
    %29 = tpu.matmul %26, %28, %cst_27 {dimension_numbers = #tpu.dot_dimension_numbers<[1], [0], [0], [1], [0, 0, 1, 1], [], []>} : vector<21x48xbf16>, vector<48x192xbf16>, vector<21x192xf32> -> vector<21x192xf32>
    %30 = arith.addf %24, %29 : vector<21x192xf32>
    %c0_28 = arith.constant 0 : index
    %c9 = arith.constant 9 : index
    %c0_29 = arith.constant 0 : index
    %31 = vector.load %arg1[%c0_28, %c9, %c0_29] : memref<1x42x48xbf16, #tpu.memory_space<vmem>>, vector<1x21x48xbf16>
    %32 = vector.shape_cast %31 : vector<1x21x48xbf16> to vector<21x48xbf16>
    %c5 = arith.constant 5 : index
    %c0_30 = arith.constant 0 : index
    %c0_31 = arith.constant 0 : index
    %33 = vector.load %arg2[%c5, %c0_30, %c0_31] : memref<9x48x192xbf16, #tpu.memory_space<vmem>>, vector<1x48x192xbf16>
    %34 = vector.shape_cast %33 : vector<1x48x192xbf16> to vector<48x192xbf16>
    %cst_32 = arith.constant dense<0.000000e+00> : vector<21x192xf32>
    %35 = tpu.matmul %32, %34, %cst_32 {dimension_numbers = #tpu.dot_dimension_numbers<[1], [0], [0], [1], [0, 0, 1, 1], [], []>} : vector<21x48xbf16>, vector<48x192xbf16>, vector<21x192xf32> -> vector<21x192xf32>
    %36 = arith.addf %30, %35 : vector<21x192xf32>
    %c0_33 = arith.constant 0 : index
    %c14 = arith.constant 14 : index
    %c0_34 = arith.constant 0 : index
    %37 = vector.load %arg1[%c0_33, %c14, %c0_34] : memref<1x42x48xbf16, #tpu.memory_space<vmem>>, vector<1x21x48xbf16>
    %38 = vector.shape_cast %37 : vector<1x21x48xbf16> to vector<21x48xbf16>
    %c6 = arith.constant 6 : index
    %c0_35 = arith.constant 0 : index
    %c0_36 = arith.constant 0 : index
    %39 = vector.load %arg2[%c6, %c0_35, %c0_36] : memref<9x48x192xbf16, #tpu.memory_space<vmem>>, vector<1x48x192xbf16>
    %40 = vector.shape_cast %39 : vector<1x48x192xbf16> to vector<48x192xbf16>
    %cst_37 = arith.constant dense<0.000000e+00> : vector<21x192xf32>
    %41 = tpu.matmul %38, %40, %cst_37 {dimension_numbers = #tpu.dot_dimension_numbers<[1], [0], [0], [1], [0, 0, 1, 1], [], []>} : vector<21x48xbf16>, vector<48x192xbf16>, vector<21x192xf32> -> vector<21x192xf32>
    %42 = arith.addf %36, %41 : vector<21x192xf32>
    %c0_38 = arith.constant 0 : index
    %c15 = arith.constant 15 : index
    %c0_39 = arith.constant 0 : index
    %43 = vector.load %arg1[%c0_38, %c15, %c0_39] : memref<1x42x48xbf16, #tpu.memory_space<vmem>>, vector<1x21x48xbf16>
    %44 = vector.shape_cast %43 : vector<1x21x48xbf16> to vector<21x48xbf16>
    %c7_40 = arith.constant 7 : index
    %c0_41 = arith.constant 0 : index
    %c0_42 = arith.constant 0 : index
    %45 = vector.load %arg2[%c7_40, %c0_41, %c0_42] : memref<9x48x192xbf16, #tpu.memory_space<vmem>>, vector<1x48x192xbf16>
    %46 = vector.shape_cast %45 : vector<1x48x192xbf16> to vector<48x192xbf16>
    %cst_43 = arith.constant dense<0.000000e+00> : vector<21x192xf32>
    %47 = tpu.matmul %44, %46, %cst_43 {dimension_numbers = #tpu.dot_dimension_numbers<[1], [0], [0], [1], [0, 0, 1, 1], [], []>} : vector<21x48xbf16>, vector<48x192xbf16>, vector<21x192xf32> -> vector<21x192xf32>
    %48 = arith.addf %42, %47 : vector<21x192xf32>
    %c0_44 = arith.constant 0 : index
    %c16 = arith.constant 16 : index
    %c0_45 = arith.constant 0 : index
    %49 = vector.load %arg1[%c0_44, %c16, %c0_45] : memref<1x42x48xbf16, #tpu.memory_space<vmem>>, vector<1x21x48xbf16>
    %50 = vector.shape_cast %49 : vector<1x21x48xbf16> to vector<21x48xbf16>
    %c8_46 = arith.constant 8 : index
    %c0_47 = arith.constant 0 : index
    %c0_48 = arith.constant 0 : index
    %51 = vector.load %arg2[%c8_46, %c0_47, %c0_48] : memref<9x48x192xbf16, #tpu.memory_space<vmem>>, vector<1x48x192xbf16>
    %52 = vector.shape_cast %51 : vector<1x48x192xbf16> to vector<48x192xbf16>
    %cst_49 = arith.constant dense<0.000000e+00> : vector<21x192xf32>
    %53 = tpu.matmul %50, %52, %cst_49 {dimension_numbers = #tpu.dot_dimension_numbers<[1], [0], [0], [1], [0, 0, 1, 1], [], []>} : vector<21x48xbf16>, vector<48x192xbf16>, vector<21x192xf32> -> vector<21x192xf32>
    %54 = arith.addf %48, %53 : vector<21x192xf32>
    %cst_50 = arith.constant 0.000000e+00 : f32
    %55 = vector.broadcast %cst_50 : f32 to vector<21x192xf32>
    %56 = arith.maximumf %54, %55 : vector<21x192xf32>
    %c0_51 = arith.constant 0 : index
    %c0_52 = arith.constant 0 : index
    %c0_53 = arith.constant 0 : index
    %57 = vector.load %arg3[%c0_51, %c0_52, %c0_53] : memref<1x21x192xf32, #tpu.memory_space<vmem>>, vector<1x21x192xf32>
    %58 = vector.shape_cast %57 : vector<1x21x192xf32> to vector<21x192xf32>
    %59 = vector.shape_cast %56 : vector<21x192xf32> to vector<1x21x192xf32>
    tpu.vector_store %arg3[%c0_51, %c0_52, %c0_53], %59 {strides = array<i32>} : memref<1x21x192xf32, #tpu.memory_space<vmem>>, vector<1x21x192xf32>,
    return
  }
  func.func @transform_0(%arg0: i32) -> (i32, i32, i32) {
    %c0_i32 = arith.constant 0 : i32
    %c0_i32_0 = arith.constant 0 : i32
    %c0_i32_1 = arith.constant 0 : i32
    return %arg0, %c0_i32, %c0_i32_0 : i32, i32, i32
  }
  func.func @transform_1(%arg0: i32) -> (i32, i32, i32) {
    %c0_i32 = arith.constant 0 : i32
    %c0_i32_0 = arith.constant 0 : i32
    %c0_i32_1 = arith.constant 0 : i32
    %c0_i32_2 = arith.constant 0 : i32
    return %c0_i32, %c0_i32_0, %c0_i32_1 : i32, i32, i32
  }
  func.func @transform_2(%arg0: i32) -> (i32, i32, i32) {
    %c0_i32 = arith.constant 0 : i32
    %c0_i32_0 = arith.constant 0 : i32
    %c0_i32_1 = arith.constant 0 : i32
    return %arg0, %c0_i32, %c0_i32_0 : i32, i32, i32
  }
}

module attributes {stable_mosaic.version = 11 : i64} {
  func.func @_mm_kernel(%arg0: i32, %arg1: i32, %arg2: i32, %arg3: memref<24x48xbf16, #tpu.memory_space<vmem>>, %arg4: memref<48x192xbf16, #tpu.memory_space<vmem>>, %arg5: memref<24x192xf32, #tpu.memory_space<vmem>>, %arg6: memref<24x192xf32, #tpu.memory_space<vmem>>) attributes {dimension_semantics = [#tpu.dimension_semantics<parallel>, #tpu.dimension_semantics<parallel>, #tpu.dimension_semantics<arbitrary>], iteration_bounds = array<i64: 1, 1, 1>, scalar_prefetch = 0 : i64, scratch_operands = 1 : i64, tpu.core_type = #tpu.core_type<tc>, window_params = [{transform_indices = @transform_0, window_bounds = array<i64: 24, 48>}, {transform_indices = @transform_1, window_bounds = array<i64: 48, 192>}, {transform_indices = @transform_2, window_bounds = array<i64: 24, 192>}]} {
    %c0_i32 = arith.constant 0 : i32
    %0 = arith.cmpi eq, %arg2, %c0_i32 : i32
    %1 = arith.extui %0 : i1 to i32
    %c0_i32_0 = arith.constant 0 : i32
    %2 = arith.cmpi ne, %1, %c0_i32_0 : i32
    scf.if %2 {
      %cst_10 = arith.constant 0.000000e+00 : f32
      %12 = vector.broadcast %cst_10 : f32 to vector<24x192xf32>
      %c0_11 = arith.constant 0 : index
      %c0_12 = arith.constant 0 : index
      %13 = vector.load %arg6[%c0_11, %c0_12] : memref<24x192xf32, #tpu.memory_space<vmem>>, vector<24x192xf32>
      tpu.vector_store %arg6[%c0_11, %c0_12], %12 {strides = array<i32>} : memref<24x192xf32, #tpu.memory_space<vmem>>, vector<24x192xf32>,
    } else {
    }
    %c0 = arith.constant 0 : index
    %c0_1 = arith.constant 0 : index
    %3 = vector.load %arg6[%c0, %c0_1] : memref<24x192xf32, #tpu.memory_space<vmem>>, vector<24x192xf32>
    %c0_2 = arith.constant 0 : index
    %c0_3 = arith.constant 0 : index
    %4 = vector.load %arg3[%c0_2, %c0_3] : memref<24x48xbf16, #tpu.memory_space<vmem>>, vector<24x48xbf16>
    %c0_4 = arith.constant 0 : index
    %c0_5 = arith.constant 0 : index
    %5 = vector.load %arg4[%c0_4, %c0_5] : memref<48x192xbf16, #tpu.memory_space<vmem>>, vector<48x192xbf16>
    %cst = arith.constant dense<0.000000e+00> : vector<24x192xf32>
    %6 = tpu.matmul %4, %5, %cst {dimension_numbers = #tpu.dot_dimension_numbers<[1], [0], [0], [1], [0, 0, 1, 1], [], []>} : vector<24x48xbf16>, vector<48x192xbf16>, vector<24x192xf32> -> vector<24x192xf32>
    %7 = arith.addf %3, %6 : vector<24x192xf32>
    %c0_6 = arith.constant 0 : index
    %c0_7 = arith.constant 0 : index
    %8 = vector.load %arg6[%c0_6, %c0_7] : memref<24x192xf32, #tpu.memory_space<vmem>>, vector<24x192xf32>
    tpu.vector_store %arg6[%c0_6, %c0_7], %7 {strides = array<i32>} : memref<24x192xf32, #tpu.memory_space<vmem>>, vector<24x192xf32>,
    %c0_i32_8 = arith.constant 0 : i32
    %9 = arith.cmpi eq, %arg2, %c0_i32_8 : i32
    %10 = arith.extui %9 : i1 to i32
    %c0_i32_9 = arith.constant 0 : i32
    %11 = arith.cmpi ne, %10, %c0_i32_9 : i32
    scf.if %11 {
      %c0_10 = arith.constant 0 : index
      %c0_11 = arith.constant 0 : index
      %12 = vector.load %arg6[%c0_10, %c0_11] : memref<24x192xf32, #tpu.memory_space<vmem>>, vector<24x192xf32>
      %cst_12 = arith.constant 0.000000e+00 : f32
      %13 = vector.broadcast %cst_12 : f32 to vector<24x192xf32>
      %14 = arith.maximumf %12, %13 : vector<24x192xf32>
      %c0_13 = arith.constant 0 : index
      %c0_14 = arith.constant 0 : index
      %15 = vector.load %arg5[%c0_13, %c0_14] : memref<24x192xf32, #tpu.memory_space<vmem>>, vector<24x192xf32>
      tpu.vector_store %arg5[%c0_13, %c0_14], %14 {strides = array<i32>} : memref<24x192xf32, #tpu.memory_space<vmem>>, vector<24x192xf32>,
    } else {
    }
    return
  }
  func.func @transform_0(%arg0: i32, %arg1: i32, %arg2: i32) -> (i32, i32) {
    %c0_i32 = arith.constant 0 : i32
    return %arg0, %arg2 : i32, i32
  }
  func.func @transform_1(%arg0: i32, %arg1: i32, %arg2: i32) -> (i32, i32) {
    %c0_i32 = arith.constant 0 : i32
    return %arg2, %arg1 : i32, i32
  }
  func.func @transform_2(%arg0: i32, %arg1: i32, %arg2: i32) -> (i32, i32) {
    %c0_i32 = arith.constant 0 : i32
    return %arg0, %arg1 : i32, i32
  }
}

module attributes {stable_mosaic.version = 11 : i64} {
  func.func @_mm_kernel(%arg0: i32, %arg1: i32, %arg2: i32, %arg3: memref<24x384xbf16, #tpu.memory_space<vmem>>, %arg4: memref<384x48xbf16, #tpu.memory_space<vmem>>, %arg5: memref<24x48xf32, #tpu.memory_space<vmem>>, %arg6: memref<24x48xf32, #tpu.memory_space<vmem>>) attributes {dimension_semantics = [#tpu.dimension_semantics<parallel>, #tpu.dimension_semantics<parallel>, #tpu.dimension_semantics<arbitrary>], iteration_bounds = array<i64: 1, 1, 1>, scalar_prefetch = 0 : i64, scratch_operands = 1 : i64, tpu.core_type = #tpu.core_type<tc>, window_params = [{transform_indices = @transform_0, window_bounds = array<i64: 24, 384>}, {transform_indices = @transform_1, window_bounds = array<i64: 384, 48>}, {transform_indices = @transform_2, window_bounds = array<i64: 24, 48>}]} {
    %c0_i32 = arith.constant 0 : i32
    %0 = arith.cmpi eq, %arg2, %c0_i32 : i32
    %1 = arith.extui %0 : i1 to i32
    %c0_i32_0 = arith.constant 0 : i32
    %2 = arith.cmpi ne, %1, %c0_i32_0 : i32
    scf.if %2 {
      %cst_10 = arith.constant 0.000000e+00 : f32
      %12 = vector.broadcast %cst_10 : f32 to vector<24x48xf32>
      %c0_11 = arith.constant 0 : index
      %c0_12 = arith.constant 0 : index
      %13 = vector.load %arg6[%c0_11, %c0_12] : memref<24x48xf32, #tpu.memory_space<vmem>>, vector<24x48xf32>
      tpu.vector_store %arg6[%c0_11, %c0_12], %12 {strides = array<i32>} : memref<24x48xf32, #tpu.memory_space<vmem>>, vector<24x48xf32>,
    } else {
    }
    %c0 = arith.constant 0 : index
    %c0_1 = arith.constant 0 : index
    %3 = vector.load %arg6[%c0, %c0_1] : memref<24x48xf32, #tpu.memory_space<vmem>>, vector<24x48xf32>
    %c0_2 = arith.constant 0 : index
    %c0_3 = arith.constant 0 : index
    %4 = vector.load %arg3[%c0_2, %c0_3] : memref<24x384xbf16, #tpu.memory_space<vmem>>, vector<24x384xbf16>
    %c0_4 = arith.constant 0 : index
    %c0_5 = arith.constant 0 : index
    %5 = vector.load %arg4[%c0_4, %c0_5] : memref<384x48xbf16, #tpu.memory_space<vmem>>, vector<384x48xbf16>
    %cst = arith.constant dense<0.000000e+00> : vector<24x48xf32>
    %6 = tpu.matmul %4, %5, %cst {dimension_numbers = #tpu.dot_dimension_numbers<[1], [0], [0], [1], [0, 0, 1, 1], [], []>} : vector<24x384xbf16>, vector<384x48xbf16>, vector<24x48xf32> -> vector<24x48xf32>
    %7 = arith.addf %3, %6 : vector<24x48xf32>
    %c0_6 = arith.constant 0 : index
    %c0_7 = arith.constant 0 : index
    %8 = vector.load %arg6[%c0_6, %c0_7] : memref<24x48xf32, #tpu.memory_space<vmem>>, vector<24x48xf32>
    tpu.vector_store %arg6[%c0_6, %c0_7], %7 {strides = array<i32>} : memref<24x48xf32, #tpu.memory_space<vmem>>, vector<24x48xf32>,
    %c0_i32_8 = arith.constant 0 : i32
    %9 = arith.cmpi eq, %arg2, %c0_i32_8 : i32
    %10 = arith.extui %9 : i1 to i32
    %c0_i32_9 = arith.constant 0 : i32
    %11 = arith.cmpi ne, %10, %c0_i32_9 : i32
    scf.if %11 {
      %c0_10 = arith.constant 0 : index
      %c0_11 = arith.constant 0 : index
      %12 = vector.load %arg6[%c0_10, %c0_11] : memref<24x48xf32, #tpu.memory_space<vmem>>, vector<24x48xf32>
      %cst_12 = arith.constant 0.000000e+00 : f32
      %13 = vector.broadcast %cst_12 : f32 to vector<24x48xf32>
      %14 = arith.maximumf %12, %13 : vector<24x48xf32>
      %c0_13 = arith.constant 0 : index
      %c0_14 = arith.constant 0 : index
      %15 = vector.load %arg5[%c0_13, %c0_14] : memref<24x48xf32, #tpu.memory_space<vmem>>, vector<24x48xf32>
      tpu.vector_store %arg5[%c0_13, %c0_14], %14 {strides = array<i32>} : memref<24x48xf32, #tpu.memory_space<vmem>>, vector<24x48xf32>,
    } else {
    }
    return
  }
  func.func @transform_0(%arg0: i32, %arg1: i32, %arg2: i32) -> (i32, i32) {
    %c0_i32 = arith.constant 0 : i32
    return %arg0, %arg2 : i32, i32
  }
  func.func @transform_1(%arg0: i32, %arg1: i32, %arg2: i32) -> (i32, i32) {
    %c0_i32 = arith.constant 0 : i32
    return %arg2, %arg1 : i32, i32
  }
  func.func @transform_2(%arg0: i32, %arg1: i32, %arg2: i32) -> (i32, i32) {
    %c0_i32 = arith.constant 0 : i32
    return %arg0, %arg1 : i32, i32
  }
}

module attributes {stable_mosaic.version = 11 : i64} {
  func.func @_mm_kernel(%arg0: i32, %arg1: i32, %arg2: i32, %arg3: memref<24x384xbf16, #tpu.memory_space<vmem>>, %arg4: memref<384x64xbf16, #tpu.memory_space<vmem>>, %arg5: memref<24x64xf32, #tpu.memory_space<vmem>>, %arg6: memref<24x64xf32, #tpu.memory_space<vmem>>) attributes {dimension_semantics = [#tpu.dimension_semantics<parallel>, #tpu.dimension_semantics<parallel>, #tpu.dimension_semantics<arbitrary>], iteration_bounds = array<i64: 1, 1, 1>, scalar_prefetch = 0 : i64, scratch_operands = 1 : i64, tpu.core_type = #tpu.core_type<tc>, window_params = [{transform_indices = @transform_0, window_bounds = array<i64: 24, 384>}, {transform_indices = @transform_1, window_bounds = array<i64: 384, 64>}, {transform_indices = @transform_2, window_bounds = array<i64: 24, 64>}]} {
    %c0_i32 = arith.constant 0 : i32
    %0 = arith.cmpi eq, %arg2, %c0_i32 : i32
    %1 = arith.extui %0 : i1 to i32
    %c0_i32_0 = arith.constant 0 : i32
    %2 = arith.cmpi ne, %1, %c0_i32_0 : i32
    scf.if %2 {
      %cst_10 = arith.constant 0.000000e+00 : f32
      %12 = vector.broadcast %cst_10 : f32 to vector<24x64xf32>
      %c0_11 = arith.constant 0 : index
      %c0_12 = arith.constant 0 : index
      %13 = vector.load %arg6[%c0_11, %c0_12] : memref<24x64xf32, #tpu.memory_space<vmem>>, vector<24x64xf32>
      tpu.vector_store %arg6[%c0_11, %c0_12], %12 {strides = array<i32>} : memref<24x64xf32, #tpu.memory_space<vmem>>, vector<24x64xf32>,
    } else {
    }
    %c0 = arith.constant 0 : index
    %c0_1 = arith.constant 0 : index
    %3 = vector.load %arg6[%c0, %c0_1] : memref<24x64xf32, #tpu.memory_space<vmem>>, vector<24x64xf32>
    %c0_2 = arith.constant 0 : index
    %c0_3 = arith.constant 0 : index
    %4 = vector.load %arg3[%c0_2, %c0_3] : memref<24x384xbf16, #tpu.memory_space<vmem>>, vector<24x384xbf16>
    %c0_4 = arith.constant 0 : index
    %c0_5 = arith.constant 0 : index
    %5 = vector.load %arg4[%c0_4, %c0_5] : memref<384x64xbf16, #tpu.memory_space<vmem>>, vector<384x64xbf16>
    %cst = arith.constant dense<0.000000e+00> : vector<24x64xf32>
    %6 = tpu.matmul %4, %5, %cst {dimension_numbers = #tpu.dot_dimension_numbers<[1], [0], [0], [1], [0, 0, 1, 1], [], []>} : vector<24x384xbf16>, vector<384x64xbf16>, vector<24x64xf32> -> vector<24x64xf32>
    %7 = arith.addf %3, %6 : vector<24x64xf32>
    %c0_6 = arith.constant 0 : index
    %c0_7 = arith.constant 0 : index
    %8 = vector.load %arg6[%c0_6, %c0_7] : memref<24x64xf32, #tpu.memory_space<vmem>>, vector<24x64xf32>
    tpu.vector_store %arg6[%c0_6, %c0_7], %7 {strides = array<i32>} : memref<24x64xf32, #tpu.memory_space<vmem>>, vector<24x64xf32>,
    %c0_i32_8 = arith.constant 0 : i32
    %9 = arith.cmpi eq, %arg2, %c0_i32_8 : i32
    %10 = arith.extui %9 : i1 to i32
    %c0_i32_9 = arith.constant 0 : i32
    %11 = arith.cmpi ne, %10, %c0_i32_9 : i32
    scf.if %11 {
      %c0_10 = arith.constant 0 : index
      %c0_11 = arith.constant 0 : index
      %12 = vector.load %arg6[%c0_10, %c0_11] : memref<24x64xf32, #tpu.memory_space<vmem>>, vector<24x64xf32>
      %cst_12 = arith.constant 0.000000e+00 : f32
      %13 = vector.broadcast %cst_12 : f32 to vector<24x64xf32>
      %14 = arith.maximumf %12, %13 : vector<24x64xf32>
      %c0_13 = arith.constant 0 : index
      %c0_14 = arith.constant 0 : index
      %15 = vector.load %arg5[%c0_13, %c0_14] : memref<24x64xf32, #tpu.memory_space<vmem>>, vector<24x64xf32>
      tpu.vector_store %arg5[%c0_13, %c0_14], %14 {strides = array<i32>} : memref<24x64xf32, #tpu.memory_space<vmem>>, vector<24x64xf32>,
    } else {
    }
    return
  }
  func.func @transform_0(%arg0: i32, %arg1: i32, %arg2: i32) -> (i32, i32) {
    %c0_i32 = arith.constant 0 : i32
    return %arg0, %arg2 : i32, i32
  }
  func.func @transform_1(%arg0: i32, %arg1: i32, %arg2: i32) -> (i32, i32) {
    %c0_i32 = arith.constant 0 : i32
    return %arg2, %arg1 : i32, i32
  }
  func.func @transform_2(%arg0: i32, %arg1: i32, %arg2: i32) -> (i32, i32) {
    %c0_i32 = arith.constant 0 : i32
    return %arg0, %arg1 : i32, i32
  }
}

module attributes {stable_mosaic.version = 11 : i64} {
  func.func @_conv3x3_kernel(%arg0: i32, %arg1: memref<1x42x64xbf16, #tpu.memory_space<vmem>>, %arg2: memref<9x64x256xbf16, #tpu.memory_space<vmem>>, %arg3: memref<1x21x256xf32, #tpu.memory_space<vmem>>) attributes {dimension_semantics = [#tpu.dimension_semantics<parallel>], iteration_bounds = array<i64: 2>, scalar_prefetch = 0 : i64, scratch_operands = 0 : i64, tpu.core_type = #tpu.core_type<tc>, window_params = [{transform_indices = @transform_0, window_bounds = array<i64: 1, 42, 64>}, {pipeline_mode = #tpu.pipeline_mode<synchronous>, transform_indices = @transform_1, window_bounds = array<i64: 9, 64, 256>}, {transform_indices = @transform_2, window_bounds = array<i64: 1, 21, 256>}]} {
    %cst = arith.constant 0.000000e+00 : f32
    %0 = vector.broadcast %cst : f32 to vector<21x256xf32>
    %c0 = arith.constant 0 : index
    %c0_0 = arith.constant 0 : index
    %c0_1 = arith.constant 0 : index
    %1 = vector.load %arg1[%c0, %c0_0, %c0_1] : memref<1x42x64xbf16, #tpu.memory_space<vmem>>, vector<1x21x64xbf16>
    %2 = vector.shape_cast %1 : vector<1x21x64xbf16> to vector<21x64xbf16>
    %c0_2 = arith.constant 0 : index
    %c0_3 = arith.constant 0 : index
    %c0_4 = arith.constant 0 : index
    %3 = vector.load %arg2[%c0_2, %c0_3, %c0_4] : memref<9x64x256xbf16, #tpu.memory_space<vmem>>, vector<1x64x256xbf16>
    %4 = vector.shape_cast %3 : vector<1x64x256xbf16> to vector<64x256xbf16>
    %cst_5 = arith.constant dense<0.000000e+00> : vector<21x256xf32>
    %5 = tpu.matmul %2, %4, %cst_5 {dimension_numbers = #tpu.dot_dimension_numbers<[1], [0], [0], [1], [0, 0, 1, 1], [], []>} : vector<21x64xbf16>, vector<64x256xbf16>, vector<21x256xf32> -> vector<21x256xf32>
    %6 = arith.addf %0, %5 : vector<21x256xf32>
    %c0_6 = arith.constant 0 : index
    %c1 = arith.constant 1 : index
    %c0_7 = arith.constant 0 : index
    %7 = vector.load %arg1[%c0_6, %c1, %c0_7] : memref<1x42x64xbf16, #tpu.memory_space<vmem>>, vector<1x21x64xbf16>
    %8 = vector.shape_cast %7 : vector<1x21x64xbf16> to vector<21x64xbf16>
    %c1_8 = arith.constant 1 : index
    %c0_9 = arith.constant 0 : index
    %c0_10 = arith.constant 0 : index
    %9 = vector.load %arg2[%c1_8, %c0_9, %c0_10] : memref<9x64x256xbf16, #tpu.memory_space<vmem>>, vector<1x64x256xbf16>
    %10 = vector.shape_cast %9 : vector<1x64x256xbf16> to vector<64x256xbf16>
    %cst_11 = arith.constant dense<0.000000e+00> : vector<21x256xf32>
    %11 = tpu.matmul %8, %10, %cst_11 {dimension_numbers = #tpu.dot_dimension_numbers<[1], [0], [0], [1], [0, 0, 1, 1], [], []>} : vector<21x64xbf16>, vector<64x256xbf16>, vector<21x256xf32> -> vector<21x256xf32>
    %12 = arith.addf %6, %11 : vector<21x256xf32>
    %c0_12 = arith.constant 0 : index
    %c2 = arith.constant 2 : index
    %c0_13 = arith.constant 0 : index
    %13 = vector.load %arg1[%c0_12, %c2, %c0_13] : memref<1x42x64xbf16, #tpu.memory_space<vmem>>, vector<1x21x64xbf16>
    %14 = vector.shape_cast %13 : vector<1x21x64xbf16> to vector<21x64xbf16>
    %c2_14 = arith.constant 2 : index
    %c0_15 = arith.constant 0 : index
    %c0_16 = arith.constant 0 : index
    %15 = vector.load %arg2[%c2_14, %c0_15, %c0_16] : memref<9x64x256xbf16, #tpu.memory_space<vmem>>, vector<1x64x256xbf16>
    %16 = vector.shape_cast %15 : vector<1x64x256xbf16> to vector<64x256xbf16>
    %cst_17 = arith.constant dense<0.000000e+00> : vector<21x256xf32>
    %17 = tpu.matmul %14, %16, %cst_17 {dimension_numbers = #tpu.dot_dimension_numbers<[1], [0], [0], [1], [0, 0, 1, 1], [], []>} : vector<21x64xbf16>, vector<64x256xbf16>, vector<21x256xf32> -> vector<21x256xf32>
    %18 = arith.addf %12, %17 : vector<21x256xf32>
    %c0_18 = arith.constant 0 : index
    %c7 = arith.constant 7 : index
    %c0_19 = arith.constant 0 : index
    %19 = vector.load %arg1[%c0_18, %c7, %c0_19] : memref<1x42x64xbf16, #tpu.memory_space<vmem>>, vector<1x21x64xbf16>
    %20 = vector.shape_cast %19 : vector<1x21x64xbf16> to vector<21x64xbf16>
    %c3 = arith.constant 3 : index
    %c0_20 = arith.constant 0 : index
    %c0_21 = arith.constant 0 : index
    %21 = vector.load %arg2[%c3, %c0_20, %c0_21] : memref<9x64x256xbf16, #tpu.memory_space<vmem>>, vector<1x64x256xbf16>
    %22 = vector.shape_cast %21 : vector<1x64x256xbf16> to vector<64x256xbf16>
    %cst_22 = arith.constant dense<0.000000e+00> : vector<21x256xf32>
    %23 = tpu.matmul %20, %22, %cst_22 {dimension_numbers = #tpu.dot_dimension_numbers<[1], [0], [0], [1], [0, 0, 1, 1], [], []>} : vector<21x64xbf16>, vector<64x256xbf16>, vector<21x256xf32> -> vector<21x256xf32>
    %24 = arith.addf %18, %23 : vector<21x256xf32>
    %c0_23 = arith.constant 0 : index
    %c8 = arith.constant 8 : index
    %c0_24 = arith.constant 0 : index
    %25 = vector.load %arg1[%c0_23, %c8, %c0_24] : memref<1x42x64xbf16, #tpu.memory_space<vmem>>, vector<1x21x64xbf16>
    %26 = vector.shape_cast %25 : vector<1x21x64xbf16> to vector<21x64xbf16>
    %c4 = arith.constant 4 : index
    %c0_25 = arith.constant 0 : index
    %c0_26 = arith.constant 0 : index
    %27 = vector.load %arg2[%c4, %c0_25, %c0_26] : memref<9x64x256xbf16, #tpu.memory_space<vmem>>, vector<1x64x256xbf16>
    %28 = vector.shape_cast %27 : vector<1x64x256xbf16> to vector<64x256xbf16>
    %cst_27 = arith.constant dense<0.000000e+00> : vector<21x256xf32>
    %29 = tpu.matmul %26, %28, %cst_27 {dimension_numbers = #tpu.dot_dimension_numbers<[1], [0], [0], [1], [0, 0, 1, 1], [], []>} : vector<21x64xbf16>, vector<64x256xbf16>, vector<21x256xf32> -> vector<21x256xf32>
    %30 = arith.addf %24, %29 : vector<21x256xf32>
    %c0_28 = arith.constant 0 : index
    %c9 = arith.constant 9 : index
    %c0_29 = arith.constant 0 : index
    %31 = vector.load %arg1[%c0_28, %c9, %c0_29] : memref<1x42x64xbf16, #tpu.memory_space<vmem>>, vector<1x21x64xbf16>
    %32 = vector.shape_cast %31 : vector<1x21x64xbf16> to vector<21x64xbf16>
    %c5 = arith.constant 5 : index
    %c0_30 = arith.constant 0 : index
    %c0_31 = arith.constant 0 : index
    %33 = vector.load %arg2[%c5, %c0_30, %c0_31] : memref<9x64x256xbf16, #tpu.memory_space<vmem>>, vector<1x64x256xbf16>
    %34 = vector.shape_cast %33 : vector<1x64x256xbf16> to vector<64x256xbf16>
    %cst_32 = arith.constant dense<0.000000e+00> : vector<21x256xf32>
    %35 = tpu.matmul %32, %34, %cst_32 {dimension_numbers = #tpu.dot_dimension_numbers<[1], [0], [0], [1], [0, 0, 1, 1], [], []>} : vector<21x64xbf16>, vector<64x256xbf16>, vector<21x256xf32> -> vector<21x256xf32>
    %36 = arith.addf %30, %35 : vector<21x256xf32>
    %c0_33 = arith.constant 0 : index
    %c14 = arith.constant 14 : index
    %c0_34 = arith.constant 0 : index
    %37 = vector.load %arg1[%c0_33, %c14, %c0_34] : memref<1x42x64xbf16, #tpu.memory_space<vmem>>, vector<1x21x64xbf16>
    %38 = vector.shape_cast %37 : vector<1x21x64xbf16> to vector<21x64xbf16>
    %c6 = arith.constant 6 : index
    %c0_35 = arith.constant 0 : index
    %c0_36 = arith.constant 0 : index
    %39 = vector.load %arg2[%c6, %c0_35, %c0_36] : memref<9x64x256xbf16, #tpu.memory_space<vmem>>, vector<1x64x256xbf16>
    %40 = vector.shape_cast %39 : vector<1x64x256xbf16> to vector<64x256xbf16>
    %cst_37 = arith.constant dense<0.000000e+00> : vector<21x256xf32>
    %41 = tpu.matmul %38, %40, %cst_37 {dimension_numbers = #tpu.dot_dimension_numbers<[1], [0], [0], [1], [0, 0, 1, 1], [], []>} : vector<21x64xbf16>, vector<64x256xbf16>, vector<21x256xf32> -> vector<21x256xf32>
    %42 = arith.addf %36, %41 : vector<21x256xf32>
    %c0_38 = arith.constant 0 : index
    %c15 = arith.constant 15 : index
    %c0_39 = arith.constant 0 : index
    %43 = vector.load %arg1[%c0_38, %c15, %c0_39] : memref<1x42x64xbf16, #tpu.memory_space<vmem>>, vector<1x21x64xbf16>
    %44 = vector.shape_cast %43 : vector<1x21x64xbf16> to vector<21x64xbf16>
    %c7_40 = arith.constant 7 : index
    %c0_41 = arith.constant 0 : index
    %c0_42 = arith.constant 0 : index
    %45 = vector.load %arg2[%c7_40, %c0_41, %c0_42] : memref<9x64x256xbf16, #tpu.memory_space<vmem>>, vector<1x64x256xbf16>
    %46 = vector.shape_cast %45 : vector<1x64x256xbf16> to vector<64x256xbf16>
    %cst_43 = arith.constant dense<0.000000e+00> : vector<21x256xf32>
    %47 = tpu.matmul %44, %46, %cst_43 {dimension_numbers = #tpu.dot_dimension_numbers<[1], [0], [0], [1], [0, 0, 1, 1], [], []>} : vector<21x64xbf16>, vector<64x256xbf16>, vector<21x256xf32> -> vector<21x256xf32>
    %48 = arith.addf %42, %47 : vector<21x256xf32>
    %c0_44 = arith.constant 0 : index
    %c16 = arith.constant 16 : index
    %c0_45 = arith.constant 0 : index
    %49 = vector.load %arg1[%c0_44, %c16, %c0_45] : memref<1x42x64xbf16, #tpu.memory_space<vmem>>, vector<1x21x64xbf16>
    %50 = vector.shape_cast %49 : vector<1x21x64xbf16> to vector<21x64xbf16>
    %c8_46 = arith.constant 8 : index
    %c0_47 = arith.constant 0 : index
    %c0_48 = arith.constant 0 : index
    %51 = vector.load %arg2[%c8_46, %c0_47, %c0_48] : memref<9x64x256xbf16, #tpu.memory_space<vmem>>, vector<1x64x256xbf16>
    %52 = vector.shape_cast %51 : vector<1x64x256xbf16> to vector<64x256xbf16>
    %cst_49 = arith.constant dense<0.000000e+00> : vector<21x256xf32>
    %53 = tpu.matmul %50, %52, %cst_49 {dimension_numbers = #tpu.dot_dimension_numbers<[1], [0], [0], [1], [0, 0, 1, 1], [], []>} : vector<21x64xbf16>, vector<64x256xbf16>, vector<21x256xf32> -> vector<21x256xf32>
    %54 = arith.addf %48, %53 : vector<21x256xf32>
    %cst_50 = arith.constant 0.000000e+00 : f32
    %55 = vector.broadcast %cst_50 : f32 to vector<21x256xf32>
    %56 = arith.maximumf %54, %55 : vector<21x256xf32>
    %c0_51 = arith.constant 0 : index
    %c0_52 = arith.constant 0 : index
    %c0_53 = arith.constant 0 : index
    %57 = vector.load %arg3[%c0_51, %c0_52, %c0_53] : memref<1x21x256xf32, #tpu.memory_space<vmem>>, vector<1x21x256xf32>
    %58 = vector.shape_cast %57 : vector<1x21x256xf32> to vector<21x256xf32>
    %59 = vector.shape_cast %56 : vector<21x256xf32> to vector<1x21x256xf32>
    tpu.vector_store %arg3[%c0_51, %c0_52, %c0_53], %59 {strides = array<i32>} : memref<1x21x256xf32, #tpu.memory_space<vmem>>, vector<1x21x256xf32>,
    return
  }
  func.func @transform_0(%arg0: i32) -> (i32, i32, i32) {
    %c0_i32 = arith.constant 0 : i32
    %c0_i32_0 = arith.constant 0 : i32
    %c0_i32_1 = arith.constant 0 : i32
    return %arg0, %c0_i32, %c0_i32_0 : i32, i32, i32
  }
  func.func @transform_1(%arg0: i32) -> (i32, i32, i32) {
    %c0_i32 = arith.constant 0 : i32
    %c0_i32_0 = arith.constant 0 : i32
    %c0_i32_1 = arith.constant 0 : i32
    %c0_i32_2 = arith.constant 0 : i32
    return %c0_i32, %c0_i32_0, %c0_i32_1 : i32, i32, i32
  }
  func.func @transform_2(%arg0: i32) -> (i32, i32, i32) {
    %c0_i32 = arith.constant 0 : i32
    %c0_i32_0 = arith.constant 0 : i32
    %c0_i32_1 = arith.constant 0 : i32
    return %arg0, %c0_i32, %c0_i32_0 : i32, i32, i32
  }
}

module attributes {stable_mosaic.version = 11 : i64} {
  func.func @_mm_kernel(%arg0: i32, %arg1: i32, %arg2: i32, %arg3: memref<24x64xbf16, #tpu.memory_space<vmem>>, %arg4: memref<64x256xbf16, #tpu.memory_space<vmem>>, %arg5: memref<24x256xf32, #tpu.memory_space<vmem>>, %arg6: memref<24x256xf32, #tpu.memory_space<vmem>>) attributes {dimension_semantics = [#tpu.dimension_semantics<parallel>, #tpu.dimension_semantics<parallel>, #tpu.dimension_semantics<arbitrary>], iteration_bounds = array<i64: 1, 1, 1>, scalar_prefetch = 0 : i64, scratch_operands = 1 : i64, tpu.core_type = #tpu.core_type<tc>, window_params = [{transform_indices = @transform_0, window_bounds = array<i64: 24, 64>}, {transform_indices = @transform_1, window_bounds = array<i64: 64, 256>}, {transform_indices = @transform_2, window_bounds = array<i64: 24, 256>}]} {
    %c0_i32 = arith.constant 0 : i32
    %0 = arith.cmpi eq, %arg2, %c0_i32 : i32
    %1 = arith.extui %0 : i1 to i32
    %c0_i32_0 = arith.constant 0 : i32
    %2 = arith.cmpi ne, %1, %c0_i32_0 : i32
    scf.if %2 {
      %cst_10 = arith.constant 0.000000e+00 : f32
      %12 = vector.broadcast %cst_10 : f32 to vector<24x256xf32>
      %c0_11 = arith.constant 0 : index
      %c0_12 = arith.constant 0 : index
      %13 = vector.load %arg6[%c0_11, %c0_12] : memref<24x256xf32, #tpu.memory_space<vmem>>, vector<24x256xf32>
      tpu.vector_store %arg6[%c0_11, %c0_12], %12 {strides = array<i32>} : memref<24x256xf32, #tpu.memory_space<vmem>>, vector<24x256xf32>,
    } else {
    }
    %c0 = arith.constant 0 : index
    %c0_1 = arith.constant 0 : index
    %3 = vector.load %arg6[%c0, %c0_1] : memref<24x256xf32, #tpu.memory_space<vmem>>, vector<24x256xf32>
    %c0_2 = arith.constant 0 : index
    %c0_3 = arith.constant 0 : index
    %4 = vector.load %arg3[%c0_2, %c0_3] : memref<24x64xbf16, #tpu.memory_space<vmem>>, vector<24x64xbf16>
    %c0_4 = arith.constant 0 : index
    %c0_5 = arith.constant 0 : index
    %5 = vector.load %arg4[%c0_4, %c0_5] : memref<64x256xbf16, #tpu.memory_space<vmem>>, vector<64x256xbf16>
    %cst = arith.constant dense<0.000000e+00> : vector<24x256xf32>
    %6 = tpu.matmul %4, %5, %cst {dimension_numbers = #tpu.dot_dimension_numbers<[1], [0], [0], [1], [0, 0, 1, 1], [], []>} : vector<24x64xbf16>, vector<64x256xbf16>, vector<24x256xf32> -> vector<24x256xf32>
    %7 = arith.addf %3, %6 : vector<24x256xf32>
    %c0_6 = arith.constant 0 : index
    %c0_7 = arith.constant 0 : index
    %8 = vector.load %arg6[%c0_6, %c0_7] : memref<24x256xf32, #tpu.memory_space<vmem>>, vector<24x256xf32>
    tpu.vector_store %arg6[%c0_6, %c0_7], %7 {strides = array<i32>} : memref<24x256xf32, #tpu.memory_space<vmem>>, vector<24x256xf32>,
    %c0_i32_8 = arith.constant 0 : i32
    %9 = arith.cmpi eq, %arg2, %c0_i32_8 : i32
    %10 = arith.extui %9 : i1 to i32
    %c0_i32_9 = arith.constant 0 : i32
    %11 = arith.cmpi ne, %10, %c0_i32_9 : i32
    scf.if %11 {
      %c0_10 = arith.constant 0 : index
      %c0_11 = arith.constant 0 : index
      %12 = vector.load %arg6[%c0_10, %c0_11] : memref<24x256xf32, #tpu.memory_space<vmem>>, vector<24x256xf32>
      %cst_12 = arith.constant 0.000000e+00 : f32
      %13 = vector.broadcast %cst_12 : f32 to vector<24x256xf32>
      %14 = arith.maximumf %12, %13 : vector<24x256xf32>
      %c0_13 = arith.constant 0 : index
      %c0_14 = arith.constant 0 : index
      %15 = vector.load %arg5[%c0_13, %c0_14] : memref<24x256xf32, #tpu.memory_space<vmem>>, vector<24x256xf32>
      tpu.vector_store %arg5[%c0_13, %c0_14], %14 {strides = array<i32>} : memref<24x256xf32, #tpu.memory_space<vmem>>, vector<24x256xf32>,
    } else {
    }
    return
  }
  func.func @transform_0(%arg0: i32, %arg1: i32, %arg2: i32) -> (i32, i32) {
    %c0_i32 = arith.constant 0 : i32
    return %arg0, %arg2 : i32, i32
  }
  func.func @transform_1(%arg0: i32, %arg1: i32, %arg2: i32) -> (i32, i32) {
    %c0_i32 = arith.constant 0 : i32
    return %arg2, %arg1 : i32, i32
  }
  func.func @transform_2(%arg0: i32, %arg1: i32, %arg2: i32) -> (i32, i32) {
    %c0_i32 = arith.constant 0 : i32
    return %arg0, %arg1 : i32, i32
  }
}

module attributes {stable_mosaic.version = 11 : i64} {
  func.func @_max9_kernel(%arg0: i32, %arg1: memref<9x8x512xf32, #tpu.memory_space<vmem>>, %arg2: memref<8x512xf32, #tpu.memory_space<vmem>>) attributes {dimension_semantics = [#tpu.dimension_semantics<parallel>], iteration_bounds = array<i64: 1>, scalar_prefetch = 0 : i64, scratch_operands = 0 : i64, tpu.core_type = #tpu.core_type<tc>, window_params = [{transform_indices = @transform_0, window_bounds = array<i64: 9, 8, 512>}, {transform_indices = @transform_1, window_bounds = array<i64: 8, 512>}]} {
    %c0 = arith.constant 0 : index
    %c0_0 = arith.constant 0 : index
    %c0_1 = arith.constant 0 : index
    %0 = vector.load %arg1[%c0, %c0_0, %c0_1] : memref<9x8x512xf32, #tpu.memory_space<vmem>>, vector<9x8x512xf32>
    %cst = arith.constant dense<0xFF800000> : vector<8x512xf32>
    %1 = vector.multi_reduction <maximumf>, %0, %cst [0] : vector<9x8x512xf32> to vector<8x512xf32>
    %c0_2 = arith.constant 0 : index
    %c0_3 = arith.constant 0 : index
    %2 = vector.load %arg2[%c0_2, %c0_3] : memref<8x512xf32, #tpu.memory_space<vmem>>, vector<8x512xf32>
    tpu.vector_store %arg2[%c0_2, %c0_3], %1 {strides = array<i32>} : memref<8x512xf32, #tpu.memory_space<vmem>>, vector<8x512xf32>,
    return
  }
  func.func @transform_0(%arg0: i32) -> (i32, i32, i32) {
    %c0_i32 = arith.constant 0 : i32
    %c0_i32_0 = arith.constant 0 : i32
    %c0_i32_1 = arith.constant 0 : i32
    return %c0_i32, %arg0, %c0_i32_0 : i32, i32, i32
  }
  func.func @transform_1(%arg0: i32) -> (i32, i32) {
    %c0_i32 = arith.constant 0 : i32
    %c0_i32_0 = arith.constant 0 : i32
    return %arg0, %c0_i32 : i32, i32
  }
}

module attributes {stable_mosaic.version = 11 : i64} {
  func.func @_mm_kernel(%arg0: i32, %arg1: i32, %arg2: i32, %arg3: memref<8x512xbf16, #tpu.memory_space<vmem>>, %arg4: memref<512x64xbf16, #tpu.memory_space<vmem>>, %arg5: memref<8x64xf32, #tpu.memory_space<vmem>>, %arg6: memref<8x64xf32, #tpu.memory_space<vmem>>) attributes {dimension_semantics = [#tpu.dimension_semantics<parallel>, #tpu.dimension_semantics<parallel>, #tpu.dimension_semantics<arbitrary>], iteration_bounds = array<i64: 1, 1, 1>, scalar_prefetch = 0 : i64, scratch_operands = 1 : i64, tpu.core_type = #tpu.core_type<tc>, window_params = [{transform_indices = @transform_0, window_bounds = array<i64: 8, 512>}, {transform_indices = @transform_1, window_bounds = array<i64: 512, 64>}, {transform_indices = @transform_2, window_bounds = array<i64: 8, 64>}]} {
    %c0_i32 = arith.constant 0 : i32
    %0 = arith.cmpi eq, %arg2, %c0_i32 : i32
    %1 = arith.extui %0 : i1 to i32
    %c0_i32_0 = arith.constant 0 : i32
    %2 = arith.cmpi ne, %1, %c0_i32_0 : i32
    scf.if %2 {
      %cst_10 = arith.constant 0.000000e+00 : f32
      %12 = vector.broadcast %cst_10 : f32 to vector<8x64xf32>
      %c0_11 = arith.constant 0 : index
      %c0_12 = arith.constant 0 : index
      %13 = vector.load %arg6[%c0_11, %c0_12] : memref<8x64xf32, #tpu.memory_space<vmem>>, vector<8x64xf32>
      tpu.vector_store %arg6[%c0_11, %c0_12], %12 {strides = array<i32>} : memref<8x64xf32, #tpu.memory_space<vmem>>, vector<8x64xf32>,
    } else {
    }
    %c0 = arith.constant 0 : index
    %c0_1 = arith.constant 0 : index
    %3 = vector.load %arg6[%c0, %c0_1] : memref<8x64xf32, #tpu.memory_space<vmem>>, vector<8x64xf32>
    %c0_2 = arith.constant 0 : index
    %c0_3 = arith.constant 0 : index
    %4 = vector.load %arg3[%c0_2, %c0_3] : memref<8x512xbf16, #tpu.memory_space<vmem>>, vector<8x512xbf16>
    %c0_4 = arith.constant 0 : index
    %c0_5 = arith.constant 0 : index
    %5 = vector.load %arg4[%c0_4, %c0_5] : memref<512x64xbf16, #tpu.memory_space<vmem>>, vector<512x64xbf16>
    %cst = arith.constant dense<0.000000e+00> : vector<8x64xf32>
    %6 = tpu.matmul %4, %5, %cst {dimension_numbers = #tpu.dot_dimension_numbers<[1], [0], [0], [1], [0, 0, 1, 1], [], []>} : vector<8x512xbf16>, vector<512x64xbf16>, vector<8x64xf32> -> vector<8x64xf32>
    %7 = arith.addf %3, %6 : vector<8x64xf32>
    %c0_6 = arith.constant 0 : index
    %c0_7 = arith.constant 0 : index
    %8 = vector.load %arg6[%c0_6, %c0_7] : memref<8x64xf32, #tpu.memory_space<vmem>>, vector<8x64xf32>
    tpu.vector_store %arg6[%c0_6, %c0_7], %7 {strides = array<i32>} : memref<8x64xf32, #tpu.memory_space<vmem>>, vector<8x64xf32>,
    %c0_i32_8 = arith.constant 0 : i32
    %9 = arith.cmpi eq, %arg2, %c0_i32_8 : i32
    %10 = arith.extui %9 : i1 to i32
    %c0_i32_9 = arith.constant 0 : i32
    %11 = arith.cmpi ne, %10, %c0_i32_9 : i32
    scf.if %11 {
      %c0_10 = arith.constant 0 : index
      %c0_11 = arith.constant 0 : index
      %12 = vector.load %arg6[%c0_10, %c0_11] : memref<8x64xf32, #tpu.memory_space<vmem>>, vector<8x64xf32>
      %cst_12 = arith.constant 0.000000e+00 : f32
      %13 = vector.broadcast %cst_12 : f32 to vector<8x64xf32>
      %14 = arith.maximumf %12, %13 : vector<8x64xf32>
      %c0_13 = arith.constant 0 : index
      %c0_14 = arith.constant 0 : index
      %15 = vector.load %arg5[%c0_13, %c0_14] : memref<8x64xf32, #tpu.memory_space<vmem>>, vector<8x64xf32>
      tpu.vector_store %arg5[%c0_13, %c0_14], %14 {strides = array<i32>} : memref<8x64xf32, #tpu.memory_space<vmem>>, vector<8x64xf32>,
    } else {
    }
    return
  }
  func.func @transform_0(%arg0: i32, %arg1: i32, %arg2: i32) -> (i32, i32) {
    %c0_i32 = arith.constant 0 : i32
    return %arg0, %arg2 : i32, i32
  }
  func.func @transform_1(%arg0: i32, %arg1: i32, %arg2: i32) -> (i32, i32) {
    %c0_i32 = arith.constant 0 : i32
    return %arg2, %arg1 : i32, i32
  }
  func.func @transform_2(%arg0: i32, %arg1: i32, %arg2: i32) -> (i32, i32) {
    %c0_i32 = arith.constant 0 : i32
    return %arg0, %arg1 : i32, i32
  }
}

module attributes {stable_mosaic.version = 11 : i64} {
  func.func @_conv3x3_kernel(%arg0: i32, %arg1: memref<1x20x64xbf16, #tpu.memory_space<vmem>>, %arg2: memref<9x64x256xbf16, #tpu.memory_space<vmem>>, %arg3: memref<1x5x256xf32, #tpu.memory_space<vmem>>) attributes {dimension_semantics = [#tpu.dimension_semantics<parallel>], iteration_bounds = array<i64: 2>, scalar_prefetch = 0 : i64, scratch_operands = 0 : i64, tpu.core_type = #tpu.core_type<tc>, window_params = [{transform_indices = @transform_0, window_bounds = array<i64: 1, 20, 64>}, {pipeline_mode = #tpu.pipeline_mode<synchronous>, transform_indices = @transform_1, window_bounds = array<i64: 9, 64, 256>}, {transform_indices = @transform_2, window_bounds = array<i64: 1, 5, 256>}]} {
    %cst = arith.constant 0.000000e+00 : f32
    %0 = vector.broadcast %cst : f32 to vector<5x256xf32>
    %c0 = arith.constant 0 : index
    %c0_0 = arith.constant 0 : index
    %c0_1 = arith.constant 0 : index
    %1 = vector.load %arg1[%c0, %c0_0, %c0_1] : memref<1x20x64xbf16, #tpu.memory_space<vmem>>, vector<1x5x64xbf16>
    %2 = vector.shape_cast %1 : vector<1x5x64xbf16> to vector<5x64xbf16>
    %c0_2 = arith.constant 0 : index
    %c0_3 = arith.constant 0 : index
    %c0_4 = arith.constant 0 : index
    %3 = vector.load %arg2[%c0_2, %c0_3, %c0_4] : memref<9x64x256xbf16, #tpu.memory_space<vmem>>, vector<1x64x256xbf16>
    %4 = vector.shape_cast %3 : vector<1x64x256xbf16> to vector<64x256xbf16>
    %cst_5 = arith.constant dense<0.000000e+00> : vector<5x256xf32>
    %5 = tpu.matmul %2, %4, %cst_5 {dimension_numbers = #tpu.dot_dimension_numbers<[1], [0], [0], [1], [0, 0, 1, 1], [], []>} : vector<5x64xbf16>, vector<64x256xbf16>, vector<5x256xf32> -> vector<5x256xf32>
    %6 = arith.addf %0, %5 : vector<5x256xf32>
    %c0_6 = arith.constant 0 : index
    %c1 = arith.constant 1 : index
    %c0_7 = arith.constant 0 : index
    %7 = vector.load %arg1[%c0_6, %c1, %c0_7] : memref<1x20x64xbf16, #tpu.memory_space<vmem>>, vector<1x5x64xbf16>
    %8 = vector.shape_cast %7 : vector<1x5x64xbf16> to vector<5x64xbf16>
    %c1_8 = arith.constant 1 : index
    %c0_9 = arith.constant 0 : index
    %c0_10 = arith.constant 0 : index
    %9 = vector.load %arg2[%c1_8, %c0_9, %c0_10] : memref<9x64x256xbf16, #tpu.memory_space<vmem>>, vector<1x64x256xbf16>
    %10 = vector.shape_cast %9 : vector<1x64x256xbf16> to vector<64x256xbf16>
    %cst_11 = arith.constant dense<0.000000e+00> : vector<5x256xf32>
    %11 = tpu.matmul %8, %10, %cst_11 {dimension_numbers = #tpu.dot_dimension_numbers<[1], [0], [0], [1], [0, 0, 1, 1], [], []>} : vector<5x64xbf16>, vector<64x256xbf16>, vector<5x256xf32> -> vector<5x256xf32>
    %12 = arith.addf %6, %11 : vector<5x256xf32>
    %c0_12 = arith.constant 0 : index
    %c2 = arith.constant 2 : index
    %c0_13 = arith.constant 0 : index
    %13 = vector.load %arg1[%c0_12, %c2, %c0_13] : memref<1x20x64xbf16, #tpu.memory_space<vmem>>, vector<1x5x64xbf16>
    %14 = vector.shape_cast %13 : vector<1x5x64xbf16> to vector<5x64xbf16>
    %c2_14 = arith.constant 2 : index
    %c0_15 = arith.constant 0 : index
    %c0_16 = arith.constant 0 : index
    %15 = vector.load %arg2[%c2_14, %c0_15, %c0_16] : memref<9x64x256xbf16, #tpu.memory_space<vmem>>, vector<1x64x256xbf16>
    %16 = vector.shape_cast %15 : vector<1x64x256xbf16> to vector<64x256xbf16>
    %cst_17 = arith.constant dense<0.000000e+00> : vector<5x256xf32>
    %17 = tpu.matmul %14, %16, %cst_17 {dimension_numbers = #tpu.dot_dimension_numbers<[1], [0], [0], [1], [0, 0, 1, 1], [], []>} : vector<5x64xbf16>, vector<64x256xbf16>, vector<5x256xf32> -> vector<5x256xf32>
    %18 = arith.addf %12, %17 : vector<5x256xf32>
    %c0_18 = arith.constant 0 : index
    %c5 = arith.constant 5 : index
    %c0_19 = arith.constant 0 : index
    %19 = vector.load %arg1[%c0_18, %c5, %c0_19] : memref<1x20x64xbf16, #tpu.memory_space<vmem>>, vector<1x5x64xbf16>
    %20 = vector.shape_cast %19 : vector<1x5x64xbf16> to vector<5x64xbf16>
    %c3 = arith.constant 3 : index
    %c0_20 = arith.constant 0 : index
    %c0_21 = arith.constant 0 : index
    %21 = vector.load %arg2[%c3, %c0_20, %c0_21] : memref<9x64x256xbf16, #tpu.memory_space<vmem>>, vector<1x64x256xbf16>
    %22 = vector.shape_cast %21 : vector<1x64x256xbf16> to vector<64x256xbf16>
    %cst_22 = arith.constant dense<0.000000e+00> : vector<5x256xf32>
    %23 = tpu.matmul %20, %22, %cst_22 {dimension_numbers = #tpu.dot_dimension_numbers<[1], [0], [0], [1], [0, 0, 1, 1], [], []>} : vector<5x64xbf16>, vector<64x256xbf16>, vector<5x256xf32> -> vector<5x256xf32>
    %24 = arith.addf %18, %23 : vector<5x256xf32>
    %c0_23 = arith.constant 0 : index
    %c6 = arith.constant 6 : index
    %c0_24 = arith.constant 0 : index
    %25 = vector.load %arg1[%c0_23, %c6, %c0_24] : memref<1x20x64xbf16, #tpu.memory_space<vmem>>, vector<1x5x64xbf16>
    %26 = vector.shape_cast %25 : vector<1x5x64xbf16> to vector<5x64xbf16>
    %c4 = arith.constant 4 : index
    %c0_25 = arith.constant 0 : index
    %c0_26 = arith.constant 0 : index
    %27 = vector.load %arg2[%c4, %c0_25, %c0_26] : memref<9x64x256xbf16, #tpu.memory_space<vmem>>, vector<1x64x256xbf16>
    %28 = vector.shape_cast %27 : vector<1x64x256xbf16> to vector<64x256xbf16>
    %cst_27 = arith.constant dense<0.000000e+00> : vector<5x256xf32>
    %29 = tpu.matmul %26, %28, %cst_27 {dimension_numbers = #tpu.dot_dimension_numbers<[1], [0], [0], [1], [0, 0, 1, 1], [], []>} : vector<5x64xbf16>, vector<64x256xbf16>, vector<5x256xf32> -> vector<5x256xf32>
    %30 = arith.addf %24, %29 : vector<5x256xf32>
    %c0_28 = arith.constant 0 : index
    %c7 = arith.constant 7 : index
    %c0_29 = arith.constant 0 : index
    %31 = vector.load %arg1[%c0_28, %c7, %c0_29] : memref<1x20x64xbf16, #tpu.memory_space<vmem>>, vector<1x5x64xbf16>
    %32 = vector.shape_cast %31 : vector<1x5x64xbf16> to vector<5x64xbf16>
    %c5_30 = arith.constant 5 : index
    %c0_31 = arith.constant 0 : index
    %c0_32 = arith.constant 0 : index
    %33 = vector.load %arg2[%c5_30, %c0_31, %c0_32] : memref<9x64x256xbf16, #tpu.memory_space<vmem>>, vector<1x64x256xbf16>
    %34 = vector.shape_cast %33 : vector<1x64x256xbf16> to vector<64x256xbf16>
    %cst_33 = arith.constant dense<0.000000e+00> : vector<5x256xf32>
    %35 = tpu.matmul %32, %34, %cst_33 {dimension_numbers = #tpu.dot_dimension_numbers<[1], [0], [0], [1], [0, 0, 1, 1], [], []>} : vector<5x64xbf16>, vector<64x256xbf16>, vector<5x256xf32> -> vector<5x256xf32>
    %36 = arith.addf %30, %35 : vector<5x256xf32>
    %c0_34 = arith.constant 0 : index
    %c10 = arith.constant 10 : index
    %c0_35 = arith.constant 0 : index
    %37 = vector.load %arg1[%c0_34, %c10, %c0_35] : memref<1x20x64xbf16, #tpu.memory_space<vmem>>, vector<1x5x64xbf16>
    %38 = vector.shape_cast %37 : vector<1x5x64xbf16> to vector<5x64xbf16>
    %c6_36 = arith.constant 6 : index
    %c0_37 = arith.constant 0 : index
    %c0_38 = arith.constant 0 : index
    %39 = vector.load %arg2[%c6_36, %c0_37, %c0_38] : memref<9x64x256xbf16, #tpu.memory_space<vmem>>, vector<1x64x256xbf16>
    %40 = vector.shape_cast %39 : vector<1x64x256xbf16> to vector<64x256xbf16>
    %cst_39 = arith.constant dense<0.000000e+00> : vector<5x256xf32>
    %41 = tpu.matmul %38, %40, %cst_39 {dimension_numbers = #tpu.dot_dimension_numbers<[1], [0], [0], [1], [0, 0, 1, 1], [], []>} : vector<5x64xbf16>, vector<64x256xbf16>, vector<5x256xf32> -> vector<5x256xf32>
    %42 = arith.addf %36, %41 : vector<5x256xf32>
    %c0_40 = arith.constant 0 : index
    %c11 = arith.constant 11 : index
    %c0_41 = arith.constant 0 : index
    %43 = vector.load %arg1[%c0_40, %c11, %c0_41] : memref<1x20x64xbf16, #tpu.memory_space<vmem>>, vector<1x5x64xbf16>
    %44 = vector.shape_cast %43 : vector<1x5x64xbf16> to vector<5x64xbf16>
    %c7_42 = arith.constant 7 : index
    %c0_43 = arith.constant 0 : index
    %c0_44 = arith.constant 0 : index
    %45 = vector.load %arg2[%c7_42, %c0_43, %c0_44] : memref<9x64x256xbf16, #tpu.memory_space<vmem>>, vector<1x64x256xbf16>
    %46 = vector.shape_cast %45 : vector<1x64x256xbf16> to vector<64x256xbf16>
    %cst_45 = arith.constant dense<0.000000e+00> : vector<5x256xf32>
    %47 = tpu.matmul %44, %46, %cst_45 {dimension_numbers = #tpu.dot_dimension_numbers<[1], [0], [0], [1], [0, 0, 1, 1], [], []>} : vector<5x64xbf16>, vector<64x256xbf16>, vector<5x256xf32> -> vector<5x256xf32>
    %48 = arith.addf %42, %47 : vector<5x256xf32>
    %c0_46 = arith.constant 0 : index
    %c12 = arith.constant 12 : index
    %c0_47 = arith.constant 0 : index
    %49 = vector.load %arg1[%c0_46, %c12, %c0_47] : memref<1x20x64xbf16, #tpu.memory_space<vmem>>, vector<1x5x64xbf16>
    %50 = vector.shape_cast %49 : vector<1x5x64xbf16> to vector<5x64xbf16>
    %c8 = arith.constant 8 : index
    %c0_48 = arith.constant 0 : index
    %c0_49 = arith.constant 0 : index
    %51 = vector.load %arg2[%c8, %c0_48, %c0_49] : memref<9x64x256xbf16, #tpu.memory_space<vmem>>, vector<1x64x256xbf16>
    %52 = vector.shape_cast %51 : vector<1x64x256xbf16> to vector<64x256xbf16>
    %cst_50 = arith.constant dense<0.000000e+00> : vector<5x256xf32>
    %53 = tpu.matmul %50, %52, %cst_50 {dimension_numbers = #tpu.dot_dimension_numbers<[1], [0], [0], [1], [0, 0, 1, 1], [], []>} : vector<5x64xbf16>, vector<64x256xbf16>, vector<5x256xf32> -> vector<5x256xf32>
    %54 = arith.addf %48, %53 : vector<5x256xf32>
    %cst_51 = arith.constant 0.000000e+00 : f32
    %55 = vector.broadcast %cst_51 : f32 to vector<5x256xf32>
    %56 = arith.maximumf %54, %55 : vector<5x256xf32>
    %c0_52 = arith.constant 0 : index
    %c0_53 = arith.constant 0 : index
    %c0_54 = arith.constant 0 : index
    %57 = vector.load %arg3[%c0_52, %c0_53, %c0_54] : memref<1x5x256xf32, #tpu.memory_space<vmem>>, vector<1x5x256xf32>
    %58 = vector.shape_cast %57 : vector<1x5x256xf32> to vector<5x256xf32>
    %59 = vector.shape_cast %56 : vector<5x256xf32> to vector<1x5x256xf32>
    tpu.vector_store %arg3[%c0_52, %c0_53, %c0_54], %59 {strides = array<i32>} : memref<1x5x256xf32, #tpu.memory_space<vmem>>, vector<1x5x256xf32>,
    return
  }
  func.func @transform_0(%arg0: i32) -> (i32, i32, i32) {
    %c0_i32 = arith.constant 0 : i32
    %c0_i32_0 = arith.constant 0 : i32
    %c0_i32_1 = arith.constant 0 : i32
    return %arg0, %c0_i32, %c0_i32_0 : i32, i32, i32
  }
  func.func @transform_1(%arg0: i32) -> (i32, i32, i32) {
    %c0_i32 = arith.constant 0 : i32
    %c0_i32_0 = arith.constant 0 : i32
    %c0_i32_1 = arith.constant 0 : i32
    %c0_i32_2 = arith.constant 0 : i32
    return %c0_i32, %c0_i32_0, %c0_i32_1 : i32, i32, i32
  }
  func.func @transform_2(%arg0: i32) -> (i32, i32, i32) {
    %c0_i32 = arith.constant 0 : i32
    %c0_i32_0 = arith.constant 0 : i32
    %c0_i32_1 = arith.constant 0 : i32
    return %arg0, %c0_i32, %c0_i32_0 : i32, i32, i32
  }
}

module attributes {stable_mosaic.version = 11 : i64} {
  func.func @_mm_kernel(%arg0: i32, %arg1: i32, %arg2: i32, %arg3: memref<8x64xbf16, #tpu.memory_space<vmem>>, %arg4: memref<64x256xbf16, #tpu.memory_space<vmem>>, %arg5: memref<8x256xf32, #tpu.memory_space<vmem>>, %arg6: memref<8x256xf32, #tpu.memory_space<vmem>>) attributes {dimension_semantics = [#tpu.dimension_semantics<parallel>, #tpu.dimension_semantics<parallel>, #tpu.dimension_semantics<arbitrary>], iteration_bounds = array<i64: 1, 1, 1>, scalar_prefetch = 0 : i64, scratch_operands = 1 : i64, tpu.core_type = #tpu.core_type<tc>, window_params = [{transform_indices = @transform_0, window_bounds = array<i64: 8, 64>}, {transform_indices = @transform_1, window_bounds = array<i64: 64, 256>}, {transform_indices = @transform_2, window_bounds = array<i64: 8, 256>}]} {
    %c0_i32 = arith.constant 0 : i32
    %0 = arith.cmpi eq, %arg2, %c0_i32 : i32
    %1 = arith.extui %0 : i1 to i32
    %c0_i32_0 = arith.constant 0 : i32
    %2 = arith.cmpi ne, %1, %c0_i32_0 : i32
    scf.if %2 {
      %cst_10 = arith.constant 0.000000e+00 : f32
      %12 = vector.broadcast %cst_10 : f32 to vector<8x256xf32>
      %c0_11 = arith.constant 0 : index
      %c0_12 = arith.constant 0 : index
      %13 = vector.load %arg6[%c0_11, %c0_12] : memref<8x256xf32, #tpu.memory_space<vmem>>, vector<8x256xf32>
      tpu.vector_store %arg6[%c0_11, %c0_12], %12 {strides = array<i32>} : memref<8x256xf32, #tpu.memory_space<vmem>>, vector<8x256xf32>,
    } else {
    }
    %c0 = arith.constant 0 : index
    %c0_1 = arith.constant 0 : index
    %3 = vector.load %arg6[%c0, %c0_1] : memref<8x256xf32, #tpu.memory_space<vmem>>, vector<8x256xf32>
    %c0_2 = arith.constant 0 : index
    %c0_3 = arith.constant 0 : index
    %4 = vector.load %arg3[%c0_2, %c0_3] : memref<8x64xbf16, #tpu.memory_space<vmem>>, vector<8x64xbf16>
    %c0_4 = arith.constant 0 : index
    %c0_5 = arith.constant 0 : index
    %5 = vector.load %arg4[%c0_4, %c0_5] : memref<64x256xbf16, #tpu.memory_space<vmem>>, vector<64x256xbf16>
    %cst = arith.constant dense<0.000000e+00> : vector<8x256xf32>
    %6 = tpu.matmul %4, %5, %cst {dimension_numbers = #tpu.dot_dimension_numbers<[1], [0], [0], [1], [0, 0, 1, 1], [], []>} : vector<8x64xbf16>, vector<64x256xbf16>, vector<8x256xf32> -> vector<8x256xf32>
    %7 = arith.addf %3, %6 : vector<8x256xf32>
    %c0_6 = arith.constant 0 : index
    %c0_7 = arith.constant 0 : index
    %8 = vector.load %arg6[%c0_6, %c0_7] : memref<8x256xf32, #tpu.memory_space<vmem>>, vector<8x256xf32>
    tpu.vector_store %arg6[%c0_6, %c0_7], %7 {strides = array<i32>} : memref<8x256xf32, #tpu.memory_space<vmem>>, vector<8x256xf32>,
    %c0_i32_8 = arith.constant 0 : i32
    %9 = arith.cmpi eq, %arg2, %c0_i32_8 : i32
    %10 = arith.extui %9 : i1 to i32
    %c0_i32_9 = arith.constant 0 : i32
    %11 = arith.cmpi ne, %10, %c0_i32_9 : i32
    scf.if %11 {
      %c0_10 = arith.constant 0 : index
      %c0_11 = arith.constant 0 : index
      %12 = vector.load %arg6[%c0_10, %c0_11] : memref<8x256xf32, #tpu.memory_space<vmem>>, vector<8x256xf32>
      %cst_12 = arith.constant 0.000000e+00 : f32
      %13 = vector.broadcast %cst_12 : f32 to vector<8x256xf32>
      %14 = arith.maximumf %12, %13 : vector<8x256xf32>
      %c0_13 = arith.constant 0 : index
      %c0_14 = arith.constant 0 : index
      %15 = vector.load %arg5[%c0_13, %c0_14] : memref<8x256xf32, #tpu.memory_space<vmem>>, vector<8x256xf32>
      tpu.vector_store %arg5[%c0_13, %c0_14], %14 {strides = array<i32>} : memref<8x256xf32, #tpu.memory_space<vmem>>, vector<8x256xf32>,
    } else {
    }
    return
  }
  func.func @transform_0(%arg0: i32, %arg1: i32, %arg2: i32) -> (i32, i32) {
    %c0_i32 = arith.constant 0 : i32
    return %arg0, %arg2 : i32, i32
  }
  func.func @transform_1(%arg0: i32, %arg1: i32, %arg2: i32) -> (i32, i32) {
    %c0_i32 = arith.constant 0 : i32
    return %arg2, %arg1 : i32, i32
  }
  func.func @transform_2(%arg0: i32, %arg1: i32, %arg2: i32) -> (i32, i32) {
    %c0_i32 = arith.constant 0 : i32
    return %arg0, %arg1 : i32, i32
  }
}

module attributes {stable_mosaic.version = 11 : i64} {
  func.func @_avgpool_kernel(%arg0: i32, %arg1: memref<1x1x512xf32, #tpu.memory_space<vmem>>, %arg2: memref<1x1x512xf32, #tpu.memory_space<vmem>>) attributes {dimension_semantics = [#tpu.dimension_semantics<parallel>], iteration_bounds = array<i64: 2>, scalar_prefetch = 0 : i64, scratch_operands = 0 : i64, tpu.core_type = #tpu.core_type<tc>, window_params = [{transform_indices = @transform_0, window_bounds = array<i64: 1, 1, 512>}, {transform_indices = @transform_1, window_bounds = array<i64: 1, 1, 512>}]} {
    %c0 = arith.constant 0 : index
    %c0_0 = arith.constant 0 : index
    %c0_1 = arith.constant 0 : index
    %0 = vector.load %arg1[%c0, %c0_0, %c0_1] : memref<1x1x512xf32, #tpu.memory_space<vmem>>, vector<1x1x512xf32>
    %cst = arith.constant dense<0.000000e+00> : vector<1x512xf32>
    %1 = vector.multi_reduction <add>, %0, %cst [1] : vector<1x1x512xf32> to vector<1x512xf32>
    %2 = vector.shape_cast %1 : vector<1x512xf32> to vector<1x1x512xf32>
    %cst_2 = arith.constant 1.000000e+00 : f32
    %3 = vector.broadcast %cst_2 : f32 to vector<1x1x512xf32>
    %4 = arith.divf %2, %3 : vector<1x1x512xf32>
    %c0_3 = arith.constant 0 : index
    %c0_4 = arith.constant 0 : index
    %c0_5 = arith.constant 0 : index
    %5 = vector.load %arg2[%c0_3, %c0_4, %c0_5] : memref<1x1x512xf32, #tpu.memory_space<vmem>>, vector<1x1x512xf32>
    tpu.vector_store %arg2[%c0_3, %c0_4, %c0_5], %4 {strides = array<i32>} : memref<1x1x512xf32, #tpu.memory_space<vmem>>, vector<1x1x512xf32>,
    return
  }
  func.func @transform_0(%arg0: i32) -> (i32, i32, i32) {
    %c0_i32 = arith.constant 0 : i32
    %c0_i32_0 = arith.constant 0 : i32
    %c0_i32_1 = arith.constant 0 : i32
    return %arg0, %c0_i32, %c0_i32_0 : i32, i32, i32
  }
  func.func @transform_1(%arg0: i32) -> (i32, i32, i32) {
    %c0_i32 = arith.constant 0 : i32
    %c0_i32_0 = arith.constant 0 : i32
    %c0_i32_1 = arith.constant 0 : i32
    return %arg0, %c0_i32, %c0_i32_0 : i32, i32, i32
  }
}

module attributes {stable_mosaic.version = 11 : i64} {
  func.func @_mm_kernel(%arg0: i32, %arg1: i32, %arg2: i32, %arg3: memref<8x512xbf16, #tpu.memory_space<vmem>>, %arg4: memref<512x16xbf16, #tpu.memory_space<vmem>>, %arg5: memref<8x16xf32, #tpu.memory_space<vmem>>, %arg6: memref<8x16xf32, #tpu.memory_space<vmem>>) attributes {dimension_semantics = [#tpu.dimension_semantics<parallel>, #tpu.dimension_semantics<parallel>, #tpu.dimension_semantics<arbitrary>], iteration_bounds = array<i64: 1, 1, 1>, scalar_prefetch = 0 : i64, scratch_operands = 1 : i64, tpu.core_type = #tpu.core_type<tc>, window_params = [{transform_indices = @transform_0, window_bounds = array<i64: 8, 512>}, {transform_indices = @transform_1, window_bounds = array<i64: 512, 16>}, {transform_indices = @transform_2, window_bounds = array<i64: 8, 16>}]} {
    %c0_i32 = arith.constant 0 : i32
    %0 = arith.cmpi eq, %arg2, %c0_i32 : i32
    %1 = arith.extui %0 : i1 to i32
    %c0_i32_0 = arith.constant 0 : i32
    %2 = arith.cmpi ne, %1, %c0_i32_0 : i32
    scf.if %2 {
      %cst_10 = arith.constant 0.000000e+00 : f32
      %12 = vector.broadcast %cst_10 : f32 to vector<8x16xf32>
      %c0_11 = arith.constant 0 : index
      %c0_12 = arith.constant 0 : index
      %13 = vector.load %arg6[%c0_11, %c0_12] : memref<8x16xf32, #tpu.memory_space<vmem>>, vector<8x16xf32>
      tpu.vector_store %arg6[%c0_11, %c0_12], %12 {strides = array<i32>} : memref<8x16xf32, #tpu.memory_space<vmem>>, vector<8x16xf32>,
    } else {
    }
    %c0 = arith.constant 0 : index
    %c0_1 = arith.constant 0 : index
    %3 = vector.load %arg6[%c0, %c0_1] : memref<8x16xf32, #tpu.memory_space<vmem>>, vector<8x16xf32>
    %c0_2 = arith.constant 0 : index
    %c0_3 = arith.constant 0 : index
    %4 = vector.load %arg3[%c0_2, %c0_3] : memref<8x512xbf16, #tpu.memory_space<vmem>>, vector<8x512xbf16>
    %c0_4 = arith.constant 0 : index
    %c0_5 = arith.constant 0 : index
    %5 = vector.load %arg4[%c0_4, %c0_5] : memref<512x16xbf16, #tpu.memory_space<vmem>>, vector<512x16xbf16>
    %cst = arith.constant dense<0.000000e+00> : vector<8x16xf32>
    %6 = tpu.matmul %4, %5, %cst {dimension_numbers = #tpu.dot_dimension_numbers<[1], [0], [0], [1], [0, 0, 1, 1], [], []>} : vector<8x512xbf16>, vector<512x16xbf16>, vector<8x16xf32> -> vector<8x16xf32>
    %7 = arith.addf %3, %6 : vector<8x16xf32>
    %c0_6 = arith.constant 0 : index
    %c0_7 = arith.constant 0 : index
    %8 = vector.load %arg6[%c0_6, %c0_7] : memref<8x16xf32, #tpu.memory_space<vmem>>, vector<8x16xf32>
    tpu.vector_store %arg6[%c0_6, %c0_7], %7 {strides = array<i32>} : memref<8x16xf32, #tpu.memory_space<vmem>>, vector<8x16xf32>,
    %c0_i32_8 = arith.constant 0 : i32
    %9 = arith.cmpi eq, %arg2, %c0_i32_8 : i32
    %10 = arith.extui %9 : i1 to i32
    %c0_i32_9 = arith.constant 0 : i32
    %11 = arith.cmpi ne, %10, %c0_i32_9 : i32
    scf.if %11 {
      %c0_10 = arith.constant 0 : index
      %c0_11 = arith.constant 0 : index
      %12 = vector.load %arg6[%c0_10, %c0_11] : memref<8x16xf32, #tpu.memory_space<vmem>>, vector<8x16xf32>
      %c0_12 = arith.constant 0 : index
      %c0_13 = arith.constant 0 : index
      %13 = vector.load %arg5[%c0_12, %c0_13] : memref<8x16xf32, #tpu.memory_space<vmem>>, vector<8x16xf32>
      tpu.vector_store %arg5[%c0_12, %c0_13], %12 {strides = array<i32>} : memref<8x16xf32, #tpu.memory_space<vmem>>, vector<8x16xf32>,
    } else {
    }
    return
  }
  func.func @transform_0(%arg0: i32, %arg1: i32, %arg2: i32) -> (i32, i32) {
    %c0_i32 = arith.constant 0 : i32
    return %arg0, %arg2 : i32, i32
  }
  func.func @transform_1(%arg0: i32, %arg1: i32, %arg2: i32) -> (i32, i32) {
    %c0_i32 = arith.constant 0 : i32
    return %arg2, %arg1 : i32, i32
  }
  func.func @transform_2(%arg0: i32, %arg1: i32, %arg2: i32) -> (i32, i32) {
    %c0_i32 = arith.constant 0 : i32
    return %arg0, %arg1 : i32, i32
  }
}

</mosaic_0001>

<bundles_post_ra>
// kernel: squeezenet_forward.30
= control target key start
LH: loop header
LB: loop body
LE: loop exit
PB: predicated region body
PF: predicated region fallthrough
CT: control target
= control target key end

     0   :  { %v1390_v0 = vmov 0   ;;  %vm522_vm0 = vcmask 154624   ;;  %vm610_vm1 = vcmask 1040384   ;;  %vm16_vm2 = vcmask 785408   ;;  %s2005_s1 = inlined_call_operand.vmem [shape: bf16[147,96], index: 1, kind: input, shape index: {}]   ;;  %s2006_s0 = inlined_call_operand.vmem [shape: bf16[456,147], index: 0, kind: input, shape index: {}]   ;;  %s2007_s2 = inlined_call_operand.vmem [shape: f32[456,96], index: 2, kind: output, shape index: {}]  }
   0x1   :  { %617 = vmatprep.subr.bf16.mxu0 %v1390_v0  ;;  %v1294_v1 = vld [vmem:[%s2005_s1] sm:$0xff]   ;;  %1271 = vmatprep.subr.bf16.mxu1 %v1390_v0  ;;  %v1295_v2 = vld [vmem:[%s2005_s1 + $0x8] sm:$0xff]   ;;  %v1296_v3 = vld [vmem:[%s2005_s1 + $0x10] sm:$0xff]   ;;  %v1391_v11 = vmov 0.0   ;;  %vm611_vm3 = vcmask 1041408   ;;  %v1392_v12 = vmov 65535  }
   0x2   :  { %618 = vmatpush1.bf16.msra.mxu0 %v1294_v1  ;;  %1281 = vmatpush1.bf16.msra.mxu1 %v1294_v1  ;;  %v1297_v4 = vld [vmem:[%s2005_s1 + $0x18] sm:$0xff]   ;;  %v1306_v5 = vld [vmem:[%s2006_s0 + $0x4] ss:$8 sps:$4 sm:$0xff]   ;;  %v1300_v9 = vld [vmem:[%s2005_s1 + $0x30] sm:$0xff]   ;;  %17 = vst.msk [vmem:[#allocation2] sm:$0xff] %vm16_vm2, %v1391_v11  ;;  %v612_v13 = vsel %vm610_vm1, 4294967295, %v1392_v12 }
   0x3   :  { %619 = vmatprep.subr.bf16.mxu0 %v1390_v0  ;;  %1272 = vmatprep.subr.bf16.mxu1 %v1390_v0  ;;  %v1309_v6 = vld [vmem:[%s2006_s0 + $0xf4] ss:$8 sps:$4 sm:$0xff]   ;;  %v1298_v7 = vld [vmem:[%s2005_s1 + $0x20] sm:$0xff]   ;;  %v1299_v8 = vld [vmem:[%s2005_s1 + $0x28] sm:$0xff]   ;;  %18 = vst.msk [vmem:[#allocation2 + $0x8] sm:$0xff] %vm16_vm2, %v1391_v11  ;;  %v613_v16 = vsel %vm611_vm3, %v612_v13, 0 }
   0x4   :  { %1242 = vmatprep.mubr.msk.bf16.mxu0 %vm522_vm0, %v1306_v5  ;;  %1257 = vmatprep.mubr.msk.bf16.mxu1 %vm522_vm0, %v1309_v6  ;;  %v1454_v10 = vld [vmem:[%s2005_s1 + $0x38] sm:$0xff]   ;;  %19 = vst.msk [vmem:[#allocation2 + $0x10] sm:$0xff] %vm16_vm2, %v1391_v11  ;;  %20 = vst.msk [vmem:[#allocation2 + $0x18] sm:$0xff] %vm16_vm2, %v1391_v11  ;;  %v1302_v14 = vld [vmem:[%s2005_s1 + $0x40] sm:$0xff]  }
   0x5   :  { %21 = vst.msk [vmem:[#allocation2 + $0x20] sm:$0xff] %vm16_vm2, %v1391_v11  ;;  %22 = vst.msk [vmem:[#allocation2 + $0x28] sm:$0xff] %vm16_vm2, %v1391_v11  ;;  %v1303_v15 = vld [vmem:[%s2005_s1 + $0x48] ss:$0 sps:$4 sm:$0x33]  }
   0x6   :  { %620 = vmatpush1.bf16.msra.mxu0 %v1295_v2  ;;  %1282 = vmatpush1.bf16.msra.mxu1 %v1295_v2  ;;  %23 = vst.msk [vmem:[#allocation2 + $0x30] sm:$0xff] %vm16_vm2, %v1391_v11  ;;  %24 = vst.msk [vmem:[#allocation2 + $0x38] sm:$0xff] %vm16_vm2, %v1391_v11  ;;  %v615_v17 = vand.u32 %v1303_v15, %v613_v16  ;;  %v1304_v18 = vld [vmem:[%s2006_s0] ss:$8 sps:$4 sm:$0xff]   ;;  %v1307_v19 = vld [vmem:[%s2006_s0 + $0xf0] ss:$8 sps:$4 sm:$0xff]  }
   0x7   :  { %621 = vmatprep.subr.bf16.mxu0 %v1390_v0  ;;  %1273 = vmatprep.subr.bf16.mxu1 %v1390_v0  ;;  %25 = vst.msk [vmem:[#allocation2 + $0x40] sm:$0xff] %vm16_vm2, %v1391_v11  ;;  %26 = vst.msk [vmem:[#allocation2 + $0x48] sm:$0xff] %vm16_vm2, %v1391_v11  ;;  %v1310_v20 = vld [vmem:[%s2006_s0 + $0x14] ss:$8 sps:$4 sm:$0xff]   ;;  %v1313_v21 = vld [vmem:[%s2006_s0 + $0x104] ss:$8 sps:$4 sm:$0xff]  }
   0x8   :  { %27 = vst.msk [vmem:[#allocation2 + $0x50] sm:$0xff] %vm16_vm2, %v1391_v11  ;;  %28 = vst.msk [vmem:[#allocation2 + $0x58] sm:$0xff] %vm16_vm2, %v1391_v11  ;;  %v1312_v22 = vld [vmem:[%s2006_s0 + $0x10] ss:$8 sps:$4 sm:$0xff]   ;;  %v1315_v23 = vld [vmem:[%s2006_s0 + $0x24] ss:$8 sps:$4 sm:$0xff]  }
   0x9   :  { %29 = vst.msk [vmem:[#allocation2 + $0x60] sm:$0xff] %vm16_vm2, %v1391_v11  ;;  %30 = vst.msk [vmem:[#allocation2 + $0x68] sm:$0xff] %vm16_vm2, %v1391_v11  ;;  %v1317_v24 = vld [vmem:[%s2006_s0 + $0x100] ss:$8 sps:$4 sm:$0xff]   ;;  %v1319_v25 = vld [vmem:[%s2006_s0 + $0x114] ss:$8 sps:$4 sm:$0xff]  }
   0xa   :  { %622 = vmatpush1.bf16.msra.mxu0 %v1296_v3  ;;  %1283 = vmatpush1.bf16.msra.mxu1 %v1296_v3  ;;  %31 = vst.msk [vmem:[#allocation2 + $0x70] sm:$0xff] %vm16_vm2, %v1391_v11  ;;  %32 = vst.msk [vmem:[#allocation2 + $0x78] sm:$0xff] %vm16_vm2, %v1391_v11  ;;  %v1318_v26 = vld [vmem:[%s2006_s0 + $0x20] ss:$8 sps:$4 sm:$0xff]   ;;  %v1323_v27 = vld [vmem:[%s2006_s0 + $0x110] ss:$8 sps:$4 sm:$0xff]  }
   0xb   :  { %623 = vmatprep.subr.bf16.mxu0 %v1390_v0  ;;  %1274 = vmatprep.subr.bf16.mxu1 %v1390_v0  ;;  %33 = vst.msk [vmem:[#allocation2 + $0x80] sm:$0xff] %vm16_vm2, %v1391_v11  ;;  %34 = vst.msk [vmem:[#allocation2 + $0x88] sm:$0xff] %vm16_vm2, %v1391_v11  ;;  %v1321_v28 = vld [vmem:[%s2006_s0 + $0x34] ss:$8 sps:$4 sm:$0xff]   ;;  %v1325_v29 = vld [vmem:[%s2006_s0 + $0x124] ss:$8 sps:$4 sm:$0xff]  }
   0xc   :  { %35 = vst.msk [vmem:[#allocation2 + $0x90] sm:$0xff] %vm16_vm2, %v1391_v11  ;;  %36 = vst.msk [vmem:[#allocation2 + $0x98] sm:$0xff] %vm16_vm2, %v1391_v11  ;;  %v1324_v30 = vld [vmem:[%s2006_s0 + $0x30] ss:$8 sps:$4 sm:$0xff]   ;;  %v1329_v31 = vld [vmem:[%s2006_s0 + $0x120] ss:$8 sps:$4 sm:$0xff]  }
   0xd   :  { %37 = vst.msk [vmem:[#allocation2 + $0xa0] sm:$0xff] %vm16_vm2, %v1391_v11  ;;  %38 = vst.msk [vmem:[#allocation2 + $0xa8] sm:$0xff] %vm16_vm2, %v1391_v11  ;;  %v1327_v32 = vld [vmem:[%s2006_s0 + $0x44] ss:$8 sps:$4 sm:$0xff]   ;;  %v1331_v33 = vld [vmem:[%s2006_s0 + $0x134] ss:$8 sps:$4 sm:$0xff]  }
   0xe   :  { %624 = vmatpush1.bf16.msra.mxu0 %v1297_v4  ;;  %1284 = vmatpush1.bf16.msra.mxu1 %v1297_v4  ;;  %39 = vst.msk [vmem:[#allocation2 + $0xb0] sm:$0xff] %vm16_vm2, %v1391_v11  ;;  %40 = vst.msk [vmem:[#allocation2 + $0xb8] sm:$0xff] %vm16_vm2, %v1391_v11  ;;  %v1330_v34 = vld [vmem:[%s2006_s0 + $0x40] ss:$8 sps:$4 sm:$0xff]   ;;  %v1335_v35 = vld [vmem:[%s2006_s0 + $0x130] ss:$8 sps:$4 sm:$0xff]  }
   0xf   :  { %625 = vmatprep.subr.bf16.mxu0 %v1390_v0  ;;  %1275 = vmatprep.subr.bf16.mxu1 %v1390_v0  ;;  %41 = vst.msk [vmem:[#allocation2 + $0xc0] sm:$0xff] %vm16_vm2, %v1391_v11  ;;  %42 = vst.msk [vmem:[#allocation2 + $0xc8] sm:$0xff] %vm16_vm2, %v1391_v11  ;;  %v1333_v36 = vld [vmem:[%s2006_s0 + $0x54] ss:$8 sps:$4 sm:$0xff]   ;;  %v1337_v37 = vld [vmem:[%s2006_s0 + $0x144] ss:$8 sps:$4 sm:$0xff]  }
  0x10   :  { %43 = vst.msk [vmem:[#allocation2 + $0xd0] sm:$0xff] %vm16_vm2, %v1391_v11  ;;  %44 = vst.msk [vmem:[#allocation2 + $0xd8] sm:$0xff] %vm16_vm2, %v1391_v11  ;;  %v1336_v38 = vld [vmem:[%s2006_s0 + $0x50] ss:$8 sps:$4 sm:$0xff]   ;;  %v1341_v39 = vld [vmem:[%s2006_s0 + $0x140] ss:$8 sps:$4 sm:$0xff]  }
  0x11   :  { %45 = vst.msk [vmem:[#allocation2 + $0xe0] sm:$0xff] %vm16_vm2, %v1391_v11  ;;  %46 = vst.msk [vmem:[#allocation2 + $0xe8] sm:$0xff] %vm16_vm2, %v1391_v11  ;;  %v1339_v40 = vld [vmem:[%s2006_s0 + $0x64] ss:$8 sps:$4 sm:$0xff]   ;;  %v1343_v41 = vld [vmem:[%s2006_s0 + $0x154] ss:$8 sps:$4 sm:$0xff]  }
  0x12   :  { %626 = vmatpush1.bf16.msra.mxu0 %v1298_v7  ;;  %1285 = vmatpush1.bf16.msra.mxu1 %v1298_v7  ;;  %47 = vst.msk [vmem:[#allocation2 + $0xf0] sm:$0xff] %vm16_vm2, %v1391_v11  ;;  %48 = vst.msk [vmem:[#allocation2 + $0xf8] sm:$0xff] %vm16_vm2, %v1391_v11  ;;  %v1342_v42 = vld [vmem:[%s2006_s0 + $0x60] ss:$8 sps:$4 sm:$0xff]   ;;  %v1347_v43 = vld [vmem:[%s2006_s0 + $0x150] ss:$8 sps:$4 sm:$0xff]  }
  0x13   :  { %627 = vmatprep.subr.bf16.mxu0 %v1390_v0  ;;  %1276 = vmatprep.subr.bf16.mxu1 %v1390_v0  ;;  %49 = vst.msk [vmem:[#allocation2 + $0x100] sm:$0xff] %vm16_vm2, %v1391_v11  ;;  %50 = vst.msk [vmem:[#allocation2 + $0x108] sm:$0xff] %vm16_vm2, %v1391_v11  ;;  %v1345_v44 = vld [vmem:[%s2006_s0 + $0x74] ss:$8 sps:$4 sm:$0xff]   ;;  %v1349_v45 = vld [vmem:[%s2006_s0 + $0x164] ss:$8 sps:$4 sm:$0xff]  }
  0x14   :  { %51 = vst.msk [vmem:[#allocation2 + $0x110] sm:$0xff] %vm16_vm2, %v1391_v11  ;;  %52 = vst.msk [vmem:[#allocation2 + $0x118] sm:$0xff] %vm16_vm2, %v1391_v11  ;;  %v1348_v46 = vld [vmem:[%s2006_s0 + $0x70] ss:$8 sps:$4 sm:$0xff]   ;;  %v1353_v47 = vld [vmem:[%s2006_s0 + $0x160] ss:$8 sps:$4 sm:$0xff]  }
  0x15   :  { %53 = vst.msk [vmem:[#allocation2 + $0x120] sm:$0xff] %vm16_vm2, %v1391_v11  ;;  %54 = vst.msk [vmem:[#allocation2 + $0x128] sm:$0xff] %vm16_vm2, %v1391_v11  ;;  %v1351_v48 = vld [vmem:[%s2006_s0 + $0x84] ss:$8 sps:$4 sm:$0xff]   ;;  %v1355_v49 = vld [vmem:[%s2006_s0 + $0x174] ss:$8 sps:$4 sm:$0xff]  }
  0x16   :  { %628 = vmatpush1.bf16.msra.mxu0 %v1299_v8  ;;  %1286 = vmatpush1.bf16.msra.mxu1 %v1299_v8  ;;  %55 = vst.msk [vmem:[#allocation2 + $0x130] sm:$0xff] %vm16_vm2, %v1391_v11  ;;  %56 = vst.msk [vmem:[#allocation2 + $0x138] sm:$0xff] %vm16_vm2, %v1391_v11  ;;  %v1354_v50 = vld [vmem:[%s2006_s0 + $0x80] ss:$8 sps:$4 sm:$0xff]   ;;  %v1359_v51 = vld [vmem:[%s2006_s0 + $0x170] ss:$8 sps:$4 sm:$0xff]  }
  0x17   :  { %629 = vmatprep.subr.bf16.mxu0 %v1390_v0  ;;  %1277 = vmatprep.subr.bf16.mxu1 %v1390_v0  ;;  %57 = vst.msk [vmem:[#allocation2 + $0x140] sm:$0xff] %vm16_vm2, %v1391_v11  ;;  %58 = vst.msk [vmem:[#allocation2 + $0x148] sm:$0xff] %vm16_vm2, %v1391_v11  ;;  %v1357_v52 = vld [vmem:[%s2006_s0 + $0x94] ss:$8 sps:$4 sm:$0xff]   ;;  %v1361_v53 = vld [vmem:[%s2006_s0 + $0x184] ss:$8 sps:$4 sm:$0xff]  }
  0x18   :  { %59 = vst.msk [vmem:[#allocation2 + $0x150] sm:$0xff] %vm16_vm2, %v1391_v11  ;;  %60 = vst.msk [vmem:[#allocation2 + $0x158] sm:$0xff] %vm16_vm2, %v1391_v11  ;;  %v1360_v54 = vld [vmem:[%s2006_s0 + $0x90] ss:$8 sps:$4 sm:$0xff]   ;;  %v1365_v55 = vld [vmem:[%s2006_s0 + $0x180] ss:$8 sps:$4 sm:$0xff]  }
  0x19   :  { %61 = vst.msk [vmem:[#allocation2 + $0x160] sm:$0xff] %vm16_vm2, %v1391_v11  ;;  %62 = vst.msk [vmem:[#allocation2 + $0x168] sm:$0xff] %vm16_vm2, %v1391_v11  ;;  %v1363_v56 = vld [vmem:[%s2006_s0 + $0xa4] ss:$8 sps:$4 sm:$0xff]   ;;  %v1367_v57 = vld [vmem:[%s2006_s0 + $0x194] ss:$8 sps:$4 sm:$0xff]  }
  0x1a   :  { %630 = vmatpush1.bf16.msra.mxu0 %v1300_v9  ;;  %1287 = vmatpush1.bf16.msra.mxu1 %v1300_v9  ;;  %63 = vst.msk [vmem:[#allocation2 + $0x170] sm:$0xff] %vm16_vm2, %v1391_v11  ;;  %64 = vst.msk [vmem:[#allocation2 + $0x178] sm:$0xff] %vm16_vm2, %v1391_v11  ;;  %v1366_v58 = vld [vmem:[%s2006_s0 + $0xa0] ss:$8 sps:$4 sm:$0xff]   ;;  %v1371_v59 = vld [vmem:[%s2006_s0 + $0x190] ss:$8 sps:$4 sm:$0xff]  }
  0x1b   :  { %65 = vst.msk [vmem:[#allocation2 + $0x180] sm:$0xff] %vm16_vm2, %v1391_v11  ;;  %66 = vst.msk [vmem:[#allocation2 + $0x188] sm:$0xff] %vm16_vm2, %v1391_v11  ;;  %631 = vmatprep.subr.bf16.mxu0 %v1390_v0  ;;  %1278 = vmatprep.subr.bf16.mxu1 %v1390_v0  ;;  %v1369_v60 = vld [vmem:[%s2006_s0 + $0xb4] ss:$8 sps:$4 sm:$0xff]   ;;  %v1373_v61 = vld [vmem:[%s2006_s0 + $0x1a4] ss:$8 sps:$4 sm:$0xff]  }
  0x1c   :  { %67 = vst.msk [vmem:[#allocation2 + $0x190] sm:$0xff] %vm16_vm2, %v1391_v11  ;;  %68 = vst.msk [vmem:[#allocation2 + $0x198] sm:$0xff] %vm16_vm2, %v1391_v11  ;;  %v1372_v62 = vld [vmem:[%s2006_s0 + $0xb0] ss:$8 sps:$4 sm:$0xff]   ;;  %v1377_v63 = vld [vmem:[%s2006_s0 + $0x1a0] ss:$8 sps:$4 sm:$0xff]  }
  0x1d   :  { %69 = vst.msk [vmem:[#allocation2 + $0x1a0] sm:$0xff] %vm16_vm2, %v1391_v11  ;;  %70 = vst.msk [vmem:[#allocation2 + $0x1a8] sm:$0xff] %vm16_vm2, %v1391_v11  ;;  %v1379_v1 = vld [vmem:[%s2006_s0 + $0x1b4] ss:$8 sps:$4 sm:$0xff]   ;;  %v187_v2 = vld [vmem:[%s2006_s0 + $0x1c0] sm:$0xff] }
  0x1e   :  { %71 = vst.msk [vmem:[#allocation2 + $0x1b0] sm:$0xff] %vm16_vm2, %v1391_v11  ;;  %72 = vst.msk [vmem:[#allocation2 + $0x1b8] sm:$0xff] %vm16_vm2, %v1391_v11  ;;  %632 = vmatpush1.bf16.msra.mxu0 %v1454_v10  ;;  %1288 = vmatpush1.bf16.msra.mxu1 %v1454_v10  ;;  %v1378_v3 = vld [vmem:[%s2006_s0 + $0xc0] ss:$8 sps:$4 sm:$0xff]   ;;  %v1383_v4 = vld [vmem:[%s2006_s0 + $0x1b0] ss:$8 sps:$4 sm:$0xff]   ;;  %v1231_v6 = vcombine.high %v187_v2, %v187_v2  ;;  %v1230_v8 = vcombine.low %v187_v2, %v187_v2 }
  0x1f   :  { %73 = vst.msk [vmem:[#allocation2 + $0x1c0] sm:$0xff] %vm16_vm2, %v1391_v11  ;;  %633 = vmatprep.subr.bf16.mxu0 %v1390_v0  ;;  %1279 = vmatprep.subr.bf16.mxu1 %v1390_v0  ;;  %v1381_v5 = vld [vmem:[%s2006_s0 + $0xd4] ss:$8 sps:$4 sm:$0xff]   ;;  %v1384_v7 = vld [vmem:[%s2006_s0 + $0xd0] ss:$8 sps:$4 sm:$0xff]   ;;  %v74_v11 = vld [vmem:[#allocation2] sm:$0xff] }
  0x20   :  { %v1386_v9 = vld [vmem:[%s2006_s0 + $0xe4] ss:$8 sps:$4 sm:$0xff]   ;;  %v1389_v10 = vld [vmem:[%s2006_s0 + $0xe0] ss:$8 sps:$4 sm:$0xff]   ;;  %v104_v12 = vld [vmem:[#allocation2 + $0xf0] sm:$0xff] }
  0x21   :  { %v105_v16 = vld [vmem:[#allocation2 + $0xf8] sm:$0xff] }
  0x22   :  { %634 = vmatpush1.bf16.msra.mxu0 %v1302_v14  ;;  %1289 = vmatpush1.bf16.msra.mxu1 %v1302_v14  ;;  %v75_v14 = vld [vmem:[#allocation2 + $0x8] sm:$0xff] }
  0x23   :  { %635 = vmatprep.subr.bf16.mxu0 %v1390_v0  ;;  %1280 = vmatprep.subr.bf16.mxu1 %v1390_v0  ;;  %v1375_v0 = vld [vmem:[%s2006_s0 + $0xc4] ss:$8 sps:$4 sm:$0xff]  }
  0x26   :  { %636 = vmatpush1.bf16.msra.mxu0 %v615_v17  ;;  %1290 = vmatpush1.bf16.msra.mxu1 %v615_v17 }
  0x29   :  { %650 = vmatmul.mubr.bf16.vlgmr.msra.gmra.mrb[0].mxu0 %v1304_v18  ;;  %770 = vmatmul.mubr.bf16.vlgmr.msra.gmra.mrb[0].mxu1 %v1307_v19 }
  0x2a   :  { %1243 = vmatprep.mubr.msk.bf16.mxu0 %vm522_vm0, %v1310_v20  ;;  %1258 = vmatprep.mubr.msk.bf16.mxu1 %vm522_vm0, %v1313_v21 }
  0x31   :  { %658 = vmatmul.mubr.bf16.gmra.mrb[4].mxu0 %v1312_v22  ;;  %778 = vmatmul.mubr.bf16.gmra.mrb[4].mxu1 %v1317_v24 }
  0x32   :  { %1244 = vmatprep.mubr.msk.bf16.mxu0 %vm522_vm0, %v1315_v23  ;;  %1259 = vmatprep.mubr.msk.bf16.mxu1 %vm522_vm0, %v1319_v25 }
  0x39   :  { %666 = vmatmul.mubr.bf16.gmra.mrb[8].mxu0 %v1318_v26  ;;  %786 = vmatmul.mubr.bf16.gmra.mrb[8].mxu1 %v1323_v27  ;;  %v76_v27 = vld [vmem:[#allocation2 + $0x10] sm:$0xff] }
  0x3a   :  { %1245 = vmatprep.mubr.msk.bf16.mxu0 %vm522_vm0, %v1321_v28  ;;  %1260 = vmatprep.mubr.msk.bf16.mxu1 %vm522_vm0, %v1325_v29  ;;  %v106_v28 = vld [vmem:[#allocation2 + $0x100] sm:$0xff] }
  0x41   :  { %674 = vmatmul.mubr.bf16.gmra.mrb[12].mxu0 %v1324_v30  ;;  %794 = vmatmul.mubr.bf16.gmra.mrb[12].mxu1 %v1329_v31  ;;  %v77_v30 = vld [vmem:[#allocation2 + $0x18] sm:$0xff] }
  0x42   :  { %1246 = vmatprep.mubr.msk.bf16.mxu0 %vm522_vm0, %v1327_v32  ;;  %1261 = vmatprep.mubr.msk.bf16.mxu1 %vm522_vm0, %v1331_v33  ;;  %v107_v32 = vld [vmem:[#allocation2 + $0x108] sm:$0xff] }
  0x49   :  { %682 = vmatmul.mubr.bf16.gmra.mrb[16].mxu0 %v1330_v34  ;;  %802 = vmatmul.mubr.bf16.gmra.mrb[16].mxu1 %v1335_v35 }
  0x4a   :  { %1247 = vmatprep.mubr.msk.bf16.mxu0 %vm522_vm0, %v1333_v36  ;;  %1262 = vmatprep.mubr.msk.bf16.mxu1 %vm522_vm0, %v1337_v37 }
  0x51   :  { %690 = vmatmul.mubr.bf16.gmra.mrb[20].mxu0 %v1336_v38  ;;  %810 = vmatmul.mubr.bf16.gmra.mrb[20].mxu1 %v1341_v39 }
  0x52   :  { %1248 = vmatprep.mubr.msk.bf16.mxu0 %vm522_vm0, %v1339_v40  ;;  %1263 = vmatprep.mubr.msk.bf16.mxu1 %vm522_vm0, %v1343_v41 }
  0x59   :  { %698 = vmatmul.mubr.bf16.gmra.mrb[24].mxu0 %v1342_v42  ;;  %818 = vmatmul.mubr.bf16.gmra.mrb[24].mxu1 %v1347_v43 }
  0x5a   :  { %1249 = vmatprep.mubr.msk.bf16.mxu0 %vm522_vm0, %v1345_v44  ;;  %1264 = vmatprep.mubr.msk.bf16.mxu1 %vm522_vm0, %v1349_v45 }
  0x61   :  { %706 = vmatmul.mubr.bf16.gmra.mrb[28].mxu0 %v1348_v46  ;;  %826 = vmatmul.mubr.bf16.gmra.mrb[28].mxu1 %v1353_v47 }
  0x62   :  { %1250 = vmatprep.mubr.msk.bf16.mxu0 %vm522_vm0, %v1351_v48  ;;  %1265 = vmatprep.mubr.msk.bf16.mxu1 %vm522_vm0, %v1355_v49 }
  0x69   :  { %714 = vmatmul.mubr.bf16.gmra.mrb[32].mxu0 %v1354_v50  ;;  %834 = vmatmul.mubr.bf16.gmra.mrb[32].mxu1 %v1359_v51  ;;  %v78_v51 = vld [vmem:[#allocation2 + $0x20] sm:$0xff] }
  0x6a   :  { %1251 = vmatprep.mubr.msk.bf16.mxu0 %vm522_vm0, %v1357_v52  ;;  %1266 = vmatprep.mubr.msk.bf16.mxu1 %vm522_vm0, %v1361_v53  ;;  %v108_v52 = vld [vmem:[#allocation2 + $0x110] sm:$0xff] }
  0x71   :  { %722 = vmatmul.mubr.bf16.gmra.mrb[36].mxu0 %v1360_v54  ;;  %842 = vmatmul.mubr.bf16.gmra.mrb[36].mxu1 %v1365_v55  ;;  %v79_v54 = vld [vmem:[#allocation2 + $0x28] sm:$0xff] }
  0x72   :  { %1252 = vmatprep.mubr.msk.bf16.mxu0 %vm522_vm0, %v1363_v56  ;;  %1267 = vmatprep.mubr.msk.bf16.mxu1 %vm522_vm0, %v1367_v57  ;;  %v109_v56 = vld [vmem:[#allocation2 + $0x118] sm:$0xff] }
  0x79   :  { %730 = vmatmul.mubr.bf16.gmra.mrb[40].mxu0 %v1366_v58  ;;  %850 = vmatmul.mubr.bf16.gmra.mrb[40].mxu1 %v1371_v59 }
  0x7a   :  { %1253 = vmatprep.mubr.msk.bf16.mxu0 %vm522_vm0, %v1369_v60  ;;  %1268 = vmatprep.mubr.msk.bf16.mxu1 %vm522_vm0, %v1373_v61 }
  0x81   :  { %738 = vmatmul.mubr.bf16.gmra.mrb[44].mxu0 %v1372_v62  ;;  %858 = vmatmul.mubr.bf16.gmra.mrb[44].mxu1 %v1377_v63 }
  0x82   :  { %1254 = vmatprep.mubr.msk.bf16.mxu0 %vm522_vm0, %v1375_v0  ;;  %1269 = vmatprep.mubr.msk.bf16.mxu1 %vm522_vm0, %v1379_v1 }
  0x89   :  { %746 = vmatmul.mubr.bf16.gmra.mrb[48].mxu0 %v1378_v3  ;;  %866 = vmatmul.mubr.bf16.gmra.mrb[48].mxu1 %v1383_v4 }
  0x8a   :  { %1255 = vmatprep.mubr.msk.bf16.mxu0 %vm522_vm0, %v1381_v5  ;;  %1270 = vmatprep.mubr.msk.bf16.mxu1 %vm522_vm0, %v1231_v6 }
  0x91   :  { %754 = vmatmul.mubr.bf16.gmra.mrb[52].mxu0 %v1384_v7  ;;  %874 = vmatmul.mubr.bf16.gmra.mrb[52].mxu1 %v1230_v8 }
  0x92   :  { %1256 = vmatprep.mubr.msk.bf16.mxu0 %vm522_vm0, %v1386_v9 }
  0x99   :  { %762 = vmatmul.mubr.bf16.gmra.mrb[56].mxu0 %v1389_v10 }
  0xfc   :  { %v651_v13 = vpop.f32.mrb[0].mxu0  ;;  %v771_v15 = vpop.f32.mrb[0].mxu1 }
  0xfd   :  { %v881_v17 = vadd.f32 %v651_v13, %v74_v11  ;;  %v653_v18 = vpop.f32.mrb[1].mxu0  ;;  %v911_v19 = vadd.f32 %v771_v15, %v104_v12  ;;  %v773_v20 = vpop.f32.mrb[1].mxu1  ;;  %v80_v11 = vld [vmem:[#allocation2 + $0x30] sm:$0xff]  ;;  %v110_v12 = vld [vmem:[#allocation2 + $0x120] sm:$0xff] }
  0xfe   :  { %v654_v21 = vpop.f32.mrb[2].mxu0  ;;  %v774_v22 = vpop.f32.mrb[2].mxu1 }
  0xff   :  { %939 = vst.msk [vmem:[#allocation2] sm:$0xff] %vm16_vm2, %v881_v17  ;;  %v882_v23 = vadd.f32 %v654_v21, %v75_v14  ;;  %v656_v24 = vpop.f32.mrb[3].mxu0  ;;  %969 = vst.msk [vmem:[#allocation2 + $0xf0] sm:$0xff] %vm16_vm2, %v911_v19  ;;  %v912_v25 = vadd.f32 %v774_v22, %v105_v16  ;;  %v776_v26 = vpop.f32.mrb[3].mxu1  ;;  %v81_v14 = vld [vmem:[#allocation2 + $0x38] sm:$0xff]  ;;  %v111_v16 = vld [vmem:[#allocation2 + $0x128] sm:$0xff] }
 0x101   :  { %940 = vst.msk [vmem:[#allocation2 + $0x8] sm:$0xff] %vm16_vm2, %v882_v23  ;;  %970 = vst.msk [vmem:[#allocation2 + $0xf8] sm:$0xff] %vm16_vm2, %v912_v25 }
 0x104   :  { %v659_v29 = vpop.f32.mrb[4].mxu0  ;;  %v779_v31 = vpop.f32.mrb[4].mxu1 }
 0x105   :  { %v883_v33 = vadd.f32 %v659_v29, %v76_v27  ;;  %v661_v34 = vpop.f32.mrb[5].mxu0  ;;  %v913_v35 = vadd.f32 %v779_v31, %v106_v28  ;;  %v781_v36 = vpop.f32.mrb[5].mxu1 }
 0x106   :  { %v999_v37 = vld [vmem:[#allocation2] sm:$0xff]  ;;  %v1029_v38 = vld [vmem:[#allocation2 + $0xf0] sm:$0xff]  ;;  %v662_v39 = vpop.f32.mrb[6].mxu0  ;;  %v782_v40 = vpop.f32.mrb[6].mxu1 }
 0x107   :  { %v1056_v41 = vmax.f32 %v999_v37, 0.0  ;;  %v1086_v42 = vmax.f32 %v1029_v38, 0.0  ;;  %941 = vst.msk [vmem:[#allocation2 + $0x10] sm:$0xff] %vm16_vm2, %v883_v33  ;;  %v884_v43 = vadd.f32 %v662_v39, %v77_v30  ;;  %v664_v44 = vpop.f32.mrb[7].mxu0  ;;  %971 = vst.msk [vmem:[#allocation2 + $0x100] sm:$0xff] %vm16_vm2, %v913_v35  ;;  %v914_v45 = vadd.f32 %v782_v40, %v107_v32  ;;  %v784_v46 = vpop.f32.mrb[7].mxu1 }
 0x108   :  { %v1000_v47 = vld [vmem:[#allocation2 + $0x8] sm:$0xff]  ;;  %v1030_v48 = vld [vmem:[#allocation2 + $0xf8] sm:$0xff]  ;;  %v82_v35 = vld [vmem:[#allocation2 + $0x40] sm:$0xff] }
 0x109   :  { %1113 = vst.msk [vmem:[%s2007_s2] sm:$0xff] %vm16_vm2, %v1056_v41  ;;  %v1057_v49 = vmax.f32 %v1000_v47, 0.0  ;;  %1143 = vst.msk [vmem:[%s2007_s2 + $0xf0] sm:$0xff] %vm16_vm2, %v1086_v42  ;;  %v1087_v50 = vmax.f32 %v1030_v48, 0.0  ;;  %v112_v36 = vld [vmem:[#allocation2 + $0x130] sm:$0xff]  ;;  %v83_v38 = vld [vmem:[#allocation2 + $0x48] sm:$0xff] }
 0x10a   :  { %942 = vst.msk [vmem:[#allocation2 + $0x18] sm:$0xff] %vm16_vm2, %v884_v43  ;;  %972 = vst.msk [vmem:[#allocation2 + $0x108] sm:$0xff] %vm16_vm2, %v914_v45  ;;  %v113_v40 = vld [vmem:[#allocation2 + $0x138] sm:$0xff] }
 0x10b   :  { %1114 = vst.msk [vmem:[%s2007_s2 + $0x8] sm:$0xff] %vm16_vm2, %v1057_v49  ;;  %1144 = vst.msk [vmem:[%s2007_s2 + $0xf8] sm:$0xff] %vm16_vm2, %v1087_v50 }
 0x10c   :  { %v667_v53 = vpop.f32.mrb[8].mxu0  ;;  %v787_v55 = vpop.f32.mrb[8].mxu1 }
 0x10d   :  { %v885_v57 = vadd.f32 %v667_v53, %v78_v51  ;;  %v669_v58 = vpop.f32.mrb[9].mxu0  ;;  %v915_v59 = vadd.f32 %v787_v55, %v108_v52  ;;  %v789_v60 = vpop.f32.mrb[9].mxu1 }
 0x10e   :  { %v1001_v61 = vld [vmem:[#allocation2 + $0x10] sm:$0xff]  ;;  %v1031_v62 = vld [vmem:[#allocation2 + $0x100] sm:$0xff]  ;;  %v670_v63 = vpop.f32.mrb[10].mxu0  ;;  %v790_v0 = vpop.f32.mrb[10].mxu1 }
 0x10f   :  { %v1058_v1 = vmax.f32 %v1001_v61, 0.0  ;;  %v1088_v2 = vmax.f32 %v1031_v62, 0.0  ;;  %943 = vst.msk [vmem:[#allocation2 + $0x20] sm:$0xff] %vm16_vm2, %v885_v57  ;;  %v886_v3 = vadd.f32 %v670_v63, %v79_v54  ;;  %v672_v4 = vpop.f32.mrb[11].mxu0  ;;  %973 = vst.msk [vmem:[#allocation2 + $0x110] sm:$0xff] %vm16_vm2, %v915_v59  ;;  %v916_v5 = vadd.f32 %v790_v0, %v109_v56  ;;  %v792_v6 = vpop.f32.mrb[11].mxu1 }
 0x110   :  { %v84_v59 = vld [vmem:[#allocation2 + $0x50] sm:$0xff]  ;;  %v114_v60 = vld [vmem:[#allocation2 + $0x140] sm:$0xff]  ;;  %v85_v62 = vld [vmem:[#allocation2 + $0x58] sm:$0xff] }
 0x111   :  { %v1002_v7 = vld [vmem:[#allocation2 + $0x18] sm:$0xff]  ;;  %v1032_v8 = vld [vmem:[#allocation2 + $0x108] sm:$0xff]  ;;  %1115 = vst.msk [vmem:[%s2007_s2 + $0x10] sm:$0xff] %vm16_vm2, %v1058_v1  ;;  %1145 = vst.msk [vmem:[%s2007_s2 + $0x100] sm:$0xff] %vm16_vm2, %v1088_v2 }
 0x112   :  { %v1059_v9 = vmax.f32 %v1002_v7, 0.0  ;;  %v1089_v10 = vmax.f32 %v1032_v8, 0.0  ;;  %944 = vst.msk [vmem:[#allocation2 + $0x28] sm:$0xff] %vm16_vm2, %v886_v3  ;;  %974 = vst.msk [vmem:[#allocation2 + $0x118] sm:$0xff] %vm16_vm2, %v916_v5  ;;  %v115_v0 = vld [vmem:[#allocation2 + $0x148] sm:$0xff] }
 0x114   :  { %1116 = vst.msk [vmem:[%s2007_s2 + $0x18] sm:$0xff] %vm16_vm2, %v1059_v9  ;;  %1146 = vst.msk [vmem:[%s2007_s2 + $0x108] sm:$0xff] %vm16_vm2, %v1089_v10  ;;  %v675_v13 = vpop.f32.mrb[12].mxu0  ;;  %v795_v15 = vpop.f32.mrb[12].mxu1 }
 0x115   :  { %v887_v17 = vadd.f32 %v675_v13, %v80_v11  ;;  %v677_v18 = vpop.f32.mrb[13].mxu0  ;;  %v917_v19 = vadd.f32 %v795_v15, %v110_v12  ;;  %v797_v20 = vpop.f32.mrb[13].mxu1 }
 0x116   :  { %v1003_v21 = vld [vmem:[#allocation2 + $0x20] sm:$0xff]  ;;  %v1033_v22 = vld [vmem:[#allocation2 + $0x110] sm:$0xff]  ;;  %v678_v23 = vpop.f32.mrb[14].mxu0  ;;  %v798_v24 = vpop.f32.mrb[14].mxu1 }
 0x117   :  { %v1060_v25 = vmax.f32 %v1003_v21, 0.0  ;;  %v1090_v26 = vmax.f32 %v1033_v22, 0.0  ;;  %945 = vst.msk [vmem:[#allocation2 + $0x30] sm:$0xff] %vm16_vm2, %v887_v17  ;;  %v888_v27 = vadd.f32 %v678_v23, %v81_v14  ;;  %v680_v28 = vpop.f32.mrb[15].mxu0  ;;  %975 = vst.msk [vmem:[#allocation2 + $0x120] sm:$0xff] %vm16_vm2, %v917_v19  ;;  %v918_v29 = vadd.f32 %v798_v24, %v111_v16  ;;  %v800_v30 = vpop.f32.mrb[15].mxu1 }
 0x118   :  { %v86_v19 = vld [vmem:[#allocation2 + $0x60] sm:$0xff]  ;;  %v116_v20 = vld [vmem:[#allocation2 + $0x150] sm:$0xff]  ;;  %v87_v22 = vld [vmem:[#allocation2 + $0x68] sm:$0xff] }
 0x119   :  { %v1004_v31 = vld [vmem:[#allocation2 + $0x28] sm:$0xff]  ;;  %v1034_v32 = vld [vmem:[#allocation2 + $0x118] sm:$0xff]  ;;  %1117 = vst.msk [vmem:[%s2007_s2 + $0x20] sm:$0xff] %vm16_vm2, %v1060_v25  ;;  %1147 = vst.msk [vmem:[%s2007_s2 + $0x110] sm:$0xff] %vm16_vm2, %v1090_v26 }
 0x11a   :  { %v1061_v33 = vmax.f32 %v1004_v31, 0.0  ;;  %v1091_v34 = vmax.f32 %v1034_v32, 0.0  ;;  %946 = vst.msk [vmem:[#allocation2 + $0x38] sm:$0xff] %vm16_vm2, %v888_v27  ;;  %976 = vst.msk [vmem:[#allocation2 + $0x128] sm:$0xff] %vm16_vm2, %v918_v29  ;;  %v117_v24 = vld [vmem:[#allocation2 + $0x158] sm:$0xff] }
 0x11c   :  { %1118 = vst.msk [vmem:[%s2007_s2 + $0x28] sm:$0xff] %vm16_vm2, %v1061_v33  ;;  %1148 = vst.msk [vmem:[%s2007_s2 + $0x118] sm:$0xff] %vm16_vm2, %v1091_v34  ;;  %v683_v37 = vpop.f32.mrb[16].mxu0  ;;  %v803_v39 = vpop.f32.mrb[16].mxu1 }
 0x11d   :  { %v889_v41 = vadd.f32 %v683_v37, %v82_v35  ;;  %v685_v42 = vpop.f32.mrb[17].mxu0  ;;  %v919_v43 = vadd.f32 %v803_v39, %v112_v36  ;;  %v805_v44 = vpop.f32.mrb[17].mxu1 }
 0x11e   :  { %v1005_v45 = vld [vmem:[#allocation2 + $0x30] sm:$0xff]  ;;  %v1035_v46 = vld [vmem:[#allocation2 + $0x120] sm:$0xff]  ;;  %v686_v47 = vpop.f32.mrb[18].mxu0  ;;  %v806_v48 = vpop.f32.mrb[18].mxu1 }
 0x11f   :  { %v1062_v49 = vmax.f32 %v1005_v45, 0.0  ;;  %v1092_v50 = vmax.f32 %v1035_v46, 0.0  ;;  %947 = vst.msk [vmem:[#allocation2 + $0x40] sm:$0xff] %vm16_vm2, %v889_v41  ;;  %v890_v51 = vadd.f32 %v686_v47, %v83_v38  ;;  %v688_v52 = vpop.f32.mrb[19].mxu0  ;;  %977 = vst.msk [vmem:[#allocation2 + $0x130] sm:$0xff] %vm16_vm2, %v919_v43  ;;  %v920_v53 = vadd.f32 %v806_v48, %v113_v40  ;;  %v808_v54 = vpop.f32.mrb[19].mxu1 }
 0x120   :  { %v88_v43 = vld [vmem:[#allocation2 + $0x70] sm:$0xff]  ;;  %v118_v44 = vld [vmem:[#allocation2 + $0x160] sm:$0xff]  ;;  %v89_v46 = vld [vmem:[#allocation2 + $0x78] sm:$0xff] }
 0x121   :  { %v1006_v55 = vld [vmem:[#allocation2 + $0x38] sm:$0xff]  ;;  %v1036_v56 = vld [vmem:[#allocation2 + $0x128] sm:$0xff]  ;;  %1119 = vst.msk [vmem:[%s2007_s2 + $0x30] sm:$0xff] %vm16_vm2, %v1062_v49  ;;  %1149 = vst.msk [vmem:[%s2007_s2 + $0x120] sm:$0xff] %vm16_vm2, %v1092_v50 }
 0x122   :  { %v1063_v57 = vmax.f32 %v1006_v55, 0.0  ;;  %v1093_v58 = vmax.f32 %v1036_v56, 0.0  ;;  %948 = vst.msk [vmem:[#allocation2 + $0x48] sm:$0xff] %vm16_vm2, %v890_v51  ;;  %978 = vst.msk [vmem:[#allocation2 + $0x138] sm:$0xff] %vm16_vm2, %v920_v53  ;;  %v119_v48 = vld [vmem:[#allocation2 + $0x168] sm:$0xff] }
 0x124   :  { %1120 = vst.msk [vmem:[%s2007_s2 + $0x38] sm:$0xff] %vm16_vm2, %v1063_v57  ;;  %1150 = vst.msk [vmem:[%s2007_s2 + $0x128] sm:$0xff] %vm16_vm2, %v1093_v58  ;;  %v691_v61 = vpop.f32.mrb[20].mxu0  ;;  %v811_v63 = vpop.f32.mrb[20].mxu1 }
 0x125   :  { %v891_v1 = vadd.f32 %v691_v61, %v84_v59  ;;  %v693_v2 = vpop.f32.mrb[21].mxu0  ;;  %v921_v3 = vadd.f32 %v811_v63, %v114_v60  ;;  %v813_v4 = vpop.f32.mrb[21].mxu1 }
 0x126   :  { %v1007_v5 = vld [vmem:[#allocation2 + $0x40] sm:$0xff]  ;;  %v1037_v6 = vld [vmem:[#allocation2 + $0x130] sm:$0xff]  ;;  %v694_v7 = vpop.f32.mrb[22].mxu0  ;;  %v814_v8 = vpop.f32.mrb[22].mxu1 }
 0x127   :  { %v1064_v9 = vmax.f32 %v1007_v5, 0.0  ;;  %v1094_v10 = vmax.f32 %v1037_v6, 0.0  ;;  %949 = vst.msk [vmem:[#allocation2 + $0x50] sm:$0xff] %vm16_vm2, %v891_v1  ;;  %v892_v11 = vadd.f32 %v694_v7, %v85_v62  ;;  %v696_v12 = vpop.f32.mrb[23].mxu0  ;;  %979 = vst.msk [vmem:[#allocation2 + $0x140] sm:$0xff] %vm16_vm2, %v921_v3  ;;  %v922_v13 = vadd.f32 %v814_v8, %v115_v0  ;;  %v816_v14 = vpop.f32.mrb[23].mxu1 }
 0x128   :  { %v90_v3 = vld [vmem:[#allocation2 + $0x80] sm:$0xff]  ;;  %v120_v4 = vld [vmem:[#allocation2 + $0x170] sm:$0xff]  ;;  %v91_v6 = vld [vmem:[#allocation2 + $0x88] sm:$0xff] }
 0x129   :  { %v1008_v15 = vld [vmem:[#allocation2 + $0x48] sm:$0xff]  ;;  %v1038_v16 = vld [vmem:[#allocation2 + $0x138] sm:$0xff]  ;;  %1121 = vst.msk [vmem:[%s2007_s2 + $0x40] sm:$0xff] %vm16_vm2, %v1064_v9  ;;  %1151 = vst.msk [vmem:[%s2007_s2 + $0x130] sm:$0xff] %vm16_vm2, %v1094_v10 }
 0x12a   :  { %v1065_v17 = vmax.f32 %v1008_v15, 0.0  ;;  %v1095_v18 = vmax.f32 %v1038_v16, 0.0  ;;  %950 = vst.msk [vmem:[#allocation2 + $0x58] sm:$0xff] %vm16_vm2, %v892_v11  ;;  %980 = vst.msk [vmem:[#allocation2 + $0x148] sm:$0xff] %vm16_vm2, %v922_v13  ;;  %v121_v8 = vld [vmem:[#allocation2 + $0x178] sm:$0xff] }
 0x12c   :  { %1122 = vst.msk [vmem:[%s2007_s2 + $0x48] sm:$0xff] %vm16_vm2, %v1065_v17  ;;  %1152 = vst.msk [vmem:[%s2007_s2 + $0x138] sm:$0xff] %vm16_vm2, %v1095_v18  ;;  %v699_v21 = vpop.f32.mrb[24].mxu0  ;;  %v819_v23 = vpop.f32.mrb[24].mxu1 }
 0x12d   :  { %v893_v25 = vadd.f32 %v699_v21, %v86_v19  ;;  %v701_v26 = vpop.f32.mrb[25].mxu0  ;;  %v923_v27 = vadd.f32 %v819_v23, %v116_v20  ;;  %v821_v28 = vpop.f32.mrb[25].mxu1 }
 0x12e   :  { %v1009_v29 = vld [vmem:[#allocation2 + $0x50] sm:$0xff]  ;;  %v1039_v30 = vld [vmem:[#allocation2 + $0x140] sm:$0xff]  ;;  %v702_v31 = vpop.f32.mrb[26].mxu0  ;;  %v822_v32 = vpop.f32.mrb[26].mxu1 }
 0x12f   :  { %v1066_v33 = vmax.f32 %v1009_v29, 0.0  ;;  %v1096_v34 = vmax.f32 %v1039_v30, 0.0  ;;  %951 = vst.msk [vmem:[#allocation2 + $0x60] sm:$0xff] %vm16_vm2, %v893_v25  ;;  %v894_v35 = vadd.f32 %v702_v31, %v87_v22  ;;  %v704_v36 = vpop.f32.mrb[27].mxu0  ;;  %981 = vst.msk [vmem:[#allocation2 + $0x150] sm:$0xff] %vm16_vm2, %v923_v27  ;;  %v924_v37 = vadd.f32 %v822_v32, %v117_v24  ;;  %v824_v38 = vpop.f32.mrb[27].mxu1 }
 0x130   :  { %v92_v27 = vld [vmem:[#allocation2 + $0x90] sm:$0xff]  ;;  %v122_v28 = vld [vmem:[#allocation2 + $0x180] sm:$0xff]  ;;  %v93_v30 = vld [vmem:[#allocation2 + $0x98] sm:$0xff] }
 0x131   :  { %v1010_v39 = vld [vmem:[#allocation2 + $0x58] sm:$0xff]  ;;  %v1040_v40 = vld [vmem:[#allocation2 + $0x148] sm:$0xff]  ;;  %1123 = vst.msk [vmem:[%s2007_s2 + $0x50] sm:$0xff] %vm16_vm2, %v1066_v33  ;;  %1153 = vst.msk [vmem:[%s2007_s2 + $0x140] sm:$0xff] %vm16_vm2, %v1096_v34 }
 0x132   :  { %v1067_v41 = vmax.f32 %v1010_v39, 0.0  ;;  %v1097_v42 = vmax.f32 %v1040_v40, 0.0  ;;  %952 = vst.msk [vmem:[#allocation2 + $0x68] sm:$0xff] %vm16_vm2, %v894_v35  ;;  %982 = vst.msk [vmem:[#allocation2 + $0x158] sm:$0xff] %vm16_vm2, %v924_v37  ;;  %v123_v32 = vld [vmem:[#allocation2 + $0x188] sm:$0xff] }
 0x134   :  { %1124 = vst.msk [vmem:[%s2007_s2 + $0x58] sm:$0xff] %vm16_vm2, %v1067_v41  ;;  %1154 = vst.msk [vmem:[%s2007_s2 + $0x148] sm:$0xff] %vm16_vm2, %v1097_v42  ;;  %v707_v45 = vpop.f32.mrb[28].mxu0  ;;  %v827_v47 = vpop.f32.mrb[28].mxu1 }
 0x135   :  { %v895_v49 = vadd.f32 %v707_v45, %v88_v43  ;;  %v709_v50 = vpop.f32.mrb[29].mxu0  ;;  %v925_v51 = vadd.f32 %v827_v47, %v118_v44  ;;  %v829_v52 = vpop.f32.mrb[29].mxu1 }
 0x136   :  { %v1011_v53 = vld [vmem:[#allocation2 + $0x60] sm:$0xff]  ;;  %v1041_v54 = vld [vmem:[#allocation2 + $0x150] sm:$0xff]  ;;  %v710_v55 = vpop.f32.mrb[30].mxu0  ;;  %v830_v56 = vpop.f32.mrb[30].mxu1 }
 0x137   :  { %v1068_v57 = vmax.f32 %v1011_v53, 0.0  ;;  %v1098_v58 = vmax.f32 %v1041_v54, 0.0  ;;  %953 = vst.msk [vmem:[#allocation2 + $0x70] sm:$0xff] %vm16_vm2, %v895_v49  ;;  %v896_v59 = vadd.f32 %v710_v55, %v89_v46  ;;  %v712_v60 = vpop.f32.mrb[31].mxu0  ;;  %983 = vst.msk [vmem:[#allocation2 + $0x160] sm:$0xff] %vm16_vm2, %v925_v51  ;;  %v926_v61 = vadd.f32 %v830_v56, %v119_v48  ;;  %v832_v62 = vpop.f32.mrb[31].mxu1 }
 0x138   :  { %v94_v51 = vld [vmem:[#allocation2 + $0xa0] sm:$0xff]  ;;  %v124_v52 = vld [vmem:[#allocation2 + $0x190] sm:$0xff]  ;;  %v95_v54 = vld [vmem:[#allocation2 + $0xa8] sm:$0xff] }
 0x139   :  { %v1012_v63 = vld [vmem:[#allocation2 + $0x68] sm:$0xff]  ;;  %v1042_v0 = vld [vmem:[#allocation2 + $0x158] sm:$0xff]  ;;  %1125 = vst.msk [vmem:[%s2007_s2 + $0x60] sm:$0xff] %vm16_vm2, %v1068_v57  ;;  %1155 = vst.msk [vmem:[%s2007_s2 + $0x150] sm:$0xff] %vm16_vm2, %v1098_v58 }
 0x13a   :  { %v1069_v1 = vmax.f32 %v1012_v63, 0.0  ;;  %v1099_v2 = vmax.f32 %v1042_v0, 0.0  ;;  %954 = vst.msk [vmem:[#allocation2 + $0x78] sm:$0xff] %vm16_vm2, %v896_v59  ;;  %984 = vst.msk [vmem:[#allocation2 + $0x168] sm:$0xff] %vm16_vm2, %v926_v61  ;;  %v125_v56 = vld [vmem:[#allocation2 + $0x198] sm:$0xff] }
 0x13c   :  { %1126 = vst.msk [vmem:[%s2007_s2 + $0x68] sm:$0xff] %vm16_vm2, %v1069_v1  ;;  %1156 = vst.msk [vmem:[%s2007_s2 + $0x158] sm:$0xff] %vm16_vm2, %v1099_v2  ;;  %v715_v5 = vpop.f32.mrb[32].mxu0  ;;  %v835_v7 = vpop.f32.mrb[32].mxu1 }
 0x13d   :  { %v897_v9 = vadd.f32 %v715_v5, %v90_v3  ;;  %v717_v10 = vpop.f32.mrb[33].mxu0  ;;  %v927_v11 = vadd.f32 %v835_v7, %v120_v4  ;;  %v837_v12 = vpop.f32.mrb[33].mxu1 }
 0x13e   :  { %v1013_v13 = vld [vmem:[#allocation2 + $0x70] sm:$0xff]  ;;  %v1043_v14 = vld [vmem:[#allocation2 + $0x160] sm:$0xff]  ;;  %v718_v15 = vpop.f32.mrb[34].mxu0  ;;  %v838_v16 = vpop.f32.mrb[34].mxu1 }
 0x13f   :  { %v1070_v17 = vmax.f32 %v1013_v13, 0.0  ;;  %v1100_v18 = vmax.f32 %v1043_v14, 0.0  ;;  %955 = vst.msk [vmem:[#allocation2 + $0x80] sm:$0xff] %vm16_vm2, %v897_v9  ;;  %v898_v19 = vadd.f32 %v718_v15, %v91_v6  ;;  %v720_v20 = vpop.f32.mrb[35].mxu0  ;;  %985 = vst.msk [vmem:[#allocation2 + $0x170] sm:$0xff] %vm16_vm2, %v927_v11  ;;  %v928_v21 = vadd.f32 %v838_v16, %v121_v8  ;;  %v840_v22 = vpop.f32.mrb[35].mxu1 }
 0x140   :  { %v96_v11 = vld [vmem:[#allocation2 + $0xb0] sm:$0xff]  ;;  %v126_v12 = vld [vmem:[#allocation2 + $0x1a0] sm:$0xff]  ;;  %v97_v14 = vld [vmem:[#allocation2 + $0xb8] sm:$0xff] }
 0x141   :  { %v1014_v23 = vld [vmem:[#allocation2 + $0x78] sm:$0xff]  ;;  %v1044_v24 = vld [vmem:[#allocation2 + $0x168] sm:$0xff]  ;;  %1127 = vst.msk [vmem:[%s2007_s2 + $0x70] sm:$0xff] %vm16_vm2, %v1070_v17  ;;  %1157 = vst.msk [vmem:[%s2007_s2 + $0x160] sm:$0xff] %vm16_vm2, %v1100_v18 }
 0x142   :  { %v1071_v25 = vmax.f32 %v1014_v23, 0.0  ;;  %v1101_v26 = vmax.f32 %v1044_v24, 0.0  ;;  %956 = vst.msk [vmem:[#allocation2 + $0x88] sm:$0xff] %vm16_vm2, %v898_v19  ;;  %986 = vst.msk [vmem:[#allocation2 + $0x178] sm:$0xff] %vm16_vm2, %v928_v21  ;;  %v127_v16 = vld [vmem:[#allocation2 + $0x1a8] sm:$0xff] }
 0x144   :  { %1128 = vst.msk [vmem:[%s2007_s2 + $0x78] sm:$0xff] %vm16_vm2, %v1071_v25  ;;  %1158 = vst.msk [vmem:[%s2007_s2 + $0x168] sm:$0xff] %vm16_vm2, %v1101_v26  ;;  %v723_v29 = vpop.f32.mrb[36].mxu0  ;;  %v843_v31 = vpop.f32.mrb[36].mxu1 }
 0x145   :  { %v899_v33 = vadd.f32 %v723_v29, %v92_v27  ;;  %v725_v34 = vpop.f32.mrb[37].mxu0  ;;  %v929_v35 = vadd.f32 %v843_v31, %v122_v28  ;;  %v845_v36 = vpop.f32.mrb[37].mxu1 }
 0x146   :  { %v1015_v37 = vld [vmem:[#allocation2 + $0x80] sm:$0xff]  ;;  %v1045_v38 = vld [vmem:[#allocation2 + $0x170] sm:$0xff]  ;;  %v726_v39 = vpop.f32.mrb[38].mxu0  ;;  %v846_v40 = vpop.f32.mrb[38].mxu1 }
 0x147   :  { %v1072_v41 = vmax.f32 %v1015_v37, 0.0  ;;  %v1102_v42 = vmax.f32 %v1045_v38, 0.0  ;;  %957 = vst.msk [vmem:[#allocation2 + $0x90] sm:$0xff] %vm16_vm2, %v899_v33  ;;  %v900_v43 = vadd.f32 %v726_v39, %v93_v30  ;;  %v728_v44 = vpop.f32.mrb[39].mxu0  ;;  %987 = vst.msk [vmem:[#allocation2 + $0x180] sm:$0xff] %vm16_vm2, %v929_v35  ;;  %v930_v45 = vadd.f32 %v846_v40, %v123_v32  ;;  %v848_v46 = vpop.f32.mrb[39].mxu1 }
 0x148   :  { %v98_v35 = vld [vmem:[#allocation2 + $0xc0] sm:$0xff]  ;;  %v128_v36 = vld [vmem:[#allocation2 + $0x1b0] sm:$0xff]  ;;  %v99_v38 = vld [vmem:[#allocation2 + $0xc8] sm:$0xff] }
 0x149   :  { %v1016_v47 = vld [vmem:[#allocation2 + $0x88] sm:$0xff]  ;;  %v1046_v48 = vld [vmem:[#allocation2 + $0x178] sm:$0xff]  ;;  %1129 = vst.msk [vmem:[%s2007_s2 + $0x80] sm:$0xff] %vm16_vm2, %v1072_v41  ;;  %1159 = vst.msk [vmem:[%s2007_s2 + $0x170] sm:$0xff] %vm16_vm2, %v1102_v42 }
 0x14a   :  { %v1073_v49 = vmax.f32 %v1016_v47, 0.0  ;;  %v1103_v50 = vmax.f32 %v1046_v48, 0.0  ;;  %958 = vst.msk [vmem:[#allocation2 + $0x98] sm:$0xff] %vm16_vm2, %v900_v43  ;;  %988 = vst.msk [vmem:[#allocation2 + $0x188] sm:$0xff] %vm16_vm2, %v930_v45  ;;  %v129_v40 = vld [vmem:[#allocation2 + $0x1b8] sm:$0xff] }
 0x14c   :  { %1130 = vst.msk [vmem:[%s2007_s2 + $0x88] sm:$0xff] %vm16_vm2, %v1073_v49  ;;  %1160 = vst.msk [vmem:[%s2007_s2 + $0x178] sm:$0xff] %vm16_vm2, %v1103_v50  ;;  %v731_v53 = vpop.f32.mrb[40].mxu0  ;;  %v851_v55 = vpop.f32.mrb[40].mxu1 }
 0x14d   :  { %v901_v57 = vadd.f32 %v731_v53, %v94_v51  ;;  %v733_v58 = vpop.f32.mrb[41].mxu0  ;;  %v931_v59 = vadd.f32 %v851_v55, %v124_v52  ;;  %v853_v60 = vpop.f32.mrb[41].mxu1 }
 0x14e   :  { %v1017_v61 = vld [vmem:[#allocation2 + $0x90] sm:$0xff]  ;;  %v1047_v62 = vld [vmem:[#allocation2 + $0x180] sm:$0xff]  ;;  %v734_v63 = vpop.f32.mrb[42].mxu0  ;;  %v854_v0 = vpop.f32.mrb[42].mxu1 }
 0x14f   :  { %v1074_v1 = vmax.f32 %v1017_v61, 0.0  ;;  %v1104_v2 = vmax.f32 %v1047_v62, 0.0  ;;  %959 = vst.msk [vmem:[#allocation2 + $0xa0] sm:$0xff] %vm16_vm2, %v901_v57  ;;  %v902_v3 = vadd.f32 %v734_v63, %v95_v54  ;;  %v736_v4 = vpop.f32.mrb[43].mxu0  ;;  %989 = vst.msk [vmem:[#allocation2 + $0x190] sm:$0xff] %vm16_vm2, %v931_v59  ;;  %v932_v5 = vadd.f32 %v854_v0, %v125_v56  ;;  %v856_v6 = vpop.f32.mrb[43].mxu1 }
 0x150   :  { %v100_v59 = vld [vmem:[#allocation2 + $0xd0] sm:$0xff]  ;;  %v130_v60 = vld [vmem:[#allocation2 + $0x1c0] sm:$0xff]  ;;  %v101_v62 = vld [vmem:[#allocation2 + $0xd8] sm:$0xff] }
 0x151   :  { %v1018_v7 = vld [vmem:[#allocation2 + $0x98] sm:$0xff]  ;;  %v1048_v8 = vld [vmem:[#allocation2 + $0x188] sm:$0xff]  ;;  %1131 = vst.msk [vmem:[%s2007_s2 + $0x90] sm:$0xff] %vm16_vm2, %v1074_v1  ;;  %1161 = vst.msk [vmem:[%s2007_s2 + $0x180] sm:$0xff] %vm16_vm2, %v1104_v2 }
 0x152   :  { %v1075_v9 = vmax.f32 %v1018_v7, 0.0  ;;  %v1105_v10 = vmax.f32 %v1048_v8, 0.0  ;;  %960 = vst.msk [vmem:[#allocation2 + $0xa8] sm:$0xff] %vm16_vm2, %v902_v3  ;;  %990 = vst.msk [vmem:[#allocation2 + $0x198] sm:$0xff] %vm16_vm2, %v932_v5 }
 0x154   :  { %1132 = vst.msk [vmem:[%s2007_s2 + $0x98] sm:$0xff] %vm16_vm2, %v1075_v9  ;;  %1162 = vst.msk [vmem:[%s2007_s2 + $0x188] sm:$0xff] %vm16_vm2, %v1105_v10  ;;  %v739_v13 = vpop.f32.mrb[44].mxu0  ;;  %v859_v15 = vpop.f32.mrb[44].mxu1 }
 0x155   :  { %v903_v17 = vadd.f32 %v739_v13, %v96_v11  ;;  %v741_v18 = vpop.f32.mrb[45].mxu0  ;;  %v933_v19 = vadd.f32 %v859_v15, %v126_v12  ;;  %v861_v20 = vpop.f32.mrb[45].mxu1 }
 0x156   :  { %v1019_v21 = vld [vmem:[#allocation2 + $0xa0] sm:$0xff]  ;;  %v1049_v22 = vld [vmem:[#allocation2 + $0x190] sm:$0xff]  ;;  %v742_v23 = vpop.f32.mrb[46].mxu0  ;;  %v862_v24 = vpop.f32.mrb[46].mxu1 }
 0x157   :  { %v1076_v25 = vmax.f32 %v1019_v21, 0.0  ;;  %v1106_v26 = vmax.f32 %v1049_v22, 0.0  ;;  %961 = vst.msk [vmem:[#allocation2 + $0xb0] sm:$0xff] %vm16_vm2, %v903_v17  ;;  %v904_v27 = vadd.f32 %v742_v23, %v97_v14  ;;  %v744_v28 = vpop.f32.mrb[47].mxu0  ;;  %991 = vst.msk [vmem:[#allocation2 + $0x1a0] sm:$0xff] %vm16_vm2, %v933_v19  ;;  %v934_v29 = vadd.f32 %v862_v24, %v127_v16  ;;  %v864_v30 = vpop.f32.mrb[47].mxu1 }
 0x158   :  { %v102_v17 = vld [vmem:[#allocation2 + $0xe0] sm:$0xff]  ;;  %v103_v19 = vld [vmem:[#allocation2 + $0xe8] sm:$0xff] }
 0x159   :  { %v1020_v31 = vld [vmem:[#allocation2 + $0xa8] sm:$0xff]  ;;  %v1050_v32 = vld [vmem:[#allocation2 + $0x198] sm:$0xff]  ;;  %1133 = vst.msk [vmem:[%s2007_s2 + $0xa0] sm:$0xff] %vm16_vm2, %v1076_v25  ;;  %1163 = vst.msk [vmem:[%s2007_s2 + $0x190] sm:$0xff] %vm16_vm2, %v1106_v26 }
 0x15a   :  { %v1077_v33 = vmax.f32 %v1020_v31, 0.0  ;;  %v1107_v34 = vmax.f32 %v1050_v32, 0.0  ;;  %962 = vst.msk [vmem:[#allocation2 + $0xb8] sm:$0xff] %vm16_vm2, %v904_v27  ;;  %992 = vst.msk [vmem:[#allocation2 + $0x1a8] sm:$0xff] %vm16_vm2, %v934_v29 }
 0x15c   :  { %1134 = vst.msk [vmem:[%s2007_s2 + $0xa8] sm:$0xff] %vm16_vm2, %v1077_v33  ;;  %1164 = vst.msk [vmem:[%s2007_s2 + $0x198] sm:$0xff] %vm16_vm2, %v1107_v34  ;;  %v747_v37 = vpop.f32.mrb[48].mxu0  ;;  %v867_v39 = vpop.f32.mrb[48].mxu1 }
 0x15d   :  { %v905_v41 = vadd.f32 %v747_v37, %v98_v35  ;;  %v749_v42 = vpop.f32.mrb[49].mxu0  ;;  %v935_v43 = vadd.f32 %v867_v39, %v128_v36  ;;  %v869_v44 = vpop.f32.mrb[49].mxu1 }
 0x15e   :  { %v1021_v45 = vld [vmem:[#allocation2 + $0xb0] sm:$0xff]  ;;  %v1051_v46 = vld [vmem:[#allocation2 + $0x1a0] sm:$0xff]  ;;  %v750_v47 = vpop.f32.mrb[50].mxu0  ;;  %v870_v48 = vpop.f32.mrb[50].mxu1 }
 0x15f   :  { %v1078_v49 = vmax.f32 %v1021_v45, 0.0  ;;  %v1108_v50 = vmax.f32 %v1051_v46, 0.0  ;;  %963 = vst.msk [vmem:[#allocation2 + $0xc0] sm:$0xff] %vm16_vm2, %v905_v41  ;;  %v906_v51 = vadd.f32 %v750_v47, %v99_v38  ;;  %v752_v52 = vpop.f32.mrb[51].mxu0  ;;  %993 = vst.msk [vmem:[#allocation2 + $0x1b0] sm:$0xff] %vm16_vm2, %v935_v43  ;;  %v936_v53 = vadd.f32 %v870_v48, %v129_v40  ;;  %v872_v54 = vpop.f32.mrb[51].mxu1 }
 0x161   :  { %v1022_v55 = vld [vmem:[#allocation2 + $0xb8] sm:$0xff]  ;;  %v1052_v56 = vld [vmem:[#allocation2 + $0x1a8] sm:$0xff]  ;;  %1135 = vst.msk [vmem:[%s2007_s2 + $0xb0] sm:$0xff] %vm16_vm2, %v1078_v49  ;;  %1165 = vst.msk [vmem:[%s2007_s2 + $0x1a0] sm:$0xff] %vm16_vm2, %v1108_v50 }
 0x162   :  { %v1079_v57 = vmax.f32 %v1022_v55, 0.0  ;;  %v1109_v58 = vmax.f32 %v1052_v56, 0.0  ;;  %964 = vst.msk [vmem:[#allocation2 + $0xc8] sm:$0xff] %vm16_vm2, %v906_v51  ;;  %994 = vst.msk [vmem:[#allocation2 + $0x1b8] sm:$0xff] %vm16_vm2, %v936_v53 }
 0x164   :  { %1136 = vst.msk [vmem:[%s2007_s2 + $0xb8] sm:$0xff] %vm16_vm2, %v1079_v57  ;;  %1166 = vst.msk [vmem:[%s2007_s2 + $0x1a8] sm:$0xff] %vm16_vm2, %v1109_v58  ;;  %v755_v61 = vpop.f32.mrb[52].mxu0  ;;  %v875_v63 = vpop.f32.mrb[52].mxu1 }
 0x165   :  { %v907_v0 = vadd.f32 %v755_v61, %v100_v59  ;;  %v757_v1 = vpop.f32.mrb[53].mxu0  ;;  %v937_v2 = vadd.f32 %v875_v63, %v130_v60  ;;  %v877_v3 = vpop.f32.mrb[53].mxu1 }
 0x166   :  { %v1023_v4 = vld [vmem:[#allocation2 + $0xc0] sm:$0xff]  ;;  %v1053_v5 = vld [vmem:[#allocation2 + $0x1b0] sm:$0xff]  ;;  %v758_v6 = vpop.f32.mrb[54].mxu0  ;;  %v878_v7 = vpop.f32.mrb[54].mxu1 }
 0x167   :  { %v1080_v8 = vmax.f32 %v1023_v4, 0.0  ;;  %v1110_v9 = vmax.f32 %v1053_v5, 0.0  ;;  %965 = vst.msk [vmem:[#allocation2 + $0xd0] sm:$0xff] %vm16_vm2, %v907_v0  ;;  %v908_v10 = vadd.f32 %v758_v6, %v101_v62  ;;  %v760_v11 = vpop.f32.mrb[55].mxu0  ;;  %995 = vst.msk [vmem:[#allocation2 + $0x1c0] sm:$0xff] %vm16_vm2, %v937_v2  ;;  %v879_v12 = vpop.f32.mrb[55].mxu1 }
 0x169   :  { %v1024_v13 = vld [vmem:[#allocation2 + $0xc8] sm:$0xff]  ;;  %v1054_v14 = vld [vmem:[#allocation2 + $0x1b8] sm:$0xff]  ;;  %1137 = vst.msk [vmem:[%s2007_s2 + $0xc0] sm:$0xff] %vm16_vm2, %v1080_v8  ;;  %1167 = vst.msk [vmem:[%s2007_s2 + $0x1b0] sm:$0xff] %vm16_vm2, %v1110_v9 }
 0x16a   :  { %v1081_v15 = vmax.f32 %v1024_v13, 0.0  ;;  %v1111_v16 = vmax.f32 %v1054_v14, 0.0  ;;  %966 = vst.msk [vmem:[#allocation2 + $0xd8] sm:$0xff] %vm16_vm2, %v908_v10 }
 0x16c   :  { %1138 = vst.msk [vmem:[%s2007_s2 + $0xc8] sm:$0xff] %vm16_vm2, %v1081_v15  ;;  %1168 = vst.msk [vmem:[%s2007_s2 + $0x1b8] sm:$0xff] %vm16_vm2, %v1111_v16  ;;  %v763_v18 = vpop.f32.mrb[56].mxu0 }
 0x16d   :  { %v909_v20 = vadd.f32 %v763_v18, %v102_v17  ;;  %v765_v21 = vpop.f32.mrb[57].mxu0 }
 0x16e   :  { %v1025_v22 = vld [vmem:[#allocation2 + $0xd0] sm:$0xff]  ;;  %v1055_v23 = vld [vmem:[#allocation2 + $0x1c0] sm:$0xff]  ;;  %v766_v24 = vpop.f32.mrb[58].mxu0 }
 0x16f   :  { %v1082_v25 = vmax.f32 %v1025_v22, 0.0  ;;  %v1112_v26 = vmax.f32 %v1055_v23, 0.0  ;;  %967 = vst.msk [vmem:[#allocation2 + $0xe0] sm:$0xff] %vm16_vm2, %v909_v20  ;;  %v910_v27 = vadd.f32 %v766_v24, %v103_v19  ;;  %v768_v28 = vpop.f32.mrb[59].mxu0 }
 0x171   :  { %v1026_v29 = vld [vmem:[#allocation2 + $0xd8] sm:$0xff]  ;;  %1139 = vst.msk [vmem:[%s2007_s2 + $0xd0] sm:$0xff] %vm16_vm2, %v1082_v25  ;;  %1169 = vst.msk [vmem:[%s2007_s2 + $0x1c0] sm:$0xff] %vm16_vm2, %v1112_v26 }
 0x172   :  { %v1083_v30 = vmax.f32 %v1026_v29, 0.0  ;;  %968 = vst.msk [vmem:[#allocation2 + $0xe8] sm:$0xff] %vm16_vm2, %v910_v27 }
 0x174   :  { %1140 = vst.msk [vmem:[%s2007_s2 + $0xd8] sm:$0xff] %vm16_vm2, %v1083_v30 }
 0x176   :  { %v1027_v31 = vld [vmem:[#allocation2 + $0xe0] sm:$0xff] }
 0x177   :  { %v1084_v32 = vmax.f32 %v1027_v31, 0.0 }
 0x179   :  { %v1028_v33 = vld [vmem:[#allocation2 + $0xe8] sm:$0xff]  ;;  %1141 = vst.msk [vmem:[%s2007_s2 + $0xe0] sm:$0xff] %vm16_vm2, %v1084_v32 }
 0x17a   :  { %v1085_v34 = vmax.f32 %v1028_v33, 0.0 }
 0x17c   :  { %1142 = vst.msk [vmem:[%s2007_s2 + $0xe8] sm:$0xff] %vm16_vm2, %v1085_v34 }

// kernel: squeezenet_forward.31
= control target key start
LH: loop header
LB: loop body
LE: loop exit
PB: predicated region body
PF: predicated region fallthrough
CT: control target
= control target key end

     0   :  { %vm125_vm0 = vcmask 785408   ;;  %s894_s0 = inlined_call_operand.vmem [shape: f32[9,104,96], index: 0, kind: input, shape index: {}]   ;;  %s895_s1 = inlined_call_operand.vmem [shape: f32[104,96], index: 1, kind: output, shape index: {}]  }
   0x1   :  { %v8_v0 = vld [vmem:[%s894_s0] sm:$0xff]  ;;  %v21_v1 = vld [vmem:[%s894_s0 + $0x68] sm:$0xff]  ;;  %v34_v2 = vld [vmem:[%s894_s0 + $0xd0] sm:$0xff] }
   0x2   :  { %v47_v3 = vld [vmem:[%s894_s0 + $0x138] sm:$0xff]  ;;  %v60_v4 = vld [vmem:[%s894_s0 + $0x1a0] sm:$0xff]  ;;  %v126_v5 = vsel %vm125_vm0, %v8_v0, -inf  ;;  %v127_v6 = vsel %vm125_vm0, %v21_v1, -inf  ;;  %v129_v7 = vsel %vm125_vm0, %v34_v2, -inf  ;;  %v73_v8 = vld [vmem:[%s894_s0 + $0x208] sm:$0xff] }
   0x3   :  { %v86_v9 = vld [vmem:[%s894_s0 + $0x270] sm:$0xff]  ;;  %v99_v10 = vld [vmem:[%s894_s0 + $0x2d8] sm:$0xff]  ;;  %v128_v11 = vmax.f32 %v126_v5, %v127_v6  ;;  %v131_v12 = vsel %vm125_vm0, %v47_v3, -inf  ;;  %v9_v13 = vld [vmem:[%s894_s0 + $0x8] sm:$0xff]  ;;  %v133_v22 = vsel %vm125_vm0, %v60_v4, -inf  ;;  %v135_v23 = vsel %vm125_vm0, %v73_v8, -inf }
   0x4   :  { %v22_v14 = vld [vmem:[%s894_s0 + $0x70] sm:$0xff]  ;;  %v35_v15 = vld [vmem:[%s894_s0 + $0xd8] sm:$0xff]  ;;  %v112_v16 = vld [vmem:[%s894_s0 + $0x340] sm:$0xff]  ;;  %v143_v19 = vsel %vm125_vm0, %v9_v13, -inf  ;;  %v137_v29 = vsel %vm125_vm0, %v86_v9, -inf  ;;  %v139_v30 = vsel %vm125_vm0, %v99_v10, -inf }
   0x5   :  { %v130_v17 = vmax.f32 %v128_v11, %v129_v7  ;;  %v48_v18 = vld [vmem:[%s894_s0 + $0x140] sm:$0xff]  ;;  %v144_v20 = vsel %vm125_vm0, %v22_v14, -inf  ;;  %v146_v21 = vsel %vm125_vm0, %v35_v15, -inf  ;;  %v61_v24 = vld [vmem:[%s894_s0 + $0x1a8] sm:$0xff]  ;;  %v74_v25 = vld [vmem:[%s894_s0 + $0x210] sm:$0xff]  ;;  %v141_v42 = vsel %vm125_vm0, %v112_v16, -inf }
   0x6   :  { %v87_v26 = vld [vmem:[%s894_s0 + $0x278] sm:$0xff]  ;;  %v145_v27 = vmax.f32 %v143_v19, %v144_v20  ;;  %v148_v31 = vsel %vm125_vm0, %v48_v18, -inf  ;;  %v10_v32 = vld [vmem:[%s894_s0 + $0x10] sm:$0xff]  ;;  %v36_v34 = vld [vmem:[%s894_s0 + $0xe0] sm:$0xff]  ;;  %v150_v44 = vsel %vm125_vm0, %v61_v24, -inf  ;;  %v152_v48 = vsel %vm125_vm0, %v74_v25, -inf }
   0x7   :  { %v132_v28 = vmax.f32 %v130_v17, %v131_v12  ;;  %v23_v33 = vld [vmem:[%s894_s0 + $0x78] sm:$0xff]  ;;  %v100_v35 = vld [vmem:[%s894_s0 + $0x2e0] sm:$0xff]  ;;  %v49_v37 = vld [vmem:[%s894_s0 + $0x148] sm:$0xff]  ;;  %v160_v38 = vsel %vm125_vm0, %v10_v32, -inf  ;;  %v163_v40 = vsel %vm125_vm0, %v36_v34, -inf  ;;  %v154_v49 = vsel %vm125_vm0, %v87_v26, -inf }
   0x8   :  { %v147_v36 = vmax.f32 %v145_v27, %v146_v21  ;;  %v161_v39 = vsel %vm125_vm0, %v23_v33, -inf  ;;  %v113_v43 = vld [vmem:[%s894_s0 + $0x348] sm:$0xff]  ;;  %v62_v45 = vld [vmem:[%s894_s0 + $0x1b0] sm:$0xff]  ;;  %v165_v50 = vsel %vm125_vm0, %v49_v37, -inf  ;;  %v11_v51 = vld [vmem:[%s894_s0 + $0x18] sm:$0xff]  ;;  %v156_v55 = vsel %vm125_vm0, %v100_v35, -inf }
   0x9   :  { %v134_v41 = vmax.f32 %v132_v28, %v133_v22  ;;  %v162_v46 = vmax.f32 %v160_v38, %v161_v39  ;;  %v24_v52 = vld [vmem:[%s894_s0 + $0x80] sm:$0xff]  ;;  %v37_v53 = vld [vmem:[%s894_s0 + $0xe8] sm:$0xff]  ;;  %v75_v56 = vld [vmem:[%s894_s0 + $0x218] sm:$0xff]  ;;  %v177_v60 = vsel %vm125_vm0, %v11_v51, -inf  ;;  %v167_v62 = vsel %vm125_vm0, %v62_v45, -inf }
   0xa   :  { %v149_v47 = vmax.f32 %v147_v36, %v148_v31  ;;  %v88_v57 = vld [vmem:[%s894_s0 + $0x280] sm:$0xff]  ;;  %v50_v59 = vld [vmem:[%s894_s0 + $0x150] sm:$0xff]  ;;  %v63_v63 = vld [vmem:[%s894_s0 + $0x1b8] sm:$0xff]  ;;  %v178_v0 = vsel %vm125_vm0, %v24_v52, -inf  ;;  %v180_v1 = vsel %vm125_vm0, %v37_v53, -inf  ;;  %v158_v3 = vsel %vm125_vm0, %v113_v43, -inf }
   0xb   :  { %v136_v54 = vmax.f32 %v134_v41, %v135_v23  ;;  %v164_v58 = vmax.f32 %v162_v46, %v163_v40  ;;  %v179_v5 = vmax.f32 %v177_v60, %v178_v0  ;;  %v12_v6 = vld [vmem:[%s894_s0 + $0x20] sm:$0xff]  ;;  %v25_v7 = vld [vmem:[%s894_s0 + $0x88] sm:$0xff]  ;;  %v38_v8 = vld [vmem:[%s894_s0 + $0xf0] sm:$0xff]  ;;  %v169_v10 = vsel %vm125_vm0, %v75_v56, -inf }
   0xc   :  { %v151_v61 = vmax.f32 %v149_v47, %v150_v44  ;;  %v171_v11 = vsel %vm125_vm0, %v88_v57, -inf  ;;  %v182_v12 = vsel %vm125_vm0, %v50_v59, -inf  ;;  %v101_v14 = vld [vmem:[%s894_s0 + $0x2e8] sm:$0xff]  ;;  %v76_v16 = vld [vmem:[%s894_s0 + $0x220] sm:$0xff]  ;;  %v184_v18 = vsel %vm125_vm0, %v63_v63, -inf  ;;  %v51_v19 = vld [vmem:[%s894_s0 + $0x158] sm:$0xff] }
   0xd   :  { %v138_v2 = vmax.f32 %v136_v54, %v137_v29  ;;  %v166_v4 = vmax.f32 %v164_v58, %v165_v50  ;;  %v181_v17 = vmax.f32 %v179_v5, %v180_v1  ;;  %v114_v21 = vld [vmem:[%s894_s0 + $0x350] sm:$0xff]  ;;  %v194_v22 = vsel %vm125_vm0, %v12_v6, -inf  ;;  %v89_v27 = vld [vmem:[%s894_s0 + $0x288] sm:$0xff]  ;;  %v64_v29 = vld [vmem:[%s894_s0 + $0x1c0] sm:$0xff] }
   0xe   :  { %v153_v9 = vmax.f32 %v151_v61, %v152_v48  ;;  %v195_v23 = vsel %vm125_vm0, %v25_v7, -inf  ;;  %v197_v24 = vsel %vm125_vm0, %v38_v8, -inf  ;;  %v13_v31 = vld [vmem:[%s894_s0 + $0x28] sm:$0xff]  ;;  %v173_v33 = vsel %vm125_vm0, %v101_v14, -inf  ;;  %v26_v36 = vld [vmem:[%s894_s0 + $0x90] sm:$0xff]  ;;  %v39_v43 = vld [vmem:[%s894_s0 + $0xf8] sm:$0xff] }
   0xf   :  { %v140_v13 = vmax.f32 %v138_v2, %v139_v30  ;;  %v168_v15 = vmax.f32 %v166_v4, %v167_v62  ;;  %v183_v28 = vmax.f32 %v181_v17, %v182_v12  ;;  %v196_v30 = vmax.f32 %v194_v22, %v195_v23  ;;  %v102_v39 = vld [vmem:[%s894_s0 + $0x2f0] sm:$0xff]  ;;  %v77_v41 = vld [vmem:[%s894_s0 + $0x228] sm:$0xff]  ;;  %v52_v47 = vld [vmem:[%s894_s0 + $0x160] sm:$0xff] }
  0x10   :  { %v155_v20 = vmax.f32 %v153_v9, %v154_v49  ;;  %v186_v34 = vsel %vm125_vm0, %v76_v16, -inf  ;;  %v199_v35 = vsel %vm125_vm0, %v51_v19, -inf  ;;  %v175_v38 = vsel %vm125_vm0, %v114_v21, -inf  ;;  %v115_v50 = vld [vmem:[%s894_s0 + $0x358] sm:$0xff]  ;;  %v90_v52 = vld [vmem:[%s894_s0 + $0x290] sm:$0xff]  ;;  %v65_v54 = vld [vmem:[%s894_s0 + $0x1c8] sm:$0xff] }
  0x11   :  { %v142_v25 = vmax.f32 %v140_v13, %v141_v42  ;;  %v170_v26 = vmax.f32 %v168_v15, %v169_v10  ;;  %v185_v40 = vmax.f32 %v183_v28, %v184_v18  ;;  %v198_v42 = vmax.f32 %v196_v30, %v197_v24  ;;  %v14_v60 = vld [vmem:[%s894_s0 + $0x30] sm:$0xff]  ;;  %v27_v61 = vld [vmem:[%s894_s0 + $0x98] sm:$0xff]  ;;  %v53_v9 = vld [vmem:[%s894_s0 + $0x168] sm:$0xff] }
  0x12   :  { %v157_v32 = vmax.f32 %v155_v20, %v156_v55  ;;  %v188_v45 = vsel %vm125_vm0, %v89_v27, -inf  ;;  %v201_v46 = vsel %vm125_vm0, %v64_v29, -inf  ;;  %v211_v48 = vsel %vm125_vm0, %v13_v31, -inf  ;;  %v103_v0 = vld [vmem:[%s894_s0 + $0x2f8] sm:$0xff]  ;;  %v78_v6 = vld [vmem:[%s894_s0 + $0x230] sm:$0xff]  ;;  %v28_v22 = vld [vmem:[%s894_s0 + $0xa0] sm:$0xff] }
  0x13   :  { %347 = vst.msk [vmem:[%s895_s1] sm:$0xff] %vm125_vm0, %v142_v25  ;;  %v172_v37 = vmax.f32 %v170_v26, %v171_v11  ;;  %v187_v51 = vmax.f32 %v185_v40, %v186_v34  ;;  %v200_v53 = vmax.f32 %v198_v42, %v199_v35  ;;  %v212_v55 = vsel %vm125_vm0, %v26_v36, -inf  ;;  %v116_v11 = vld [vmem:[%s894_s0 + $0x360] sm:$0xff]  ;;  %v91_v13 = vld [vmem:[%s894_s0 + $0x298] sm:$0xff]  ;;  %v66_v18 = vld [vmem:[%s894_s0 + $0x1d0] sm:$0xff] }
  0x14   :  { %v159_v44 = vmax.f32 %v157_v32, %v158_v3  ;;  %v190_v56 = vsel %vm125_vm0, %v102_v39, -inf  ;;  %v203_v57 = vsel %vm125_vm0, %v77_v41, -inf  ;;  %v213_v58 = vmax.f32 %v211_v48, %v212_v55  ;;  %v40_v3 = vld [vmem:[%s894_s0 + $0x100] sm:$0xff]  ;;  %v15_v21 = vld [vmem:[%s894_s0 + $0x38] sm:$0xff]  ;;  %v41_v27 = vld [vmem:[%s894_s0 + $0x108] sm:$0xff] }
  0x15   :  { %v174_v49 = vmax.f32 %v172_v37, %v173_v33  ;;  %v214_v59 = vsel %vm125_vm0, %v39_v43, -inf  ;;  %v189_v63 = vmax.f32 %v187_v51, %v188_v45  ;;  %v202_v1 = vmax.f32 %v200_v53, %v201_v46  ;;  %v104_v29 = vld [vmem:[%s894_s0 + $0x300] sm:$0xff]  ;;  %v79_v32 = vld [vmem:[%s894_s0 + $0x238] sm:$0xff]  ;;  %v54_v34 = vld [vmem:[%s894_s0 + $0x170] sm:$0xff] }
  0x16   :  { %348 = vst.msk [vmem:[%s895_s1 + $0x8] sm:$0xff] %vm125_vm0, %v159_v44  ;;  %v216_v2 = vsel %vm125_vm0, %v52_v47, -inf  ;;  %v192_v4 = vsel %vm125_vm0, %v115_v50, -inf  ;;  %v205_v5 = vsel %vm125_vm0, %v90_v52, -inf  ;;  %v215_v7 = vmax.f32 %v213_v58, %v214_v59  ;;  %v117_v36 = vld [vmem:[%s894_s0 + $0x368] sm:$0xff]  ;;  %v92_v37 = vld [vmem:[%s894_s0 + $0x2a0] sm:$0xff] }
  0x17   :  { %v176_v62 = vmax.f32 %v174_v49, %v175_v38  ;;  %v218_v8 = vsel %vm125_vm0, %v65_v54, -inf  ;;  %v191_v10 = vmax.f32 %v189_v63, %v190_v56  ;;  %v204_v12 = vmax.f32 %v202_v1, %v203_v57  ;;  %v67_v43 = vld [vmem:[%s894_s0 + $0x1d8] sm:$0xff]  ;;  %v16_v46 = vld [vmem:[%s894_s0 + $0x40] sm:$0xff]  ;;  %v29_v47 = vld [vmem:[%s894_s0 + $0xa8] sm:$0xff] }
  0x18   :  { %v228_v14 = vsel %vm125_vm0, %v14_v60, -inf  ;;  %v229_v15 = vsel %vm125_vm0, %v27_v61, -inf  ;;  %v207_v16 = vsel %vm125_vm0, %v103_v0, -inf  ;;  %v217_v17 = vmax.f32 %v215_v7, %v216_v2  ;;  %v105_v50 = vld [vmem:[%s894_s0 + $0x308] sm:$0xff]  ;;  %v80_v56 = vld [vmem:[%s894_s0 + $0x240] sm:$0xff]  ;;  %v42_v58 = vld [vmem:[%s894_s0 + $0x110] sm:$0xff] }
  0x19   :  { %349 = vst.msk [vmem:[%s895_s1 + $0x10] sm:$0xff] %vm125_vm0, %v176_v62  ;;  %v230_v19 = vmax.f32 %v228_v14, %v229_v15  ;;  %v231_v20 = vsel %vm125_vm0, %v40_v3, -inf  ;;  %v193_v23 = vmax.f32 %v191_v10, %v192_v4  ;;  %v206_v24 = vmax.f32 %v204_v12, %v205_v5  ;;  %v55_v59 = vld [vmem:[%s894_s0 + $0x178] sm:$0xff]  ;;  %v118_v60 = vld [vmem:[%s894_s0 + $0x370] sm:$0xff]  ;;  %v93_v3 = vld [vmem:[%s894_s0 + $0x2a8] sm:$0xff] }
  0x1a   :  { %v220_v25 = vsel %vm125_vm0, %v78_v6, -inf  ;;  %v233_v26 = vsel %vm125_vm0, %v53_v9, -inf  ;;  %v209_v28 = vsel %vm125_vm0, %v116_v11, -inf  ;;  %v219_v30 = vmax.f32 %v217_v17, %v218_v8  ;;  %v68_v5 = vld [vmem:[%s894_s0 + $0x1e0] sm:$0xff]  ;;  %v17_v7 = vld [vmem:[%s894_s0 + $0x48] sm:$0xff]  ;;  %v30_v12 = vld [vmem:[%s894_s0 + $0xb0] sm:$0xff] }
  0x1b   :  { %v222_v31 = vsel %vm125_vm0, %v91_v13, -inf  ;;  %v232_v33 = vmax.f32 %v230_v19, %v231_v20  ;;  %350 = vst.msk [vmem:[%s895_s1 + $0x18] sm:$0xff] %vm125_vm0, %v193_v23  ;;  %v208_v35 = vmax.f32 %v206_v24, %v207_v16  ;;  %v235_v38 = vsel %vm125_vm0, %v66_v18, -inf  ;;  %v106_v15 = vld [vmem:[%s894_s0 + $0x310] sm:$0xff]  ;;  %v81_v17 = vld [vmem:[%s894_s0 + $0x248] sm:$0xff]  ;;  %v43_v19 = vld [vmem:[%s894_s0 + $0x118] sm:$0xff] }
  0x1c   :  { %v245_v39 = vsel %vm125_vm0, %v15_v21, -inf  ;;  %v246_v40 = vsel %vm125_vm0, %v28_v22, -inf  ;;  %v221_v41 = vmax.f32 %v219_v30, %v220_v25  ;;  %v248_v45 = vsel %vm125_vm0, %v41_v27, -inf  ;;  %v56_v23 = vld [vmem:[%s894_s0 + $0x180] sm:$0xff]  ;;  %v69_v30 = vld [vmem:[%s894_s0 + $0x1e8] sm:$0xff] }
  0x1d   :  { %v234_v42 = vmax.f32 %v232_v33, %v233_v26  ;;  %v247_v44 = vmax.f32 %v245_v39, %v246_v40  ;;  %v210_v48 = vmax.f32 %v208_v35, %v209_v28  ;;  %v224_v49 = vsel %vm125_vm0, %v104_v29, -inf  ;;  %v119_v26 = vld [vmem:[%s894_s0 + $0x378] sm:$0xff]  ;;  %v94_v28 = vld [vmem:[%s894_s0 + $0x2b0] sm:$0xff] }
  0x1e   :  { %v237_v51 = vsel %vm125_vm0, %v79_v32, -inf  ;;  %v250_v52 = vsel %vm125_vm0, %v54_v34, -inf  ;;  %v223_v53 = vmax.f32 %v221_v41, %v222_v31  ;;  %v226_v54 = vsel %vm125_vm0, %v117_v36, -inf  ;;  %v18_v36 = vld [vmem:[%s894_s0 + $0x50] sm:$0xff]  ;;  %v107_v40 = vld [vmem:[%s894_s0 + $0x318] sm:$0xff] }
  0x1f   :  { %v236_v55 = vmax.f32 %v234_v42, %v235_v38  ;;  %v249_v57 = vmax.f32 %v247_v44, %v248_v45  ;;  %351 = vst.msk [vmem:[%s895_s1 + $0x20] sm:$0xff] %vm125_vm0, %v210_v48  ;;  %v239_v61 = vsel %vm125_vm0, %v92_v37, -inf  ;;  %v252_v62 = vsel %vm125_vm0, %v67_v43, -inf  ;;  %v31_v37 = vld [vmem:[%s894_s0 + $0xb8] sm:$0xff]  ;;  %v44_v43 = vld [vmem:[%s894_s0 + $0x120] sm:$0xff] }
  0x20   :  { %v262_v63 = vsel %vm125_vm0, %v16_v46, -inf  ;;  %v263_v0 = vsel %vm125_vm0, %v29_v47, -inf  ;;  %v225_v1 = vmax.f32 %v223_v53, %v224_v49  ;;  %v241_v8 = vsel %vm125_vm0, %v105_v50, -inf  ;;  %v82_v46 = vld [vmem:[%s894_s0 + $0x250] sm:$0xff]  ;;  %v57_v49 = vld [vmem:[%s894_s0 + $0x188] sm:$0xff]  ;;  %v95_v53 = vld [vmem:[%s894_s0 + $0x2b8] sm:$0xff] }
  0x21   :  { %v238_v2 = vmax.f32 %v236_v55, %v237_v51  ;;  %v251_v4 = vmax.f32 %v249_v57, %v250_v52  ;;  %v264_v6 = vmax.f32 %v262_v63, %v263_v0  ;;  %v254_v9 = vsel %vm125_vm0, %v80_v56, -inf  ;;  %v120_v51 = vld [vmem:[%s894_s0 + $0x380] sm:$0xff] }
  0x22   :  { %v265_v10 = vsel %vm125_vm0, %v42_v58, -inf  ;;  %v267_v11 = vsel %vm125_vm0, %v55_v59, -inf  ;;  %v227_v13 = vmax.f32 %v225_v1, %v226_v54  ;;  %v243_v20 = vsel %vm125_vm0, %v118_v60, -inf  ;;  %v70_v58 = vld [vmem:[%s894_s0 + $0x1f0] sm:$0xff] }
  0x23   :  { %v240_v14 = vmax.f32 %v238_v2, %v239_v61  ;;  %v253_v16 = vmax.f32 %v251_v4, %v252_v62  ;;  %v266_v18 = vmax.f32 %v264_v6, %v265_v10  ;;  %v256_v21 = vsel %vm125_vm0, %v93_v3, -inf  ;;  %v19_v61 = vld [vmem:[%s894_s0 + $0x58] sm:$0xff]  ;;  %v32_v62 = vld [vmem:[%s894_s0 + $0xc0] sm:$0xff]  ;;  %v45_v3 = vld [vmem:[%s894_s0 + $0x128] sm:$0xff] }
  0x24   :  { %v269_v22 = vsel %vm125_vm0, %v68_v5, -inf  ;;  %v279_v24 = vsel %vm125_vm0, %v17_v7, -inf  ;;  %352 = vst.msk [vmem:[%s895_s1 + $0x28] sm:$0xff] %vm125_vm0, %v227_v13  ;;  %v280_v31 = vsel %vm125_vm0, %v30_v12, -inf  ;;  %v258_v32 = vsel %vm125_vm0, %v106_v15, -inf  ;;  %v108_v5 = vld [vmem:[%s894_s0 + $0x320] sm:$0xff] }
  0x25   :  { %v242_v25 = vmax.f32 %v240_v14, %v241_v8  ;;  %v255_v27 = vmax.f32 %v253_v16, %v254_v9  ;;  %v268_v29 = vmax.f32 %v266_v18, %v267_v11  ;;  %v271_v33 = vsel %vm125_vm0, %v81_v17, -inf  ;;  %v83_v8 = vld [vmem:[%s894_s0 + $0x258] sm:$0xff]  ;;  %v58_v10 = vld [vmem:[%s894_s0 + $0x190] sm:$0xff]  ;;  %v121_v12 = vld [vmem:[%s894_s0 + $0x388] sm:$0xff] }
  0x26   :  { %v281_v34 = vmax.f32 %v279_v24, %v280_v31  ;;  %v282_v35 = vsel %vm125_vm0, %v43_v19, -inf  ;;  %v284_v42 = vsel %vm125_vm0, %v56_v23, -inf  ;;  %v260_v44 = vsel %vm125_vm0, %v119_v26, -inf  ;;  %v96_v13 = vld [vmem:[%s894_s0 + $0x2c0] sm:$0xff]  ;;  %v71_v19 = vld [vmem:[%s894_s0 + $0x1f8] sm:$0xff]  ;;  %v33_v23 = vld [vmem:[%s894_s0 + $0xc8] sm:$0xff] }
  0x27   :  { %v244_v38 = vmax.f32 %v242_v25, %v243_v20  ;;  %v257_v39 = vmax.f32 %v255_v27, %v256_v21  ;;  %v270_v41 = vmax.f32 %v268_v29, %v269_v22  ;;  %v273_v45 = vsel %vm125_vm0, %v94_v28, -inf  ;;  %v20_v22 = vld [vmem:[%s894_s0 + $0x60] sm:$0xff]  ;;  %v109_v26 = vld [vmem:[%s894_s0 + $0x328] sm:$0xff] }
  0x28   :  { %v283_v47 = vmax.f32 %v281_v34, %v282_v35  ;;  %v286_v48 = vsel %vm125_vm0, %v69_v30, -inf  ;;  %v296_v54 = vsel %vm125_vm0, %v18_v36, -inf  ;;  %v297_v55 = vsel %vm125_vm0, %v31_v37, -inf  ;;  %v46_v34 = vld [vmem:[%s894_s0 + $0x130] sm:$0xff]  ;;  %v59_v35 = vld [vmem:[%s894_s0 + $0x198] sm:$0xff] }
  0x29   :  { %353 = vst.msk [vmem:[%s895_s1 + $0x30] sm:$0xff] %vm125_vm0, %v244_v38  ;;  %v259_v50 = vmax.f32 %v257_v39, %v258_v32  ;;  %v272_v52 = vmax.f32 %v270_v41, %v271_v33  ;;  %v275_v56 = vsel %vm125_vm0, %v107_v40, -inf  ;;  %v298_v59 = vmax.f32 %v296_v54, %v297_v55  ;;  %v84_v32 = vld [vmem:[%s894_s0 + $0x260] sm:$0xff]  ;;  %v122_v41 = vld [vmem:[%s894_s0 + $0x390] sm:$0xff]  ;;  %v85_v55 = vld [vmem:[%s894_s0 + $0x268] sm:$0xff] }
  0x2a   :  { %v285_v57 = vmax.f32 %v283_v47, %v284_v42  ;;  %v299_v60 = vsel %vm125_vm0, %v44_v43, -inf  ;;  %v288_v1 = vsel %vm125_vm0, %v82_v46, -inf  ;;  %v301_v2 = vsel %vm125_vm0, %v57_v49, -inf  ;;  %v97_v43 = vld [vmem:[%s894_s0 + $0x2c8] sm:$0xff] }
  0x2b   :  { %v261_v63 = vmax.f32 %v259_v50, %v260_v44  ;;  %v274_v0 = vmax.f32 %v272_v52, %v273_v45  ;;  %v277_v4 = vsel %vm125_vm0, %v120_v51, -inf  ;;  %v290_v7 = vsel %vm125_vm0, %v95_v53, -inf  ;;  %v72_v45 = vld [vmem:[%s894_s0 + $0x200] sm:$0xff]  ;;  %v110_v53 = vld [vmem:[%s894_s0 + $0x330] sm:$0xff] }
  0x2c   :  { %v287_v6 = vmax.f32 %v285_v57, %v286_v48  ;;  %v300_v9 = vmax.f32 %v298_v59, %v299_v60  ;;  %v303_v14 = vsel %vm125_vm0, %v70_v58, -inf  ;;  %v313_v15 = vsel %vm125_vm0, %v19_v61, -inf  ;;  %v123_v61 = vld [vmem:[%s894_s0 + $0x398] sm:$0xff] }
  0x2d   :  { %354 = vst.msk [vmem:[%s895_s1 + $0x38] sm:$0xff] %vm125_vm0, %v261_v63  ;;  %v276_v11 = vmax.f32 %v274_v0, %v275_v56  ;;  %v314_v16 = vsel %vm125_vm0, %v32_v62, -inf  ;;  %v316_v21 = vsel %vm125_vm0, %v45_v3, -inf  ;;  %v292_v25 = vsel %vm125_vm0, %v108_v5, -inf  ;;  %v98_v63 = vld [vmem:[%s894_s0 + $0x2d0] sm:$0xff]  ;;  %v111_v5 = vld [vmem:[%s894_s0 + $0x338] sm:$0xff] }
  0x2e   :  { %v289_v17 = vmax.f32 %v287_v6, %v288_v1  ;;  %v302_v18 = vmax.f32 %v300_v9, %v301_v2  ;;  %v315_v20 = vmax.f32 %v313_v15, %v314_v16  ;;  %v305_v27 = vsel %vm125_vm0, %v83_v8, -inf }
  0x2f   :  { %v278_v24 = vmax.f32 %v276_v11, %v277_v4  ;;  %v318_v28 = vsel %vm125_vm0, %v58_v10, -inf  ;;  %v294_v30 = vsel %vm125_vm0, %v121_v12, -inf  ;;  %v307_v36 = vsel %vm125_vm0, %v96_v13, -inf  ;;  %v124_v10 = vld [vmem:[%s894_s0 + $0x3a0] sm:$0xff] }
  0x30   :  { %v291_v29 = vmax.f32 %v289_v17, %v290_v7  ;;  %v304_v31 = vmax.f32 %v302_v18, %v303_v14  ;;  %v317_v33 = vmax.f32 %v315_v20, %v316_v21  ;;  %v320_v37 = vsel %vm125_vm0, %v71_v19, -inf }
  0x31   :  { %355 = vst.msk [vmem:[%s895_s1 + $0x40] sm:$0xff] %vm125_vm0, %v278_v24  ;;  %v330_v38 = vsel %vm125_vm0, %v20_v22, -inf  ;;  %v331_v39 = vsel %vm125_vm0, %v33_v23, -inf  ;;  %v309_v47 = vsel %vm125_vm0, %v109_v26, -inf  ;;  %v322_v48 = vsel %vm125_vm0, %v84_v32, -inf }
  0x32   :  { %v293_v40 = vmax.f32 %v291_v29, %v292_v25  ;;  %v306_v42 = vmax.f32 %v304_v31, %v305_v27  ;;  %v319_v44 = vmax.f32 %v317_v33, %v318_v28  ;;  %v332_v46 = vmax.f32 %v330_v38, %v331_v39 }
  0x33   :  { %v333_v49 = vsel %vm125_vm0, %v46_v34, -inf  ;;  %v335_v50 = vsel %vm125_vm0, %v59_v35, -inf  ;;  %v311_v57 = vsel %vm125_vm0, %v122_v41, -inf  ;;  %v324_v58 = vsel %vm125_vm0, %v97_v43, -inf }
  0x34   :  { %v295_v51 = vmax.f32 %v293_v40, %v294_v30  ;;  %v308_v52 = vmax.f32 %v306_v42, %v307_v36  ;;  %v321_v54 = vmax.f32 %v319_v44, %v320_v37  ;;  %v334_v56 = vmax.f32 %v332_v46, %v333_v49 }
  0x35   :  { %v337_v59 = vsel %vm125_vm0, %v72_v45, -inf  ;;  %v326_v1 = vsel %vm125_vm0, %v110_v53, -inf  ;;  %v339_v2 = vsel %vm125_vm0, %v85_v55, -inf  ;;  %v328_v7 = vsel %vm125_vm0, %v123_v61, -inf }
  0x36   :  { %356 = vst.msk [vmem:[%s895_s1 + $0x48] sm:$0xff] %vm125_vm0, %v295_v51  ;;  %v310_v60 = vmax.f32 %v308_v52, %v309_v47  ;;  %v323_v62 = vmax.f32 %v321_v54, %v322_v48  ;;  %v336_v0 = vmax.f32 %v334_v56, %v335_v50  ;;  %v341_v8 = vsel %vm125_vm0, %v98_v63, -inf }
  0x37   :  { %v343_v12 = vsel %vm125_vm0, %v111_v5, -inf  ;;  %v345_v15 = vsel %vm125_vm0, %v124_v10, -inf }
  0x38   :  { %v312_v3 = vmax.f32 %v310_v60, %v311_v57  ;;  %v325_v4 = vmax.f32 %v323_v62, %v324_v58  ;;  %v338_v6 = vmax.f32 %v336_v0, %v337_v59 }
  0x3a   :  { %357 = vst.msk [vmem:[%s895_s1 + $0x50] sm:$0xff] %vm125_vm0, %v312_v3  ;;  %v327_v9 = vmax.f32 %v325_v4, %v326_v1  ;;  %v340_v11 = vmax.f32 %v338_v6, %v339_v2 }
  0x3c   :  { %v329_v13 = vmax.f32 %v327_v9, %v328_v7  ;;  %v342_v14 = vmax.f32 %v340_v11, %v341_v8 }
  0x3e   :  { %358 = vst.msk [vmem:[%s895_s1 + $0x58] sm:$0xff] %vm125_vm0, %v329_v13  ;;  %v344_v16 = vmax.f32 %v342_v14, %v343_v12 }
  0x40   :  { %v346_v17 = vmax.f32 %v344_v16, %v345_v15 }
  0x42   :  { %359 = vst.msk [vmem:[%s895_s1 + $0x60] sm:$0xff] %vm125_vm0, %v346_v17 }

// kernel: squeezenet_forward.32
= control target key start
LH: loop header
LB: loop body
LE: loop exit
PB: predicated region body
PF: predicated region fallthrough
CT: control target
= control target key end

     0   :  { %vm16_vm0 = vcmask 130048   ;;  %v420_v0 = vmov 0.0   ;;  %vm421_vm1 = vmmov 0   ;;  %vm137_vm2 = vcmask 785408   ;;  %s600_s1 = inlined_call_operand.vmem [shape: bf16[96,16], index: 1, kind: input, shape index: {}]   ;;  %s601_s0 = inlined_call_operand.vmem [shape: bf16[104,96], index: 0, kind: input, shape index: {}]   ;;  %s602_s2 = inlined_call_operand.vmem [shape: f32[104,16], index: 2, kind: output, shape index: {}]  }
   0x1   :  { %353 = vmatprep.subr.bf16.mxu0 %v420_v0  ;;  %v407_v1 = vld [vmem:[%s600_s1] sm:$0xff]   ;;  %393 = vmatprep.subr.bf16.mxu1 %v420_v0  ;;  %17 = vst.msk [vmem:[#allocation2] sm:$0xff] %vm16_vm0, %v420_v0  ;;  %18 = vst.msk [vmem:[#allocation2 + $0x8] sm:$0xff] %vm16_vm0, %v420_v0  ;;  %v408_v2 = vld [vmem:[%s600_s1 + $0x8] sm:$0xff]  }
   0x2   :  { %19 = vst.msk [vmem:[#allocation2 + $0x10] sm:$0xff] %vm16_vm0, %v420_v0  ;;  %20 = vst.msk [vmem:[#allocation2 + $0x18] sm:$0xff] %vm16_vm0, %v420_v0  ;;  %365 = vmatprep.mubr.msk.bf16.mxu0 %vm421_vm1, %v420_v0  ;;  %381 = vmatprep.mubr.msk.bf16.mxu1 %vm421_vm1, %v420_v0  ;;  %v409_v3 = vld [vmem:[%s600_s1 + $0x10] sm:$0xff]   ;;  %v410_v4 = vld [vmem:[%s600_s1 + $0x18] sm:$0xff]  }
   0x3   :  { %21 = vst.msk [vmem:[#allocation2 + $0x20] sm:$0xff] %vm16_vm0, %v420_v0  ;;  %22 = vst.msk [vmem:[#allocation2 + $0x28] sm:$0xff] %vm16_vm0, %v420_v0  ;;  %354 = vmatpush3.bf16.msra.mxu0 %v407_v1  ;;  %399 = vmatpush3.bf16.msra.mxu1 %v407_v1  ;;  %v411_v5 = vld [vmem:[%s600_s1 + $0x20] sm:$0xff]   ;;  %v412_v6 = vld [vmem:[%s600_s1 + $0x28] sm:$0xff]  }
   0x4   :  { %23 = vst.msk [vmem:[#allocation2 + $0x30] sm:$0xff] %vm16_vm0, %v420_v0  ;;  %24 = vst.msk [vmem:[#allocation2 + $0x38] sm:$0xff] %vm16_vm0, %v420_v0  ;;  %355 = vmatprep.subr.bf16.mxu0 %v420_v0  ;;  %394 = vmatprep.subr.bf16.mxu1 %v420_v0  ;;  %v413_v7 = vld [vmem:[%s601_s0] sm:$0xff]   ;;  %v415_v9 = vld [vmem:[%s601_s0 + $0x8] sm:$0xff]  }
   0x5   :  { %25 = vst.msk [vmem:[#allocation2 + $0x40] sm:$0xff] %vm16_vm0, %v420_v0  ;;  %26 = vst.msk [vmem:[#allocation2 + $0x48] sm:$0xff] %vm16_vm0, %v420_v0  ;;  %v414_v8 = vld [vmem:[%s601_s0 + $0x20] sm:$0xff]   ;;  %v416_v10 = vld [vmem:[%s601_s0 + $0x28] sm:$0xff]  }
   0x6   :  { %27 = vst.msk [vmem:[#allocation2 + $0x50] sm:$0xff] %vm16_vm0, %v420_v0  ;;  %28 = vst.msk [vmem:[#allocation2 + $0x58] sm:$0xff] %vm16_vm0, %v420_v0  ;;  %v417_v11 = vld [vmem:[%s601_s0 + $0x10] sm:$0xff]   ;;  %v419_v13 = vld [vmem:[%s601_s0 + $0x18] sm:$0xff]  }
   0x7   :  { %29 = vst.msk [vmem:[#allocation2 + $0x60] sm:$0xff] %vm16_vm0, %v420_v0  ;;  %356 = vmatpush3.bf16.msra.mxu0 %v408_v2  ;;  %400 = vmatpush3.bf16.msra.mxu1 %v408_v2  ;;  %v418_v12 = vld [vmem:[%s601_s0 + $0x30] ss:$0 sps:$4 sm:$0xff]  }
   0x8   :  { %357 = vmatprep.subr.bf16.mxu0 %v420_v0  ;;  %395 = vmatprep.subr.bf16.mxu1 %v420_v0  ;;  %v30_v14 = vld [vmem:[#allocation2] sm:$0xff]  ;;  %v31_v17 = vld [vmem:[#allocation2 + $0x8] sm:$0xff] }
   0x9   :  { %v32_v30 = vld [vmem:[#allocation2 + $0x10] sm:$0xff]  ;;  %v33_v33 = vld [vmem:[#allocation2 + $0x18] sm:$0xff] }
   0xa   :  { %v34_v54 = vld [vmem:[#allocation2 + $0x20] sm:$0xff]  ;;  %v35_v57 = vld [vmem:[#allocation2 + $0x28] sm:$0xff] }
   0xb   :  { %358 = vmatpush3.bf16.msra.mxu0 %v409_v3  ;;  %401 = vmatpush3.bf16.msra.mxu1 %v409_v3 }
   0xc   :  { %359 = vmatprep.subr.bf16.mxu0 %v420_v0  ;;  %396 = vmatprep.subr.bf16.mxu1 %v420_v0  ;;  %v38_v15 = vld [vmem:[#allocation2 + $0x40] sm:$0xff]  ;;  %v39_v19 = vld [vmem:[#allocation2 + $0x48] sm:$0xff] }
   0xd   :  { %v40_v31 = vld [vmem:[#allocation2 + $0x50] sm:$0xff]  ;;  %v41_v35 = vld [vmem:[#allocation2 + $0x58] sm:$0xff] }
   0xe   :  { %v42_v55 = vld [vmem:[#allocation2 + $0x60] sm:$0xff] }
   0xf   :  { %360 = vmatpush3.bf16.msra.mxu0 %v410_v4  ;;  %402 = vmatpush3.bf16.msra.mxu1 %v410_v4 }
  0x10   :  { %361 = vmatprep.subr.bf16.mxu0 %v420_v0  ;;  %397 = vmatprep.subr.bf16.mxu1 %v420_v0 }
  0x13   :  { %362 = vmatpush3.bf16.msra.mxu0 %v411_v5  ;;  %403 = vmatpush3.bf16.msra.mxu1 %v411_v5 }
  0x14   :  { %363 = vmatprep.subr.bf16.mxu0 %v420_v0  ;;  %398 = vmatprep.subr.bf16.mxu1 %v420_v0 }
  0x17   :  { %364 = vmatpush3.bf16.msra.mxu0 %v412_v6  ;;  %404 = vmatpush3.bf16.msra.mxu1 %v412_v6 }
  0x1a   :  { %366 = vmatmul.mubr.msk.bf16.vlgmr.msra.gmra.mrb[0].mxu0 %vm137_vm2, %v413_v7  ;;  %382 = vmatmul.mubr.msk.bf16.vlgmr.msra.gmra.mrb[0].mxu1 %vm137_vm2, %v414_v8 }
  0x1b   :  { %369 = vmatprep.mubr.msk.bf16.mxu0 %vm421_vm1, %v420_v0  ;;  %385 = vmatprep.mubr.msk.bf16.mxu1 %vm421_vm1, %v420_v0 }
  0x22   :  { %370 = vmatmul.mubr.msk.bf16.gmra.mrb[4].mxu0 %vm137_vm2, %v415_v9  ;;  %386 = vmatmul.mubr.msk.bf16.gmra.mrb[4].mxu1 %vm137_vm2, %v416_v10 }
  0x23   :  { %373 = vmatprep.mubr.msk.bf16.mxu0 %vm421_vm1, %v420_v0  ;;  %389 = vmatprep.mubr.msk.bf16.mxu1 %vm421_vm1, %v420_v0 }
  0x2a   :  { %374 = vmatmul.mubr.msk.bf16.gmra.mrb[8].mxu0 %vm137_vm2, %v417_v11  ;;  %390 = vmatmul.mubr.msk.bf16.gmra.mrb[8].mxu1 %vm137_vm2, %v418_v12  ;;  %v36_v12 = vld [vmem:[#allocation2 + $0x30] sm:$0xff] }
  0x2b   :  { %377 = vmatprep.mubr.msk.bf16.mxu0 %vm421_vm1, %v420_v0 }
  0x32   :  { %378 = vmatmul.mubr.msk.bf16.gmra.mrb[12].mxu0 %vm137_vm2, %v419_v13 }
  0xed   :  { %v193_v16 = vpop.f32.mrb[0].mxu0  ;;  %v225_v18 = vpop.f32.mrb[0].mxu1 }
  0xee   :  { %v247_v20 = vadd.f32 %v193_v16, %v30_v14  ;;  %v367_v21 = vpop.f32.mrb[1].mxu0  ;;  %v255_v22 = vadd.f32 %v225_v18, %v38_v15  ;;  %v383_v23 = vpop.f32.mrb[1].mxu1  ;;  %v37_v14 = vld [vmem:[#allocation2 + $0x38] sm:$0xff] }
  0xef   :  { %v196_v24 = vpop.f32.mrb[2].mxu0  ;;  %v228_v25 = vpop.f32.mrb[2].mxu1 }
  0xf0   :  { %261 = vst.msk [vmem:[#allocation2] sm:$0xff] %vm16_vm0, %v247_v20  ;;  %v248_v26 = vadd.f32 %v196_v24, %v31_v17  ;;  %v368_v27 = vpop.f32.mrb[3].mxu0  ;;  %269 = vst.msk [vmem:[#allocation2 + $0x40] sm:$0xff] %vm16_vm0, %v255_v22  ;;  %v256_v28 = vadd.f32 %v228_v25, %v39_v19  ;;  %v384_v29 = vpop.f32.mrb[3].mxu1 }
  0xf2   :  { %262 = vst.msk [vmem:[#allocation2 + $0x8] sm:$0xff] %vm16_vm0, %v248_v26  ;;  %270 = vst.msk [vmem:[#allocation2 + $0x48] sm:$0xff] %vm16_vm0, %v256_v28 }
  0xf5   :  { %v201_v32 = vpop.f32.mrb[4].mxu0  ;;  %v233_v34 = vpop.f32.mrb[4].mxu1 }
  0xf6   :  { %v249_v36 = vadd.f32 %v201_v32, %v32_v30  ;;  %v371_v37 = vpop.f32.mrb[5].mxu0  ;;  %v257_v38 = vadd.f32 %v233_v34, %v40_v31  ;;  %v387_v39 = vpop.f32.mrb[5].mxu1 }
  0xf7   :  { %v277_v40 = vld [vmem:[#allocation2] sm:$0xff]  ;;  %v204_v42 = vpop.f32.mrb[6].mxu0  ;;  %v236_v43 = vpop.f32.mrb[6].mxu1 }
  0xf8   :  { %v285_v41 = vld [vmem:[#allocation2 + $0x40] sm:$0xff]  ;;  %v290_v44 = vmax.f32 %v277_v40, 0.0  ;;  %263 = vst.msk [vmem:[#allocation2 + $0x10] sm:$0xff] %vm16_vm0, %v249_v36  ;;  %v250_v46 = vadd.f32 %v204_v42, %v33_v33  ;;  %v372_v47 = vpop.f32.mrb[7].mxu0  ;;  %271 = vst.msk [vmem:[#allocation2 + $0x50] sm:$0xff] %vm16_vm0, %v257_v38  ;;  %v258_v48 = vadd.f32 %v236_v43, %v41_v35  ;;  %v388_v49 = vpop.f32.mrb[7].mxu1 }
  0xf9   :  { %v298_v45 = vmax.f32 %v285_v41, 0.0  ;;  %v278_v50 = vld [vmem:[#allocation2 + $0x8] sm:$0xff] }
  0xfa   :  { %v286_v51 = vld [vmem:[#allocation2 + $0x48] sm:$0xff]  ;;  %303 = vst.msk [vmem:[%s602_s2] sm:$0xff] %vm16_vm0, %v290_v44  ;;  %v291_v52 = vmax.f32 %v278_v50, 0.0  ;;  %264 = vst.msk [vmem:[#allocation2 + $0x18] sm:$0xff] %vm16_vm0, %v250_v46 }
  0xfb   :  { %311 = vst.msk [vmem:[%s602_s2 + $0x40] sm:$0xff] %vm16_vm0, %v298_v45  ;;  %v299_v53 = vmax.f32 %v286_v51, 0.0  ;;  %272 = vst.msk [vmem:[#allocation2 + $0x58] sm:$0xff] %vm16_vm0, %v258_v48 }
  0xfc   :  { %304 = vst.msk [vmem:[%s602_s2 + $0x8] sm:$0xff] %vm16_vm0, %v291_v52 }
  0xfd   :  { %312 = vst.msk [vmem:[%s602_s2 + $0x48] sm:$0xff] %vm16_vm0, %v299_v53  ;;  %v209_v56 = vpop.f32.mrb[8].mxu0  ;;  %v241_v58 = vpop.f32.mrb[8].mxu1 }
  0xfe   :  { %v251_v59 = vadd.f32 %v209_v56, %v34_v54  ;;  %v375_v60 = vpop.f32.mrb[9].mxu0  ;;  %v259_v61 = vadd.f32 %v241_v58, %v42_v55  ;;  %v391_v62 = vpop.f32.mrb[9].mxu1 }
  0xff   :  { %v279_v63 = vld [vmem:[#allocation2 + $0x10] sm:$0xff]  ;;  %v212_v1 = vpop.f32.mrb[10].mxu0  ;;  %v244_v2 = vpop.f32.mrb[10].mxu1 }
 0x100   :  { %v287_v0 = vld [vmem:[#allocation2 + $0x50] sm:$0xff]  ;;  %v292_v3 = vmax.f32 %v279_v63, 0.0  ;;  %265 = vst.msk [vmem:[#allocation2 + $0x20] sm:$0xff] %vm16_vm0, %v251_v59  ;;  %v252_v5 = vadd.f32 %v212_v1, %v35_v57  ;;  %v376_v6 = vpop.f32.mrb[11].mxu0  ;;  %273 = vst.msk [vmem:[#allocation2 + $0x60] sm:$0xff] %vm16_vm0, %v259_v61  ;;  %v392_v7 = vpop.f32.mrb[11].mxu1 }
 0x101   :  { %v300_v4 = vmax.f32 %v287_v0, 0.0  ;;  %v280_v8 = vld [vmem:[#allocation2 + $0x18] sm:$0xff] }
 0x102   :  { %v288_v9 = vld [vmem:[#allocation2 + $0x58] sm:$0xff]  ;;  %305 = vst.msk [vmem:[%s602_s2 + $0x10] sm:$0xff] %vm16_vm0, %v292_v3  ;;  %v293_v10 = vmax.f32 %v280_v8, 0.0  ;;  %266 = vst.msk [vmem:[#allocation2 + $0x28] sm:$0xff] %vm16_vm0, %v252_v5 }
 0x103   :  { %313 = vst.msk [vmem:[%s602_s2 + $0x50] sm:$0xff] %vm16_vm0, %v300_v4  ;;  %v301_v11 = vmax.f32 %v288_v9, 0.0 }
 0x104   :  { %306 = vst.msk [vmem:[%s602_s2 + $0x18] sm:$0xff] %vm16_vm0, %v293_v10 }
 0x105   :  { %314 = vst.msk [vmem:[%s602_s2 + $0x58] sm:$0xff] %vm16_vm0, %v301_v11  ;;  %v217_v13 = vpop.f32.mrb[12].mxu0 }
 0x106   :  { %v253_v15 = vadd.f32 %v217_v13, %v36_v12  ;;  %v379_v16 = vpop.f32.mrb[13].mxu0 }
 0x107   :  { %v281_v17 = vld [vmem:[#allocation2 + $0x20] sm:$0xff]  ;;  %v220_v19 = vpop.f32.mrb[14].mxu0 }
 0x108   :  { %v289_v18 = vld [vmem:[#allocation2 + $0x60] sm:$0xff]  ;;  %v294_v20 = vmax.f32 %v281_v17, 0.0  ;;  %267 = vst.msk [vmem:[#allocation2 + $0x30] sm:$0xff] %vm16_vm0, %v253_v15  ;;  %v254_v22 = vadd.f32 %v220_v19, %v37_v14  ;;  %v380_v23 = vpop.f32.mrb[15].mxu0 }
 0x109   :  { %v302_v21 = vmax.f32 %v289_v18, 0.0  ;;  %v282_v24 = vld [vmem:[#allocation2 + $0x28] sm:$0xff] }
 0x10a   :  { %307 = vst.msk [vmem:[%s602_s2 + $0x20] sm:$0xff] %vm16_vm0, %v294_v20  ;;  %v295_v25 = vmax.f32 %v282_v24, 0.0  ;;  %268 = vst.msk [vmem:[#allocation2 + $0x38] sm:$0xff] %vm16_vm0, %v254_v22 }
 0x10b   :  { %315 = vst.msk [vmem:[%s602_s2 + $0x60] sm:$0xff] %vm16_vm0, %v302_v21 }
 0x10c   :  { %308 = vst.msk [vmem:[%s602_s2 + $0x28] sm:$0xff] %vm16_vm0, %v295_v25 }
 0x10f   :  { %v283_v26 = vld [vmem:[#allocation2 + $0x30] sm:$0xff] }
 0x110   :  { %v296_v27 = vmax.f32 %v283_v26, 0.0 }
 0x111   :  { %v284_v28 = vld [vmem:[#allocation2 + $0x38] sm:$0xff] }
 0x112   :  { %309 = vst.msk [vmem:[%s602_s2 + $0x30] sm:$0xff] %vm16_vm0, %v296_v27  ;;  %v297_v29 = vmax.f32 %v284_v28, 0.0 }
 0x114   :  { %310 = vst.msk [vmem:[%s602_s2 + $0x38] sm:$0xff] %vm16_vm0, %v297_v29 }

// kernel: squeezenet_forward.33
= control target key start
LH: loop header
LB: loop body
LE: loop exit
PB: predicated region body
PF: predicated region fallthrough
CT: control target
= control target key end

     0   :  { %vm16_vm0 = vcmask 523264   ;;  %v345_v0 = vmov 0.0   ;;  %vm346_vm1 = vmmov 0   ;;  %vm97_vm2 = vcmask 130048   ;;  %s478_s1 = inlined_call_operand.vmem [shape: bf16[16,64], index: 1, kind: input, shape index: {}]   ;;  %s479_s0 = inlined_call_operand.vmem [shape: bf16[104,16], index: 0, kind: input, shape index: {}]   ;;  %s480_s2 = inlined_call_operand.vmem [shape: f32[104,64], index: 2, kind: output, shape index: {}]  }
   0x1   :  { %303 = vmatprep.subr.bf16.mxu0 %v345_v0  ;;  %v337_v1 = vld [vmem:[%s478_s1] sm:$0xff]   ;;  %305 = vmatprep.mubr.msk.bf16.mxu0 %vm346_vm1, %v345_v0  ;;  %17 = vst.msk [vmem:[#allocation2] sm:$0xff] %vm16_vm0, %v345_v0  ;;  %18 = vst.msk [vmem:[#allocation2 + $0x8] sm:$0xff] %vm16_vm0, %v345_v0  ;;  %v340_v4 = vld [vmem:[%s479_s0 + $0x8] sm:$0xff]  }
   0x2   :  { %19 = vst.msk [vmem:[#allocation2 + $0x10] sm:$0xff] %vm16_vm0, %v345_v0  ;;  %20 = vst.msk [vmem:[#allocation2 + $0x18] sm:$0xff] %vm16_vm0, %v345_v0  ;;  %v338_v2 = vld [vmem:[%s479_s0] sm:$0xff]   ;;  %333 = vmatprep.subr.bf16.mxu1 %v345_v0  ;;  %321 = vmatprep.mubr.msk.bf16.mxu1 %vm346_vm1, %v345_v0  ;;  %v341_v5 = vld [vmem:[%s479_s0 + $0x28] sm:$0xff]  }
   0x3   :  { %21 = vst.msk [vmem:[#allocation2 + $0x20] sm:$0xff] %vm16_vm0, %v345_v0  ;;  %22 = vst.msk [vmem:[#allocation2 + $0x28] sm:$0xff] %vm16_vm0, %v345_v0  ;;  %304 = vmatpush3.bf16.msra.mxu0 %v337_v1  ;;  %334 = vmatpush3.bf16.msra.mxu1 %v337_v1  ;;  %v339_v3 = vld [vmem:[%s479_s0 + $0x20] sm:$0xff]   ;;  %v342_v6 = vld [vmem:[%s479_s0 + $0x10] sm:$0xff]  }
   0x4   :  { %23 = vst.msk [vmem:[#allocation2 + $0x30] sm:$0xff] %vm16_vm0, %v345_v0  ;;  %24 = vst.msk [vmem:[#allocation2 + $0x38] sm:$0xff] %vm16_vm0, %v345_v0  ;;  %v343_v7 = vld [vmem:[%s479_s0 + $0x30] ss:$0 sps:$4 sm:$0xff]   ;;  %v344_v8 = vld [vmem:[%s479_s0 + $0x18] sm:$0xff]  }
   0x5   :  { %25 = vst.msk [vmem:[#allocation2 + $0x40] sm:$0xff] %vm16_vm0, %v345_v0  ;;  %26 = vst.msk [vmem:[#allocation2 + $0x48] sm:$0xff] %vm16_vm0, %v345_v0 }
   0x6   :  { %27 = vst.msk [vmem:[#allocation2 + $0x50] sm:$0xff] %vm16_vm0, %v345_v0  ;;  %28 = vst.msk [vmem:[#allocation2 + $0x58] sm:$0xff] %vm16_vm0, %v345_v0  ;;  %306 = vmatmul.mubr.msk.bf16.vlgmr.msra.gmra.mrb[0].mxu0 %vm97_vm2, %v338_v2  ;;  %322 = vmatmul.mubr.msk.bf16.vlgmr.msra.gmra.mrb[0].mxu1 %vm97_vm2, %v339_v3 }
   0x7   :  { %29 = vst.msk [vmem:[#allocation2 + $0x60] sm:$0xff] %vm16_vm0, %v345_v0  ;;  %309 = vmatprep.mubr.msk.bf16.mxu0 %vm346_vm1, %v345_v0  ;;  %325 = vmatprep.mubr.msk.bf16.mxu1 %vm346_vm1, %v345_v0 }
   0x8   :  { %v30_v9 = vld [vmem:[#allocation2] sm:$0xff]  ;;  %v31_v12 = vld [vmem:[#allocation2 + $0x8] sm:$0xff] }
   0x9   :  { %v32_v25 = vld [vmem:[#allocation2 + $0x10] sm:$0xff]  ;;  %v33_v28 = vld [vmem:[#allocation2 + $0x18] sm:$0xff] }
   0xa   :  { %v34_v49 = vld [vmem:[#allocation2 + $0x20] sm:$0xff]  ;;  %v35_v52 = vld [vmem:[#allocation2 + $0x28] sm:$0xff] }
   0xc   :  { %v38_v10 = vld [vmem:[#allocation2 + $0x40] sm:$0xff]  ;;  %v39_v14 = vld [vmem:[#allocation2 + $0x48] sm:$0xff] }
   0xd   :  { %v40_v26 = vld [vmem:[#allocation2 + $0x50] sm:$0xff]  ;;  %v41_v30 = vld [vmem:[#allocation2 + $0x58] sm:$0xff] }
   0xe   :  { %310 = vmatmul.mubr.msk.bf16.gmra.mrb[4].mxu0 %vm97_vm2, %v340_v4  ;;  %326 = vmatmul.mubr.msk.bf16.gmra.mrb[4].mxu1 %vm97_vm2, %v341_v5  ;;  %v42_v50 = vld [vmem:[#allocation2 + $0x60] sm:$0xff] }
   0xf   :  { %313 = vmatprep.mubr.msk.bf16.mxu0 %vm346_vm1, %v345_v0  ;;  %329 = vmatprep.mubr.msk.bf16.mxu1 %vm346_vm1, %v345_v0 }
  0x16   :  { %314 = vmatmul.mubr.msk.bf16.gmra.mrb[8].mxu0 %vm97_vm2, %v342_v6  ;;  %330 = vmatmul.mubr.msk.bf16.gmra.mrb[8].mxu1 %vm97_vm2, %v343_v7  ;;  %v36_v7 = vld [vmem:[#allocation2 + $0x30] sm:$0xff] }
  0x17   :  { %317 = vmatprep.mubr.msk.bf16.mxu0 %vm346_vm1, %v345_v0 }
  0x1e   :  { %318 = vmatmul.mubr.msk.bf16.gmra.mrb[12].mxu0 %vm97_vm2, %v344_v8 }
  0xd9   :  { %v153_v11 = vpop.f32.mrb[0].mxu0  ;;  %v185_v13 = vpop.f32.mrb[0].mxu1 }
  0xda   :  { %v207_v15 = vadd.f32 %v153_v11, %v30_v9  ;;  %v307_v16 = vpop.f32.mrb[1].mxu0  ;;  %v215_v17 = vadd.f32 %v185_v13, %v38_v10  ;;  %v323_v18 = vpop.f32.mrb[1].mxu1  ;;  %v37_v9 = vld [vmem:[#allocation2 + $0x38] sm:$0xff] }
  0xdb   :  { %v156_v19 = vpop.f32.mrb[2].mxu0  ;;  %v188_v20 = vpop.f32.mrb[2].mxu1 }
  0xdc   :  { %221 = vst.msk [vmem:[#allocation2] sm:$0xff] %vm16_vm0, %v207_v15  ;;  %v208_v21 = vadd.f32 %v156_v19, %v31_v12  ;;  %v308_v22 = vpop.f32.mrb[3].mxu0  ;;  %229 = vst.msk [vmem:[#allocation2 + $0x40] sm:$0xff] %vm16_vm0, %v215_v17  ;;  %v216_v23 = vadd.f32 %v188_v20, %v39_v14  ;;  %v324_v24 = vpop.f32.mrb[3].mxu1 }
  0xde   :  { %222 = vst.msk [vmem:[#allocation2 + $0x8] sm:$0xff] %vm16_vm0, %v208_v21  ;;  %230 = vst.msk [vmem:[#allocation2 + $0x48] sm:$0xff] %vm16_vm0, %v216_v23 }
  0xe1   :  { %v161_v27 = vpop.f32.mrb[4].mxu0  ;;  %v193_v29 = vpop.f32.mrb[4].mxu1 }
  0xe2   :  { %v209_v31 = vadd.f32 %v161_v27, %v32_v25  ;;  %v311_v32 = vpop.f32.mrb[5].mxu0  ;;  %v217_v33 = vadd.f32 %v193_v29, %v40_v26  ;;  %v327_v34 = vpop.f32.mrb[5].mxu1 }
  0xe3   :  { %v237_v35 = vld [vmem:[#allocation2] sm:$0xff]  ;;  %v164_v37 = vpop.f32.mrb[6].mxu0  ;;  %v196_v38 = vpop.f32.mrb[6].mxu1 }
  0xe4   :  { %v245_v36 = vld [vmem:[#allocation2 + $0x40] sm:$0xff]  ;;  %v250_v39 = vmax.f32 %v237_v35, 0.0  ;;  %223 = vst.msk [vmem:[#allocation2 + $0x10] sm:$0xff] %vm16_vm0, %v209_v31  ;;  %v210_v41 = vadd.f32 %v164_v37, %v33_v28  ;;  %v312_v42 = vpop.f32.mrb[7].mxu0  ;;  %231 = vst.msk [vmem:[#allocation2 + $0x50] sm:$0xff] %vm16_vm0, %v217_v33  ;;  %v218_v43 = vadd.f32 %v196_v38, %v41_v30  ;;  %v328_v44 = vpop.f32.mrb[7].mxu1 }
  0xe5   :  { %v258_v40 = vmax.f32 %v245_v36, 0.0  ;;  %v238_v45 = vld [vmem:[#allocation2 + $0x8] sm:$0xff] }
  0xe6   :  { %v246_v46 = vld [vmem:[#allocation2 + $0x48] sm:$0xff]  ;;  %263 = vst.msk [vmem:[%s480_s2] sm:$0xff] %vm16_vm0, %v250_v39  ;;  %v251_v47 = vmax.f32 %v238_v45, 0.0  ;;  %224 = vst.msk [vmem:[#allocation2 + $0x18] sm:$0xff] %vm16_vm0, %v210_v41 }
  0xe7   :  { %271 = vst.msk [vmem:[%s480_s2 + $0x40] sm:$0xff] %vm16_vm0, %v258_v40  ;;  %v259_v48 = vmax.f32 %v246_v46, 0.0  ;;  %232 = vst.msk [vmem:[#allocation2 + $0x58] sm:$0xff] %vm16_vm0, %v218_v43 }
  0xe8   :  { %264 = vst.msk [vmem:[%s480_s2 + $0x8] sm:$0xff] %vm16_vm0, %v251_v47 }
  0xe9   :  { %272 = vst.msk [vmem:[%s480_s2 + $0x48] sm:$0xff] %vm16_vm0, %v259_v48  ;;  %v169_v51 = vpop.f32.mrb[8].mxu0  ;;  %v201_v53 = vpop.f32.mrb[8].mxu1 }
  0xea   :  { %v211_v54 = vadd.f32 %v169_v51, %v34_v49  ;;  %v315_v55 = vpop.f32.mrb[9].mxu0  ;;  %v219_v56 = vadd.f32 %v201_v53, %v42_v50  ;;  %v331_v57 = vpop.f32.mrb[9].mxu1 }
  0xeb   :  { %v239_v58 = vld [vmem:[#allocation2 + $0x10] sm:$0xff]  ;;  %v172_v60 = vpop.f32.mrb[10].mxu0  ;;  %v204_v61 = vpop.f32.mrb[10].mxu1 }
  0xec   :  { %v247_v59 = vld [vmem:[#allocation2 + $0x50] sm:$0xff]  ;;  %v252_v62 = vmax.f32 %v239_v58, 0.0  ;;  %225 = vst.msk [vmem:[#allocation2 + $0x20] sm:$0xff] %vm16_vm0, %v211_v54  ;;  %v212_v0 = vadd.f32 %v172_v60, %v35_v52  ;;  %v316_v1 = vpop.f32.mrb[11].mxu0  ;;  %233 = vst.msk [vmem:[#allocation2 + $0x60] sm:$0xff] %vm16_vm0, %v219_v56  ;;  %v332_v2 = vpop.f32.mrb[11].mxu1 }
  0xed   :  { %v260_v63 = vmax.f32 %v247_v59, 0.0  ;;  %v240_v3 = vld [vmem:[#allocation2 + $0x18] sm:$0xff] }
  0xee   :  { %v248_v4 = vld [vmem:[#allocation2 + $0x58] sm:$0xff]  ;;  %265 = vst.msk [vmem:[%s480_s2 + $0x10] sm:$0xff] %vm16_vm0, %v252_v62  ;;  %v253_v5 = vmax.f32 %v240_v3, 0.0  ;;  %226 = vst.msk [vmem:[#allocation2 + $0x28] sm:$0xff] %vm16_vm0, %v212_v0 }
  0xef   :  { %273 = vst.msk [vmem:[%s480_s2 + $0x50] sm:$0xff] %vm16_vm0, %v260_v63  ;;  %v261_v6 = vmax.f32 %v248_v4, 0.0 }
  0xf0   :  { %266 = vst.msk [vmem:[%s480_s2 + $0x18] sm:$0xff] %vm16_vm0, %v253_v5 }
  0xf1   :  { %274 = vst.msk [vmem:[%s480_s2 + $0x58] sm:$0xff] %vm16_vm0, %v261_v6  ;;  %v177_v8 = vpop.f32.mrb[12].mxu0 }
  0xf2   :  { %v213_v10 = vadd.f32 %v177_v8, %v36_v7  ;;  %v319_v11 = vpop.f32.mrb[13].mxu0 }
  0xf3   :  { %v241_v12 = vld [vmem:[#allocation2 + $0x20] sm:$0xff]  ;;  %v180_v14 = vpop.f32.mrb[14].mxu0 }
  0xf4   :  { %v249_v13 = vld [vmem:[#allocation2 + $0x60] sm:$0xff]  ;;  %v254_v15 = vmax.f32 %v241_v12, 0.0  ;;  %227 = vst.msk [vmem:[#allocation2 + $0x30] sm:$0xff] %vm16_vm0, %v213_v10  ;;  %v214_v17 = vadd.f32 %v180_v14, %v37_v9  ;;  %v320_v18 = vpop.f32.mrb[15].mxu0 }
  0xf5   :  { %v262_v16 = vmax.f32 %v249_v13, 0.0  ;;  %v242_v19 = vld [vmem:[#allocation2 + $0x28] sm:$0xff] }
  0xf6   :  { %267 = vst.msk [vmem:[%s480_s2 + $0x20] sm:$0xff] %vm16_vm0, %v254_v15  ;;  %v255_v20 = vmax.f32 %v242_v19, 0.0  ;;  %228 = vst.msk [vmem:[#allocation2 + $0x38] sm:$0xff] %vm16_vm0, %v214_v17 }
  0xf7   :  { %275 = vst.msk [vmem:[%s480_s2 + $0x60] sm:$0xff] %vm16_vm0, %v262_v16 }
  0xf8   :  { %268 = vst.msk [vmem:[%s480_s2 + $0x28] sm:$0xff] %vm16_vm0, %v255_v20 }
  0xfb   :  { %v243_v21 = vld [vmem:[#allocation2 + $0x30] sm:$0xff] }
  0xfc   :  { %v256_v22 = vmax.f32 %v243_v21, 0.0 }
  0xfd   :  { %v244_v23 = vld [vmem:[#allocation2 + $0x38] sm:$0xff] }
  0xfe   :  { %269 = vst.msk [vmem:[%s480_s2 + $0x30] sm:$0xff] %vm16_vm0, %v256_v22  ;;  %v257_v24 = vmax.f32 %v244_v23, 0.0 }
 0x100   :  { %270 = vst.msk [vmem:[%s480_s2 + $0x38] sm:$0xff] %vm16_vm0, %v257_v24 }

// kernel: squeezenet_forward.34
= control target key start
LH: loop header
LB: loop body
LE: loop exit
PB: predicated region body
PF: predicated region fallthrough
CT: control target
= control target key end

     0   :  { %s2138_s9 = smov 0   ;;  %s2558_s0 = inlined_call_operand.vmem [shape: bf16[2,110,16], index: 0, kind: input, shape index: {}]   ;;  %s2559_s1 = inlined_call_operand.vmem [shape: bf16[9,16,64], index: 1, kind: input, shape index: {}]   ;;  %s2560_s2 = inlined_call_operand.vmem [shape: f32[2,77,64], index: 2, kind: output, shape index: {}]  }
   0x1 LB: > { %s1551_s10 = sadd.s32 4294967295, %s2119_s9   ;;  %p1555_p0 = scmp.ge.s32.totalorder %s2119_s9, 1  ;;  %s2119_s9 = sphi %s2138_s9, %s12_s9  }
   0x2   : > { %p112_p1 = scmp.lt.s32.totalorder %s2119_s9, 3 }
   0x4   : > { %p113_p2 = pnand %p1555_p0, %p112_p1 }
   0x5   : > { %v2149_v0 = vld [vmem:[%s2559_s1 + $0x20] sm:$0xff] (!%p113_p2)   ;;  %v2121_v1 = vmov (!%p113_p2), 0.0   ;;  %p134_p3 = scmp.lt.s32.totalorder (!%p113_p2), %s1551_s10, 1  ;;  %vm2122_vm0 = vmmov (!%p113_p2), 0   ;;  %v2079_v2 = vld [vmem:[%s2559_s1 + $0x8] sm:$0xff] (!%p113_p2)   ;;  %vm231_vm1 = vcmask (!%p113_p2), 130048  }
   0x6   : > { %116 = sbr.rel (%p113_p2) target bundleno = 417 (0x1a1), region = 28  ;;  %1801 = vmatprep.subr.bf16.mxu0 (!%p113_p2), %v2121_v1  ;;  %1713 = vmatprep.subr.bf16.mxu1 (!%p113_p2), %v2121_v1  ;;  %vm763_vm2 = vcmask (!%p113_p2), 1045504   ;;  %v2078_v5 = vld [vmem:[%s2559_s1 + $0x28] sm:$0xff] (!%p113_p2)   ;;  %vm185_vm3 = vsmask.f32 (!%p113_p2), 7424  ;;  %v2082_v22 = vld [vmem:[%s2559_s1] sm:$0xff] (!%p113_p2)  }
   0x7   : > { %1802 = vmatpush3.bf16.msra.mxu0 (!%p113_p2), %v2149_v0  ;;  %1803 = vmatprep.mubr.msk.bf16.mxu0 (!%p113_p2), %vm2122_vm0, %v2121_v1  ;;  %vm420_vm4 = vcmask (!%p113_p2), 1046528   ;;  %vm882_vm5 = vsmask.f32 (!%p113_p2), 5376  ;;  %vm1082_vm6 = vcmask (!%p113_p2), 1044480   ;;  %vm1201_vm7 = vsmask.f32 (!%p113_p2), 4352 }
   0x8   : > { %1823 = vmatprep.subr.bf16.mxu0 (!%p113_p2), %v2121_v1  ;;  %1715 = vmatprep.mubr.msk.bf16.mxu1 (!%p113_p2), %vm2122_vm0, %v2121_v1  ;;  %vm572_vm8 = vsmask.f32 (!%p113_p2), 6400  ;;  %vm1484_vm9 = vcmask (!%p113_p2), 523264   ;;  %vm1494_vm10 = vcmask (!%p113_p2), 520192  }
   0x9   : > { %1714 = vmatpush3.bf16.msra.mxu1 (!%p113_p2), %v2079_v2  ;;  %v2087_v2 = vld [vmem:[%s2559_s1 + $0x30] sm:$0xff] (!%p113_p2)  }
   0xa   : > { %1735 = vmatprep.subr.bf16.mxu1 (!%p113_p2), %v2121_v1 }
   0xd   : > { %s2562_s10 = smov (!%p134_p3, %s1551_s10), 1 }
   0xe   : > { %s2063_s15 = smul.u32 56, %s2562_s10 }
   0xf   : > { %s2064_s5 = smul.u32 80, %s2562_s10 }
  0x10   : > { %s2169_s18 = scalar_lea.vmem %s2558_s0, %s2063_s15 }
  0x11   : > { %v2076_v3 = vld [vmem:[%s2169_s18 + $0x4] sm:$0xfc]   ;;  %v2077_v4 = vld [vmem:[%s2169_s18 + $0xc] sm:$0xff]   ;;  %v145_v6 = vld [vmem:[%s2169_s18] sm:$0xf]  ;;  %s2534_s8 = scalar_lea.vmem %s2560_s2, %s2064_s5 }
  0x12   : > { %v2178_v7 = vld [vmem:[%s2169_s18 + $0x4] sm:$0xf]  ;;  %v764_v8 = vrot.slane %v2076_v3, 2  ;;  %v765_v9 = vrot.slane %v2077_v4, 2  ;;  %v2184_v11 = vld [vmem:[%s2169_s18 + $0x8] sm:$0xff]   ;;  %v2187_v12 = vld [vmem:[%s2169_s18 + $0x14] sm:$0xff]  }
  0x13   : > { %v2181_v10 = vcombine.low %v145_v6, %v2178_v7  ;;  %v194_v16 = vshll.u32 %v2184_v11, 16  ;;  %v2194_v17 = vld [vmem:[%s2169_s18 + $0x10] sm:$0xff]   ;;  %v767_v20 = vrot.slane %v2187_v12, 2  ;;  %v198_v23 = vshrl.u32 %v2184_v11, 16  ;;  %v2209_v27 = vld [vmem:[%s2169_s18 + $0x1c] sm:$0xff]  }
  0x14   : > { %v766_v13 = vsel %vm763_vm2, %v764_v8, %v765_v9  ;;  %v202_v24 = vshll.u32 %v2194_v17, 16  ;;  %v2215_v30 = vld [vmem:[%s2169_s18 + $0x18] sm:$0xff]   ;;  %v884_v31 = vshrl.u32 %v2076_v3, 16  ;;  %v769_v32 = vrot.slane %v2209_v27, 2  ;;  %v2226_v40 = vld [vmem:[%s2169_s18 + $0x20] sm:$0xf] }
  0x15   : > { %v187_v14 = vshrl.u32 %v2181_v10, 16  ;;  %v189_v15 = vshll.u32 %v2181_v10, 16  ;;  %1804 = vmatmul.mubr.msk.bf16.vlgmr.msra.gmra.mrb[0].mxu0 %vm231_vm1, %v766_v13  ;;  %v196_v19 = vrot.slane %v194_v16, 1  ;;  %v768_v26 = vsel %vm763_vm2, %v765_v9, %v767_v20  ;;  %v154_v41 = vld [vmem:[%s2169_s18 + $0x24] sm:$0x7] }
  0x16   : > { %1824 = vmatpush3.bf16.msra.mxu0 %v2078_v5  ;;  %1807 = vmatprep.mubr.msk.bf16.mxu0 %vm2122_vm0, %v2121_v1  ;;  %v204_v29 = vrot.slane %v202_v24, 1  ;;  %v887_v33 = vshll.u32 %v2076_v3, 16  ;;  %v892_v34 = vshrl.u32 %v2077_v4, 16  ;;  %v895_v35 = vshll.u32 %v2077_v4, 16  ;;  %v409_v46 = vld [vmem:[%s2169_s18] sm:$0xe] }
  0x17   : > { %v191_v18 = vrot.slane %v189_v15, 1  ;;  %1845 = vmatprep.subr.bf16.mxu0 %v2121_v1  ;;  %v200_v28 = vor.u32 %v198_v23, %v196_v19  ;;  %v206_v37 = vshrl.u32 %v2194_v17, 16  ;;  %v210_v38 = vshll.u32 %v2215_v30, 16  ;;  %v2254_v62 = vld [vmem:[%s2169_s18 + $0x24] sm:$0xf] }
  0x18   : > { %v886_v39 = vrot.slane %v884_v31, 2  ;;  %v770_v42 = vsel %vm763_vm2, %v767_v20, %v769_v32  ;;  %v889_v43 = vrot.slane %v887_v33, 3  ;;  %v894_v44 = vrot.slane %v892_v34, 2  ;;  %v2090_v15 = vld [vmem:[%s2169_s18 + $0x24] sm:$0xff]   ;;  %v2301_v34 = vld [vmem:[%s2169_s18 + $0x1c] sm:$0xf] }
  0x19   : > { %v192_v21 = vor.u32 %v191_v18, %v187_v14  ;;  %v205_v36 = vsel %vm185_vm3, %v200_v28, %v204_v29  ;;  %v897_v45 = vrot.slane %v895_v35, 3  ;;  %v208_v47 = vor.u32 %v206_v37, %v204_v29  ;;  %v2293_v28 = vld [vmem:[%s2169_s18 + $0x14] sm:$0xf]  ;;  %v2296_v29 = vld [vmem:[%s2169_s18 + $0x18] sm:$0xf] }
  0x1a   : > { %v212_v48 = vrot.slane %v210_v38, 1  ;;  %v2237_v49 = vcombine.low %v2226_v40, %v154_v41  ;;  %v1579_v50 = vcombine.low %v409_v46, %v2178_v7  ;;  %v422_v51 = vrot.slane %v2184_v11, 1  ;;  %v2304_v35 = vld [vmem:[%s2169_s18 + $0x20] sm:$0xf] }
  0x1b   : > { %v197_v25 = vsel %vm185_vm3, %v192_v21, %v196_v19  ;;  %v890_v52 = vor.u32 %v889_v43, %v886_v39  ;;  %v898_v53 = vor.u32 %v897_v45, %v894_v44  ;;  %v901_v54 = vshrl.u32 %v2187_v12, 16  ;;  %v2091_v38 = vld [vmem:[%s2169_s18 + $0x2c] ss:$0 sps:$4 sm:$0x11]   ;;  %v2317_v43 = vld [vmem:[%s2169_s18 + $0x28] sm:$0xf] }
  0x1c   : > { %1716 = vmatmul.mubr.msk.bf16.vlgmr.msra.gmra.mrb[0].mxu1 %vm231_vm1, %v197_v25  ;;  %v904_v55 = vshll.u32 %v2187_v12, 16  ;;  %v214_v56 = vshrl.u32 %v2215_v30, 16  ;;  %v421_v57 = vrot.slane %v1579_v50, 1  ;;  %v213_v58 = vsel %vm185_vm3, %v208_v47, %v212_v48  ;;  %v2287_v25 = vld [vmem:[%s2169_s18 + $0xc] sm:$0xf] }
  0x1d   : > { %1736 = vmatpush3.bf16.msra.mxu1 %v2082_v22  ;;  %1719 = vmatprep.mubr.msk.bf16.mxu1 %vm2122_vm0, %v2121_v1  ;;  %v218_v59 = vshll.u32 %v2237_v49, 16  ;;  %v424_v60 = vrot.slane %v2194_v17, 1  ;;  %v899_v63 = vsel %vm882_vm5, %v890_v52, %v898_v53  ;;  %v903_v3 = vrot.slane %v901_v54, 2 }
  0x1e   : > { %1808 = vmatmul.mubr.msk.bf16.gmra.mrb[4].mxu0 %vm231_vm1, %v768_v26  ;;  %1757 = vmatprep.subr.bf16.mxu1 %v2121_v1  ;;  %v2251_v61 = vsel %vm420_vm4, %v421_v57, %v422_v51  ;;  %v906_v4 = vrot.slane %v904_v55, 3  ;;  %v216_v6 = vor.u32 %v214_v56, %v212_v48  ;;  %v1580_v8 = vcombine.low %v2226_v40, %v2254_v62  ;;  %v2290_v26 = vld [vmem:[%s2169_s18 + $0x10] sm:$0xf]  ;;  %v2341_v57 = vld [vmem:[%s2169_s18 + $0x2c] sm:$0xf] }
  0x1f   : > { %1811 = vmatprep.mubr.msk.bf16.mxu0 %vm2122_vm0, %v2121_v1  ;;  %v2263_v5 = vsel %vm420_vm4, %v422_v51, %v424_v60  ;;  %v220_v7 = vrot.slane %v218_v59, 1  ;;  %v910_v12 = vshrl.u32 %v2209_v27, 16  ;;  %v913_v13 = vshll.u32 %v2209_v27, 16  ;;  %v2344_v27 = vld [vmem:[%s2169_s18 + $0x30] sm:$0x7] }
  0x20   : > { %v907_v9 = vor.u32 %v906_v4, %v903_v3  ;;  %v222_v20 = vshrl.u32 %v2237_v49, 16  ;;  %v919_v21 = vshrl.u32 %v2090_v15, 16  ;;  %v922_v23 = vshll.u32 %v2090_v15, 16 }
  0x21   : > { %v221_v14 = vsel %vm185_vm3, %v216_v6, %v220_v7  ;;  %v912_v18 = vrot.slane %v910_v12, 2  ;;  %v915_v19 = vrot.slane %v913_v13, 3  ;;  %v1646_v31 = vcombine.low %v2287_v25, %v2290_v26 }
  0x22   : > { %v908_v16 = vsel %vm882_vm5, %v898_v53, %v907_v9  ;;  %v224_v24 = vor.u32 %v222_v20, %v220_v7  ;;  %v921_v33 = vrot.slane %v919_v21, 2  ;;  %v924_v37 = vrot.slane %v922_v23, 3  ;;  %v2089_v53 = vld [vmem:[%s2559_s1 + $0x10] sm:$0xff]   ;;  %v2094_v7 = vld [vmem:[%s2559_s1 + $0x38] sm:$0xff]  }
  0x23   : > { %v916_v22 = vor.u32 %v915_v19, %v912_v18  ;;  %v1647_v39 = vcombine.low %v2293_v28, %v2296_v29  ;;  %v1648_v41 = vcombine.low %v2301_v34, %v2304_v35  ;;  %v771_v44 = vrot.slane %v2090_v15, 2  ;;  %v2098_v19 = vld [vmem:[%s2559_s1 + $0x18] sm:$0xff]   ;;  %v2407_v20 = vld [vmem:[%s2169_s18 + $0x30] ss:$0 sps:$4 sm:$0x33]  }
  0x24   : > { %1720 = vmatmul.mubr.msk.bf16.gmra.mrb[4].mxu1 %vm231_vm1, %v205_v36  ;;  %v773_v46 = vrot.slane %v2091_v38, 2  ;;  %v925_v47 = vor.u32 %v924_v37, %v921_v33  ;;  %v928_v48 = vshrl.u32 %v2091_v38, 16  ;;  %v931_v50 = vshll.u32 %v2091_v38, 16 }
  0x25   : > { %1723 = vmatprep.mubr.msk.bf16.mxu1 %vm2122_vm0, %v2121_v1  ;;  %v917_v36 = vsel %vm882_vm5, %v907_v9, %v916_v22  ;;  %v2329_v51 = vsel %vm763_vm2, %v769_v32, %v771_v44  ;;  %v1650_v32 = vcombine.low %v2341_v57, %v2344_v27 }
  0x26   : > { %1812 = vmatmul.mubr.msk.bf16.gmra.mrb[8].mxu0 %vm231_vm1, %v770_v42  ;;  %v2314_v42 = vld [vmem:[%s2169_s18 + $0x24] sm:$0xf]  ;;  %v2332_v52 = vsel %vm763_vm2, %v771_v44, %v773_v46  ;;  %v926_v54 = vsel %vm882_vm5, %v916_v22, %v925_v47  ;;  %v930_v55 = vrot.slane %v928_v48, 2  ;;  %v933_v56 = vrot.slane %v931_v50, 3 }
  0x27   : > { %1825 = vmatprep.mubr.msk.bf16.mxu0 %vm2122_vm0, %v2121_v1  ;;  %v1649_v45 = vcombine.low %v2314_v42, %v2317_v43  ;;  %v1627_v13 = vcombine.low %v2304_v35, %v2314_v42  ;;  %v426_v46 = vrot.slane %v2215_v30, 1 }
  0x2c   : > { %1724 = vmatmul.mubr.msk.bf16.gmra.mrb[8].mxu1 %vm231_vm1, %v213_v58  ;;  %v934_v58 = vor.u32 %v933_v56, %v930_v55 }
  0x2d   : > { %1727 = vmatprep.mubr.msk.bf16.mxu1 %vm2122_vm0, %v2121_v1 }
  0x2e   : > { %1826 = vmatmul.mubr.msk.bf16.vlgmr.msra.gmra.mrb[0].mxu0 %vm231_vm1, %v899_v63  ;;  %v935_v59 = vsel %vm882_vm5, %v925_v47, %v934_v58  ;;  %v1229_v58 = vshrl.u32 %v1627_v13, 16 }
  0x2f   : > { %1846 = vmatpush3.bf16.msra.mxu0 %v2087_v2  ;;  %1829 = vmatprep.mubr.msk.bf16.mxu0 %vm2122_vm0, %v2121_v1  ;;  %v1625_v2 = vcombine.low %v2290_v26, %v2293_v28 }
  0x30   : > { %1867 = vmatprep.subr.bf16.mxu0 %v2121_v1 }
  0x31   : > { %v1084_v4 = vrot.slane %v1625_v2, 3  ;;  %v1214_v33 = vshll.u32 %v1625_v2, 16 }
  0x33   : > { %v1216_v44 = vrot.slane %v1214_v33, 4 }
  0x34   : > { %1728 = vmatmul.mubr.msk.bf16.gmra.mrb[12].mxu1 %vm231_vm1, %v221_v14  ;;  %v1088_v14 = vrot.slane %v1627_v13, 3 }
  0x35   : > { %1731 = vmatprep.mubr.msk.bf16.mxu1 %vm2122_vm0, %v2121_v1 }
  0x36   : > { %1830 = vmatmul.mubr.msk.bf16.gmra.mrb[4].mxu0 %vm231_vm1, %v908_v16  ;;  %v2393_v16 = vcombine.low %v2317_v43, %v2341_v57 }
  0x37   : > { %1833 = vmatprep.mubr.msk.bf16.mxu0 %vm2122_vm0, %v2121_v1 }
  0x38   : > { %v1090_v18 = vrot.slane %v2393_v16, 3 }
  0x3a   : > { %v1091_v21 = vsel %vm1082_vm6, %v1088_v14, %v1090_v18 }
  0x3c   : > { %1732 = vmatmul.mubr.msk.bf16.gmra.mrb[16].mxu1 %vm231_vm1, %v224_v24  ;;  %v1211_v24 = vshrl.u32 %v1625_v2, 16  ;;  %v2104_v2 = vld [vmem:[%s2169_s18 + $0xc] sm:$0xff]  }
  0x3d   : > { %1737 = vmatprep.mubr.msk.bf16.mxu1 %vm2122_vm0, %v2121_v1 }
  0x3e   : > { %1834 = vmatmul.mubr.msk.bf16.gmra.mrb[8].mxu0 %vm231_vm1, %v917_v36  ;;  %v1213_v38 = vrot.slane %v1211_v24, 3 }
  0x3f   : > { %1837 = vmatprep.mubr.msk.bf16.mxu0 %vm2122_vm0, %v2121_v1 }
  0x40   : > { %v1217_v48 = vor.u32 %v1216_v44, %v1213_v38 }
  0x44   : > { %1738 = vmatmul.mubr.msk.bf16.vlgmr.msra.gmra.mrb[0].mxu1 %vm231_vm1, %v2181_v10  ;;  %v1040_v10 = vld [vmem:[%s2169_s18 + $0x8] sm:$0x8] }
  0x45   : > { %1758 = vmatpush3.bf16.msra.mxu1 %v2089_v53  ;;  %1741 = vmatprep.mubr.msk.bf16.mxu1 %vm2122_vm0, %v2121_v1  ;;  %v1624_v63 = vcombine.low %v1040_v10, %v2287_v25  ;;  %v1232_v10 = vshll.u32 %v1627_v13, 16 }
  0x46   : > { %1838 = vmatmul.mubr.msk.bf16.gmra.mrb[12].mxu0 %vm231_vm1, %v926_v54  ;;  %1779 = vmatprep.subr.bf16.mxu1 %v2121_v1 }
  0x47   : > { %1841 = vmatprep.mubr.msk.bf16.mxu0 %vm2122_vm0, %v2121_v1  ;;  %v1083_v3 = vrot.slane %v1624_v63, 3  ;;  %v1203_v22 = vshrl.u32 %v1624_v63, 16  ;;  %v1206_v23 = vshll.u32 %v1624_v63, 16  ;;  %v2103_v63 = vld [vmem:[%s2169_s18 + $0x4] sm:$0xfe]  }
  0x48   : > { %v574_v40 = vshrl.u32 %v2103_v63, 16  ;;  %v577_v62 = vshll.u32 %v2103_v63, 16 }
  0x49   : > { %v1085_v6 = vsel %vm1082_vm6, %v1083_v3, %v1084_v4  ;;  %v1208_v37 = vrot.slane %v1206_v23, 4 }
  0x4a   : > { %v576_v13 = vrot.slane %v574_v40, 1 }
  0x4c   : > { %1742 = vmatmul.mubr.msk.bf16.gmra.mrb[4].mxu1 %vm231_vm1, %v2184_v11  ;;  %v1626_v11 = vcombine.low %v2296_v29, %v2301_v34 }
  0x4d   : > { %1745 = vmatprep.mubr.msk.bf16.mxu1 %vm2122_vm0, %v2121_v1 }
  0x4e   : > { %1842 = vmatmul.mubr.msk.bf16.gmra.mrb[16].mxu0 %vm231_vm1, %v935_v59  ;;  %v1086_v9 = vrot.slane %v1626_v11, 3  ;;  %v1220_v50 = vshrl.u32 %v1626_v11, 16  ;;  %v1223_v53 = vshll.u32 %v1626_v11, 16 }
  0x4f   : > { %1847 = vmatprep.mubr.msk.bf16.mxu0 %vm2122_vm0, %v2121_v1 }
  0x50   : > { %v1087_v12 = vsel %vm1082_vm6, %v1084_v4, %v1086_v9  ;;  %v1089_v15 = vsel %vm1082_vm6, %v1086_v9, %v1088_v14  ;;  %v1222_v55 = vrot.slane %v1220_v50, 3  ;;  %v1225_v56 = vrot.slane %v1223_v53, 4 }
  0x51   : > { %v1231_v4 = vrot.slane %v1229_v58, 3  ;;  %v1238_v9 = vshrl.u32 %v2393_v16, 16  ;;  %v579_v14 = vrot.slane %v577_v62, 2 }
  0x53   : > { %v580_v23 = vor.u32 %v579_v14, %v576_v13 }
  0x54   : > { %1746 = vmatmul.mubr.msk.bf16.gmra.mrb[8].mxu1 %vm231_vm1, %v2194_v17  ;;  %v428_v17 = vrot.slane %v1580_v8, 1  ;;  %v582_v8 = vshrl.u32 %v2104_v2, 16 }
  0x55   : > { %1749 = vmatprep.mubr.msk.bf16.mxu1 %vm2122_vm0, %v2121_v1 }
  0x56   : > { %1848 = vmatmul.mubr.msk.bf16.vlgmr.msra.gmra.mrb[0].mxu0 %vm231_vm1, %v1085_v6  ;;  %v429_v59 = vsel %vm420_vm4, %v426_v46, %v428_v17  ;;  %v1234_v6 = vrot.slane %v1232_v10, 4 }
  0x57   : > { %1868 = vmatpush3.bf16.msra.mxu0 %v2094_v7  ;;  %1851 = vmatprep.mubr.msk.bf16.mxu0 %vm2122_vm0, %v2121_v1  ;;  %v585_v7 = vshll.u32 %v2104_v2, 16 }
  0x58   : > { %1889 = vmatprep.subr.bf16.mxu0 %v2121_v1  ;;  %v1235_v11 = vor.u32 %v1234_v6, %v1231_v4 }
  0x5c   : > { %1750 = vmatmul.mubr.msk.bf16.gmra.mrb[12].mxu1 %vm231_vm1, %v2215_v30  ;;  %v2101_v30 = vld [vmem:[%s2559_s1 + $0x40] sm:$0xff]  }
  0x5d   : > { %1753 = vmatprep.mubr.msk.bf16.mxu1 %vm2122_vm0, %v2121_v1 }
  0x5e   : > { %1852 = vmatmul.mubr.msk.bf16.gmra.mrb[4].mxu0 %vm231_vm1, %v1087_v12  ;;  %v1241_v12 = vshll.u32 %v2393_v16, 16 }
  0x5f   : > { %1855 = vmatprep.mubr.msk.bf16.mxu0 %vm2122_vm0, %v2121_v1 }
  0x64   : > { %1754 = vmatmul.mubr.msk.bf16.gmra.mrb[16].mxu1 %vm231_vm1, %v2237_v49  ;;  %v1092_v49 = vrot.slane %v2407_v20, 3 }
  0x65   : > { %1759 = vmatprep.mubr.msk.bf16.mxu1 %vm2122_vm0, %v2121_v1 }
  0x66   : > { %1856 = vmatmul.mubr.msk.bf16.gmra.mrb[8].mxu0 %vm231_vm1, %v1089_v15  ;;  %v1093_v36 = vsel %vm1082_vm6, %v1090_v18, %v1092_v49  ;;  %v584_v15 = vrot.slane %v582_v8, 1  ;;  %v587_v18 = vrot.slane %v585_v7, 2  ;;  %v1240_v49 = vrot.slane %v1238_v9, 3 }
  0x67   : > { %1859 = vmatprep.mubr.msk.bf16.mxu0 %vm2122_vm0, %v2121_v1 }
  0x68   : > { %v588_v24 = vor.u32 %v587_v18, %v584_v15 }
  0x6a   : > { %v589_v38 = vsel %vm572_vm8, %v580_v23, %v588_v24 }
  0x6c   : > { %1760 = vmatmul.mubr.msk.bf16.vlgmr.msra.gmra.mrb[0].mxu1 %vm231_vm1, %v2251_v61  ;;  %v1205_v61 = vrot.slane %v1203_v22, 3  ;;  %v1243_v22 = vrot.slane %v1241_v12, 4 }
  0x6d   : > { %1780 = vmatpush3.bf16.msra.mxu1 %v2098_v19  ;;  %1763 = vmatprep.mubr.msk.bf16.mxu1 %vm2122_vm0, %v2121_v1  ;;  %v2105_v19 = vld [vmem:[%s2169_s18 + $0x14] sm:$0xff]  }
  0x6e   : > { %1860 = vmatmul.mubr.msk.bf16.gmra.mrb[12].mxu0 %vm231_vm1, %v1091_v21  ;;  %1911 = vmatprep.subr.bf16.mxu1 %v2121_v1  ;;  %v1209_v47 = vor.u32 %v1208_v37, %v1205_v61  ;;  %v591_v33 = vshrl.u32 %v2105_v19, 16  ;;  %v1244_v16 = vor.u32 %v1243_v22, %v1240_v49  ;;  %v1247_v61 = vshrl.u32 %v2407_v20, 16 }
  0x6f   : > { %1863 = vmatprep.mubr.msk.bf16.mxu0 %vm2122_vm0, %v2121_v1  ;;  %v1250_v37 = vshll.u32 %v2407_v20, 16 }
  0x70   : > { %v1218_v54 = vsel %vm1201_vm7, %v1209_v47, %v1217_v48  ;;  %v593_v44 = vrot.slane %v591_v33, 1  ;;  %v2106_v47 = vld [vmem:[%s2169_s18 + $0x1c] sm:$0xff]   ;;  %v1249_v50 = vrot.slane %v1247_v61, 3 }
  0x71   : > { %v1252_v53 = vrot.slane %v1250_v37, 4  ;;  %v603_v20 = vshll.u32 %v2106_v47, 16 }
  0x74   : > { %1764 = vmatmul.mubr.msk.bf16.gmra.mrb[4].mxu1 %vm231_vm1, %v2263_v5  ;;  %v427_v5 = vsel %vm420_vm4, %v424_v60, %v426_v46  ;;  %v1226_v60 = vor.u32 %v1225_v56, %v1222_v55 }
  0x75   : > { %1767 = vmatprep.mubr.msk.bf16.mxu1 %vm2122_vm0, %v2121_v1 }
  0x76   : > { %1864 = vmatmul.mubr.msk.bf16.gmra.mrb[16].mxu0 %vm231_vm1, %v1093_v36  ;;  %v1227_v3 = vsel %vm1201_vm7, %v1217_v48, %v1226_v60  ;;  %v1236_v21 = vsel %vm1201_vm7, %v1226_v60, %v1235_v11  ;;  %v594_v36 = vshll.u32 %v2105_v19, 16  ;;  %v1245_v48 = vsel %vm1201_vm7, %v1235_v11, %v1244_v16  ;;  %v2108_v60 = vld [vmem:[%s2169_s18 + $0x24] sm:$0xff]  }
  0x77   : > { %1869 = vmatprep.mubr.msk.bf16.mxu0 %vm2122_vm0, %v2121_v1  ;;  %v609_v10 = vshrl.u32 %v2108_v60, 16 }
  0x78   : > { %v596_v46 = vrot.slane %v594_v36, 2 }
  0x79   : > { %v611_v2 = vrot.slane %v609_v10, 1 }
  0x7c   : > { %1768 = vmatmul.mubr.msk.bf16.gmra.mrb[8].mxu1 %vm231_vm1, %v427_v5  ;;  %v597_v5 = vor.u32 %v596_v46, %v593_v44 }
  0x7d   : > { %1771 = vmatprep.mubr.msk.bf16.mxu1 %vm2122_vm0, %v2121_v1 }
  0x7e   : > { %1870 = vmatmul.mubr.msk.bf16.vlgmr.msra.gmra.mrb[0].mxu0 %vm231_vm1, %v1218_v54  ;;  %v600_v54 = vshrl.u32 %v2106_v47, 16  ;;  %v598_v55 = vsel %vm572_vm8, %v588_v24, %v597_v5 }
  0x7f   : > { %1890 = vmatpush3.bf16.msra.mxu0 %v2101_v30  ;;  %1873 = vmatprep.mubr.msk.bf16.mxu0 %vm2122_vm0, %v2121_v1  ;;  %v1253_v30 = vor.u32 %v1252_v53, %v1249_v50 }
  0x80   : > { %v602_v56 = vrot.slane %v600_v54, 1 }
  0x81   : > { %v1254_v58 = vsel %vm1201_vm7, %v1244_v16, %v1253_v30 }
  0x84   : > { %1772 = vmatmul.mubr.msk.bf16.gmra.mrb[12].mxu1 %vm231_vm1, %v429_v59  ;;  %v612_v59 = vshll.u32 %v2108_v60, 16 }
  0x85   : > { %1775 = vmatprep.mubr.msk.bf16.mxu1 %vm2122_vm0, %v2121_v1 }
  0x86   : > { %1874 = vmatmul.mubr.msk.bf16.gmra.mrb[4].mxu0 %vm231_vm1, %v1227_v3  ;;  %v614_v3 = vrot.slane %v612_v59, 2 }
  0x87   : > { %1877 = vmatprep.mubr.msk.bf16.mxu0 %vm2122_vm0, %v2121_v1 }
  0x88   : > { %v615_v4 = vor.u32 %v614_v3, %v611_v2 }
  0x8c   : > { %1776 = vmatmul.mubr.msk.bf16.gmra.mrb[16].mxu1 %vm231_vm1, %v428_v17  ;;  %v605_v17 = vrot.slane %v603_v20, 2 }
  0x8d   : > { %1781 = vmatprep.mubr.msk.bf16.mxu1 %vm2122_vm0, %v2121_v1 }
  0x8e   : > { %1878 = vmatmul.mubr.msk.bf16.gmra.mrb[8].mxu0 %vm231_vm1, %v1236_v21 }
  0x8f   : > { %1881 = vmatprep.mubr.msk.bf16.mxu0 %vm2122_vm0, %v2121_v1 }
  0x94   : > { %1782 = vmatmul.mubr.msk.bf16.vlgmr.msra.gmra.mrb[0].mxu1 %vm231_vm1, %v589_v38 }
  0x95   : > { %1912 = vmatpush3.bf16.msra.mxu1 %v2149_v0  ;;  %1785 = vmatprep.mubr.msk.bf16.mxu1 %vm2122_vm0, %v2121_v1  ;;  %v606_v0 = vor.u32 %v605_v17, %v602_v56 }
  0x96   : > { %1882 = vmatmul.mubr.msk.bf16.gmra.mrb[12].mxu0 %vm231_vm1, %v1245_v48 }
  0x97   : > { %1885 = vmatprep.mubr.msk.bf16.mxu0 %vm2122_vm0, %v2121_v1  ;;  %v607_v63 = vsel %vm572_vm8, %v597_v5, %v606_v0  ;;  %v616_v6 = vsel %vm572_vm8, %v606_v0, %v615_v4 }
  0x9c   : > { %1786 = vmatmul.mubr.msk.bf16.gmra.mrb[4].mxu1 %vm231_vm1, %v598_v55 }
  0x9d   : > { %1789 = vmatprep.mubr.msk.bf16.mxu1 %vm2122_vm0, %v2121_v1 }
  0x9e   : > { %1886 = vmatmul.mubr.msk.bf16.gmra.mrb[16].mxu0 %vm231_vm1, %v1254_v58 }
  0x9f   : > { %1891 = vmatprep.mubr.msk.bf16.mxu0 %vm2122_vm0, %v2121_v1 }
  0xa4   : > { %1790 = vmatmul.mubr.msk.bf16.gmra.mrb[8].mxu1 %vm231_vm1, %v607_v63 }
  0xa5   : > { %1793 = vmatprep.mubr.msk.bf16.mxu1 %vm2122_vm0, %v2121_v1 }
  0xa6   : > { %1892 = vmatmul.mubr.msk.bf16.vlgmr.msra.gmra.mrb[0].mxu0 %vm231_vm1, %v1646_v31 }
  0xa7   : > { %1895 = vmatprep.mubr.msk.bf16.mxu0 %vm2122_vm0, %v2121_v1 }
  0xac   : > { %1794 = vmatmul.mubr.msk.bf16.gmra.mrb[12].mxu1 %vm231_vm1, %v616_v6 }
  0xad   : > { %1797 = vmatprep.mubr.msk.bf16.mxu1 %vm2122_vm0, %v2121_v1 }
  0xae   : > { %1896 = vmatmul.mubr.msk.bf16.gmra.mrb[4].mxu0 %vm231_vm1, %v1647_v39 }
  0xaf   : > { %1899 = vmatprep.mubr.msk.bf16.mxu0 %vm2122_vm0, %v2121_v1 }
  0xb4   : > { %1798 = vmatmul.mubr.msk.bf16.gmra.mrb[16].mxu1 %vm231_vm1, %v615_v4 }
  0xb5   : > { %1815 = vmatprep.mubr.msk.bf16.mxu1 %vm2122_vm0, %v2121_v1 }
  0xb6   : > { %1900 = vmatmul.mubr.msk.bf16.gmra.mrb[8].mxu0 %vm231_vm1, %v1648_v41 }
  0xb7   : > { %1903 = vmatprep.mubr.msk.bf16.mxu0 %vm2122_vm0, %v2121_v1 }
  0xbc   : > { %1816 = vmatmul.mubr.msk.bf16.vlgmr.msra.gmra.mrb[12].mxu1 %vm231_vm1, %v2329_v51 }
  0xbd   : > { %1819 = vmatprep.mubr.msk.bf16.mxu1 %vm2122_vm0, %v2121_v1 }
  0xbe   : > { %1904 = vmatmul.mubr.msk.bf16.gmra.mrb[12].mxu0 %vm231_vm1, %v1649_v45 }
  0xbf   : > { %1907 = vmatprep.mubr.msk.bf16.mxu0 %vm2122_vm0, %v2121_v1 }
  0xc4   : > { %1820 = vmatmul.mubr.msk.bf16.gmra.mrb[16].mxu1 %vm231_vm1, %v2332_v52 }
  0xc6   : > { %1908 = vmatmul.mubr.msk.bf16.gmra.mrb[16].mxu0 %vm231_vm1, %v1650_v32 }
 0x167   : > { %v672_v25 = vpop.f32.mrb[0].mxu1 }
 0x168   : > { %v1783_v26 = vpop.f32.mrb[1].mxu1 }
 0x169   : > { %v675_v28 = vpop.f32.mrb[2].mxu1 }
 0x16a   : > { %v1784_v29 = vpop.f32.mrb[3].mxu1 }
 0x16f   : > { %v680_v31 = vpop.f32.mrb[4].mxu1 }
 0x170   : > { %v1787_v34 = vpop.f32.mrb[5].mxu1 }
 0x171   : > { %v683_v35 = vpop.f32.mrb[6].mxu1 }
 0x172   : > { %v1788_v39 = vpop.f32.mrb[7].mxu1 }
 0x177   : > { %v688_v41 = vpop.f32.mrb[8].mxu1 }
 0x178   : > { %v1791_v42 = vpop.f32.mrb[9].mxu1 }
 0x179   : > { %v691_v1 = vpop.f32.mrb[10].mxu1  ;;  %v1425_v43 = vpop.f32.mrb[0].mxu0 }
 0x17a   : > { %v1792_v45 = vpop.f32.mrb[11].mxu1  ;;  %v1913_v51 = vadd.f32 %v1425_v43, %v672_v25  ;;  %v1893_v52 = vpop.f32.mrb[1].mxu0 }
 0x17b   : > { %v1428_v57 = vpop.f32.mrb[2].mxu0 }
 0x17c   : > { %v1474_v27 = vmax.f32 %v1913_v51, 0.0  ;;  %v1914_v32 = vadd.f32 %v1428_v57, %v675_v28  ;;  %v1894_v40 = vpop.f32.mrb[3].mxu0 }
 0x17e   : > { %1485 = vst.msk [vmem:[%s2534_s8] sm:$0xff] %vm1484_vm9, %v1474_v27  ;;  %v1475_v62 = vmax.f32 %v1914_v32, 0.0 }
 0x180   : > { %1486 = vst.msk [vmem:[%s2534_s8 + $0x8] sm:$0xff] %vm1484_vm9, %v1475_v62 }
 0x181   : > { %v1433_v8 = vpop.f32.mrb[4].mxu0 }
 0x182   : > { %v1915_v7 = vadd.f32 %v1433_v8, %v680_v31  ;;  %v1897_v11 = vpop.f32.mrb[5].mxu0 }
 0x183   : > { %v1436_v9 = vpop.f32.mrb[6].mxu0 }
 0x184   : > { %v1476_v12 = vmax.f32 %v1915_v7, 0.0  ;;  %v1916_v13 = vadd.f32 %v1436_v9, %v683_v35  ;;  %v1898_v14 = vpop.f32.mrb[7].mxu0 }
 0x186   : > { %1487 = vst.msk [vmem:[%s2534_s8 + $0x10] sm:$0xff] %vm1484_vm9, %v1476_v12  ;;  %v1477_v15 = vmax.f32 %v1916_v13, 0.0 }
 0x188   : > { %1488 = vst.msk [vmem:[%s2534_s8 + $0x18] sm:$0xff] %vm1484_vm9, %v1477_v15 }
 0x189   : > { %v1441_v18 = vpop.f32.mrb[8].mxu0 }
 0x18a   : > { %v1917_v19 = vadd.f32 %v1441_v18, %v688_v41  ;;  %v1901_v21 = vpop.f32.mrb[9].mxu0 }
 0x18b   : > { %v1444_v49 = vpop.f32.mrb[10].mxu0 }
 0x18c   : > { %v1478_v22 = vmax.f32 %v1917_v19, 0.0  ;;  %v1918_v23 = vadd.f32 %v1444_v49, %v691_v1  ;;  %v1902_v24 = vpop.f32.mrb[11].mxu0 }
 0x18e   : > { %1489 = vst.msk [vmem:[%s2534_s8 + $0x20] sm:$0xff] %vm1484_vm9, %v1478_v22  ;;  %v1479_v33 = vmax.f32 %v1918_v23, 0.0 }
 0x18f   : > { %v854_v36 = vpop.f32.mrb[12].mxu1 }
 0x190   : > { %1490 = vst.msk [vmem:[%s2534_s8 + $0x28] sm:$0xff] %vm1484_vm9, %v1479_v33  ;;  %v1817_v16 = vpop.f32.mrb[13].mxu1 }
 0x191   : > { %v857_v61 = vpop.f32.mrb[14].mxu1  ;;  %v1449_v37 = vpop.f32.mrb[12].mxu0 }
 0x192   : > { %v1818_v38 = vpop.f32.mrb[15].mxu1  ;;  %v1919_v44 = vadd.f32 %v1449_v37, %v854_v36  ;;  %v1905_v46 = vpop.f32.mrb[13].mxu0 }
 0x193   : > { %v1452_v47 = vpop.f32.mrb[14].mxu0 }
 0x194   : > { %v1480_v48 = vmax.f32 %v1919_v44, 0.0  ;;  %v1920_v50 = vadd.f32 %v1452_v47, %v857_v61  ;;  %v1906_v53 = vpop.f32.mrb[15].mxu0 }
 0x196   : > { %1491 = vst.msk [vmem:[%s2534_s8 + $0x30] sm:$0xff] %vm1484_vm9, %v1480_v48  ;;  %v1481_v5 = vmax.f32 %v1920_v50, 0.0 }
 0x197   : > { %v862_v54 = vpop.f32.mrb[16].mxu1 }
 0x198   : > { %1492 = vst.msk [vmem:[%s2534_s8 + $0x38] sm:$0xff] %vm1484_vm9, %v1481_v5  ;;  %v1821_v20 = vpop.f32.mrb[17].mxu1 }
 0x199   : > { %v865_v30 = vpop.f32.mrb[18].mxu1  ;;  %v1457_v55 = vpop.f32.mrb[16].mxu0 }
 0x19a   : > { %v1822_v56 = vpop.f32.mrb[19].mxu1  ;;  %v1921_v17 = vadd.f32 %v1457_v55, %v862_v54  ;;  %v1909_v60 = vpop.f32.mrb[17].mxu0 }
 0x19b   : > { %v1460_v58 = vpop.f32.mrb[18].mxu0 }
 0x19c   : > { %v1482_v0 = vmax.f32 %v1921_v17, 0.0  ;;  %v1922_v10 = vadd.f32 %v1460_v58, %v865_v30  ;;  %v1910_v59 = vpop.f32.mrb[19].mxu0 }
 0x19e   : > { %1493 = vst.msk [vmem:[%s2534_s8 + $0x40] sm:$0xff] %vm1484_vm9, %v1482_v0  ;;  %v1483_v63 = vmax.f32 %v1922_v10, 0.0 }
 0x1a0   : > { %1495 = vst.msk [vmem:[%s2534_s8 + $0x48] sm:$0x1f] %vm1494_vm10, %v1483_v63 }
 0x1a1 PF: > { %s12_s9 = sadd.s32 1, %s2119_s9  }
 0x1a2   : > { %p9_p4 = scmp.ge.s32.totalorder %s12_s9, 4  }
 0x1a4   :  { %11 = sbr.rel (!%p9_p4) target bundleno = 1 (0x1), region = 66 }

// kernel: squeezenet_forward.35
= control target key start
LH: loop header
LB: loop body
LE: loop exit
PB: predicated region body
PF: predicated region fallthrough
CT: control target
= control target key end

     0   :  { %vm16_vm0 = vcmask 130048   ;;  %v428_v0 = vmov 0.0   ;;  %vm429_vm1 = vmmov 0   ;;  %s611_s1 = inlined_call_operand.vmem [shape: bf16[128,16], index: 1, kind: input, shape index: {}]   ;;  %s612_s0 = inlined_call_operand.vmem [shape: bf16[104,128], index: 0, kind: input, shape index: {}]   ;;  %s613_s2 = inlined_call_operand.vmem [shape: f32[104,16], index: 2, kind: output, shape index: {}]  }
   0x1   :  { %351 = vmatprep.subr.bf16.mxu0 %v428_v0  ;;  %v413_v1 = vld [vmem:[%s611_s1] sm:$0xff]   ;;  %395 = vmatprep.subr.bf16.mxu1 %v428_v0  ;;  %17 = vst.msk [vmem:[#allocation2] sm:$0xff] %vm16_vm0, %v428_v0  ;;  %18 = vst.msk [vmem:[#allocation2 + $0x8] sm:$0xff] %vm16_vm0, %v428_v0  ;;  %v414_v2 = vld [vmem:[%s611_s1 + $0x8] sm:$0xff]  }
   0x2   :  { %19 = vst.msk [vmem:[#allocation2 + $0x10] sm:$0xff] %vm16_vm0, %v428_v0  ;;  %20 = vst.msk [vmem:[#allocation2 + $0x18] sm:$0xff] %vm16_vm0, %v428_v0  ;;  %367 = vmatprep.mubr.msk.bf16.mxu0 %vm429_vm1, %v428_v0  ;;  %383 = vmatprep.mubr.msk.bf16.mxu1 %vm429_vm1, %v428_v0  ;;  %v415_v3 = vld [vmem:[%s611_s1 + $0x10] sm:$0xff]   ;;  %v416_v4 = vld [vmem:[%s611_s1 + $0x18] sm:$0xff]  }
   0x3   :  { %21 = vst.msk [vmem:[#allocation2 + $0x20] sm:$0xff] %vm16_vm0, %v428_v0  ;;  %22 = vst.msk [vmem:[#allocation2 + $0x28] sm:$0xff] %vm16_vm0, %v428_v0  ;;  %352 = vmatpush3.bf16.msra.mxu0 %v413_v1  ;;  %403 = vmatpush3.bf16.msra.mxu1 %v413_v1  ;;  %v417_v5 = vld [vmem:[%s611_s1 + $0x20] sm:$0xff]   ;;  %v418_v6 = vld [vmem:[%s611_s1 + $0x28] sm:$0xff]  }
   0x4   :  { %23 = vst.msk [vmem:[#allocation2 + $0x30] sm:$0xff] %vm16_vm0, %v428_v0  ;;  %24 = vst.msk [vmem:[#allocation2 + $0x38] sm:$0xff] %vm16_vm0, %v428_v0  ;;  %353 = vmatprep.subr.bf16.mxu0 %v428_v0  ;;  %396 = vmatprep.subr.bf16.mxu1 %v428_v0  ;;  %v419_v7 = vld [vmem:[%s611_s1 + $0x30] sm:$0xff]   ;;  %v420_v8 = vld [vmem:[%s611_s1 + $0x38] sm:$0xff]  }
   0x5   :  { %25 = vst.msk [vmem:[#allocation2 + $0x40] sm:$0xff] %vm16_vm0, %v428_v0  ;;  %26 = vst.msk [vmem:[#allocation2 + $0x48] sm:$0xff] %vm16_vm0, %v428_v0  ;;  %v421_v9 = vld [vmem:[%s612_s0] sm:$0xff]   ;;  %v423_v11 = vld [vmem:[%s612_s0 + $0x8] sm:$0xff]  }
   0x6   :  { %27 = vst.msk [vmem:[#allocation2 + $0x50] sm:$0xff] %vm16_vm0, %v428_v0  ;;  %28 = vst.msk [vmem:[#allocation2 + $0x58] sm:$0xff] %vm16_vm0, %v428_v0  ;;  %v422_v10 = vld [vmem:[%s612_s0 + $0x20] sm:$0xff]   ;;  %v424_v12 = vld [vmem:[%s612_s0 + $0x28] sm:$0xff]  }
   0x7   :  { %29 = vst.msk [vmem:[#allocation2 + $0x60] sm:$0xff] %vm16_vm0, %v428_v0  ;;  %354 = vmatpush3.bf16.msra.mxu0 %v414_v2  ;;  %404 = vmatpush3.bf16.msra.mxu1 %v414_v2  ;;  %v425_v13 = vld [vmem:[%s612_s0 + $0x10] sm:$0xff]   ;;  %v427_v15 = vld [vmem:[%s612_s0 + $0x18] sm:$0xff]  }
   0x8   :  { %355 = vmatprep.subr.bf16.mxu0 %v428_v0  ;;  %397 = vmatprep.subr.bf16.mxu1 %v428_v0  ;;  %v426_v14 = vld [vmem:[%s612_s0 + $0x30] ss:$0 sps:$4 sm:$0xff]   ;;  %v30_v16 = vld [vmem:[#allocation2] sm:$0xff]  ;;  %v31_v19 = vld [vmem:[#allocation2 + $0x8] sm:$0xff] }
   0x9   :  { %v32_v32 = vld [vmem:[#allocation2 + $0x10] sm:$0xff]  ;;  %v33_v35 = vld [vmem:[#allocation2 + $0x18] sm:$0xff] }
   0xa   :  { %v34_v56 = vld [vmem:[#allocation2 + $0x20] sm:$0xff]  ;;  %v35_v59 = vld [vmem:[#allocation2 + $0x28] sm:$0xff] }
   0xb   :  { %356 = vmatpush3.bf16.msra.mxu0 %v415_v3  ;;  %405 = vmatpush3.bf16.msra.mxu1 %v415_v3 }
   0xc   :  { %357 = vmatprep.subr.bf16.mxu0 %v428_v0  ;;  %398 = vmatprep.subr.bf16.mxu1 %v428_v0  ;;  %v38_v17 = vld [vmem:[#allocation2 + $0x40] sm:$0xff]  ;;  %v39_v21 = vld [vmem:[#allocation2 + $0x48] sm:$0xff] }
   0xd   :  { %v40_v33 = vld [vmem:[#allocation2 + $0x50] sm:$0xff]  ;;  %v41_v37 = vld [vmem:[#allocation2 + $0x58] sm:$0xff] }
   0xe   :  { %v42_v57 = vld [vmem:[#allocation2 + $0x60] sm:$0xff] }
   0xf   :  { %358 = vmatpush3.bf16.msra.mxu0 %v416_v4  ;;  %406 = vmatpush3.bf16.msra.mxu1 %v416_v4 }
  0x10   :  { %359 = vmatprep.subr.bf16.mxu0 %v428_v0  ;;  %399 = vmatprep.subr.bf16.mxu1 %v428_v0 }
  0x13   :  { %360 = vmatpush3.bf16.msra.mxu0 %v417_v5  ;;  %407 = vmatpush3.bf16.msra.mxu1 %v417_v5 }
  0x14   :  { %361 = vmatprep.subr.bf16.mxu0 %v428_v0  ;;  %400 = vmatprep.subr.bf16.mxu1 %v428_v0 }
  0x17   :  { %362 = vmatpush3.bf16.msra.mxu0 %v418_v6  ;;  %408 = vmatpush3.bf16.msra.mxu1 %v418_v6 }
  0x18   :  { %363 = vmatprep.subr.bf16.mxu0 %v428_v0  ;;  %401 = vmatprep.subr.bf16.mxu1 %v428_v0 }
  0x1b   :  { %364 = vmatpush3.bf16.msra.mxu0 %v419_v7  ;;  %409 = vmatpush3.bf16.msra.mxu1 %v419_v7 }
  0x1c   :  { %365 = vmatprep.subr.bf16.mxu0 %v428_v0  ;;  %402 = vmatprep.subr.bf16.mxu1 %v428_v0 }
  0x1f   :  { %366 = vmatpush3.bf16.msra.mxu0 %v420_v8  ;;  %410 = vmatpush3.bf16.msra.mxu1 %v420_v8 }
  0x22   :  { %368 = vmatmul.mubr.bf16.vlgmr.msra.gmra.mrb[0].mxu0 %v421_v9  ;;  %384 = vmatmul.mubr.bf16.vlgmr.msra.gmra.mrb[0].mxu1 %v422_v10 }
  0x23   :  { %371 = vmatprep.mubr.msk.bf16.mxu0 %vm429_vm1, %v428_v0  ;;  %387 = vmatprep.mubr.msk.bf16.mxu1 %vm429_vm1, %v428_v0 }
  0x2a   :  { %372 = vmatmul.mubr.bf16.gmra.mrb[4].mxu0 %v423_v11  ;;  %388 = vmatmul.mubr.bf16.gmra.mrb[4].mxu1 %v424_v12 }
  0x2b   :  { %375 = vmatprep.mubr.msk.bf16.mxu0 %vm429_vm1, %v428_v0  ;;  %391 = vmatprep.mubr.msk.bf16.mxu1 %vm429_vm1, %v428_v0 }
  0x32   :  { %376 = vmatmul.mubr.bf16.gmra.mrb[8].mxu0 %v425_v13  ;;  %392 = vmatmul.mubr.bf16.gmra.mrb[8].mxu1 %v426_v14  ;;  %v36_v14 = vld [vmem:[#allocation2 + $0x30] sm:$0xff] }
  0x33   :  { %379 = vmatprep.mubr.msk.bf16.mxu0 %vm429_vm1, %v428_v0 }
  0x3a   :  { %380 = vmatmul.mubr.bf16.gmra.mrb[12].mxu0 %v427_v15 }
  0xf5   :  { %v194_v18 = vpop.f32.mrb[0].mxu0  ;;  %v226_v20 = vpop.f32.mrb[0].mxu1 }
  0xf6   :  { %v248_v22 = vadd.f32 %v194_v18, %v30_v16  ;;  %v369_v23 = vpop.f32.mrb[1].mxu0  ;;  %v256_v24 = vadd.f32 %v226_v20, %v38_v17  ;;  %v385_v25 = vpop.f32.mrb[1].mxu1  ;;  %v37_v16 = vld [vmem:[#allocation2 + $0x38] sm:$0xff] }
  0xf7   :  { %v197_v26 = vpop.f32.mrb[2].mxu0  ;;  %v229_v27 = vpop.f32.mrb[2].mxu1 }
  0xf8   :  { %262 = vst.msk [vmem:[#allocation2] sm:$0xff] %vm16_vm0, %v248_v22  ;;  %v249_v28 = vadd.f32 %v197_v26, %v31_v19  ;;  %v370_v29 = vpop.f32.mrb[3].mxu0  ;;  %270 = vst.msk [vmem:[#allocation2 + $0x40] sm:$0xff] %vm16_vm0, %v256_v24  ;;  %v257_v30 = vadd.f32 %v229_v27, %v39_v21  ;;  %v386_v31 = vpop.f32.mrb[3].mxu1 }
  0xfa   :  { %263 = vst.msk [vmem:[#allocation2 + $0x8] sm:$0xff] %vm16_vm0, %v249_v28  ;;  %271 = vst.msk [vmem:[#allocation2 + $0x48] sm:$0xff] %vm16_vm0, %v257_v30 }
  0xfd   :  { %v202_v34 = vpop.f32.mrb[4].mxu0  ;;  %v234_v36 = vpop.f32.mrb[4].mxu1 }
  0xfe   :  { %v250_v38 = vadd.f32 %v202_v34, %v32_v32  ;;  %v373_v39 = vpop.f32.mrb[5].mxu0  ;;  %v258_v40 = vadd.f32 %v234_v36, %v40_v33  ;;  %v389_v41 = vpop.f32.mrb[5].mxu1 }
  0xff   :  { %v278_v42 = vld [vmem:[#allocation2] sm:$0xff]  ;;  %v205_v44 = vpop.f32.mrb[6].mxu0  ;;  %v237_v45 = vpop.f32.mrb[6].mxu1 }
 0x100   :  { %v286_v43 = vld [vmem:[#allocation2 + $0x40] sm:$0xff]  ;;  %v291_v46 = vmax.f32 %v278_v42, 0.0  ;;  %264 = vst.msk [vmem:[#allocation2 + $0x10] sm:$0xff] %vm16_vm0, %v250_v38  ;;  %v251_v48 = vadd.f32 %v205_v44, %v33_v35  ;;  %v374_v49 = vpop.f32.mrb[7].mxu0  ;;  %272 = vst.msk [vmem:[#allocation2 + $0x50] sm:$0xff] %vm16_vm0, %v258_v40  ;;  %v259_v50 = vadd.f32 %v237_v45, %v41_v37  ;;  %v390_v51 = vpop.f32.mrb[7].mxu1 }
 0x101   :  { %v299_v47 = vmax.f32 %v286_v43, 0.0  ;;  %v279_v52 = vld [vmem:[#allocation2 + $0x8] sm:$0xff] }
 0x102   :  { %v287_v53 = vld [vmem:[#allocation2 + $0x48] sm:$0xff]  ;;  %304 = vst.msk [vmem:[%s613_s2] sm:$0xff] %vm16_vm0, %v291_v46  ;;  %v292_v54 = vmax.f32 %v279_v52, 0.0  ;;  %265 = vst.msk [vmem:[#allocation2 + $0x18] sm:$0xff] %vm16_vm0, %v251_v48 }
 0x103   :  { %312 = vst.msk [vmem:[%s613_s2 + $0x40] sm:$0xff] %vm16_vm0, %v299_v47  ;;  %v300_v55 = vmax.f32 %v287_v53, 0.0  ;;  %273 = vst.msk [vmem:[#allocation2 + $0x58] sm:$0xff] %vm16_vm0, %v259_v50 }
 0x104   :  { %305 = vst.msk [vmem:[%s613_s2 + $0x8] sm:$0xff] %vm16_vm0, %v292_v54 }
 0x105   :  { %313 = vst.msk [vmem:[%s613_s2 + $0x48] sm:$0xff] %vm16_vm0, %v300_v55  ;;  %v210_v58 = vpop.f32.mrb[8].mxu0  ;;  %v242_v60 = vpop.f32.mrb[8].mxu1 }
 0x106   :  { %v252_v61 = vadd.f32 %v210_v58, %v34_v56  ;;  %v377_v62 = vpop.f32.mrb[9].mxu0  ;;  %v260_v63 = vadd.f32 %v242_v60, %v42_v57  ;;  %v393_v0 = vpop.f32.mrb[9].mxu1 }
 0x107   :  { %v280_v1 = vld [vmem:[#allocation2 + $0x10] sm:$0xff]  ;;  %v213_v3 = vpop.f32.mrb[10].mxu0  ;;  %v245_v4 = vpop.f32.mrb[10].mxu1 }
 0x108   :  { %v288_v2 = vld [vmem:[#allocation2 + $0x50] sm:$0xff]  ;;  %v293_v5 = vmax.f32 %v280_v1, 0.0  ;;  %266 = vst.msk [vmem:[#allocation2 + $0x20] sm:$0xff] %vm16_vm0, %v252_v61  ;;  %v253_v7 = vadd.f32 %v213_v3, %v35_v59  ;;  %v378_v8 = vpop.f32.mrb[11].mxu0  ;;  %274 = vst.msk [vmem:[#allocation2 + $0x60] sm:$0xff] %vm16_vm0, %v260_v63  ;;  %v394_v9 = vpop.f32.mrb[11].mxu1 }
 0x109   :  { %v301_v6 = vmax.f32 %v288_v2, 0.0  ;;  %v281_v10 = vld [vmem:[#allocation2 + $0x18] sm:$0xff] }
 0x10a   :  { %v289_v11 = vld [vmem:[#allocation2 + $0x58] sm:$0xff]  ;;  %306 = vst.msk [vmem:[%s613_s2 + $0x10] sm:$0xff] %vm16_vm0, %v293_v5  ;;  %v294_v12 = vmax.f32 %v281_v10, 0.0  ;;  %267 = vst.msk [vmem:[#allocation2 + $0x28] sm:$0xff] %vm16_vm0, %v253_v7 }
 0x10b   :  { %314 = vst.msk [vmem:[%s613_s2 + $0x50] sm:$0xff] %vm16_vm0, %v301_v6  ;;  %v302_v13 = vmax.f32 %v289_v11, 0.0 }
 0x10c   :  { %307 = vst.msk [vmem:[%s613_s2 + $0x18] sm:$0xff] %vm16_vm0, %v294_v12 }
 0x10d   :  { %315 = vst.msk [vmem:[%s613_s2 + $0x58] sm:$0xff] %vm16_vm0, %v302_v13  ;;  %v218_v15 = vpop.f32.mrb[12].mxu0 }
 0x10e   :  { %v254_v17 = vadd.f32 %v218_v15, %v36_v14  ;;  %v381_v18 = vpop.f32.mrb[13].mxu0 }
 0x10f   :  { %v282_v19 = vld [vmem:[#allocation2 + $0x20] sm:$0xff]  ;;  %v221_v21 = vpop.f32.mrb[14].mxu0 }
 0x110   :  { %v290_v20 = vld [vmem:[#allocation2 + $0x60] sm:$0xff]  ;;  %v295_v22 = vmax.f32 %v282_v19, 0.0  ;;  %268 = vst.msk [vmem:[#allocation2 + $0x30] sm:$0xff] %vm16_vm0, %v254_v17  ;;  %v255_v24 = vadd.f32 %v221_v21, %v37_v16  ;;  %v382_v25 = vpop.f32.mrb[15].mxu0 }
 0x111   :  { %v303_v23 = vmax.f32 %v290_v20, 0.0  ;;  %v283_v26 = vld [vmem:[#allocation2 + $0x28] sm:$0xff] }
 0x112   :  { %308 = vst.msk [vmem:[%s613_s2 + $0x20] sm:$0xff] %vm16_vm0, %v295_v22  ;;  %v296_v27 = vmax.f32 %v283_v26, 0.0  ;;  %269 = vst.msk [vmem:[#allocation2 + $0x38] sm:$0xff] %vm16_vm0, %v255_v24 }
 0x113   :  { %316 = vst.msk [vmem:[%s613_s2 + $0x60] sm:$0xff] %vm16_vm0, %v303_v23 }
 0x114   :  { %309 = vst.msk [vmem:[%s613_s2 + $0x28] sm:$0xff] %vm16_vm0, %v296_v27 }
 0x117   :  { %v284_v28 = vld [vmem:[#allocation2 + $0x30] sm:$0xff] }
 0x118   :  { %v297_v29 = vmax.f32 %v284_v28, 0.0 }
 0x119   :  { %v285_v30 = vld [vmem:[#allocation2 + $0x38] sm:$0xff] }
 0x11a   :  { %310 = vst.msk [vmem:[%s613_s2 + $0x30] sm:$0xff] %vm16_vm0, %v297_v29  ;;  %v298_v31 = vmax.f32 %v285_v30, 0.0 }
 0x11c   :  { %311 = vst.msk [vmem:[%s613_s2 + $0x38] sm:$0xff] %vm16_vm0, %v298_v31 }

// kernel: squeezenet_forward.38
= control target key start
LH: loop header
LB: loop body
LE: loop exit
PB: predicated region body
PF: predicated region fallthrough
CT: control target
= control target key end

     0   :  { %vm16_vm0 = vcmask 261120   ;;  %v428_v0 = vmov 0.0   ;;  %vm429_vm1 = vmmov 0   ;;  %s611_s1 = inlined_call_operand.vmem [shape: bf16[128,32], index: 1, kind: input, shape index: {}]   ;;  %s612_s0 = inlined_call_operand.vmem [shape: bf16[104,128], index: 0, kind: input, shape index: {}]   ;;  %s613_s2 = inlined_call_operand.vmem [shape: f32[104,32], index: 2, kind: output, shape index: {}]  }
   0x1   :  { %351 = vmatprep.subr.bf16.mxu0 %v428_v0  ;;  %v413_v1 = vld [vmem:[%s611_s1] sm:$0xff]   ;;  %395 = vmatprep.subr.bf16.mxu1 %v428_v0  ;;  %17 = vst.msk [vmem:[#allocation2] sm:$0xff] %vm16_vm0, %v428_v0  ;;  %18 = vst.msk [vmem:[#allocation2 + $0x8] sm:$0xff] %vm16_vm0, %v428_v0  ;;  %v414_v2 = vld [vmem:[%s611_s1 + $0x8] sm:$0xff]  }
   0x2   :  { %19 = vst.msk [vmem:[#allocation2 + $0x10] sm:$0xff] %vm16_vm0, %v428_v0  ;;  %20 = vst.msk [vmem:[#allocation2 + $0x18] sm:$0xff] %vm16_vm0, %v428_v0  ;;  %367 = vmatprep.mubr.msk.bf16.mxu0 %vm429_vm1, %v428_v0  ;;  %383 = vmatprep.mubr.msk.bf16.mxu1 %vm429_vm1, %v428_v0  ;;  %v415_v3 = vld [vmem:[%s611_s1 + $0x10] sm:$0xff]   ;;  %v416_v4 = vld [vmem:[%s611_s1 + $0x18] sm:$0xff]  }
   0x3   :  { %21 = vst.msk [vmem:[#allocation2 + $0x20] sm:$0xff] %vm16_vm0, %v428_v0  ;;  %22 = vst.msk [vmem:[#allocation2 + $0x28] sm:$0xff] %vm16_vm0, %v428_v0  ;;  %352 = vmatpush3.bf16.msra.mxu0 %v413_v1  ;;  %403 = vmatpush3.bf16.msra.mxu1 %v413_v1  ;;  %v417_v5 = vld [vmem:[%s611_s1 + $0x20] sm:$0xff]   ;;  %v418_v6 = vld [vmem:[%s611_s1 + $0x28] sm:$0xff]  }
   0x4   :  { %23 = vst.msk [vmem:[#allocation2 + $0x30] sm:$0xff] %vm16_vm0, %v428_v0  ;;  %24 = vst.msk [vmem:[#allocation2 + $0x38] sm:$0xff] %vm16_vm0, %v428_v0  ;;  %353 = vmatprep.subr.bf16.mxu0 %v428_v0  ;;  %396 = vmatprep.subr.bf16.mxu1 %v428_v0  ;;  %v419_v7 = vld [vmem:[%s611_s1 + $0x30] sm:$0xff]   ;;  %v420_v8 = vld [vmem:[%s611_s1 + $0x38] sm:$0xff]  }
   0x5   :  { %25 = vst.msk [vmem:[#allocation2 + $0x40] sm:$0xff] %vm16_vm0, %v428_v0  ;;  %26 = vst.msk [vmem:[#allocation2 + $0x48] sm:$0xff] %vm16_vm0, %v428_v0  ;;  %v421_v9 = vld [vmem:[%s612_s0] sm:$0xff]   ;;  %v423_v11 = vld [vmem:[%s612_s0 + $0x8] sm:$0xff]  }
   0x6   :  { %27 = vst.msk [vmem:[#allocation2 + $0x50] sm:$0xff] %vm16_vm0, %v428_v0  ;;  %28 = vst.msk [vmem:[#allocation2 + $0x58] sm:$0xff] %vm16_vm0, %v428_v0  ;;  %v422_v10 = vld [vmem:[%s612_s0 + $0x20] sm:$0xff]   ;;  %v424_v12 = vld [vmem:[%s612_s0 + $0x28] sm:$0xff]  }
   0x7   :  { %29 = vst.msk [vmem:[#allocation2 + $0x60] sm:$0xff] %vm16_vm0, %v428_v0  ;;  %354 = vmatpush3.bf16.msra.mxu0 %v414_v2  ;;  %404 = vmatpush3.bf16.msra.mxu1 %v414_v2  ;;  %v425_v13 = vld [vmem:[%s612_s0 + $0x10] sm:$0xff]   ;;  %v427_v15 = vld [vmem:[%s612_s0 + $0x18] sm:$0xff]  }
   0x8   :  { %355 = vmatprep.subr.bf16.mxu0 %v428_v0  ;;  %397 = vmatprep.subr.bf16.mxu1 %v428_v0  ;;  %v426_v14 = vld [vmem:[%s612_s0 + $0x30] ss:$0 sps:$4 sm:$0xff]   ;;  %v30_v16 = vld [vmem:[#allocation2] sm:$0xff]  ;;  %v31_v19 = vld [vmem:[#allocation2 + $0x8] sm:$0xff] }
   0x9   :  { %v32_v32 = vld [vmem:[#allocation2 + $0x10] sm:$0xff]  ;;  %v33_v35 = vld [vmem:[#allocation2 + $0x18] sm:$0xff] }
   0xa   :  { %v34_v56 = vld [vmem:[#allocation2 + $0x20] sm:$0xff]  ;;  %v35_v59 = vld [vmem:[#allocation2 + $0x28] sm:$0xff] }
   0xb   :  { %356 = vmatpush3.bf16.msra.mxu0 %v415_v3  ;;  %405 = vmatpush3.bf16.msra.mxu1 %v415_v3 }
   0xc   :  { %357 = vmatprep.subr.bf16.mxu0 %v428_v0  ;;  %398 = vmatprep.subr.bf16.mxu1 %v428_v0  ;;  %v38_v17 = vld [vmem:[#allocation2 + $0x40] sm:$0xff]  ;;  %v39_v21 = vld [vmem:[#allocation2 + $0x48] sm:$0xff] }
   0xd   :  { %v40_v33 = vld [vmem:[#allocation2 + $0x50] sm:$0xff]  ;;  %v41_v37 = vld [vmem:[#allocation2 + $0x58] sm:$0xff] }
   0xe   :  { %v42_v57 = vld [vmem:[#allocation2 + $0x60] sm:$0xff] }
   0xf   :  { %358 = vmatpush3.bf16.msra.mxu0 %v416_v4  ;;  %406 = vmatpush3.bf16.msra.mxu1 %v416_v4 }
  0x10   :  { %359 = vmatprep.subr.bf16.mxu0 %v428_v0  ;;  %399 = vmatprep.subr.bf16.mxu1 %v428_v0 }
  0x13   :  { %360 = vmatpush3.bf16.msra.mxu0 %v417_v5  ;;  %407 = vmatpush3.bf16.msra.mxu1 %v417_v5 }
  0x14   :  { %361 = vmatprep.subr.bf16.mxu0 %v428_v0  ;;  %400 = vmatprep.subr.bf16.mxu1 %v428_v0 }
  0x17   :  { %362 = vmatpush3.bf16.msra.mxu0 %v418_v6  ;;  %408 = vmatpush3.bf16.msra.mxu1 %v418_v6 }
  0x18   :  { %363 = vmatprep.subr.bf16.mxu0 %v428_v0  ;;  %401 = vmatprep.subr.bf16.mxu1 %v428_v0 }
  0x1b   :  { %364 = vmatpush3.bf16.msra.mxu0 %v419_v7  ;;  %409 = vmatpush3.bf16.msra.mxu1 %v419_v7 }
  0x1c   :  { %365 = vmatprep.subr.bf16.mxu0 %v428_v0  ;;  %402 = vmatprep.subr.bf16.mxu1 %v428_v0 }
  0x1f   :  { %366 = vmatpush3.bf16.msra.mxu0 %v420_v8  ;;  %410 = vmatpush3.bf16.msra.mxu1 %v420_v8 }
  0x22   :  { %368 = vmatmul.mubr.bf16.vlgmr.msra.gmra.mrb[0].mxu0 %v421_v9  ;;  %384 = vmatmul.mubr.bf16.vlgmr.msra.gmra.mrb[0].mxu1 %v422_v10 }
  0x23   :  { %371 = vmatprep.mubr.msk.bf16.mxu0 %vm429_vm1, %v428_v0  ;;  %387 = vmatprep.mubr.msk.bf16.mxu1 %vm429_vm1, %v428_v0 }
  0x2a   :  { %372 = vmatmul.mubr.bf16.gmra.mrb[4].mxu0 %v423_v11  ;;  %388 = vmatmul.mubr.bf16.gmra.mrb[4].mxu1 %v424_v12 }
  0x2b   :  { %375 = vmatprep.mubr.msk.bf16.mxu0 %vm429_vm1, %v428_v0  ;;  %391 = vmatprep.mubr.msk.bf16.mxu1 %vm429_vm1, %v428_v0 }
  0x32   :  { %376 = vmatmul.mubr.bf16.gmra.mrb[8].mxu0 %v425_v13  ;;  %392 = vmatmul.mubr.bf16.gmra.mrb[8].mxu1 %v426_v14  ;;  %v36_v14 = vld [vmem:[#allocation2 + $0x30] sm:$0xff] }
  0x33   :  { %379 = vmatprep.mubr.msk.bf16.mxu0 %vm429_vm1, %v428_v0 }
  0x3a   :  { %380 = vmatmul.mubr.bf16.gmra.mrb[12].mxu0 %v427_v15 }
  0xf5   :  { %v194_v18 = vpop.f32.mrb[0].mxu0  ;;  %v226_v20 = vpop.f32.mrb[0].mxu1 }
  0xf6   :  { %v248_v22 = vadd.f32 %v194_v18, %v30_v16  ;;  %v369_v23 = vpop.f32.mrb[1].mxu0  ;;  %v256_v24 = vadd.f32 %v226_v20, %v38_v17  ;;  %v385_v25 = vpop.f32.mrb[1].mxu1  ;;  %v37_v16 = vld [vmem:[#allocation2 + $0x38] sm:$0xff] }
  0xf7   :  { %v197_v26 = vpop.f32.mrb[2].mxu0  ;;  %v229_v27 = vpop.f32.mrb[2].mxu1 }
  0xf8   :  { %262 = vst.msk [vmem:[#allocation2] sm:$0xff] %vm16_vm0, %v248_v22  ;;  %v249_v28 = vadd.f32 %v197_v26, %v31_v19  ;;  %v370_v29 = vpop.f32.mrb[3].mxu0  ;;  %270 = vst.msk [vmem:[#allocation2 + $0x40] sm:$0xff] %vm16_vm0, %v256_v24  ;;  %v257_v30 = vadd.f32 %v229_v27, %v39_v21  ;;  %v386_v31 = vpop.f32.mrb[3].mxu1 }
  0xfa   :  { %263 = vst.msk [vmem:[#allocation2 + $0x8] sm:$0xff] %vm16_vm0, %v249_v28  ;;  %271 = vst.msk [vmem:[#allocation2 + $0x48] sm:$0xff] %vm16_vm0, %v257_v30 }
  0xfd   :  { %v202_v34 = vpop.f32.mrb[4].mxu0  ;;  %v234_v36 = vpop.f32.mrb[4].mxu1 }
  0xfe   :  { %v250_v38 = vadd.f32 %v202_v34, %v32_v32  ;;  %v373_v39 = vpop.f32.mrb[5].mxu0  ;;  %v258_v40 = vadd.f32 %v234_v36, %v40_v33  ;;  %v389_v41 = vpop.f32.mrb[5].mxu1 }
  0xff   :  { %v278_v42 = vld [vmem:[#allocation2] sm:$0xff]  ;;  %v205_v44 = vpop.f32.mrb[6].mxu0  ;;  %v237_v45 = vpop.f32.mrb[6].mxu1 }
 0x100   :  { %v286_v43 = vld [vmem:[#allocation2 + $0x40] sm:$0xff]  ;;  %v291_v46 = vmax.f32 %v278_v42, 0.0  ;;  %264 = vst.msk [vmem:[#allocation2 + $0x10] sm:$0xff] %vm16_vm0, %v250_v38  ;;  %v251_v48 = vadd.f32 %v205_v44, %v33_v35  ;;  %v374_v49 = vpop.f32.mrb[7].mxu0  ;;  %272 = vst.msk [vmem:[#allocation2 + $0x50] sm:$0xff] %vm16_vm0, %v258_v40  ;;  %v259_v50 = vadd.f32 %v237_v45, %v41_v37  ;;  %v390_v51 = vpop.f32.mrb[7].mxu1 }
 0x101   :  { %v299_v47 = vmax.f32 %v286_v43, 0.0  ;;  %v279_v52 = vld [vmem:[#allocation2 + $0x8] sm:$0xff] }
 0x102   :  { %v287_v53 = vld [vmem:[#allocation2 + $0x48] sm:$0xff]  ;;  %304 = vst.msk [vmem:[%s613_s2] sm:$0xff] %vm16_vm0, %v291_v46  ;;  %v292_v54 = vmax.f32 %v279_v52, 0.0  ;;  %265 = vst.msk [vmem:[#allocation2 + $0x18] sm:$0xff] %vm16_vm0, %v251_v48 }
 0x103   :  { %312 = vst.msk [vmem:[%s613_s2 + $0x40] sm:$0xff] %vm16_vm0, %v299_v47  ;;  %v300_v55 = vmax.f32 %v287_v53, 0.0  ;;  %273 = vst.msk [vmem:[#allocation2 + $0x58] sm:$0xff] %vm16_vm0, %v259_v50 }
 0x104   :  { %305 = vst.msk [vmem:[%s613_s2 + $0x8] sm:$0xff] %vm16_vm0, %v292_v54 }
 0x105   :  { %313 = vst.msk [vmem:[%s613_s2 + $0x48] sm:$0xff] %vm16_vm0, %v300_v55  ;;  %v210_v58 = vpop.f32.mrb[8].mxu0  ;;  %v242_v60 = vpop.f32.mrb[8].mxu1 }
 0x106   :  { %v252_v61 = vadd.f32 %v210_v58, %v34_v56  ;;  %v377_v62 = vpop.f32.mrb[9].mxu0  ;;  %v260_v63 = vadd.f32 %v242_v60, %v42_v57  ;;  %v393_v0 = vpop.f32.mrb[9].mxu1 }
 0x107   :  { %v280_v1 = vld [vmem:[#allocation2 + $0x10] sm:$0xff]  ;;  %v213_v3 = vpop.f32.mrb[10].mxu0  ;;  %v245_v4 = vpop.f32.mrb[10].mxu1 }
 0x108   :  { %v288_v2 = vld [vmem:[#allocation2 + $0x50] sm:$0xff]  ;;  %v293_v5 = vmax.f32 %v280_v1, 0.0  ;;  %266 = vst.msk [vmem:[#allocation2 + $0x20] sm:$0xff] %vm16_vm0, %v252_v61  ;;  %v253_v7 = vadd.f32 %v213_v3, %v35_v59  ;;  %v378_v8 = vpop.f32.mrb[11].mxu0  ;;  %274 = vst.msk [vmem:[#allocation2 + $0x60] sm:$0xff] %vm16_vm0, %v260_v63  ;;  %v394_v9 = vpop.f32.mrb[11].mxu1 }
 0x109   :  { %v301_v6 = vmax.f32 %v288_v2, 0.0  ;;  %v281_v10 = vld [vmem:[#allocation2 + $0x18] sm:$0xff] }
 0x10a   :  { %v289_v11 = vld [vmem:[#allocation2 + $0x58] sm:$0xff]  ;;  %306 = vst.msk [vmem:[%s613_s2 + $0x10] sm:$0xff] %vm16_vm0, %v293_v5  ;;  %v294_v12 = vmax.f32 %v281_v10, 0.0  ;;  %267 = vst.msk [vmem:[#allocation2 + $0x28] sm:$0xff] %vm16_vm0, %v253_v7 }
 0x10b   :  { %314 = vst.msk [vmem:[%s613_s2 + $0x50] sm:$0xff] %vm16_vm0, %v301_v6  ;;  %v302_v13 = vmax.f32 %v289_v11, 0.0 }
 0x10c   :  { %307 = vst.msk [vmem:[%s613_s2 + $0x18] sm:$0xff] %vm16_vm0, %v294_v12 }
 0x10d   :  { %315 = vst.msk [vmem:[%s613_s2 + $0x58] sm:$0xff] %vm16_vm0, %v302_v13  ;;  %v218_v15 = vpop.f32.mrb[12].mxu0 }
 0x10e   :  { %v254_v17 = vadd.f32 %v218_v15, %v36_v14  ;;  %v381_v18 = vpop.f32.mrb[13].mxu0 }
 0x10f   :  { %v282_v19 = vld [vmem:[#allocation2 + $0x20] sm:$0xff]  ;;  %v221_v21 = vpop.f32.mrb[14].mxu0 }
 0x110   :  { %v290_v20 = vld [vmem:[#allocation2 + $0x60] sm:$0xff]  ;;  %v295_v22 = vmax.f32 %v282_v19, 0.0  ;;  %268 = vst.msk [vmem:[#allocation2 + $0x30] sm:$0xff] %vm16_vm0, %v254_v17  ;;  %v255_v24 = vadd.f32 %v221_v21, %v37_v16  ;;  %v382_v25 = vpop.f32.mrb[15].mxu0 }
 0x111   :  { %v303_v23 = vmax.f32 %v290_v20, 0.0  ;;  %v283_v26 = vld [vmem:[#allocation2 + $0x28] sm:$0xff] }
 0x112   :  { %308 = vst.msk [vmem:[%s613_s2 + $0x20] sm:$0xff] %vm16_vm0, %v295_v22  ;;  %v296_v27 = vmax.f32 %v283_v26, 0.0  ;;  %269 = vst.msk [vmem:[#allocation2 + $0x38] sm:$0xff] %vm16_vm0, %v255_v24 }
 0x113   :  { %316 = vst.msk [vmem:[%s613_s2 + $0x60] sm:$0xff] %vm16_vm0, %v303_v23 }
 0x114   :  { %309 = vst.msk [vmem:[%s613_s2 + $0x28] sm:$0xff] %vm16_vm0, %v296_v27 }
 0x117   :  { %v284_v28 = vld [vmem:[#allocation2 + $0x30] sm:$0xff] }
 0x118   :  { %v297_v29 = vmax.f32 %v284_v28, 0.0 }
 0x119   :  { %v285_v30 = vld [vmem:[#allocation2 + $0x38] sm:$0xff] }
 0x11a   :  { %310 = vst.msk [vmem:[%s613_s2 + $0x30] sm:$0xff] %vm16_vm0, %v297_v29  ;;  %v298_v31 = vmax.f32 %v285_v30, 0.0 }
 0x11c   :  { %311 = vst.msk [vmem:[%s613_s2 + $0x38] sm:$0xff] %vm16_vm0, %v298_v31 }

// kernel: squeezenet_forward.39
= control target key start
LH: loop header
LB: loop body
LE: loop exit
PB: predicated region body
PF: predicated region fallthrough
CT: control target
= control target key end

     0   :  { %v358_v0 = vmov 0.0   ;;  %vm359_vm0 = vmmov 0   ;;  %vm104_vm1 = vcmask 261120   ;;  %s455_s1 = inlined_call_operand.vmem [shape: bf16[32,128], index: 1, kind: input, shape index: {}]   ;;  %s456_s0 = inlined_call_operand.vmem [shape: bf16[104,32], index: 0, kind: input, shape index: {}]   ;;  %s457_s2 = inlined_call_operand.vmem [shape: f32[104,128], index: 2, kind: output, shape index: {}]  }
   0x1   :  { %311 = vmatprep.subr.bf16.mxu0 %v358_v0  ;;  %v349_v1 = vld [vmem:[%s455_s1] sm:$0xff]   ;;  %343 = vmatprep.subr.bf16.mxu1 %v358_v0  ;;  %v350_v2 = vld [vmem:[%s455_s1 + $0x8] sm:$0xff]   ;;  %v355_v7 = vld [vmem:[%s456_s0 + $0x10] sm:$0xff]  }
   0x2   :  { %315 = vmatprep.mubr.msk.bf16.mxu0 %vm359_vm0, %v358_v0  ;;  %331 = vmatprep.mubr.msk.bf16.mxu1 %vm359_vm0, %v358_v0  ;;  %v351_v3 = vld [vmem:[%s456_s0] sm:$0xff]   ;;  %v353_v5 = vld [vmem:[%s456_s0 + $0x8] sm:$0xff]   ;;  %v356_v8 = vld [vmem:[%s456_s0 + $0x30] ss:$0 sps:$4 sm:$0xff]  }
   0x3   :  { %312 = vmatpush3.bf16.msra.mxu0 %v349_v1  ;;  %345 = vmatpush3.bf16.msra.mxu1 %v349_v1  ;;  %v352_v4 = vld [vmem:[%s456_s0 + $0x20] sm:$0xff]   ;;  %v354_v6 = vld [vmem:[%s456_s0 + $0x28] sm:$0xff]   ;;  %v357_v9 = vld [vmem:[%s456_s0 + $0x18] sm:$0xff]  }
   0x4   :  { %313 = vmatprep.subr.bf16.mxu0 %v358_v0  ;;  %344 = vmatprep.subr.bf16.mxu1 %v358_v0 }
   0x7   :  { %314 = vmatpush3.bf16.msra.mxu0 %v350_v2  ;;  %346 = vmatpush3.bf16.msra.mxu1 %v350_v2 }
   0xa   :  { %316 = vmatmul.mubr.msk.bf16.vlgmr.msra.gmra.mrb[0].mxu0 %vm104_vm1, %v351_v3  ;;  %332 = vmatmul.mubr.msk.bf16.vlgmr.msra.gmra.mrb[0].mxu1 %vm104_vm1, %v352_v4 }
   0xb   :  { %319 = vmatprep.mubr.msk.bf16.mxu0 %vm359_vm0, %v358_v0  ;;  %335 = vmatprep.mubr.msk.bf16.mxu1 %vm359_vm0, %v358_v0 }
  0x12   :  { %320 = vmatmul.mubr.msk.bf16.gmra.mrb[4].mxu0 %vm104_vm1, %v353_v5  ;;  %336 = vmatmul.mubr.msk.bf16.gmra.mrb[4].mxu1 %vm104_vm1, %v354_v6 }
  0x13   :  { %323 = vmatprep.mubr.msk.bf16.mxu0 %vm359_vm0, %v358_v0  ;;  %339 = vmatprep.mubr.msk.bf16.mxu1 %vm359_vm0, %v358_v0 }
  0x1a   :  { %324 = vmatmul.mubr.msk.bf16.gmra.mrb[8].mxu0 %vm104_vm1, %v355_v7  ;;  %340 = vmatmul.mubr.msk.bf16.gmra.mrb[8].mxu1 %vm104_vm1, %v356_v8 }
  0x1b   :  { %327 = vmatprep.mubr.msk.bf16.mxu0 %vm359_vm0, %v358_v0 }
  0x22   :  { %328 = vmatmul.mubr.msk.bf16.gmra.mrb[12].mxu0 %vm104_vm1, %v357_v9 }
  0xdd   :  { %v160_v10 = vpop.f32.mrb[0].mxu0  ;;  %v192_v11 = vpop.f32.mrb[0].mxu1 }
  0xde   :  { %v256_v12 = vmax.f32 %v160_v10, 0.0  ;;  %v317_v13 = vpop.f32.mrb[1].mxu0  ;;  %v264_v14 = vmax.f32 %v192_v11, 0.0  ;;  %v333_v15 = vpop.f32.mrb[1].mxu1 }
  0xdf   :  { %v163_v16 = vpop.f32.mrb[2].mxu0  ;;  %v195_v17 = vpop.f32.mrb[2].mxu1 }
  0xe0   :  { %269 = vst [vmem:[%s457_s2] sm:$0xff] %v256_v12  ;;  %v257_v18 = vmax.f32 %v163_v16, 0.0  ;;  %v318_v19 = vpop.f32.mrb[3].mxu0  ;;  %277 = vst [vmem:[%s457_s2 + $0x40] sm:$0xff] %v264_v14  ;;  %v265_v20 = vmax.f32 %v195_v17, 0.0  ;;  %v334_v21 = vpop.f32.mrb[3].mxu1 }
  0xe2   :  { %270 = vst [vmem:[%s457_s2 + $0x8] sm:$0xff] %v257_v18  ;;  %278 = vst [vmem:[%s457_s2 + $0x48] sm:$0xff] %v265_v20 }
  0xe5   :  { %v168_v22 = vpop.f32.mrb[4].mxu0  ;;  %v200_v23 = vpop.f32.mrb[4].mxu1 }
  0xe6   :  { %v258_v24 = vmax.f32 %v168_v22, 0.0  ;;  %v321_v25 = vpop.f32.mrb[5].mxu0  ;;  %v266_v26 = vmax.f32 %v200_v23, 0.0  ;;  %v337_v27 = vpop.f32.mrb[5].mxu1 }
  0xe7   :  { %v171_v28 = vpop.f32.mrb[6].mxu0  ;;  %v203_v29 = vpop.f32.mrb[6].mxu1 }
  0xe8   :  { %271 = vst [vmem:[%s457_s2 + $0x10] sm:$0xff] %v258_v24  ;;  %v259_v30 = vmax.f32 %v171_v28, 0.0  ;;  %v322_v31 = vpop.f32.mrb[7].mxu0  ;;  %279 = vst [vmem:[%s457_s2 + $0x50] sm:$0xff] %v266_v26  ;;  %v267_v32 = vmax.f32 %v203_v29, 0.0  ;;  %v338_v33 = vpop.f32.mrb[7].mxu1 }
  0xea   :  { %272 = vst [vmem:[%s457_s2 + $0x18] sm:$0xff] %v259_v30  ;;  %280 = vst [vmem:[%s457_s2 + $0x58] sm:$0xff] %v267_v32 }
  0xed   :  { %v176_v34 = vpop.f32.mrb[8].mxu0  ;;  %v208_v35 = vpop.f32.mrb[8].mxu1 }
  0xee   :  { %v260_v36 = vmax.f32 %v176_v34, 0.0  ;;  %v325_v37 = vpop.f32.mrb[9].mxu0  ;;  %v268_v38 = vmax.f32 %v208_v35, 0.0  ;;  %v341_v39 = vpop.f32.mrb[9].mxu1 }
  0xef   :  { %v179_v40 = vpop.f32.mrb[10].mxu0  ;;  %v211_v41 = vpop.f32.mrb[10].mxu1 }
  0xf0   :  { %273 = vst [vmem:[%s457_s2 + $0x20] sm:$0xff] %v260_v36  ;;  %v261_v42 = vmax.f32 %v179_v40, 0.0  ;;  %v326_v43 = vpop.f32.mrb[11].mxu0  ;;  %281 = vst [vmem:[%s457_s2 + $0x60] sm:$0xff] %v268_v38  ;;  %v342_v44 = vpop.f32.mrb[11].mxu1 }
  0xf2   :  { %274 = vst [vmem:[%s457_s2 + $0x28] sm:$0xff] %v261_v42 }
  0xf5   :  { %v184_v45 = vpop.f32.mrb[12].mxu0 }
  0xf6   :  { %v262_v46 = vmax.f32 %v184_v45, 0.0  ;;  %v329_v47 = vpop.f32.mrb[13].mxu0 }
  0xf7   :  { %v187_v48 = vpop.f32.mrb[14].mxu0 }
  0xf8   :  { %275 = vst [vmem:[%s457_s2 + $0x30] sm:$0xff] %v262_v46  ;;  %v263_v49 = vmax.f32 %v187_v48, 0.0  ;;  %v330_v50 = vpop.f32.mrb[15].mxu0 }
  0xfa   :  { %276 = vst [vmem:[%s457_s2 + $0x38] sm:$0xff] %v263_v49 }

// kernel: squeezenet_forward.40
= control target key start
LH: loop header
LB: loop body
LE: loop exit
PB: predicated region body
PF: predicated region fallthrough
CT: control target
= control target key end

     0   :  { %s2271_s9 = smov 0   ;;  %s2728_s0 = inlined_call_operand.vmem [shape: bf16[2,110,32], index: 0, kind: input, shape index: {}]   ;;  %s2729_s1 = inlined_call_operand.vmem [shape: bf16[9,32,128], index: 1, kind: input, shape index: {}]   ;;  %s2730_s2 = inlined_call_operand.vmem [shape: f32[2,77,128], index: 2, kind: output, shape index: {}]  }
   0x1 LB: > { %s1621_s10 = sadd.s32 4294967295, %s2252_s9   ;;  %p1625_p0 = scmp.ge.s32.totalorder %s2252_s9, 1  ;;  %s2252_s9 = sphi %s2271_s9, %s12_s9  }
   0x2   : > { %p112_p1 = scmp.lt.s32.totalorder %s2252_s9, 3 }
   0x4   : > { %p113_p2 = pnand %p1625_p0, %p112_p1 }
   0x5   : > { %v2282_v0 = vld [vmem:[%s2729_s1 + $0x40] sm:$0xff] (!%p113_p2)   ;;  %v2254_v1 = vmov (!%p113_p2), 0.0   ;;  %v2289_v2 = vld [vmem:[%s2729_s1 + $0x48] sm:$0xff] (!%p113_p2)   ;;  %v2201_v3 = vld [vmem:[%s2729_s1 + $0x10] sm:$0xff] (!%p113_p2)   ;;  %vm2255_vm0 = vmmov (!%p113_p2), 0   ;;  %p134_p3 = scmp.lt.s32.totalorder (!%p113_p2), %s1621_s10, 1 }
   0x6   : > { %116 = sbr.rel (%p113_p2) target bundleno = 417 (0x1a1), region = 28  ;;  %1913 = vmatprep.subr.bf16.mxu0 (!%p113_p2), %v2254_v1  ;;  %1817 = vmatprep.subr.bf16.mxu1 (!%p113_p2), %v2254_v1  ;;  %v2205_v4 = vld [vmem:[%s2729_s1 + $0x18] sm:$0xff] (!%p113_p2)   ;;  %vm241_vm1 = vcmask (!%p113_p2), 261120   ;;  %vm797_vm2 = vcmask (!%p113_p2), 1045504   ;;  %v2204_v7 = vld [vmem:[%s2729_s1 + $0x50] sm:$0xff] (!%p113_p2)   ;;  %v2208_v25 = vld [vmem:[%s2729_s1] sm:$0xff] (!%p113_p2)  }
   0x7   : > { %1914 = vmatpush3.bf16.msra.mxu0 (!%p113_p2), %v2282_v0  ;;  %1917 = vmatprep.mubr.msk.bf16.mxu0 (!%p113_p2), %vm2255_vm0, %v2254_v1  ;;  %v2211_v23 = vld [vmem:[%s2729_s1 + $0x58] sm:$0xff] (!%p113_p2)   ;;  %vm189_vm3 = vsmask.f32 (!%p113_p2), 7424  ;;  %v2216_v34 = vld [vmem:[%s2729_s1 + $0x8] sm:$0xff] (!%p113_p2)   ;;  %vm924_vm4 = vsmask.f32 (!%p113_p2), 5376 }
   0x8   : > { %1915 = vmatprep.subr.bf16.mxu0 (!%p113_p2), %v2254_v1  ;;  %1821 = vmatprep.mubr.msk.bf16.mxu1 (!%p113_p2), %vm2255_vm0, %v2254_v1  ;;  %vm438_vm5 = vcmask (!%p113_p2), 1046528   ;;  %vm1132_vm6 = vcmask (!%p113_p2), 1044480   ;;  %vm1259_vm7 = vsmask.f32 (!%p113_p2), 4352  ;;  %vm598_vm8 = vsmask.f32 (!%p113_p2), 6400 }
   0x9   : > { %1818 = vmatpush3.bf16.msra.mxu1 (!%p113_p2), %v2201_v3 }
   0xa   : > { %1819 = vmatprep.subr.bf16.mxu1 (!%p113_p2), %v2254_v1 }
   0xb   : > { %1916 = vmatpush3.bf16.msra.mxu0 (!%p113_p2), %v2289_v2 }
   0xc   : > { %1937 = vmatprep.subr.bf16.mxu0 (!%p113_p2), %v2254_v1 }
   0xd   : > { %s2732_s10 = smov (!%p134_p3, %s1621_s10), 1  ;;  %1820 = vmatpush3.bf16.msra.mxu1 %v2205_v4 }
   0xe   : > { %s2187_s19 = smul.u32 56, %s2732_s10  ;;  %1841 = vmatprep.subr.bf16.mxu1 %v2254_v1 }
  0x10   : > { %s2312_s22 = scalar_lea.vmem %s2728_s0, %s2187_s19 }
  0x11   : > { %v2202_v5 = vld [vmem:[%s2312_s22 + $0x4] sm:$0xfc]   ;;  %v2203_v6 = vld [vmem:[%s2312_s22 + $0xc] sm:$0xff]   ;;  %v145_v8 = vld [vmem:[%s2312_s22] sm:$0xf] }
  0x12   : > { %v2322_v9 = vld [vmem:[%s2312_s22 + $0x4] sm:$0xf]  ;;  %v798_v10 = vrot.slane %v2202_v5, 2  ;;  %v799_v11 = vrot.slane %v2203_v6, 2  ;;  %v2328_v13 = vld [vmem:[%s2312_s22 + $0x8] sm:$0xff]   ;;  %v2331_v14 = vld [vmem:[%s2312_s22 + $0x14] sm:$0xff]  }
  0x13   : > { %v2325_v12 = vcombine.low %v145_v8, %v2322_v9  ;;  %v198_v18 = vshll.u32 %v2328_v13, 16  ;;  %v2338_v19 = vld [vmem:[%s2312_s22 + $0x10] sm:$0xff]   ;;  %v801_v22 = vrot.slane %v2331_v14, 2  ;;  %v202_v26 = vshrl.u32 %v2328_v13, 16  ;;  %v2356_v30 = vld [vmem:[%s2312_s22 + $0x1c] sm:$0xff]  }
  0x14   : > { %v800_v15 = vsel %vm797_vm2, %v798_v10, %v799_v11  ;;  %v206_v27 = vshll.u32 %v2338_v19, 16  ;;  %v2363_v33 = vld [vmem:[%s2312_s22 + $0x18] sm:$0xff]   ;;  %v926_v35 = vshrl.u32 %v2202_v5, 16  ;;  %v803_v36 = vrot.slane %v2356_v30, 2  ;;  %v2377_v44 = vld [vmem:[%s2312_s22 + $0x20] sm:$0xf] }
  0x15   : > { %v191_v16 = vshrl.u32 %v2325_v12, 16  ;;  %v193_v17 = vshll.u32 %v2325_v12, 16  ;;  %1918 = vmatmul.mubr.msk.bf16.vlgmr.msra.gmra.mrb[0].mxu0 %vm241_vm1, %v800_v15  ;;  %v200_v21 = vrot.slane %v198_v18, 1  ;;  %v802_v29 = vsel %vm797_vm2, %v799_v11, %v801_v22  ;;  %v154_v45 = vld [vmem:[%s2312_s22 + $0x24] sm:$0x7]  ;;  %v2217_v18 = vld [vmem:[%s2729_s1 + $0x68] sm:$0xff]  }
  0x16   : > { %1938 = vmatpush3.bf16.msra.mxu0 %v2204_v7  ;;  %1921 = vmatprep.mubr.msk.bf16.mxu0 %vm2255_vm0, %v2254_v1  ;;  %v208_v32 = vrot.slane %v206_v27, 1  ;;  %v929_v37 = vshll.u32 %v2202_v5, 16  ;;  %v934_v38 = vshrl.u32 %v2203_v6, 16  ;;  %v937_v39 = vshll.u32 %v2203_v6, 16  ;;  %v2386_v50 = vld [vmem:[%s2312_s22 + $0xc] sm:$0xf] }
  0x17   : > { %v195_v20 = vrot.slane %v193_v17, 1  ;;  %1939 = vmatprep.subr.bf16.mxu0 %v2254_v1  ;;  %v204_v31 = vor.u32 %v202_v26, %v200_v21  ;;  %v210_v41 = vshrl.u32 %v2338_v19, 16  ;;  %v214_v42 = vshll.u32 %v2363_v33, 16  ;;  %v2389_v51 = vld [vmem:[%s2312_s22 + $0x10] sm:$0xf]  ;;  %v2214_v8 = vld [vmem:[%s2729_s1 + $0x60] sm:$0xff]  }
  0x18   : > { %v928_v43 = vrot.slane %v926_v35, 2  ;;  %v804_v46 = vsel %vm797_vm2, %v801_v22, %v803_v36  ;;  %v931_v47 = vrot.slane %v929_v37, 3  ;;  %v936_v48 = vrot.slane %v934_v38, 2  ;;  %v425_v60 = vld [vmem:[%s2312_s22] sm:$0xe] }
  0x19   : > { %v196_v24 = vor.u32 %v195_v20, %v191_v16  ;;  %v209_v40 = vsel %vm189_vm3, %v204_v31, %v208_v32  ;;  %v939_v49 = vrot.slane %v937_v39, 3  ;;  %v212_v52 = vor.u32 %v210_v41, %v208_v32  ;;  %v2426_v17 = vld [vmem:[%s2312_s22 + $0x24] sm:$0xf]  ;;  %v2220_v37 = vld [vmem:[%s2312_s22 + $0x2c] ss:$0 sps:$4 sm:$0x11]  }
  0x1a   : > { %1940 = vmatpush3.bf16.msra.mxu0 %v2211_v23  ;;  %v216_v53 = vrot.slane %v214_v42, 1  ;;  %v2394_v54 = vcombine.low %v2377_v44, %v154_v45  ;;  %v1740_v55 = vcombine.low %v2386_v50, %v2389_v51  ;;  %v932_v56 = vor.u32 %v931_v47, %v928_v43  ;;  %v2453_v41 = vld [vmem:[%s2312_s22 + $0x14] sm:$0xf]  ;;  %v2456_v42 = vld [vmem:[%s2312_s22 + $0x18] sm:$0xf] }
  0x1b   : > { %v201_v28 = vsel %vm189_vm3, %v196_v24, %v200_v21  ;;  %1961 = vmatprep.subr.bf16.mxu0 %v2254_v1  ;;  %v940_v57 = vor.u32 %v939_v49, %v936_v48  ;;  %v943_v58 = vshrl.u32 %v2331_v14, 16  ;;  %v946_v59 = vshll.u32 %v2331_v14, 16  ;;  %v2460_v43 = vld [vmem:[%s2312_s22 + $0x1c] sm:$0xf]  ;;  %v2463_v45 = vld [vmem:[%s2312_s22 + $0x20] sm:$0xf] }
  0x1c   : > { %1822 = vmatmul.mubr.msk.bf16.vlgmr.msra.gmra.mrb[0].mxu1 %vm241_vm1, %v201_v28  ;;  %v1655_v61 = vcombine.low %v425_v60, %v2322_v9  ;;  %v217_v62 = vsel %vm189_vm3, %v212_v52, %v216_v53  ;;  %v218_v63 = vshrl.u32 %v2363_v33, 16  ;;  %v222_v3 = vshll.u32 %v2394_v54, 16  ;;  %v2219_v28 = vld [vmem:[%s2312_s22 + $0x24] sm:$0xff]  }
  0x1d   : > { %1842 = vmatpush3.bf16.msra.mxu1 %v2208_v25  ;;  %1825 = vmatprep.mubr.msk.bf16.mxu1 %vm2255_vm0, %v2254_v1  ;;  %v440_v4 = vrot.slane %v2328_v13, 1  ;;  %v442_v6 = vrot.slane %v2338_v19, 1  ;;  %v941_v7 = vsel %vm924_vm4, %v932_v56, %v940_v57  ;;  %v945_v10 = vrot.slane %v943_v58, 2  ;;  %v2470_v47 = vld [vmem:[%s2312_s22 + $0x24] sm:$0xf] }
  0x1e   : > { %1922 = vmatmul.mubr.msk.bf16.gmra.mrb[4].mxu0 %vm241_vm1, %v802_v29  ;;  %1843 = vmatprep.subr.bf16.mxu1 %v2254_v1  ;;  %v439_v5 = vrot.slane %v1655_v61, 1  ;;  %v948_v9 = vrot.slane %v946_v59, 3  ;;  %v220_v15 = vor.u32 %v218_v63, %v216_v53  ;;  %v224_v16 = vrot.slane %v222_v3, 1  ;;  %v2473_v48 = vld [vmem:[%s2312_s22 + $0x28] sm:$0xf]  ;;  %v2218_v61 = vld [vmem:[%s2729_s1 + $0x20] sm:$0xff]  }
  0x1f   : > { %1925 = vmatprep.mubr.msk.bf16.mxu0 %vm2255_vm0, %v2254_v1  ;;  %v2421_v14 = vsel %vm438_vm5, %v440_v4, %v442_v6  ;;  %v1656_v20 = vcombine.low %v2377_v44, %v2426_v17  ;;  %v952_v22 = vshrl.u32 %v2356_v30, 16  ;;  %v955_v23 = vshll.u32 %v2356_v30, 16  ;;  %v2500_v30 = vld [vmem:[%s2312_s22 + $0x30] sm:$0x7]  ;;  %v2235_v17 = vld [vmem:[%s2312_s22 + $0x4] sm:$0xfe]  }
  0x20   : > { %v2416_v11 = vsel %vm438_vm5, %v439_v5, %v440_v4  ;;  %v949_v21 = vor.u32 %v948_v9, %v945_v10  ;;  %v225_v24 = vsel %vm189_vm3, %v220_v15, %v224_v16  ;;  %v226_v29 = vshrl.u32 %v2394_v54, 16  ;;  %v2497_v5 = vld [vmem:[%s2312_s22 + $0x2c] sm:$0xf] }
  0x21   : > { %1844 = vmatpush3.bf16.msra.mxu1 %v2216_v34  ;;  %v954_v26 = vrot.slane %v952_v22, 2  ;;  %v957_v27 = vrot.slane %v955_v23, 3  ;;  %v961_v32 = vshrl.u32 %v2219_v28, 16  ;;  %v964_v34 = vshll.u32 %v2219_v28, 16  ;;  %v2223_v22 = vld [vmem:[%s2729_s1 + $0x70] sm:$0xff]  }
  0x22   : > { %1865 = vmatprep.subr.bf16.mxu1 %v2254_v1  ;;  %v950_v25 = vsel %vm924_vm4, %v940_v57, %v949_v21  ;;  %v228_v35 = vor.u32 %v226_v29, %v224_v16  ;;  %v1742_v49 = vcombine.low %v2460_v43, %v2463_v45  ;;  %v805_v52 = vrot.slane %v2219_v28, 2 }
  0x23   : > { %v958_v31 = vor.u32 %v957_v27, %v954_v26  ;;  %v963_v39 = vrot.slane %v961_v32, 2  ;;  %v1743_v53 = vcombine.low %v2470_v47, %v2473_v48  ;;  %v970_v57 = vshrl.u32 %v2220_v37, 16  ;;  %v2229_v32 = vld [vmem:[%s2729_s1 + $0x30] sm:$0xff]  }
  0x24   : > { %1826 = vmatmul.mubr.msk.bf16.gmra.mrb[4].mxu1 %vm241_vm1, %v209_v40  ;;  %v966_v40 = vrot.slane %v964_v34, 3  ;;  %v973_v58 = vshll.u32 %v2220_v37, 16  ;;  %v807_v59 = vrot.slane %v2220_v37, 2  ;;  %v2485_v60 = vsel %vm797_vm2, %v803_v36, %v805_v52  ;;  %v2224_v36 = vld [vmem:[%s2729_s1 + $0x28] sm:$0xff]  }
  0x25   : > { %1829 = vmatprep.mubr.msk.bf16.mxu1 %vm2255_vm0, %v2254_v1  ;;  %v959_v38 = vsel %vm924_vm4, %v949_v21, %v958_v31  ;;  %v972_v3 = vrot.slane %v970_v57, 2  ;;  %v1713_v15 = vcombine.low %v2389_v51, %v2453_v41  ;;  %v2546_v26 = vcombine.low %v2463_v45, %v2470_v47  ;;  %v2574_v34 = vld [vmem:[%s2312_s22 + $0x30] ss:$0 sps:$4 sm:$0x33]  }
  0x26   : > { %1926 = vmatmul.mubr.msk.bf16.gmra.mrb[8].mxu0 %vm241_vm1, %v804_v46  ;;  %v1741_v46 = vcombine.low %v2453_v41, %v2456_v42  ;;  %v967_v56 = vor.u32 %v966_v40, %v963_v39  ;;  %v975_v4 = vrot.slane %v973_v58, 3  ;;  %v2560_v29 = vcombine.low %v2473_v48, %v2497_v5 }
  0x27   : > { %1941 = vmatprep.mubr.msk.bf16.mxu0 %vm2255_vm0, %v2254_v1  ;;  %v1138_v27 = vrot.slane %v2546_v26, 3  ;;  %v1142_v37 = vrot.slane %v2574_v34, 3  ;;  %v1272_v40 = vshll.u32 %v1713_v15, 16 }
  0x28   : > { %v968_v63 = vsel %vm924_vm4, %v958_v31, %v967_v56  ;;  %v1140_v31 = vrot.slane %v2560_v29, 3 }
  0x2c   : > { %1830 = vmatmul.mubr.msk.bf16.gmra.mrb[8].mxu1 %vm241_vm1, %v217_v62  ;;  %v2491_v62 = vsel %vm797_vm2, %v805_v52, %v807_v59  ;;  %v1143_v52 = vsel %vm1132_vm6, %v1140_v31, %v1142_v37  ;;  %v1274_v59 = vrot.slane %v1272_v40, 4  ;;  %v2238_v37 = vld [vmem:[%s2312_s22 + $0x14] sm:$0xff]  }
  0x2d   : > { %1833 = vmatprep.mubr.msk.bf16.mxu1 %vm2255_vm0, %v2254_v1 }
  0x2e   : > { %1942 = vmatmul.mubr.msk.bf16.vlgmr.msra.gmra.mrb[0].mxu0 %vm241_vm1, %v941_v7  ;;  %v1744_v7 = vcombine.low %v2497_v5, %v2500_v30 }
  0x2f   : > { %1962 = vmatpush3.bf16.msra.mxu0 %v2214_v8  ;;  %1945 = vmatprep.mubr.msk.bf16.mxu0 %vm2255_vm0, %v2254_v1  ;;  %v1088_v8 = vld [vmem:[%s2312_s22 + $0x8] sm:$0x8] }
  0x30   : > { %1963 = vmatprep.subr.bf16.mxu0 %v2254_v1  ;;  %v1712_v9 = vcombine.low %v1088_v8, %v2386_v50 }
  0x32   : > { %v1133_v16 = vrot.slane %v1712_v9, 3  ;;  %v1264_v39 = vshll.u32 %v1712_v9, 16 }
  0x33   : > { %1964 = vmatpush3.bf16.msra.mxu0 %v2217_v18  ;;  %v1134_v18 = vrot.slane %v1713_v15, 3 }
  0x34   : > { %1834 = vmatmul.mubr.msk.bf16.gmra.mrb[12].mxu1 %vm241_vm1, %v225_v24  ;;  %1985 = vmatprep.subr.bf16.mxu0 %v2254_v1  ;;  %v2228_v24 = vld [vmem:[%s2729_s1 + $0x78] sm:$0xff]   ;;  %v1266_v57 = vrot.slane %v1264_v39, 4 }
  0x35   : > { %1837 = vmatprep.mubr.msk.bf16.mxu1 %vm2255_vm0, %v2254_v1  ;;  %v1135_v21 = vsel %vm1132_vm6, %v1133_v16, %v1134_v18  ;;  %v2237_v16 = vld [vmem:[%s2729_s1 + $0x88] sm:$0xff]  }
  0x36   : > { %1946 = vmatmul.mubr.msk.bf16.gmra.mrb[4].mxu0 %vm241_vm1, %v950_v25 }
  0x37   : > { %1949 = vmatprep.mubr.msk.bf16.mxu0 %vm2255_vm0, %v2254_v1 }
  0x3c   : > { %1838 = vmatmul.mubr.msk.bf16.gmra.mrb[16].mxu1 %vm241_vm1, %v228_v35  ;;  %v1141_v35 = vsel %vm1132_vm6, %v1138_v27, %v1140_v31 }
  0x3d   : > { %1845 = vmatprep.mubr.msk.bf16.mxu1 %vm2255_vm0, %v2254_v1 }
  0x3e   : > { %1950 = vmatmul.mubr.msk.bf16.gmra.mrb[8].mxu0 %vm241_vm1, %v959_v38  ;;  %v1261_v38 = vshrl.u32 %v1712_v9, 16  ;;  %v1287_v9 = vshrl.u32 %v2546_v26, 16 }
  0x3f   : > { %1953 = vmatprep.mubr.msk.bf16.mxu0 %vm2255_vm0, %v2254_v1 }
  0x44   : > { %1846 = vmatmul.mubr.msk.bf16.vlgmr.msra.gmra.mrb[0].mxu1 %vm241_vm1, %v2325_v12  ;;  %v976_v12 = vor.u32 %v975_v4, %v972_v3 }
  0x45   : > { %1866 = vmatpush3.bf16.msra.mxu1 %v2218_v61  ;;  %1849 = vmatprep.mubr.msk.bf16.mxu1 %vm2255_vm0, %v2254_v1  ;;  %v444_v61 = vrot.slane %v2363_v33, 1 }
  0x46   : > { %1954 = vmatmul.mubr.msk.bf16.gmra.mrb[12].mxu0 %vm241_vm1, %v968_v63  ;;  %1867 = vmatprep.subr.bf16.mxu1 %v2254_v1  ;;  %v977_v10 = vsel %vm924_vm4, %v967_v56, %v976_v12  ;;  %v1263_v56 = vrot.slane %v1261_v38, 3 }
  0x47   : > { %1957 = vmatprep.mubr.msk.bf16.mxu0 %vm2255_vm0, %v2254_v1  ;;  %v445_v12 = vsel %vm438_vm5, %v442_v6, %v444_v61 }
  0x48   : > { %v1267_v63 = vor.u32 %v1266_v57, %v1263_v56  ;;  %v617_v56 = vshrl.u32 %v2238_v37, 16  ;;  %v620_v57 = vshll.u32 %v2238_v37, 16 }
  0x49   : > { %1868 = vmatpush3.bf16.msra.mxu1 %v2224_v36 }
  0x4a   : > { %1889 = vmatprep.subr.bf16.mxu1 %v2254_v1 }
  0x4c   : > { %1850 = vmatmul.mubr.msk.bf16.gmra.mrb[4].mxu1 %vm241_vm1, %v2328_v13  ;;  %v1714_v13 = vcombine.low %v2456_v42, %v2460_v43 }
  0x4d   : > { %1853 = vmatprep.mubr.msk.bf16.mxu1 %vm2255_vm0, %v2254_v1 }
  0x4e   : > { %1958 = vmatmul.mubr.msk.bf16.gmra.mrb[16].mxu0 %vm241_vm1, %v977_v10  ;;  %v1136_v23 = vrot.slane %v1714_v13, 3  ;;  %v1278_v4 = vshrl.u32 %v1714_v13, 16  ;;  %v1281_v36 = vshll.u32 %v1714_v13, 16  ;;  %v600_v13 = vshrl.u32 %v2235_v17, 16 }
  0x4f   : > { %1965 = vmatprep.mubr.msk.bf16.mxu0 %vm2255_vm0, %v2254_v1 }
  0x50   : > { %v1137_v25 = vsel %vm1132_vm6, %v1134_v18, %v1136_v23  ;;  %v1139_v28 = vsel %vm1132_vm6, %v1136_v23, %v1138_v27  ;;  %v1280_v8 = vrot.slane %v1278_v4, 3  ;;  %v1283_v10 = vrot.slane %v1281_v36, 4  ;;  %v2239_v4 = vld [vmem:[%s2312_s22 + $0x1c] sm:$0xff]  }
  0x51   : > { %v603_v23 = vshll.u32 %v2235_v17, 16  ;;  %v1296_v27 = vshrl.u32 %v2560_v29, 16  ;;  %v602_v31 = vrot.slane %v600_v13, 1 }
  0x52   : > { %v1284_v6 = vor.u32 %v1283_v10, %v1280_v8  ;;  %v626_v8 = vshrl.u32 %v2239_v4, 16 }
  0x53   : > { %v1298_v39 = vrot.slane %v1296_v27, 3 }
  0x54   : > { %1854 = vmatmul.mubr.msk.bf16.gmra.mrb[8].mxu1 %vm241_vm1, %v2338_v19  ;;  %v446_v19 = vrot.slane %v1656_v20, 1  ;;  %v2236_v20 = vld [vmem:[%s2312_s22 + $0xc] sm:$0xff]  }
  0x55   : > { %1857 = vmatprep.mubr.msk.bf16.mxu1 %vm2255_vm0, %v2254_v1 }
  0x56   : > { %1966 = vmatmul.mubr.msk.bf16.vlgmr.msra.gmra.mrb[0].mxu0 %vm241_vm1, %v1135_v21  ;;  %v447_v44 = vsel %vm438_vm5, %v444_v61, %v446_v19  ;;  %v1289_v21 = vrot.slane %v1287_v9, 3 }
  0x57   : > { %1986 = vmatpush3.bf16.msra.mxu0 %v2223_v22  ;;  %1969 = vmatprep.mubr.msk.bf16.mxu0 %vm2255_vm0, %v2254_v1 }
  0x58   : > { %1987 = vmatprep.subr.bf16.mxu0 %v2254_v1 }
  0x5b   : > { %1988 = vmatpush3.bf16.msra.mxu0 %v2228_v24  ;;  %v608_v24 = vshrl.u32 %v2236_v20, 16 }
  0x5c   : > { %1858 = vmatmul.mubr.msk.bf16.gmra.mrb[12].mxu1 %vm241_vm1, %v2363_v33  ;;  %2009 = vmatprep.subr.bf16.mxu0 %v2254_v1  ;;  %v2232_v33 = vld [vmem:[%s2729_s1 + $0x80] sm:$0xff]  }
  0x5d   : > { %1861 = vmatprep.mubr.msk.bf16.mxu1 %vm2255_vm0, %v2254_v1 }
  0x5e   : > { %1970 = vmatmul.mubr.msk.bf16.gmra.mrb[4].mxu0 %vm241_vm1, %v1137_v25  ;;  %v611_v25 = vshll.u32 %v2236_v20, 16 }
  0x5f   : > { %1973 = vmatprep.mubr.msk.bf16.mxu0 %vm2255_vm0, %v2254_v1 }
  0x64   : > { %1862 = vmatmul.mubr.msk.bf16.gmra.mrb[16].mxu1 %vm241_vm1, %v2394_v54  ;;  %v2234_v54 = vld [vmem:[%s2729_s1 + $0x38] sm:$0xff]  }
  0x65   : > { %1869 = vmatprep.mubr.msk.bf16.mxu1 %vm2255_vm0, %v2254_v1 }
  0x66   : > { %1974 = vmatmul.mubr.msk.bf16.gmra.mrb[8].mxu0 %vm241_vm1, %v1139_v28  ;;  %v1299_v28 = vshll.u32 %v2560_v29, 16 }
  0x67   : > { %1977 = vmatprep.mubr.msk.bf16.mxu0 %vm2255_vm0, %v2254_v1 }
  0x6c   : > { %1870 = vmatmul.mubr.msk.bf16.vlgmr.msra.gmra.mrb[0].mxu1 %vm241_vm1, %v2416_v11  ;;  %v1269_v11 = vshrl.u32 %v1713_v15, 16  ;;  %v1290_v15 = vshll.u32 %v2546_v26, 16 }
  0x6d   : > { %1890 = vmatpush3.bf16.msra.mxu1 %v2229_v32  ;;  %1873 = vmatprep.mubr.msk.bf16.mxu1 %vm2255_vm0, %v2254_v1  ;;  %v605_v32 = vrot.slane %v603_v23, 2 }
  0x6e   : > { %1978 = vmatmul.mubr.msk.bf16.gmra.mrb[12].mxu0 %vm241_vm1, %v1141_v35  ;;  %1891 = vmatprep.subr.bf16.mxu1 %v2254_v1  ;;  %v1271_v58 = vrot.slane %v1269_v11, 3  ;;  %v1292_v22 = vrot.slane %v1290_v15, 4  ;;  %v610_v35 = vrot.slane %v608_v24, 1  ;;  %v1301_v11 = vrot.slane %v1299_v28, 4  ;;  %v2241_v15 = vld [vmem:[%s2312_s22 + $0x24] sm:$0xff]   ;;  %s2188_s22 = smul.u32 80, %s2732_s10 }
  0x6f   : > { %1981 = vmatprep.mubr.msk.bf16.mxu0 %vm2255_vm0, %v2254_v1  ;;  %v606_v40 = vor.u32 %v605_v32, %v602_v31  ;;  %v638_v17 = vshll.u32 %v2241_v15, 16 }
  0x70   : > { %v1275_v3 = vor.u32 %v1274_v59, %v1271_v58  ;;  %v1293_v26 = vor.u32 %v1292_v22, %v1289_v21  ;;  %v1302_v29 = vor.u32 %v1301_v11, %v1298_v39  ;;  %v1305_v58 = vshrl.u32 %v2574_v34, 16  ;;  %s2713_s28 = scalar_lea.vmem %s2730_s2, %s2188_s22 }
  0x71   : > { %1892 = vmatpush3.bf16.msra.mxu1 %v2234_v54  ;;  %v613_v54 = vrot.slane %v611_v25, 2  ;;  %v1308_v59 = vshll.u32 %v2574_v34, 16  ;;  %v629_v34 = vshll.u32 %v2239_v4, 16  ;;  %v640_v21 = vrot.slane %v638_v17, 2 }
  0x72   : > { %2033 = vmatprep.subr.bf16.mxu1 %v2254_v1  ;;  %v1285_v18 = vsel %vm1259_vm7, %v1275_v3, %v1284_v6  ;;  %v1294_v38 = vsel %vm1259_vm7, %v1284_v6, %v1293_v26  ;;  %v1303_v36 = vsel %vm1259_vm7, %v1293_v26, %v1302_v29  ;;  %v628_v6 = vrot.slane %v626_v8, 1 }
  0x73   : > { %v631_v9 = vrot.slane %v629_v34, 2 }
  0x74   : > { %1874 = vmatmul.mubr.msk.bf16.gmra.mrb[4].mxu1 %vm241_vm1, %v2421_v14  ;;  %v1276_v14 = vsel %vm1259_vm7, %v1267_v63, %v1275_v3  ;;  %v619_v63 = vrot.slane %v617_v56, 1  ;;  %v622_v3 = vrot.slane %v620_v57, 2 }
  0x75   : > { %1877 = vmatprep.mubr.msk.bf16.mxu1 %vm2255_vm0, %v2254_v1 }
  0x76   : > { %1982 = vmatmul.mubr.msk.bf16.gmra.mrb[16].mxu0 %vm241_vm1, %v1143_v52  ;;  %v614_v52 = vor.u32 %v613_v54, %v610_v35 }
  0x77   : > { %1989 = vmatprep.mubr.msk.bf16.mxu0 %vm2255_vm0, %v2254_v1 }
  0x78   : > { %v615_v61 = vsel %vm598_vm8, %v606_v40, %v614_v52 }
  0x7c   : > { %1878 = vmatmul.mubr.msk.bf16.gmra.mrb[8].mxu1 %vm241_vm1, %v445_v12  ;;  %v1307_v12 = vrot.slane %v1305_v58, 3 }
  0x7d   : > { %1881 = vmatprep.mubr.msk.bf16.mxu1 %vm2255_vm0, %v2254_v1 }
  0x7e   : > { %1990 = vmatmul.mubr.msk.bf16.vlgmr.msra.gmra.mrb[0].mxu0 %vm241_vm1, %v1276_v14  ;;  %v1310_v14 = vrot.slane %v1308_v59, 4 }
  0x7f   : > { %2010 = vmatpush3.bf16.msra.mxu0 %v2232_v33  ;;  %1993 = vmatprep.mubr.msk.bf16.mxu0 %vm2255_vm0, %v2254_v1  ;;  %v623_v33 = vor.u32 %v622_v3, %v619_v63 }
  0x80   : > { %2011 = vmatprep.subr.bf16.mxu0 %v2254_v1  ;;  %v1311_v10 = vor.u32 %v1310_v14, %v1307_v12 }
  0x83   : > { %2012 = vmatpush3.bf16.msra.mxu0 %v2237_v16  ;;  %v632_v16 = vor.u32 %v631_v9, %v628_v6 }
  0x84   : > { %1882 = vmatmul.mubr.msk.bf16.gmra.mrb[12].mxu1 %vm241_vm1, %v447_v44  ;;  %v635_v44 = vshrl.u32 %v2241_v15, 16 }
  0x85   : > { %1885 = vmatprep.mubr.msk.bf16.mxu1 %vm2255_vm0, %v2254_v1  ;;  %v633_v20 = vsel %vm598_vm8, %v623_v33, %v632_v16 }
  0x86   : > { %1994 = vmatmul.mubr.msk.bf16.gmra.mrb[4].mxu0 %vm241_vm1, %v1285_v18  ;;  %v637_v18 = vrot.slane %v635_v44, 1 }
  0x87   : > { %1997 = vmatprep.mubr.msk.bf16.mxu0 %vm2255_vm0, %v2254_v1 }
  0x8c   : > { %1886 = vmatmul.mubr.msk.bf16.gmra.mrb[16].mxu1 %vm241_vm1, %v446_v19  ;;  %v624_v19 = vsel %vm598_vm8, %v614_v52, %v623_v33 }
  0x8d   : > { %1893 = vmatprep.mubr.msk.bf16.mxu1 %vm2255_vm0, %v2254_v1 }
  0x8e   : > { %1998 = vmatmul.mubr.msk.bf16.gmra.mrb[8].mxu0 %vm241_vm1, %v1294_v38 }
  0x8f   : > { %2001 = vmatprep.mubr.msk.bf16.mxu0 %vm2255_vm0, %v2254_v1 }
  0x94   : > { %1894 = vmatmul.mubr.msk.bf16.vlgmr.msra.gmra.mrb[0].mxu1 %vm241_vm1, %v615_v61 }
  0x95   : > { %2035 = vmatpush3.bf16.msra.mxu1 %v2282_v0  ;;  %1897 = vmatprep.mubr.msk.bf16.mxu1 %vm2255_vm0, %v2254_v1  ;;  %v1312_v0 = vsel %vm1259_vm7, %v1302_v29, %v1311_v10 }
  0x96   : > { %2002 = vmatmul.mubr.msk.bf16.gmra.mrb[12].mxu0 %vm241_vm1, %v1303_v36  ;;  %2034 = vmatprep.subr.bf16.mxu1 %v2254_v1 }
  0x97   : > { %2005 = vmatprep.mubr.msk.bf16.mxu0 %vm2255_vm0, %v2254_v1 }
  0x99   : > { %2036 = vmatpush3.bf16.msra.mxu1 %v2289_v2  ;;  %v641_v2 = vor.u32 %v640_v21, %v637_v18 }
  0x9b   : > { %v642_v22 = vsel %vm598_vm8, %v632_v16, %v641_v2 }
  0x9c   : > { %1898 = vmatmul.mubr.msk.bf16.gmra.mrb[4].mxu1 %vm241_vm1, %v624_v19 }
  0x9d   : > { %1901 = vmatprep.mubr.msk.bf16.mxu1 %vm2255_vm0, %v2254_v1 }
  0x9e   : > { %2006 = vmatmul.mubr.msk.bf16.gmra.mrb[16].mxu0 %vm241_vm1, %v1312_v0 }
  0x9f   : > { %2013 = vmatprep.mubr.msk.bf16.mxu0 %vm2255_vm0, %v2254_v1 }
  0xa4   : > { %1902 = vmatmul.mubr.msk.bf16.gmra.mrb[8].mxu1 %vm241_vm1, %v633_v20 }
  0xa5   : > { %1905 = vmatprep.mubr.msk.bf16.mxu1 %vm2255_vm0, %v2254_v1 }
  0xa6   : > { %2014 = vmatmul.mubr.msk.bf16.vlgmr.msra.gmra.mrb[0].mxu0 %vm241_vm1, %v1740_v55 }
  0xa7   : > { %2017 = vmatprep.mubr.msk.bf16.mxu0 %vm2255_vm0, %v2254_v1 }
  0xac   : > { %1906 = vmatmul.mubr.msk.bf16.gmra.mrb[12].mxu1 %vm241_vm1, %v642_v22 }
  0xad   : > { %1909 = vmatprep.mubr.msk.bf16.mxu1 %vm2255_vm0, %v2254_v1 }
  0xae   : > { %2018 = vmatmul.mubr.msk.bf16.gmra.mrb[4].mxu0 %vm241_vm1, %v1741_v46 }
  0xaf   : > { %2021 = vmatprep.mubr.msk.bf16.mxu0 %vm2255_vm0, %v2254_v1 }
  0xb4   : > { %1910 = vmatmul.mubr.msk.bf16.gmra.mrb[16].mxu1 %vm241_vm1, %v641_v2 }
  0xb5   : > { %1929 = vmatprep.mubr.msk.bf16.mxu1 %vm2255_vm0, %v2254_v1 }
  0xb6   : > { %2022 = vmatmul.mubr.msk.bf16.gmra.mrb[8].mxu0 %vm241_vm1, %v1742_v49 }
  0xb7   : > { %2025 = vmatprep.mubr.msk.bf16.mxu0 %vm2255_vm0, %v2254_v1 }
  0xbc   : > { %1930 = vmatmul.mubr.msk.bf16.vlgmr.msra.gmra.mrb[12].mxu1 %vm241_vm1, %v2485_v60 }
  0xbd   : > { %1933 = vmatprep.mubr.msk.bf16.mxu1 %vm2255_vm0, %v2254_v1 }
  0xbe   : > { %2026 = vmatmul.mubr.msk.bf16.gmra.mrb[12].mxu0 %vm241_vm1, %v1743_v53 }
  0xbf   : > { %2029 = vmatprep.mubr.msk.bf16.mxu0 %vm2255_vm0, %v2254_v1 }
  0xc4   : > { %1934 = vmatmul.mubr.msk.bf16.gmra.mrb[16].mxu1 %vm241_vm1, %v2491_v62 }
  0xc6   : > { %2030 = vmatmul.mubr.msk.bf16.gmra.mrb[16].mxu0 %vm241_vm1, %v1744_v7 }
 0x167   : > { %v704_v50 = vpop.f32.mrb[0].mxu1 }
 0x168   : > { %v1895_v51 = vpop.f32.mrb[1].mxu1 }
 0x169   : > { %v707_v55 = vpop.f32.mrb[2].mxu1 }
 0x16a   : > { %v1896_v41 = vpop.f32.mrb[3].mxu1 }
 0x16f   : > { %v712_v42 = vpop.f32.mrb[4].mxu1 }
 0x170   : > { %v1899_v43 = vpop.f32.mrb[5].mxu1 }
 0x171   : > { %v715_v45 = vpop.f32.mrb[6].mxu1 }
 0x172   : > { %v1900_v46 = vpop.f32.mrb[7].mxu1 }
 0x177   : > { %v720_v47 = vpop.f32.mrb[8].mxu1 }
 0x178   : > { %v1903_v48 = vpop.f32.mrb[9].mxu1 }
 0x179   : > { %v723_v1 = vpop.f32.mrb[10].mxu1  ;;  %v1497_v49 = vpop.f32.mrb[0].mxu0 }
 0x17a   : > { %v1904_v53 = vpop.f32.mrb[11].mxu1  ;;  %v2037_v60 = vadd.f32 %v1497_v49, %v704_v50  ;;  %v2015_v62 = vpop.f32.mrb[1].mxu0 }
 0x17b   : > { %v1500_v5 = vpop.f32.mrb[2].mxu0 }
 0x17c   : > { %v1546_v30 = vmax.f32 %v2037_v60, 0.0  ;;  %v2038_v7 = vadd.f32 %v1500_v5, %v707_v55  ;;  %v2016_v13 = vpop.f32.mrb[3].mxu0 }
 0x17e   : > { %1556 = vst [vmem:[%s2713_s28] sm:$0xff] %v1546_v30  ;;  %v1547_v23 = vmax.f32 %v2038_v7, 0.0 }
 0x180   : > { %1557 = vst [vmem:[%s2713_s28 + $0x8] sm:$0xff] %v1547_v23 }
 0x181   : > { %v1505_v24 = vpop.f32.mrb[4].mxu0 }
 0x182   : > { %v2039_v25 = vadd.f32 %v1505_v24, %v712_v42  ;;  %v2019_v26 = vpop.f32.mrb[5].mxu0 }
 0x183   : > { %v1508_v27 = vpop.f32.mrb[6].mxu0 }
 0x184   : > { %v1548_v28 = vmax.f32 %v2039_v25, 0.0  ;;  %v2040_v31 = vadd.f32 %v1508_v27, %v715_v45  ;;  %v2020_v32 = vpop.f32.mrb[7].mxu0 }
 0x186   : > { %1558 = vst [vmem:[%s2713_s28 + $0x10] sm:$0xff] %v1548_v28  ;;  %v1549_v35 = vmax.f32 %v2040_v31, 0.0 }
 0x188   : > { %1559 = vst [vmem:[%s2713_s28 + $0x18] sm:$0xff] %v1549_v35 }
 0x189   : > { %v1513_v54 = vpop.f32.mrb[8].mxu0 }
 0x18a   : > { %v2041_v37 = vadd.f32 %v1513_v54, %v720_v47  ;;  %v2023_v38 = vpop.f32.mrb[9].mxu0 }
 0x18b   : > { %v1516_v39 = vpop.f32.mrb[10].mxu0 }
 0x18c   : > { %v1550_v11 = vmax.f32 %v2041_v37, 0.0  ;;  %v2042_v40 = vadd.f32 %v1516_v39, %v723_v1  ;;  %v2024_v52 = vpop.f32.mrb[11].mxu0 }
 0x18e   : > { %1560 = vst [vmem:[%s2713_s28 + $0x20] sm:$0xff] %v1550_v11  ;;  %v1551_v56 = vmax.f32 %v2042_v40, 0.0 }
 0x18f   : > { %v894_v57 = vpop.f32.mrb[12].mxu1 }
 0x190   : > { %1561 = vst [vmem:[%s2713_s28 + $0x28] sm:$0xff] %v1551_v56  ;;  %v1931_v29 = vpop.f32.mrb[13].mxu1 }
 0x191   : > { %v897_v58 = vpop.f32.mrb[14].mxu1  ;;  %v1521_v59 = vpop.f32.mrb[12].mxu0 }
 0x192   : > { %v1932_v61 = vpop.f32.mrb[15].mxu1  ;;  %v2043_v63 = vadd.f32 %v1521_v59, %v894_v57  ;;  %v2027_v3 = vpop.f32.mrb[13].mxu0 }
 0x193   : > { %v1524_v4 = vpop.f32.mrb[14].mxu0 }
 0x194   : > { %v1552_v36 = vmax.f32 %v2043_v63, 0.0  ;;  %v2044_v12 = vadd.f32 %v1524_v4, %v897_v58  ;;  %v2028_v14 = vpop.f32.mrb[15].mxu0 }
 0x196   : > { %1562 = vst [vmem:[%s2713_s28 + $0x30] sm:$0xff] %v1552_v36  ;;  %v1553_v33 = vmax.f32 %v2044_v12, 0.0 }
 0x197   : > { %v902_v8 = vpop.f32.mrb[16].mxu1 }
 0x198   : > { %1563 = vst [vmem:[%s2713_s28 + $0x38] sm:$0xff] %v1553_v33  ;;  %v1935_v34 = vpop.f32.mrb[17].mxu1 }
 0x199   : > { %v905_v10 = vpop.f32.mrb[18].mxu1  ;;  %v1529_v19 = vpop.f32.mrb[16].mxu0 }
 0x19a   : > { %v1936_v6 = vpop.f32.mrb[19].mxu1  ;;  %v2045_v9 = vadd.f32 %v1529_v19, %v902_v8  ;;  %v2031_v15 = vpop.f32.mrb[17].mxu0 }
 0x19b   : > { %v1532_v0 = vpop.f32.mrb[18].mxu0 }
 0x19c   : > { %v1554_v16 = vmax.f32 %v2045_v9, 0.0  ;;  %v2046_v44 = vadd.f32 %v1532_v0, %v905_v10  ;;  %v2032_v17 = vpop.f32.mrb[19].mxu0 }
 0x19e   : > { %1564 = vst [vmem:[%s2713_s28 + $0x40] sm:$0xff] %v1554_v16  ;;  %v1555_v20 = vmax.f32 %v2046_v44, 0.0 }
 0x1a0   : > { %1565 = vst [vmem:[%s2713_s28 + $0x48] sm:$0x1f] %v1555_v20 }
 0x1a1 PF: > { %s12_s9 = sadd.s32 1, %s2252_s9  }
 0x1a2   : > { %p9_p4 = scmp.ge.s32.totalorder %s12_s9, 4  }
 0x1a4   :  { %11 = sbr.rel (!%p9_p4) target bundleno = 1 (0x1), region = 66 }

// kernel: squeezenet_forward.41
= control target key start
LH: loop header
LB: loop body
LE: loop exit
PB: predicated region body
PF: predicated region fallthrough
CT: control target
= control target key end

     0   :  { %s310_s0 = inlined_call_operand.vmem [shape: f32[9,24,256], index: 0, kind: input, shape index: {}]   ;;  %s311_s1 = inlined_call_operand.vmem [shape: f32[24,256], index: 1, kind: output, shape index: {}]  }
   0x1   :  { %v8_v0 = vld [vmem:[%s310_s0] sm:$0xff]  ;;  %v14_v1 = vld [vmem:[%s310_s0 + $0x30] sm:$0xff]  ;;  %v9_v6 = vld [vmem:[%s310_s0 + $0x8] sm:$0xff] }
   0x2   :  { %v20_v2 = vld [vmem:[%s310_s0 + $0x60] sm:$0xff]  ;;  %v62_v3 = vmax.f32 %v8_v0, %v14_v1  ;;  %v26_v4 = vld [vmem:[%s310_s0 + $0x90] sm:$0xff]  ;;  %v15_v7 = vld [vmem:[%s310_s0 + $0x38] sm:$0xff] }
   0x3   :  { %v21_v8 = vld [vmem:[%s310_s0 + $0x68] sm:$0xff]  ;;  %v32_v9 = vld [vmem:[%s310_s0 + $0xc0] sm:$0xff]  ;;  %v70_v10 = vmax.f32 %v9_v6, %v15_v7  ;;  %v38_v11 = vld [vmem:[%s310_s0 + $0xf0] sm:$0xff] }
   0x4   :  { %v63_v5 = vmax.f32 %v62_v3, %v20_v2  ;;  %v27_v13 = vld [vmem:[%s310_s0 + $0x98] sm:$0xff]  ;;  %v10_v15 = vld [vmem:[%s310_s0 + $0x10] sm:$0xff]  ;;  %v16_v16 = vld [vmem:[%s310_s0 + $0x40] sm:$0xff] }
   0x5   :  { %v71_v14 = vmax.f32 %v70_v10, %v21_v8  ;;  %v22_v17 = vld [vmem:[%s310_s0 + $0x70] sm:$0xff]  ;;  %v33_v19 = vld [vmem:[%s310_s0 + $0xc8] sm:$0xff]  ;;  %v78_v20 = vmax.f32 %v10_v15, %v16_v16  ;;  %v44_v21 = vld [vmem:[%s310_s0 + $0x120] sm:$0xff] }
   0x6   :  { %v64_v12 = vmax.f32 %v63_v5, %v26_v4  ;;  %v39_v22 = vld [vmem:[%s310_s0 + $0xf8] sm:$0xff]  ;;  %v28_v24 = vld [vmem:[%s310_s0 + $0xa0] sm:$0xff]  ;;  %v17_v28 = vld [vmem:[%s310_s0 + $0x48] sm:$0xff] }
   0x7   :  { %v72_v23 = vmax.f32 %v71_v14, %v27_v13  ;;  %v79_v26 = vmax.f32 %v78_v20, %v22_v17  ;;  %v11_v27 = vld [vmem:[%s310_s0 + $0x18] sm:$0xff]  ;;  %v50_v30 = vld [vmem:[%s310_s0 + $0x150] sm:$0xff]  ;;  %v56_v31 = vld [vmem:[%s310_s0 + $0x180] sm:$0xff] }
   0x8   :  { %v65_v18 = vmax.f32 %v64_v12, %v32_v9  ;;  %v23_v29 = vld [vmem:[%s310_s0 + $0x78] sm:$0xff]  ;;  %v34_v33 = vld [vmem:[%s310_s0 + $0xd0] sm:$0xff]  ;;  %v86_v34 = vmax.f32 %v11_v27, %v17_v28  ;;  %v45_v36 = vld [vmem:[%s310_s0 + $0x128] sm:$0xff] }
   0x9   :  { %v73_v32 = vmax.f32 %v72_v23, %v33_v19  ;;  %v40_v37 = vld [vmem:[%s310_s0 + $0x100] sm:$0xff]  ;;  %v80_v38 = vmax.f32 %v79_v26, %v28_v24  ;;  %v29_v39 = vld [vmem:[%s310_s0 + $0xa8] sm:$0xff]  ;;  %v18_v43 = vld [vmem:[%s310_s0 + $0x50] sm:$0xff] }
   0xa   :  { %v66_v25 = vmax.f32 %v65_v18, %v38_v11  ;;  %v87_v41 = vmax.f32 %v86_v34, %v23_v29  ;;  %v12_v42 = vld [vmem:[%s310_s0 + $0x20] sm:$0xff]  ;;  %v51_v46 = vld [vmem:[%s310_s0 + $0x158] sm:$0xff]  ;;  %v57_v47 = vld [vmem:[%s310_s0 + $0x188] sm:$0xff] }
   0xb   :  { %v74_v40 = vmax.f32 %v73_v32, %v39_v22  ;;  %v24_v44 = vld [vmem:[%s310_s0 + $0x80] sm:$0xff]  ;;  %v81_v48 = vmax.f32 %v80_v38, %v34_v33  ;;  %v35_v49 = vld [vmem:[%s310_s0 + $0xd8] sm:$0xff]  ;;  %v94_v50 = vmax.f32 %v12_v42, %v18_v43  ;;  %v46_v52 = vld [vmem:[%s310_s0 + $0x130] sm:$0xff] }
   0xc   :  { %v67_v35 = vmax.f32 %v66_v25, %v44_v21  ;;  %v41_v53 = vld [vmem:[%s310_s0 + $0x108] sm:$0xff]  ;;  %v88_v54 = vmax.f32 %v87_v41, %v29_v39  ;;  %v30_v55 = vld [vmem:[%s310_s0 + $0xb0] sm:$0xff]  ;;  %v19_v60 = vld [vmem:[%s310_s0 + $0x58] sm:$0xff] }
   0xd   :  { %v75_v51 = vmax.f32 %v74_v40, %v45_v36  ;;  %v82_v57 = vmax.f32 %v81_v48, %v40_v37  ;;  %v95_v58 = vmax.f32 %v94_v50, %v24_v44  ;;  %v13_v59 = vld [vmem:[%s310_s0 + $0x28] sm:$0xff]  ;;  %v52_v63 = vld [vmem:[%s310_s0 + $0x160] sm:$0xff]  ;;  %v47_v4 = vld [vmem:[%s310_s0 + $0x138] sm:$0xff] }
   0xe   :  { %v68_v45 = vmax.f32 %v67_v35, %v50_v30  ;;  %v25_v61 = vld [vmem:[%s310_s0 + $0x88] sm:$0xff]  ;;  %v89_v0 = vmax.f32 %v88_v54, %v35_v49  ;;  %v36_v1 = vld [vmem:[%s310_s0 + $0xe0] sm:$0xff]  ;;  %v102_v2 = vmax.f32 %v13_v59, %v19_v60  ;;  %v31_v6 = vld [vmem:[%s310_s0 + $0xb8] sm:$0xff] }
   0xf   :  { %v76_v62 = vmax.f32 %v75_v51, %v51_v46  ;;  %v83_v3 = vmax.f32 %v82_v57, %v46_v52  ;;  %v96_v5 = vmax.f32 %v95_v58, %v30_v55  ;;  %v58_v8 = vld [vmem:[%s310_s0 + $0x190] sm:$0xff]  ;;  %v53_v13 = vld [vmem:[%s310_s0 + $0x168] sm:$0xff]  ;;  %v48_v17 = vld [vmem:[%s310_s0 + $0x140] sm:$0xff] }
  0x10   :  { %v69_v56 = vmax.f32 %v68_v45, %v56_v31  ;;  %v90_v9 = vmax.f32 %v89_v0, %v41_v53  ;;  %v42_v10 = vld [vmem:[%s310_s0 + $0x110] sm:$0xff]  ;;  %v103_v11 = vmax.f32 %v102_v2, %v25_v61  ;;  %v37_v15 = vld [vmem:[%s310_s0 + $0xe8] sm:$0xff]  ;;  %v59_v20 = vld [vmem:[%s310_s0 + $0x198] sm:$0xff] }
  0x11   :  { %v77_v7 = vmax.f32 %v76_v62, %v57_v47  ;;  %v84_v12 = vmax.f32 %v83_v3, %v52_v63  ;;  %v97_v14 = vmax.f32 %v96_v5, %v36_v1  ;;  %v43_v22 = vld [vmem:[%s310_s0 + $0x118] sm:$0xff]  ;;  %v54_v24 = vld [vmem:[%s310_s0 + $0x170] sm:$0xff]  ;;  %v49_v27 = vld [vmem:[%s310_s0 + $0x148] sm:$0xff] }
  0x12   :  { %110 = vst [vmem:[%s311_s1] sm:$0xff] %v69_v56  ;;  %v91_v16 = vmax.f32 %v90_v9, %v47_v4  ;;  %v104_v18 = vmax.f32 %v103_v11, %v31_v6  ;;  %v60_v29 = vld [vmem:[%s310_s0 + $0x1a0] sm:$0xff]  ;;  %v55_v32 = vld [vmem:[%s310_s0 + $0x178] sm:$0xff]  ;;  %v61_v35 = vld [vmem:[%s310_s0 + $0x1a8] sm:$0xff] }
  0x13   :  { %111 = vst [vmem:[%s311_s1 + $0x8] sm:$0xff] %v77_v7  ;;  %v85_v19 = vmax.f32 %v84_v12, %v58_v8  ;;  %v98_v21 = vmax.f32 %v97_v14, %v42_v10 }
  0x14   :  { %v92_v23 = vmax.f32 %v91_v16, %v53_v13  ;;  %v105_v25 = vmax.f32 %v104_v18, %v37_v15 }
  0x15   :  { %112 = vst [vmem:[%s311_s1 + $0x10] sm:$0xff] %v85_v19  ;;  %v99_v26 = vmax.f32 %v98_v21, %v48_v17 }
  0x16   :  { %v93_v28 = vmax.f32 %v92_v23, %v59_v20  ;;  %v106_v30 = vmax.f32 %v105_v25, %v43_v22 }
  0x17   :  { %v100_v31 = vmax.f32 %v99_v26, %v54_v24 }
  0x18   :  { %113 = vst [vmem:[%s311_s1 + $0x18] sm:$0xff] %v93_v28  ;;  %v107_v33 = vmax.f32 %v106_v30, %v49_v27 }
  0x19   :  { %v101_v34 = vmax.f32 %v100_v31, %v60_v29 }
  0x1a   :  { %v108_v36 = vmax.f32 %v107_v33, %v55_v32 }
  0x1b   :  { %114 = vst [vmem:[%s311_s1 + $0x20] sm:$0xff] %v101_v34 }
  0x1c   :  { %v109_v37 = vmax.f32 %v108_v36, %v61_v35 }
  0x1e   :  { %115 = vst [vmem:[%s311_s1 + $0x28] sm:$0xff] %v109_v37 }

// kernel: squeezenet_forward.42
= control target key start
LH: loop header
LB: loop body
LE: loop exit
PB: predicated region body
PF: predicated region fallthrough
CT: control target
= control target key end

     0   :  { %vm16_vm0 = vcmask 261120   ;;  %v328_v21 = vmov 0.0   ;;  %s419_s1 = inlined_call_operand.vmem [shape: bf16[256,32], index: 1, kind: input, shape index: {}]   ;;  %s420_s0 = inlined_call_operand.vmem [shape: bf16[24,256], index: 0, kind: input, shape index: {}]   ;;  %s421_s2 = inlined_call_operand.vmem [shape: f32[24,32], index: 2, kind: output, shape index: {}]  }
   0x1   :  { %v307_v0 = vld [vmem:[%s419_s1 + $0x40] sm:$0xff]   ;;  %v309_v2 = vld [vmem:[%s419_s1 + $0x48] sm:$0xff]   ;;  %v311_v4 = vld [vmem:[%s419_s1 + $0x50] sm:$0xff]   ;;  %17 = vst.msk [vmem:[#allocation2] sm:$0xff] %vm16_vm0, %v328_v21 }
   0x2   :  { %v308_v1 = vld [vmem:[%s419_s1] sm:$0xff]   ;;  %262 = vmatprep.subr.bf16.mxu0 %v307_v0  ;;  %290 = vmatprep.subr.bf16.mxu1 %v307_v0  ;;  %v310_v3 = vld [vmem:[%s419_s1 + $0x8] sm:$0xff]   ;;  %v312_v5 = vld [vmem:[%s419_s1 + $0x10] sm:$0xff]   ;;  %18 = vst.msk [vmem:[#allocation2 + $0x8] sm:$0xff] %vm16_vm0, %v328_v21 }
   0x3   :  { %263 = vmatpush3.bf16.msra.mxu0 %v308_v1  ;;  %298 = vmatpush3.bf16.msra.mxu1 %v308_v1  ;;  %v313_v6 = vld [vmem:[%s419_s1 + $0x58] sm:$0xff]   ;;  %v315_v8 = vld [vmem:[%s419_s1 + $0x60] sm:$0xff]   ;;  %v317_v10 = vld [vmem:[%s419_s1 + $0x68] sm:$0xff]   ;;  %19 = vst.msk [vmem:[#allocation2 + $0x10] sm:$0xff] %vm16_vm0, %v328_v21 }
   0x4   :  { %264 = vmatprep.subr.bf16.mxu0 %v309_v2  ;;  %291 = vmatprep.subr.bf16.mxu1 %v309_v2  ;;  %v314_v7 = vld [vmem:[%s419_s1 + $0x18] sm:$0xff]   ;;  %v316_v9 = vld [vmem:[%s419_s1 + $0x20] sm:$0xff]   ;;  %v25_v12 = vld [vmem:[%s420_s0 + $0x10] sm:$0xff] }
   0x5   :  { %v325_v11 = vld [vmem:[%s420_s0 + $0x4] ss:$8 sps:$4 sm:$0xff]   ;;  %v245_v13 = vcombine.high %v25_v12, %v25_v12  ;;  %v319_v15 = vld [vmem:[%s419_s1 + $0x70] sm:$0xff]   ;;  %v321_v17 = vld [vmem:[%s419_s1 + $0x78] sm:$0xff]   ;;  %v244_v20 = vcombine.low %v25_v12, %v25_v12 }
   0x6   :  { %v318_v14 = vld [vmem:[%s419_s1 + $0x28] sm:$0xff]   ;;  %203 = vmatprep.mubr.bf16.mxu0 %v325_v11  ;;  %v320_v16 = vld [vmem:[%s419_s1 + $0x30] sm:$0xff]   ;;  %v322_v18 = vld [vmem:[%s419_s1 + $0x38] sm:$0xff]  }
   0x7   :  { %265 = vmatpush3.bf16.msra.mxu0 %v310_v3  ;;  %299 = vmatpush3.bf16.msra.mxu1 %v310_v3  ;;  %v323_v19 = vld [vmem:[%s420_s0] ss:$8 sps:$4 sm:$0xff]  }
   0x8   :  { %266 = vmatprep.subr.bf16.mxu0 %v311_v4  ;;  %292 = vmatprep.subr.bf16.mxu1 %v311_v4  ;;  %v20_v24 = vld [vmem:[#allocation2] sm:$0xff] }
   0x9   :  { %211 = vmatprep.mubr.bf16.mxu1 %v245_v13  ;;  %v21_v32 = vld [vmem:[#allocation2 + $0x8] sm:$0xff] }
   0xa   :  { %v22_v26 = vld [vmem:[#allocation2 + $0x10] sm:$0xff] }
   0xb   :  { %267 = vmatpush3.bf16.msra.mxu0 %v312_v5  ;;  %300 = vmatpush3.bf16.msra.mxu1 %v312_v5 }
   0xc   :  { %268 = vmatprep.subr.bf16.mxu0 %v313_v6  ;;  %293 = vmatprep.subr.bf16.mxu1 %v313_v6 }
   0xf   :  { %269 = vmatpush3.bf16.msra.mxu0 %v314_v7  ;;  %301 = vmatpush3.bf16.msra.mxu1 %v314_v7 }
  0x10   :  { %270 = vmatprep.subr.bf16.mxu0 %v315_v8  ;;  %294 = vmatprep.subr.bf16.mxu1 %v315_v8 }
  0x13   :  { %271 = vmatpush3.bf16.msra.mxu0 %v316_v9  ;;  %302 = vmatpush3.bf16.msra.mxu1 %v316_v9 }
  0x14   :  { %272 = vmatprep.subr.bf16.mxu0 %v317_v10  ;;  %295 = vmatprep.subr.bf16.mxu1 %v317_v10 }
  0x17   :  { %273 = vmatpush3.bf16.msra.mxu0 %v318_v14  ;;  %303 = vmatpush3.bf16.msra.mxu1 %v318_v14 }
  0x18   :  { %274 = vmatprep.subr.bf16.mxu0 %v319_v15  ;;  %296 = vmatprep.subr.bf16.mxu1 %v319_v15 }
  0x1b   :  { %275 = vmatpush3.bf16.msra.mxu0 %v320_v16  ;;  %304 = vmatpush3.bf16.msra.mxu1 %v320_v16 }
  0x1c   :  { %276 = vmatprep.subr.bf16.mxu0 %v321_v17  ;;  %297 = vmatprep.subr.bf16.mxu1 %v321_v17 }
  0x1f   :  { %277 = vmatpush3.bf16.msra.mxu0 %v322_v18  ;;  %305 = vmatpush3.bf16.msra.mxu1 %v322_v18 }
  0x22   :  { %204 = vmatmul.mubr.bf16.vlgmr.msra.gmra.mrb[0].mxu0 %v323_v19  ;;  %212 = vmatmul.mubr.bf16.vlgmr.msra.gmra.mrb[0].mxu1 %v244_v20 }
  0xf5   :  { %v278_v22 = vpop.f32.mrb[0].mxu0  ;;  %v284_v23 = vpop.f32.mrb[0].mxu1 }
  0xf6   :  { %v279_v25 = vpop.f32.mrb[1].mxu0  ;;  %v285_v27 = vpop.f32.mrb[1].mxu1 }
  0xf7   :  { %v280_v28 = vadd.f32 %v279_v25, %v278_v22  ;;  %v286_v29 = vadd.f32 %v285_v27, %v284_v23  ;;  %v281_v30 = vpop.f32.mrb[2].mxu0  ;;  %v287_v31 = vpop.f32.mrb[2].mxu1 }
  0xf8   :  { %v282_v33 = vpop.f32.mrb[3].mxu0  ;;  %v288_v34 = vpop.f32.mrb[3].mxu1 }
  0xf9   :  { %v219_v35 = vadd.f32 %v280_v28, %v20_v24  ;;  %v221_v36 = vadd.f32 %v286_v29, %v22_v26  ;;  %v283_v37 = vadd.f32 %v282_v33, %v281_v30 }
  0xfb   :  { %223 = vst.msk [vmem:[#allocation2] sm:$0xff] %vm16_vm0, %v219_v35  ;;  %225 = vst.msk [vmem:[#allocation2 + $0x10] sm:$0xff] %vm16_vm0, %v221_v36  ;;  %v220_v38 = vadd.f32 %v283_v37, %v21_v32 }
  0xfd   :  { %224 = vst.msk [vmem:[#allocation2 + $0x8] sm:$0xff] %vm16_vm0, %v220_v38 }
 0x102   :  { %v229_v39 = vld [vmem:[#allocation2] sm:$0xff]  ;;  %v231_v40 = vld [vmem:[#allocation2 + $0x10] sm:$0xff] }
 0x103   :  { %v232_v41 = vmax.f32 %v229_v39, 0.0  ;;  %v234_v42 = vmax.f32 %v231_v40, 0.0 }
 0x104   :  { %v230_v43 = vld [vmem:[#allocation2 + $0x8] sm:$0xff] }
 0x105   :  { %235 = vst.msk [vmem:[%s421_s2] sm:$0xff] %vm16_vm0, %v232_v41  ;;  %237 = vst.msk [vmem:[%s421_s2 + $0x10] sm:$0xff] %vm16_vm0, %v234_v42  ;;  %v233_v44 = vmax.f32 %v230_v43, 0.0 }
 0x107   :  { %236 = vst.msk [vmem:[%s421_s2 + $0x8] sm:$0xff] %vm16_vm0, %v233_v44 }

// kernel: squeezenet_forward.43
= control target key start
LH: loop header
LB: loop body
LE: loop exit
PB: predicated region body
PF: predicated region fallthrough
CT: control target
= control target key end

     0   :  { %vm49_vm0 = vcmask 261120   ;;  %s184_s1 = inlined_call_operand.vmem [shape: bf16[32,128], index: 1, kind: input, shape index: {}]   ;;  %s185_s0 = inlined_call_operand.vmem [shape: bf16[24,32], index: 0, kind: input, shape index: {}]   ;;  %s186_s2 = inlined_call_operand.vmem [shape: f32[24,128], index: 2, kind: output, shape index: {}]  }
   0x1   :  { %v144_v0 = vld [vmem:[%s184_s1] sm:$0xff]   ;;  %v145_v1 = vld [vmem:[%s184_s1 + $0x8] sm:$0xff]  }
   0x2   :  { %136 = vmatprep.subr.bf16.mxu0 %v144_v0  ;;  %v146_v2 = vld [vmem:[%s185_s0] sm:$0xff]   ;;  %v147_v3 = vld [vmem:[%s185_s0 + $0x8] ss:$0 sps:$4 sm:$0xff]  }
   0x3   :  { %137 = vmatpush3.bf16.msra.mxu0 %v144_v0  ;;  %140 = vmatprep.mubr.msk.bf16.mxu0 %vm49_vm0, %v146_v2 }
   0x4   :  { %138 = vmatprep.subr.bf16.mxu0 %v145_v1 }
   0x7   :  { %139 = vmatpush3.bf16.msra.mxu0 %v145_v1 }
   0xa   :  { %141 = vmatmul.mubr.msk.bf16.vlgmr.msra.gmra.mrb[0].mxu0 %vm49_vm0, %v147_v3 }
  0xdd   :  { %v142_v4 = vpop.f32.mrb[0].mxu0 }
  0xde   :  { %v118_v5 = vmax.f32 %v142_v4, 0.0  ;;  %v90_v6 = vpop.f32.mrb[1].mxu0 }
  0xdf   :  { %v116_v7 = vmax.f32 %v90_v6, 0.0  ;;  %v143_v8 = vpop.f32.mrb[2].mxu0 }
  0xe0   :  { %121 = vst [vmem:[%s186_s2 + $0x10] sm:$0xff] %v118_v5  ;;  %v93_v9 = vpop.f32.mrb[3].mxu0 }
  0xe1   :  { %119 = vst [vmem:[%s186_s2] sm:$0xff] %v116_v7  ;;  %v117_v10 = vmax.f32 %v93_v9, 0.0 }
  0xe3   :  { %120 = vst [vmem:[%s186_s2 + $0x8] sm:$0xff] %v117_v10 }

// kernel: squeezenet_forward.44
= control target key start
LH: loop header
LB: loop body
LE: loop exit
PB: predicated region body
PF: predicated region fallthrough
CT: control target
= control target key end

     0   :  { %s1283_s9 = smov 0   ;;  %s1421_s0 = inlined_call_operand.vmem [shape: bf16[2,42,32], index: 0, kind: input, shape index: {}]   ;;  %s1422_s1 = inlined_call_operand.vmem [shape: bf16[9,32,128], index: 1, kind: input, shape index: {}]   ;;  %s1423_s2 = inlined_call_operand.vmem [shape: f32[2,21,128], index: 2, kind: output, shape index: {}]  }
   0x1 LB: > { %s993_s10 = sadd.s32 4294967295, %s1266_s9   ;;  %p997_p0 = scmp.ge.s32.totalorder %s1266_s9, 1  ;;  %s1266_s9 = sphi %s1283_s9, %s12_s9  }
   0x2   : > { %p112_p1 = scmp.lt.s32.totalorder %s1266_s9, 3 }
   0x4   : > { %p113_p2 = pnand %p997_p0, %p112_p1 }
   0x5   : > { %v1230_v0 = vld [vmem:[%s1422_s1 + $0x40] sm:$0xff] (!%p113_p2)   ;;  %p134_p3 = scmp.lt.s32.totalorder (!%p113_p2), %s993_s10, 1  ;;  %v1231_v1 = vld [vmem:[%s1422_s1 + $0x48] sm:$0xff] (!%p113_p2)   ;;  %v1232_v2 = vld [vmem:[%s1422_s1 + $0x10] sm:$0xff] (!%p113_p2)   ;;  %vm193_vm0 = vcmask (!%p113_p2), 261120   ;;  %vm689_vm2 = vcmask (!%p113_p2), 1044480  }
   0x6   : > { %116 = sbr.rel (%p113_p2) target bundleno = 289 (0x121), region = 28  ;;  %1150 = vmatprep.subr.bf16.mxu0 (!%p113_p2), %v1230_v0  ;;  %v1237_v3 = vld [vmem:[%s1422_s1 + $0x50] sm:$0xff] (!%p113_p2)   ;;  %1118 = vmatprep.subr.bf16.mxu1 (!%p113_p2), %v1232_v2  ;;  %v1238_v4 = vld [vmem:[%s1422_s1 + $0x18] sm:$0xff] (!%p113_p2)   ;;  %v1242_v12 = vld [vmem:[%s1422_s1] sm:$0xff] (!%p113_p2)   ;;  %vm165_vm1 = vsmask.f32 (!%p113_p2), 7424 }
   0x7   : > { %1151 = vmatpush3.bf16.msra.mxu0 (!%p113_p2), %v1230_v0  ;;  %1119 = vmatpush3.bf16.msra.mxu1 (!%p113_p2), %v1232_v2  ;;  %v1241_v9 = vld [vmem:[%s1422_s1 + $0x58] sm:$0xff] (!%p113_p2)   ;;  %v1243_v25 = vld [vmem:[%s1422_s1 + $0x60] sm:$0xff] (!%p113_p2)   ;;  %v1244_v38 = vld [vmem:[%s1422_s1 + $0x8] sm:$0xff] (!%p113_p2)   ;;  %vm325_vm3 = vcmask (!%p113_p2), 1046528   ;;  %vm417_vm4 = vsmask.f32 (!%p113_p2), 4352 }
   0x8   : > { %1152 = vmatprep.subr.bf16.mxu0 (!%p113_p2), %v1231_v1  ;;  %1120 = vmatprep.subr.bf16.mxu1 (!%p113_p2), %v1238_v4  ;;  %v1245_v41 = vld [vmem:[%s1422_s1 + $0x68] sm:$0xff] (!%p113_p2)   ;;  %v1246_v48 = vld [vmem:[%s1422_s1 + $0x20] sm:$0xff] (!%p113_p2)   ;;  %v1249_v52 = vld [vmem:[%s1422_s1 + $0x70] sm:$0xff] (!%p113_p2)  }
   0xb   : > { %1153 = vmatpush3.bf16.msra.mxu0 (!%p113_p2), %v1231_v1  ;;  %1121 = vmatpush3.bf16.msra.mxu1 (!%p113_p2), %v1238_v4 }
   0xc   : > { %1158 = vmatprep.subr.bf16.mxu0 (!%p113_p2), %v1237_v3  ;;  %1126 = vmatprep.subr.bf16.mxu1 (!%p113_p2), %v1242_v12 }
   0xd   : > { %s1425_s10 = smov (!%p134_p3, %s993_s10), 1 }
   0xe   : > { %s1221_s19 = smul.u32 24, %s1425_s10 }
  0x10   : > { %s1314_s24 = scalar_lea.vmem %s1421_s0, %s1221_s19  ;;  %s143_s29 = scalar_lea.vmem %s1423_s2, %s1221_s19 }
  0x11   : > { %v1317_v5 = vld [vmem:[%s1314_s24 + $0x4] sm:$0xf]  ;;  %v1320_v6 = vld [vmem:[%s1314_s24 + $0x8] sm:$0xf]  ;;  %v145_v8 = vld [vmem:[%s1314_s24] sm:$0xf] }
  0x12   : > { %v1038_v7 = vcombine.low %v1317_v5, %v1320_v6  ;;  %v1236_v10 = vld [vmem:[%s1314_s24 + $0xc] ss:$0 sps:$4 sm:$0x77]   ;;  %v146_v11 = vld [vmem:[%s1314_s24 + $0x4] sm:$0xf] }
  0x13   : > { %v1004_v15 = vcombine.low %v145_v8, %v146_v11  ;;  %v1336_v16 = vld [vmem:[%s1314_s24 + $0x8] ss:$0 sps:$4 sm:$0x77]   ;;  %v594_v17 = vshll.u32 %v1236_v10, 16  ;;  %v598_v27 = vshrl.u32 %v1236_v10, 16 }
  0x14   : > { %1154 = vmatprep.mubr.msk.bf16.mxu0 %vm193_vm0, %v1038_v7  ;;  %v588_v13 = vshrl.u32 %v1038_v7, 16  ;;  %v590_v14 = vshll.u32 %v1038_v7, 16  ;;  %v174_v21 = vshll.u32 %v1336_v16, 16  ;;  %v178_v22 = vshrl.u32 %v1336_v16, 16  ;;  %v670_v31 = vld [vmem:[%s1314_s24 + $0x4] sm:$0x8] }
  0x15   : > { %1155 = vmatmul.mubr.msk.bf16.vlgmr.msra.gmra.mrb[0].mxu0 %vm193_vm0, %v1236_v10  ;;  %v167_v19 = vshrl.u32 %v1004_v15, 16  ;;  %v169_v20 = vshll.u32 %v1004_v15, 16  ;;  %v596_v24 = vrot.slane %v594_v17, 1  ;;  %v1347_v33 = vld [vmem:[%s1314_s24 + $0x8] sm:$0xf] }
  0x16   : > { %v592_v18 = vrot.slane %v590_v14, 1  ;;  %1159 = vmatpush3.bf16.msra.mxu0 %v1237_v3  ;;  %v176_v28 = vrot.slane %v174_v21, 1  ;;  %v1350_v34 = vld [vmem:[%s1314_s24 + $0xc] sm:$0xf]  ;;  %v673_v35 = vld [vmem:[%s1314_s24 + $0x10] sm:$0x3]  ;;  %v1056_v39 = vcombine.low %v670_v31, %v1347_v33 }
  0x17   : > { %1160 = vmatprep.subr.bf16.mxu0 %v1241_v9  ;;  %v171_v26 = vrot.slane %v169_v20, 1  ;;  %v600_v37 = vor.u32 %v598_v27, %v596_v24  ;;  %v1057_v40 = vcombine.low %v1350_v34, %v673_v35  ;;  %v398_v42 = vld [vmem:[%s1314_s24] sm:$0x8]  ;;  %v1252_v47 = vld [vmem:[%s1314_s24 + $0x8] ss:$0 sps:$4 sm:$0xff]   ;;  %v1254_v14 = vld [vmem:[%s1422_s1 + $0x30] sm:$0xff]   ;;  %v1074_v20 = vcombine.low %v1347_v33, %v1350_v34 }
  0x18   : > { %v593_v23 = vor.u32 %v592_v18, %v588_v13  ;;  %v180_v32 = vor.u32 %v178_v22, %v176_v28  ;;  %v690_v43 = vrot.slane %v1056_v39, 3  ;;  %v312_v45 = vld [vmem:[%s1314_s24] sm:$0xe]  ;;  %v768_v50 = vshrl.u32 %v1056_v39, 16  ;;  %v401_v51 = vld [vmem:[%s1314_s24 + $0xc] sm:$0x3] }
  0x19   : > { %v172_v30 = vor.u32 %v171_v26, %v167_v19  ;;  %v691_v44 = vrot.slane %v1057_v40, 3  ;;  %v1018_v46 = vcombine.low %v312_v45, %v146_v11  ;;  %v771_v53 = vshll.u32 %v1056_v39, 16  ;;  %v1256_v18 = vld [vmem:[%s1422_s1 + $0x38] sm:$0xff]   ;;  %v1257_v21 = vld [vmem:[%s1422_s1 + $0x88] sm:$0xff]  }
  0x1a   : > { %1161 = vmatpush3.bf16.msra.mxu0 %v1241_v9  ;;  %v597_v29 = vsel %vm165_vm1, %v593_v23, %v596_v24  ;;  %v770_v55 = vrot.slane %v768_v50, 3  ;;  %v776_v56 = vshrl.u32 %v1057_v40, 16  ;;  %v779_v57 = vshll.u32 %v1057_v40, 16  ;;  %v1259_v22 = vld [vmem:[%s1314_s24 + $0x10] ss:$0 sps:$4 sm:$0x77]  }
  0x1b   : > { %1162 = vmatprep.mubr.msk.bf16.mxu0 %vm193_vm0, %v597_v29  ;;  %1166 = vmatprep.subr.bf16.mxu0 %v1243_v25  ;;  %v177_v36 = vsel %vm165_vm1, %v172_v30, %v176_v28  ;;  %v692_v49 = vsel %vm689_vm2, %v690_v43, %v691_v44  ;;  %v326_v54 = vrot.slane %v1018_v46, 1  ;;  %v1028_v58 = vcombine.low %v398_v42, %v1317_v5  ;;  %v1250_v5 = vld [vmem:[%s1422_s1 + $0x28] sm:$0xff]  }
  0x1c   : > { %1122 = vmatprep.mubr.msk.bf16.mxu1 %vm193_vm0, %v177_v36  ;;  %v327_v59 = vrot.slane %v1252_v47, 1  ;;  %v773_v60 = vrot.slane %v771_v53, 4  ;;  %v1029_v61 = vcombine.low %v1320_v6, %v401_v51  ;;  %v778_v62 = vrot.slane %v776_v56, 3  ;;  %v1253_v6 = vld [vmem:[%s1422_s1 + $0x78] sm:$0xff]  }
  0x1d   : > { %1123 = vmatmul.mubr.msk.bf16.vlgmr.msra.gmra.mrb[0].mxu1 %vm193_vm0, %v180_v32  ;;  %v781_v63 = vrot.slane %v779_v57, 4  ;;  %v419_v2 = vshrl.u32 %v1028_v58, 16  ;;  %v422_v3 = vshll.u32 %v1028_v58, 16 }
  0x1e   : > { %1127 = vmatpush3.bf16.msra.mxu1 %v1242_v12  ;;  %1130 = vmatprep.mubr.msk.bf16.mxu1 %vm193_vm0, %v1004_v15  ;;  %v774_v0 = vor.u32 %v773_v60, %v770_v55  ;;  %v427_v4 = vshrl.u32 %v1029_v61, 16  ;;  %v430_v7 = vshll.u32 %v1029_v61, 16  ;;  %v328_v8 = vsel %vm325_vm3, %v326_v54, %v327_v59  ;;  %v1255_v15 = vld [vmem:[%s1422_s1 + $0x80] sm:$0xff]  }
  0x1f   : > { %1128 = vmatprep.subr.bf16.mxu1 %v1244_v38  ;;  %v782_v1 = vor.u32 %v781_v63, %v778_v62  ;;  %v421_v10 = vrot.slane %v419_v2, 3  ;;  %v424_v11 = vrot.slane %v422_v3, 4 }
  0x20   : > { %v429_v12 = vrot.slane %v427_v4, 3  ;;  %v432_v13 = vrot.slane %v430_v7, 4 }
  0x21   : > { %1163 = vmatmul.mubr.msk.bf16.vlgmr.msra.gmra.mrb[0].mxu0 %vm193_vm0, %v600_v37  ;;  %v783_v9 = vsel %vm417_vm4, %v774_v0, %v782_v1 }
  0x22   : > { %1167 = vmatpush3.bf16.msra.mxu0 %v1243_v25  ;;  %1170 = vmatprep.mubr.msk.bf16.mxu0 %vm193_vm0, %v692_v49  ;;  %v433_v17 = vor.u32 %v432_v13, %v429_v12 }
  0x23   : > { %1168 = vmatprep.subr.bf16.mxu0 %v1245_v41  ;;  %1129 = vmatpush3.bf16.msra.mxu1 %v1244_v38 }
  0x24   : > { %1134 = vmatprep.subr.bf16.mxu1 %v1246_v48 }
  0x26   : > { %1169 = vmatpush3.bf16.msra.mxu0 %v1245_v41 }
  0x27   : > { %1174 = vmatprep.subr.bf16.mxu0 %v1249_v52 }
  0x29   : > { %1131 = vmatmul.mubr.msk.bf16.vlgmr.msra.gmra.mrb[0].mxu1 %vm193_vm0, %v1336_v16  ;;  %v425_v16 = vor.u32 %v424_v11, %v421_v10 }
  0x2a   : > { %1135 = vmatpush3.bf16.msra.mxu1 %v1246_v48  ;;  %1138 = vmatprep.mubr.msk.bf16.mxu1 %vm193_vm0, %v328_v8 }
  0x2b   : > { %1136 = vmatprep.subr.bf16.mxu1 %v1250_v5  ;;  %v434_v19 = vsel %vm417_vm4, %v425_v16, %v433_v17 }
  0x2d   : > { %1171 = vmatmul.mubr.msk.bf16.vlgmr.msra.gmra.mrb[0].mxu0 %vm193_vm0, %v691_v44 }
  0x2e   : > { %1175 = vmatpush3.bf16.msra.mxu0 %v1249_v52  ;;  %1178 = vmatprep.mubr.msk.bf16.mxu0 %vm193_vm0, %v783_v9 }
  0x2f   : > { %1176 = vmatprep.subr.bf16.mxu0 %v1253_v6  ;;  %1137 = vmatpush3.bf16.msra.mxu1 %v1250_v5 }
  0x30   : > { %1142 = vmatprep.subr.bf16.mxu1 %v1254_v14 }
  0x32   : > { %1177 = vmatpush3.bf16.msra.mxu0 %v1253_v6 }
  0x33   : > { %1182 = vmatprep.subr.bf16.mxu0 %v1255_v15 }
  0x35   : > { %1139 = vmatmul.mubr.msk.bf16.vlgmr.msra.gmra.mrb[0].mxu1 %vm193_vm0, %v327_v59 }
  0x36   : > { %1143 = vmatpush3.bf16.msra.mxu1 %v1254_v14  ;;  %1146 = vmatprep.mubr.msk.bf16.mxu1 %vm193_vm0, %v434_v19 }
  0x37   : > { %1144 = vmatprep.subr.bf16.mxu1 %v1256_v18 }
  0x39   : > { %1179 = vmatmul.mubr.msk.bf16.vlgmr.msra.gmra.mrb[0].mxu0 %vm193_vm0, %v782_v1 }
  0x3a   : > { %1183 = vmatpush3.bf16.msra.mxu0 %v1255_v15  ;;  %1186 = vmatprep.mubr.msk.bf16.mxu0 %vm193_vm0, %v1074_v20 }
  0x3b   : > { %1184 = vmatprep.subr.bf16.mxu0 %v1257_v21  ;;  %1145 = vmatpush3.bf16.msra.mxu1 %v1256_v18 }
  0x3e   : > { %1185 = vmatpush3.bf16.msra.mxu0 %v1257_v21 }
  0x41   : > { %1147 = vmatmul.mubr.msk.bf16.vlgmr.msra.gmra.mrb[0].mxu1 %vm193_vm0, %v433_v17 }
  0x45   : > { %1187 = vmatmul.mubr.msk.bf16.vlgmr.msra.gmra.mrb[0].mxu0 %vm193_vm0, %v1259_v22 }
 0x114   : > { %v1148_v23 = vpop.f32.mrb[0].mxu1 }
 0x115   : > { %v487_v24 = vpop.f32.mrb[1].mxu1 }
 0x116   : > { %v1149_v25 = vpop.f32.mrb[2].mxu1 }
 0x117   : > { %v490_v27 = vpop.f32.mrb[3].mxu1 }
 0x118   : > { %v1188_v26 = vpop.f32.mrb[0].mxu0 }
 0x119   : > { %v1190_v28 = vadd.f32 %v1188_v26, %v1148_v23  ;;  %v915_v29 = vpop.f32.mrb[1].mxu0 }
 0x11a   : > { %v1191_v30 = vadd.f32 %v915_v29, %v487_v24  ;;  %v1189_v31 = vpop.f32.mrb[2].mxu0 }
 0x11b   : > { %v934_v32 = vmax.f32 %v1190_v28, 0.0  ;;  %v918_v33 = vpop.f32.mrb[3].mxu0 }
 0x11c   : > { %v932_v34 = vmax.f32 %v1191_v30, 0.0  ;;  %v1192_v35 = vadd.f32 %v918_v33, %v490_v27 }
 0x11d   : > { %937 = vst [vmem:[%s143_s29 + $0x10] sm:$0x1f] %v934_v32 }
 0x11e   : > { %935 = vst [vmem:[%s143_s29] sm:$0xff] %v932_v34  ;;  %v933_v36 = vmax.f32 %v1192_v35, 0.0 }
 0x120   : > { %936 = vst [vmem:[%s143_s29 + $0x8] sm:$0xff] %v933_v36 }
 0x121 PF: > { %s12_s9 = sadd.s32 1, %s1266_s9  }
 0x122   : > { %p9_p4 = scmp.ge.s32.totalorder %s12_s9, 4  }
 0x124   :  { %11 = sbr.rel (!%p9_p4) target bundleno = 1 (0x1), region = 66 }

// kernel: squeezenet_forward.45
= control target key start
LH: loop header
LB: loop body
LE: loop exit
PB: predicated region body
PF: predicated region fallthrough
CT: control target
= control target key end

     0   :  { %vm16_vm0 = vcmask 392192   ;;  %v328_v21 = vmov 0.0   ;;  %s419_s1 = inlined_call_operand.vmem [shape: bf16[256,48], index: 1, kind: input, shape index: {}]   ;;  %s420_s0 = inlined_call_operand.vmem [shape: bf16[24,256], index: 0, kind: input, shape index: {}]   ;;  %s421_s2 = inlined_call_operand.vmem [shape: f32[24,48], index: 2, kind: output, shape index: {}]  }
   0x1   :  { %v307_v0 = vld [vmem:[%s419_s1 + $0x40] sm:$0xff]   ;;  %v309_v2 = vld [vmem:[%s419_s1 + $0x48] sm:$0xff]   ;;  %v311_v4 = vld [vmem:[%s419_s1 + $0x50] sm:$0xff]   ;;  %17 = vst.msk [vmem:[#allocation2] sm:$0xff] %vm16_vm0, %v328_v21 }
   0x2   :  { %v308_v1 = vld [vmem:[%s419_s1] sm:$0xff]   ;;  %262 = vmatprep.subr.bf16.mxu0 %v307_v0  ;;  %290 = vmatprep.subr.bf16.mxu1 %v307_v0  ;;  %v310_v3 = vld [vmem:[%s419_s1 + $0x8] sm:$0xff]   ;;  %v312_v5 = vld [vmem:[%s419_s1 + $0x10] sm:$0xff]   ;;  %18 = vst.msk [vmem:[#allocation2 + $0x8] sm:$0xff] %vm16_vm0, %v328_v21 }
   0x3   :  { %263 = vmatpush3.bf16.msra.mxu0 %v308_v1  ;;  %298 = vmatpush3.bf16.msra.mxu1 %v308_v1  ;;  %v313_v6 = vld [vmem:[%s419_s1 + $0x58] sm:$0xff]   ;;  %v315_v8 = vld [vmem:[%s419_s1 + $0x60] sm:$0xff]   ;;  %v317_v10 = vld [vmem:[%s419_s1 + $0x68] sm:$0xff]   ;;  %19 = vst.msk [vmem:[#allocation2 + $0x10] sm:$0xff] %vm16_vm0, %v328_v21 }
   0x4   :  { %264 = vmatprep.subr.bf16.mxu0 %v309_v2  ;;  %291 = vmatprep.subr.bf16.mxu1 %v309_v2  ;;  %v314_v7 = vld [vmem:[%s419_s1 + $0x18] sm:$0xff]   ;;  %v316_v9 = vld [vmem:[%s419_s1 + $0x20] sm:$0xff]   ;;  %v25_v12 = vld [vmem:[%s420_s0 + $0x10] sm:$0xff] }
   0x5   :  { %v325_v11 = vld [vmem:[%s420_s0 + $0x4] ss:$8 sps:$4 sm:$0xff]   ;;  %v245_v13 = vcombine.high %v25_v12, %v25_v12  ;;  %v319_v15 = vld [vmem:[%s419_s1 + $0x70] sm:$0xff]   ;;  %v321_v17 = vld [vmem:[%s419_s1 + $0x78] sm:$0xff]   ;;  %v244_v20 = vcombine.low %v25_v12, %v25_v12 }
   0x6   :  { %v318_v14 = vld [vmem:[%s419_s1 + $0x28] sm:$0xff]   ;;  %203 = vmatprep.mubr.bf16.mxu0 %v325_v11  ;;  %v320_v16 = vld [vmem:[%s419_s1 + $0x30] sm:$0xff]   ;;  %v322_v18 = vld [vmem:[%s419_s1 + $0x38] sm:$0xff]  }
   0x7   :  { %265 = vmatpush3.bf16.msra.mxu0 %v310_v3  ;;  %299 = vmatpush3.bf16.msra.mxu1 %v310_v3  ;;  %v323_v19 = vld [vmem:[%s420_s0] ss:$8 sps:$4 sm:$0xff]  }
   0x8   :  { %266 = vmatprep.subr.bf16.mxu0 %v311_v4  ;;  %292 = vmatprep.subr.bf16.mxu1 %v311_v4  ;;  %v20_v24 = vld [vmem:[#allocation2] sm:$0xff] }
   0x9   :  { %211 = vmatprep.mubr.bf16.mxu1 %v245_v13  ;;  %v21_v32 = vld [vmem:[#allocation2 + $0x8] sm:$0xff] }
   0xa   :  { %v22_v26 = vld [vmem:[#allocation2 + $0x10] sm:$0xff] }
   0xb   :  { %267 = vmatpush3.bf16.msra.mxu0 %v312_v5  ;;  %300 = vmatpush3.bf16.msra.mxu1 %v312_v5 }
   0xc   :  { %268 = vmatprep.subr.bf16.mxu0 %v313_v6  ;;  %293 = vmatprep.subr.bf16.mxu1 %v313_v6 }
   0xf   :  { %269 = vmatpush3.bf16.msra.mxu0 %v314_v7  ;;  %301 = vmatpush3.bf16.msra.mxu1 %v314_v7 }
  0x10   :  { %270 = vmatprep.subr.bf16.mxu0 %v315_v8  ;;  %294 = vmatprep.subr.bf16.mxu1 %v315_v8 }
  0x13   :  { %271 = vmatpush3.bf16.msra.mxu0 %v316_v9  ;;  %302 = vmatpush3.bf16.msra.mxu1 %v316_v9 }
  0x14   :  { %272 = vmatprep.subr.bf16.mxu0 %v317_v10  ;;  %295 = vmatprep.subr.bf16.mxu1 %v317_v10 }
  0x17   :  { %273 = vmatpush3.bf16.msra.mxu0 %v318_v14  ;;  %303 = vmatpush3.bf16.msra.mxu1 %v318_v14 }
  0x18   :  { %274 = vmatprep.subr.bf16.mxu0 %v319_v15  ;;  %296 = vmatprep.subr.bf16.mxu1 %v319_v15 }
  0x1b   :  { %275 = vmatpush3.bf16.msra.mxu0 %v320_v16  ;;  %304 = vmatpush3.bf16.msra.mxu1 %v320_v16 }
  0x1c   :  { %276 = vmatprep.subr.bf16.mxu0 %v321_v17  ;;  %297 = vmatprep.subr.bf16.mxu1 %v321_v17 }
  0x1f   :  { %277 = vmatpush3.bf16.msra.mxu0 %v322_v18  ;;  %305 = vmatpush3.bf16.msra.mxu1 %v322_v18 }
  0x22   :  { %204 = vmatmul.mubr.bf16.vlgmr.msra.gmra.mrb[0].mxu0 %v323_v19  ;;  %212 = vmatmul.mubr.bf16.vlgmr.msra.gmra.mrb[0].mxu1 %v244_v20 }
  0xf5   :  { %v278_v22 = vpop.f32.mrb[0].mxu0  ;;  %v284_v23 = vpop.f32.mrb[0].mxu1 }
  0xf6   :  { %v279_v25 = vpop.f32.mrb[1].mxu0  ;;  %v285_v27 = vpop.f32.mrb[1].mxu1 }
  0xf7   :  { %v280_v28 = vadd.f32 %v279_v25, %v278_v22  ;;  %v286_v29 = vadd.f32 %v285_v27, %v284_v23  ;;  %v281_v30 = vpop.f32.mrb[2].mxu0  ;;  %v287_v31 = vpop.f32.mrb[2].mxu1 }
  0xf8   :  { %v282_v33 = vpop.f32.mrb[3].mxu0  ;;  %v288_v34 = vpop.f32.mrb[3].mxu1 }
  0xf9   :  { %v219_v35 = vadd.f32 %v280_v28, %v20_v24  ;;  %v221_v36 = vadd.f32 %v286_v29, %v22_v26  ;;  %v283_v37 = vadd.f32 %v282_v33, %v281_v30 }
  0xfb   :  { %223 = vst.msk [vmem:[#allocation2] sm:$0xff] %vm16_vm0, %v219_v35  ;;  %225 = vst.msk [vmem:[#allocation2 + $0x10] sm:$0xff] %vm16_vm0, %v221_v36  ;;  %v220_v38 = vadd.f32 %v283_v37, %v21_v32 }
  0xfd   :  { %224 = vst.msk [vmem:[#allocation2 + $0x8] sm:$0xff] %vm16_vm0, %v220_v38 }
 0x102   :  { %v229_v39 = vld [vmem:[#allocation2] sm:$0xff]  ;;  %v231_v40 = vld [vmem:[#allocation2 + $0x10] sm:$0xff] }
 0x103   :  { %v232_v41 = vmax.f32 %v229_v39, 0.0  ;;  %v234_v42 = vmax.f32 %v231_v40, 0.0 }
 0x104   :  { %v230_v43 = vld [vmem:[#allocation2 + $0x8] sm:$0xff] }
 0x105   :  { %235 = vst.msk [vmem:[%s421_s2] sm:$0xff] %vm16_vm0, %v232_v41  ;;  %237 = vst.msk [vmem:[%s421_s2 + $0x10] sm:$0xff] %vm16_vm0, %v234_v42  ;;  %v233_v44 = vmax.f32 %v230_v43, 0.0 }
 0x107   :  { %236 = vst.msk [vmem:[%s421_s2 + $0x8] sm:$0xff] %vm16_vm0, %v233_v44 }

// kernel: squeezenet_forward.46
= control target key start
LH: loop header
LB: loop body
LE: loop exit
PB: predicated region body
PF: predicated region fallthrough
CT: control target
= control target key end

     0   :  { %v201_v1 = vmov 0   ;;  %vm76_vm0 = vcmask 392192   ;;  %vm17_vm1 = vcmask 523264   ;;  %v202_v9 = vmov 0.0   ;;  %s269_s1 = inlined_call_operand.vmem [shape: bf16[48,192], index: 1, kind: input, shape index: {}]   ;;  %s270_s0 = inlined_call_operand.vmem [shape: bf16[24,48], index: 0, kind: input, shape index: {}]   ;;  %s271_s2 = inlined_call_operand.vmem [shape: f32[24,192], index: 2, kind: output, shape index: {}]  }
   0x1   :  { %v190_v0 = vld [vmem:[%s269_s1 + $0x4] ss:$8 sps:$4 sm:$0xff]   ;;  %115 = vmatprep.mubr.bf16.mxu0 %v201_v1  ;;  %125 = vmatprep.mubr.bf16.mxu1 %v201_v1  ;;  %v192_v2 = vld [vmem:[%s269_s1] ss:$8 sps:$4 sm:$0xff]   ;;  %v193_v3 = vld [vmem:[%s269_s1 + $0x14] ss:$8 sps:$4 sm:$0xff]  }
   0x2   :  { %83 = vmatprep.subr.bf16.mxu0 %v190_v0  ;;  %182 = vmatprep.subr.bf16.mxu1 %v190_v0  ;;  %v195_v4 = vld [vmem:[%s269_s1 + $0x10] ss:$8 sps:$4 sm:$0xff]   ;;  %v196_v5 = vld [vmem:[%s269_s1 + $0x24] ss:$8 sps:$4 sm:$0xff]   ;;  %v198_v6 = vld [vmem:[%s269_s1 + $0x20] ss:$8 sps:$4 sm:$0xff]  }
   0x3   :  { %84 = vmatpush1.bf16.msra.mxu0 %v192_v2  ;;  %185 = vmatpush1.bf16.msra.mxu1 %v192_v2  ;;  %v199_v7 = vld [vmem:[%s270_s0] sm:$0xff]   ;;  %v200_v8 = vld [vmem:[%s270_s0 + $0x8] ss:$0 sps:$4 sm:$0xff]   ;;  %18 = vst.msk [vmem:[#allocation2 + $0x8] sm:$0xff] %vm17_vm1, %v202_v9  ;;  %20 = vst.msk [vmem:[#allocation2 + $0x18] sm:$0xff] %vm17_vm1, %v202_v9 }
   0x4   :  { %85 = vmatprep.subr.bf16.mxu0 %v193_v3  ;;  %183 = vmatprep.subr.bf16.mxu1 %v193_v3  ;;  %22 = vst.msk [vmem:[#allocation2 + $0x28] sm:$0xff] %vm17_vm1, %v202_v9 }
   0x7   :  { %86 = vmatpush1.bf16.msra.mxu0 %v195_v4  ;;  %186 = vmatpush1.bf16.msra.mxu1 %v195_v4 }
   0x8   :  { %87 = vmatprep.subr.bf16.mxu0 %v196_v5  ;;  %184 = vmatprep.subr.bf16.mxu1 %v196_v5 }
   0xa   :  { %v24_v10 = vld [vmem:[#allocation2 + $0x8] sm:$0xff]  ;;  %v26_v16 = vld [vmem:[#allocation2 + $0x18] sm:$0xff] }
   0xb   :  { %88 = vmatpush1.bf16.msra.mxu0 %v198_v6  ;;  %187 = vmatpush1.bf16.msra.mxu1 %v198_v6  ;;  %v28_v11 = vld [vmem:[#allocation2 + $0x28] sm:$0xff] }
   0xe   :  { %180 = vmatmul.mubr.msk.bf16.vlgmr.msra.gmra.mrb[0].mxu0 %vm76_vm0, %v199_v7  ;;  %181 = vmatmul.mubr.msk.bf16.vlgmr.msra.gmra.mrb[0].mxu1 %vm76_vm0, %v200_v8 }
  0xe1   :  { %v117_v12 = vpop.f32.mrb[0].mxu0  ;;  %v127_v13 = vpop.f32.mrb[0].mxu1 }
  0xe2   :  { %v119_v14 = vpop.f32.mrb[1].mxu0  ;;  %v129_v15 = vpop.f32.mrb[1].mxu1  ;;  %v156_v21 = vmax.f32 %v117_v12, 0.0  ;;  %v160_v22 = vmax.f32 %v127_v13, 0.0 }
  0xe3   :  { %v135_v17 = vadd.f32 %v119_v14, %v24_v10  ;;  %v139_v18 = vadd.f32 %v129_v15, %v28_v11  ;;  %v121_v19 = vpop.f32.mrb[2].mxu0  ;;  %v131_v20 = vpop.f32.mrb[2].mxu1 }
  0xe4   :  { %v123_v23 = vpop.f32.mrb[3].mxu0  ;;  %v132_v24 = vpop.f32.mrb[3].mxu1  ;;  %162 = vst [vmem:[%s271_s2] sm:$0xff] %v156_v21  ;;  %166 = vst [vmem:[%s271_s2 + $0x20] sm:$0xff] %v160_v22  ;;  %v158_v26 = vmax.f32 %v121_v19, 0.0 }
  0xe5   :  { %142 = vst.msk [vmem:[#allocation2 + $0x8] sm:$0xff] %vm17_vm1, %v135_v17  ;;  %146 = vst.msk [vmem:[#allocation2 + $0x28] sm:$0xff] %vm17_vm1, %v139_v18  ;;  %v137_v25 = vadd.f32 %v123_v23, %v26_v16 }
  0xe6   :  { %164 = vst [vmem:[%s271_s2 + $0x10] sm:$0xff] %v158_v26 }
  0xe7   :  { %144 = vst.msk [vmem:[#allocation2 + $0x18] sm:$0xff] %vm17_vm1, %v137_v25 }
  0xec   :  { %v151_v27 = vld [vmem:[#allocation2 + $0x8] sm:$0xff] }
  0xed   :  { %v155_v28 = vld [vmem:[#allocation2 + $0x28] sm:$0xff]  ;;  %v157_v29 = vmax.f32 %v151_v27, 0.0 }
  0xee   :  { %v161_v30 = vmax.f32 %v155_v28, 0.0  ;;  %v153_v31 = vld [vmem:[#allocation2 + $0x18] sm:$0xff] }
  0xef   :  { %163 = vst.msk [vmem:[%s271_s2 + $0x8] sm:$0xff] %vm17_vm1, %v157_v29  ;;  %v159_v32 = vmax.f32 %v153_v31, 0.0 }
  0xf0   :  { %167 = vst.msk [vmem:[%s271_s2 + $0x28] sm:$0xff] %vm17_vm1, %v161_v30 }
  0xf1   :  { %165 = vst.msk [vmem:[%s271_s2 + $0x18] sm:$0xff] %vm17_vm1, %v159_v32 }

// kernel: squeezenet_forward.47
= control target key start
LH: loop header
LB: loop body
LE: loop exit
PB: predicated region body
PF: predicated region fallthrough
CT: control target
= control target key end

     0   :  { %s1564_s9 = smov 0   ;;  %s1843_s0 = inlined_call_operand.vmem [shape: bf16[2,42,48], index: 0, kind: input, shape index: {}]   ;;  %s1844_s1 = inlined_call_operand.vmem [shape: bf16[9,48,192], index: 1, kind: input, shape index: {}]   ;;  %s1845_s2 = inlined_call_operand.vmem [shape: f32[2,21,192], index: 2, kind: output, shape index: {}]  }
   0x1 LB: > { %s1229_s10 = sadd.s32 4294967295, %s1546_s9   ;;  %p1233_p0 = scmp.ge.s32.totalorder %s1546_s9, 1  ;;  %s1546_s9 = sphi %s1564_s9, %s12_s9  }
   0x2   : > { %p112_p1 = scmp.lt.s32.totalorder %s1546_s9, 3 }
   0x4   : > { %p113_p2 = pnand %p1233_p0, %p112_p1 }
   0x5   : > { %v1447_v0 = vld [vmem:[%s1844_s1 + $0xc4] ss:$8 sps:$4 sm:$0xff] (!%p113_p2)   ;;  %p134_p3 = scmp.lt.s32.totalorder (!%p113_p2), %s1229_s10, 1  ;;  %v1449_v1 = vld [vmem:[%s1844_s1 + $0xc0] ss:$8 sps:$4 sm:$0xff] (!%p113_p2)   ;;  %v1548_v2 = vmov (!%p113_p2), 0  }
   0x6   : > { %116 = sbr.rel (%p113_p2) target bundleno = 310 (0x136), region = 28  ;;  %682 = vmatprep.mubr.bf16.mxu0 (!%p113_p2), %v1548_v2  ;;  %254 = vmatprep.mubr.bf16.mxu1 (!%p113_p2), %v1548_v2  ;;  %v1450_v3 = vld [vmem:[%s1844_s1 + $0x34] ss:$8 sps:$4 sm:$0xff] (!%p113_p2)   ;;  %v1452_v4 = vld [vmem:[%s1844_s1 + $0x30] ss:$8 sps:$4 sm:$0xff] (!%p113_p2)   ;;  %vm215_vm0 = vcmask (!%p113_p2), 392192  }
   0x7   : > { %650 = vmatprep.subr.bf16.mxu0 (!%p113_p2), %v1447_v0  ;;  %v1453_v5 = vld [vmem:[%s1844_s1 + $0xd4] ss:$8 sps:$4 sm:$0xff] (!%p113_p2)   ;;  %v1455_v6 = vld [vmem:[%s1844_s1 + $0xd0] ss:$8 sps:$4 sm:$0xff] (!%p113_p2)   ;;  %222 = vmatprep.subr.bf16.mxu1 (!%p113_p2), %v1450_v3  ;;  %v1456_v7 = vld [vmem:[%s1844_s1 + $0x44] ss:$8 sps:$4 sm:$0xff] (!%p113_p2)  }
   0x8   : > { %651 = vmatpush1.bf16.msra.mxu0 (!%p113_p2), %v1449_v1  ;;  %223 = vmatpush1.bf16.msra.mxu1 (!%p113_p2), %v1452_v4  ;;  %v1458_v8 = vld [vmem:[%s1844_s1 + $0x40] ss:$8 sps:$4 sm:$0xff] (!%p113_p2)   ;;  %v1459_v9 = vld [vmem:[%s1844_s1 + $0xe4] ss:$8 sps:$4 sm:$0xff] (!%p113_p2)   ;;  %v1462_v11 = vld [vmem:[%s1844_s1 + $0x54] ss:$8 sps:$4 sm:$0xff] (!%p113_p2)  }
   0x9   : > { %652 = vmatprep.subr.bf16.mxu0 (!%p113_p2), %v1453_v5  ;;  %224 = vmatprep.subr.bf16.mxu1 (!%p113_p2), %v1456_v7  ;;  %v1461_v10 = vld [vmem:[%s1844_s1 + $0xe0] ss:$8 sps:$4 sm:$0xff] (!%p113_p2)   ;;  %v1464_v14 = vld [vmem:[%s1844_s1 + $0x50] ss:$8 sps:$4 sm:$0xff] (!%p113_p2)   ;;  %v1470_v16 = vld [vmem:[%s1844_s1 + $0xf4] ss:$8 sps:$4 sm:$0xff] (!%p113_p2)  }
   0xa   : > { %v1468_v18 = vld [vmem:[%s1844_s1 + $0xf0] ss:$8 sps:$4 sm:$0xff] (!%p113_p2)   ;;  %vm169_vm1 = vsmask.f32 (!%p113_p2), 7424  ;;  %v1475_v26 = vld [vmem:[%s1844_s1 + $0x4] ss:$8 sps:$4 sm:$0xff] (!%p113_p2)  }
   0xb   : > { %v1476_v28 = vld [vmem:[%s1844_s1 + $0x100] ss:$8 sps:$4 sm:$0xff] (!%p113_p2)   ;;  %v1478_v29 = vld [vmem:[%s1844_s1 + $0x104] ss:$8 sps:$4 sm:$0xff] (!%p113_p2)   ;;  %v1481_v36 = vld [vmem:[%s1844_s1 + $0x14] ss:$8 sps:$4 sm:$0xff] (!%p113_p2)  }
   0xc   : > { %653 = vmatpush1.bf16.msra.mxu0 (!%p113_p2), %v1455_v6  ;;  %225 = vmatpush1.bf16.msra.mxu1 (!%p113_p2), %v1458_v8  ;;  %v1473_v32 = vld [vmem:[%s1844_s1] ss:$8 sps:$4 sm:$0xff] (!%p113_p2)   ;;  %v1485_v37 = vld [vmem:[%s1844_s1 + $0x114] ss:$8 sps:$4 sm:$0xff] (!%p113_p2)   ;;  %v1483_v40 = vld [vmem:[%s1844_s1 + $0x110] ss:$8 sps:$4 sm:$0xff] (!%p113_p2)  }
   0xd   : > { %s1847_s10 = smov (!%p134_p3, %s1229_s10), 1  ;;  %654 = vmatprep.subr.bf16.mxu0 %v1459_v9  ;;  %226 = vmatprep.subr.bf16.mxu1 %v1462_v11  ;;  %v1479_v42 = vld [vmem:[%s1844_s1 + $0x10] ss:$8 sps:$4 sm:$0xff]   ;;  %v1491_v43 = vld [vmem:[%s1844_s1 + $0x124] ss:$8 sps:$4 sm:$0xff]   ;;  %vm841_vm2 = vcmask 1044480  }
   0xe   : > { %s1436_s25 = smul.u32 24, %s1847_s10  ;;  %v1488_v45 = vld [vmem:[%s1844_s1 + $0x24] ss:$8 sps:$4 sm:$0xff]   ;;  %v1486_v48 = vld [vmem:[%s1844_s1 + $0x20] ss:$8 sps:$4 sm:$0xff]   ;;  %vm373_vm3 = vcmask 1046528  }
   0xf   : > { %v1489_v50 = vld [vmem:[%s1844_s1 + $0x120] ss:$8 sps:$4 sm:$0xff]   ;;  %v1494_v51 = vld [vmem:[%s1844_s1 + $0x64] ss:$8 sps:$4 sm:$0xff]   ;;  %v1497_v52 = vld [vmem:[%s1844_s1 + $0x134] ss:$8 sps:$4 sm:$0xff]  }
  0x10   : > { %s1613_s8 = scalar_lea.vmem %s1843_s0, %s1436_s25  ;;  %655 = vmatpush1.bf16.msra.mxu0 %v1461_v10  ;;  %227 = vmatpush1.bf16.msra.mxu1 %v1464_v14  ;;  %v1495_v53 = vld [vmem:[%s1844_s1 + $0x130] ss:$8 sps:$4 sm:$0xff]   ;;  %v1503_v55 = vld [vmem:[%s1844_s1 + $0x144] ss:$8 sps:$4 sm:$0xff]   ;;  %v1492_v60 = vld [vmem:[%s1844_s1 + $0x60] ss:$8 sps:$4 sm:$0xff]  }
  0x11   : > { %v1616_v12 = vld [vmem:[%s1613_s8 + $0x4] sm:$0xf]  ;;  %v1619_v13 = vld [vmem:[%s1613_s8 + $0x8] sm:$0xf]  ;;  %v145_v17 = vld [vmem:[%s1613_s8] sm:$0xf]  ;;  %763 = vmatprep.subr.bf16.mxu0 %v1470_v16  ;;  %307 = vmatprep.subr.bf16.mxu1 %v1475_v26 }
  0x12   : > { %v1298_v15 = vcombine.low %v1616_v12, %v1619_v13  ;;  %v1634_v19 = vld [vmem:[%s1613_s8 + $0x4] sm:$0xf]  ;;  %v1640_v21 = vld [vmem:[%s1613_s8 + $0x8] ss:$0 sps:$4 sm:$0x77]   ;;  %s1437_s22 = smul.u32 48, %s1847_s10 }
  0x13   : > { %v1637_v20 = vcombine.low %v145_v17, %v1634_v19  ;;  %v178_v25 = vshll.u32 %v1640_v21, 16  ;;  %v1482_v34 = vld [vmem:[%s1613_s8 + $0xc] ss:$0 sps:$4 sm:$0x77]   ;;  %v182_v41 = vshrl.u32 %v1640_v21, 16  ;;  %vm1167_vm5 = vcmask 523264  }
  0x14   : > { %1306 = vmatmul.mubr.msk.bf16.vlgmr.msra.gmra.mrb[0].mxu0 %vm215_vm0, %v1298_v15  ;;  %v716_v24 = vshll.u32 %v1298_v15, 16  ;;  %v714_v30 = vshrl.u32 %v1298_v15, 16  ;;  %v720_v39 = vshll.u32 %v1482_v34, 16  ;;  %v724_v54 = vshrl.u32 %v1482_v34, 16  ;;  %v820_v56 = vld [vmem:[%s1613_s8 + $0x4] sm:$0x8]  ;;  %s143_s24 = scalar_lea.vmem %s1845_s2, %s1437_s22 }
  0x15   : > { %v171_v22 = vshrl.u32 %v1637_v20, 16  ;;  %v173_v23 = vshll.u32 %v1637_v20, 16  ;;  %764 = vmatpush1.bf16.msra.mxu0 %v1468_v18  ;;  %692 = vmatprep.mubr.bf16.mxu0 %v1548_v2  ;;  %v180_v31 = vrot.slane %v178_v25, 1  ;;  %v1708_v57 = vld [vmem:[%s1613_s8 + $0x8] sm:$0xf]  ;;  %vm1172_vm6 = vcmask 520192  }
  0x16   : > { %765 = vmatprep.subr.bf16.mxu0 %v1478_v29  ;;  %v718_v35 = vrot.slane %v716_v24, 1  ;;  %v722_v44 = vrot.slane %v720_v39, 1  ;;  %v1711_v58 = vld [vmem:[%s1613_s8 + $0xc] sm:$0xf]  ;;  %v823_v59 = vld [vmem:[%s1613_s8 + $0x10] sm:$0x3]  ;;  %v1328_v63 = vcombine.low %v820_v56, %v1708_v57 }
  0x17   : > { %v175_v27 = vrot.slane %v173_v23, 1  ;;  %v184_v47 = vor.u32 %v182_v41, %v180_v31  ;;  %v1500_v62 = vld [vmem:[%s1844_s1 + $0x74] ss:$8 sps:$4 sm:$0xff]   ;;  %v1723_v0 = vcombine.low %v1711_v58, %v823_v59  ;;  %v1501_v1 = vld [vmem:[%s1844_s1 + $0x140] ss:$8 sps:$4 sm:$0xff]  }
  0x18   : > { %v719_v46 = vor.u32 %v718_v35, %v714_v30  ;;  %v726_v61 = vor.u32 %v724_v54, %v722_v44  ;;  %v1511_v3 = vld [vmem:[%s1844_s1 + $0x154] ss:$8 sps:$4 sm:$0xff]   ;;  %v1498_v4 = vld [vmem:[%s1844_s1 + $0x70] ss:$8 sps:$4 sm:$0xff]   ;;  %v1506_v5 = vld [vmem:[%s1844_s1 + $0x84] ss:$8 sps:$4 sm:$0xff]  }
  0x19   : > { %v176_v33 = vor.u32 %v175_v27, %v171_v22  ;;  %766 = vmatpush1.bf16.msra.mxu0 %v1476_v28  ;;  %v842_v6 = vrot.slane %v1328_v63, 3  ;;  %v843_v7 = vrot.slane %v1723_v0, 3  ;;  %v358_v8 = vld [vmem:[%s1613_s8] sm:$0xe]  ;;  %v1749_v11 = vld [vmem:[%s1613_s8 + $0x8] ss:$0 sps:$4 sm:$0xff]  }
  0x1a   : > { %767 = vmatprep.subr.bf16.mxu0 %v1485_v37  ;;  %v723_v49 = vsel %vm169_vm1, %v719_v46, %v722_v44  ;;  %v1504_v9 = vld [vmem:[%s1844_s1 + $0x80] ss:$8 sps:$4 sm:$0xff]   ;;  %v1266_v10 = vcombine.low %v358_v8, %v1634_v19  ;;  %v1509_v15 = vld [vmem:[%s1844_s1 + $0x150] ss:$8 sps:$4 sm:$0xff]   ;;  %v1516_v16 = vld [vmem:[%s1844_s1 + $0x94] ss:$8 sps:$4 sm:$0xff]  }
  0x1b   : > { %v181_v38 = vsel %vm169_vm1, %v176_v33, %v180_v31  ;;  %v844_v14 = vsel %vm841_vm2, %v842_v6, %v843_v7  ;;  %v1519_v17 = vld [vmem:[%s1844_s1 + $0x164] ss:$8 sps:$4 sm:$0xff]   ;;  %v470_v18 = vld [vmem:[%s1613_s8] sm:$0x8]  ;;  %v375_v22 = vrot.slane %v1749_v11, 1  ;;  %v946_v24 = vshrl.u32 %v1328_v63, 16 }
  0x1c   : > { %1250 = vmatmul.mubr.msk.bf16.vlgmr.msra.gmra.mrb[0].mxu1 %vm215_vm0, %v181_v38  ;;  %1307 = vmatmul.mubr.msk.bf16.gmra.mrb[4].mxu0 %vm215_vm0, %v1482_v34  ;;  %v473_v19 = vld [vmem:[%s1613_s8 + $0xc] sm:$0x3]  ;;  %v1517_v23 = vld [vmem:[%s1844_s1 + $0x160] ss:$8 sps:$4 sm:$0xff]   ;;  %v949_v25 = vshll.u32 %v1328_v63, 16  ;;  %v957_v26 = vshll.u32 %v1723_v0, 16  ;;  %v1282_v28 = vcombine.low %v470_v18, %v1616_v12 }
  0x1d   : > { %308 = vmatpush1.bf16.msra.mxu1 %v1473_v32  ;;  %264 = vmatprep.mubr.bf16.mxu1 %v1548_v2  ;;  %v1525_v27 = vld [vmem:[%s1844_s1 + $0x174] ss:$8 sps:$4 sm:$0xff]   ;;  %v1283_v29 = vcombine.low %v1619_v13, %v473_v19  ;;  %v1514_v31 = vld [vmem:[%s1844_s1 + $0x90] ss:$8 sps:$4 sm:$0xff]   ;;  %v1522_v32 = vld [vmem:[%s1844_s1 + $0xa4] ss:$8 sps:$4 sm:$0xff]  }
  0x1e   : > { %309 = vmatprep.subr.bf16.mxu1 %v1481_v36  ;;  %768 = vmatpush1.bf16.msra.mxu0 %v1483_v40  ;;  %v948_v33 = vrot.slane %v946_v24, 3  ;;  %v951_v34 = vrot.slane %v949_v25, 4  ;;  %v959_v36 = vrot.slane %v957_v26, 4  ;;  %v1523_v12 = vld [vmem:[%s1844_s1 + $0x170] ss:$8 sps:$4 sm:$0xff]   ;;  %v493_v37 = vshrl.u32 %v1282_v28, 16 }
  0x1f   : > { %795 = vmatprep.mubr.bf16.mxu0 %v1548_v2  ;;  %881 = vmatprep.subr.bf16.mxu0 %v1491_v43  ;;  %v1531_v13 = vld [vmem:[%s1844_s1 + $0x184] ss:$8 sps:$4 sm:$0xff]   ;;  %v496_v38 = vshll.u32 %v1282_v28, 16  ;;  %v501_v39 = vshrl.u32 %v1283_v29, 16  ;;  %v504_v40 = vshll.u32 %v1283_v29, 16 }
  0x20   : > { %v1520_v41 = vld [vmem:[%s1844_s1 + $0xa0] ss:$8 sps:$4 sm:$0xff]   ;;  %v952_v43 = vor.u32 %v951_v34, %v948_v33  ;;  %vm491_vm4 = vsmask.f32 4352  ;;  %v1537_v56 = vld [vmem:[%s1844_s1 + $0x1a4] ss:$8 sps:$4 sm:$0xff]  }
  0x21   : > { %310 = vmatpush1.bf16.msra.mxu1 %v1479_v42  ;;  %v1528_v42 = vld [vmem:[%s1844_s1 + $0xb4] ss:$8 sps:$4 sm:$0xff]   ;;  %v498_v46 = vrot.slane %v496_v38, 4 }
  0x22   : > { %311 = vmatprep.subr.bf16.mxu1 %v1488_v45  ;;  %v495_v45 = vrot.slane %v493_v37, 3 }
  0x24   : > { %1251 = vmatmul.mubr.msk.bf16.gmra.mrb[4].mxu1 %vm215_vm0, %v184_v47  ;;  %1320 = vmatmul.mubr.msk.bf16.vlgmr.msra.gmra.mrb[0].mxu0 %vm215_vm0, %v723_v49  ;;  %v503_v47 = vrot.slane %v501_v39, 3  ;;  %v1526_v49 = vld [vmem:[%s1844_s1 + $0xb0] ss:$8 sps:$4 sm:$0xff]  }
  0x25   : > { %312 = vmatpush1.bf16.msra.mxu1 %v1486_v48  ;;  %339 = vmatprep.mubr.bf16.mxu1 %v1548_v2  ;;  %v506_v48 = vrot.slane %v504_v40, 4 }
  0x26   : > { %882 = vmatpush1.bf16.msra.mxu0 %v1489_v50  ;;  %413 = vmatprep.subr.bf16.mxu1 %v1494_v51  ;;  %v1529_v51 = vld [vmem:[%s1844_s1 + $0x180] ss:$8 sps:$4 sm:$0xff]  }
  0x27   : > { %883 = vmatprep.subr.bf16.mxu0 %v1497_v52  ;;  %805 = vmatprep.mubr.bf16.mxu0 %v1548_v2  ;;  %v1534_v52 = vld [vmem:[%s1844_s1 + $0x194] ss:$8 sps:$4 sm:$0xff]   ;;  %v507_v54 = vor.u32 %v506_v48, %v503_v47 }
  0x2a   : > { %884 = vmatpush1.bf16.msra.mxu0 %v1495_v53  ;;  %v499_v53 = vor.u32 %v498_v46, %v495_v45 }
  0x2b   : > { %885 = vmatprep.subr.bf16.mxu0 %v1503_v55  ;;  %v1532_v55 = vld [vmem:[%s1844_s1 + $0x190] ss:$8 sps:$4 sm:$0xff]  }
  0x2c   : > { %1258 = vmatmul.mubr.msk.bf16.vlgmr.msra.gmra.mrb[0].mxu1 %vm215_vm0, %v1637_v20  ;;  %1321 = vmatmul.mubr.msk.bf16.gmra.mrb[4].mxu0 %vm215_vm0, %v726_v61  ;;  %v374_v20 = vrot.slane %v1266_v10, 1  ;;  %v508_v59 = vsel %vm491_vm4, %v499_v53, %v507_v54  ;;  %v1358_v61 = vcombine.low %v1708_v57, %v1711_v58 }
  0x2d   : > { %414 = vmatpush1.bf16.msra.mxu1 %v1492_v60  ;;  %349 = vmatprep.mubr.bf16.mxu1 %v1548_v2  ;;  %v1535_v60 = vld [vmem:[%s1844_s1 + $0x1a0] ss:$8 sps:$4 sm:$0xff]  }
  0x2e   : > { %415 = vmatprep.subr.bf16.mxu1 %v1500_v62  ;;  %886 = vmatpush1.bf16.msra.mxu0 %v1501_v1  ;;  %v376_v30 = vsel %vm373_vm3, %v374_v20, %v375_v22  ;;  %v1539_v62 = vld [vmem:[%s1613_s8 + $0x10] ss:$0 sps:$4 sm:$0x77]  }
  0x2f   : > { %913 = vmatprep.mubr.bf16.mxu0 %v1548_v2  ;;  %998 = vmatprep.subr.bf16.mxu0 %v1511_v3 }
  0x31   : > { %416 = vmatpush1.bf16.msra.mxu1 %v1498_v4 }
  0x32   : > { %417 = vmatprep.subr.bf16.mxu1 %v1506_v5 }
  0x34   : > { %1259 = vmatmul.mubr.msk.bf16.gmra.mrb[4].mxu1 %vm215_vm0, %v1640_v21  ;;  %1336 = vmatmul.mubr.msk.bf16.vlgmr.msra.gmra.mrb[0].mxu0 %vm215_vm0, %v844_v14  ;;  %v954_v21 = vshrl.u32 %v1723_v0, 16 }
  0x35   : > { %418 = vmatpush1.bf16.msra.mxu1 %v1504_v9  ;;  %445 = vmatprep.mubr.bf16.mxu1 %v1548_v2 }
  0x36   : > { %999 = vmatpush1.bf16.msra.mxu0 %v1509_v15  ;;  %545 = vmatprep.subr.bf16.mxu1 %v1516_v16  ;;  %v956_v35 = vrot.slane %v954_v21, 3 }
  0x37   : > { %1000 = vmatprep.subr.bf16.mxu0 %v1519_v17  ;;  %923 = vmatprep.mubr.bf16.mxu0 %v1548_v2 }
  0x38   : > { %v960_v44 = vor.u32 %v959_v36, %v956_v35 }
  0x3a   : > { %1001 = vmatpush1.bf16.msra.mxu0 %v1517_v23  ;;  %v961_v50 = vsel %vm491_vm4, %v952_v43, %v960_v44 }
  0x3b   : > { %1002 = vmatprep.subr.bf16.mxu0 %v1525_v27 }
  0x3c   : > { %1274 = vmatmul.mubr.msk.bf16.vlgmr.msra.gmra.mrb[0].mxu1 %vm215_vm0, %v376_v30  ;;  %1337 = vmatmul.mubr.msk.bf16.gmra.mrb[4].mxu0 %vm215_vm0, %v843_v7 }
  0x3d   : > { %546 = vmatpush1.bf16.msra.mxu1 %v1514_v31  ;;  %455 = vmatprep.mubr.bf16.mxu1 %v1548_v2 }
  0x3e   : > { %547 = vmatprep.subr.bf16.mxu1 %v1522_v32  ;;  %1003 = vmatpush1.bf16.msra.mxu0 %v1523_v12 }
  0x3f   : > { %1030 = vmatprep.mubr.bf16.mxu0 %v1548_v2  ;;  %1103 = vmatprep.subr.bf16.mxu0 %v1531_v13 }
  0x41   : > { %548 = vmatpush1.bf16.msra.mxu1 %v1520_v41 }
  0x42   : > { %549 = vmatprep.subr.bf16.mxu1 %v1528_v42 }
  0x44   : > { %1275 = vmatmul.mubr.msk.bf16.gmra.mrb[4].mxu1 %vm215_vm0, %v375_v22  ;;  %1350 = vmatmul.mubr.msk.bf16.vlgmr.msra.gmra.mrb[0].mxu0 %vm215_vm0, %v961_v50 }
  0x45   : > { %550 = vmatpush1.bf16.msra.mxu1 %v1526_v49  ;;  %577 = vmatprep.mubr.bf16.mxu1 %v1548_v2 }
  0x46   : > { %1104 = vmatpush1.bf16.msra.mxu0 %v1529_v51  ;;  %1370 = vmatprep.subr.bf16.mxu1 %v1531_v13 }
  0x47   : > { %1105 = vmatprep.subr.bf16.mxu0 %v1534_v52  ;;  %1040 = vmatprep.mubr.bf16.mxu0 %v1548_v2 }
  0x4a   : > { %1106 = vmatpush1.bf16.msra.mxu0 %v1532_v55 }
  0x4b   : > { %1107 = vmatprep.subr.bf16.mxu0 %v1537_v56 }
  0x4c   : > { %1290 = vmatmul.mubr.msk.bf16.vlgmr.msra.gmra.mrb[0].mxu1 %vm215_vm0, %v508_v59  ;;  %1351 = vmatmul.mubr.msk.bf16.gmra.mrb[4].mxu0 %vm215_vm0, %v960_v44 }
  0x4d   : > { %1373 = vmatpush1.bf16.msra.mxu1 %v1529_v51  ;;  %587 = vmatprep.mubr.bf16.mxu1 %v1548_v2 }
  0x4e   : > { %1371 = vmatprep.subr.bf16.mxu1 %v1534_v52  ;;  %1108 = vmatpush1.bf16.msra.mxu0 %v1535_v60 }
  0x4f   : > { %1135 = vmatprep.mubr.bf16.mxu0 %v1548_v2 }
  0x51   : > { %1374 = vmatpush1.bf16.msra.mxu1 %v1532_v55 }
  0x52   : > { %1372 = vmatprep.subr.bf16.mxu1 %v1537_v56 }
  0x54   : > { %1291 = vmatmul.mubr.msk.bf16.gmra.mrb[4].mxu1 %vm215_vm0, %v507_v54  ;;  %1366 = vmatmul.mubr.msk.bf16.vlgmr.msra.gmra.mrb[0].mxu0 %vm215_vm0, %v1358_v61 }
  0x55   : > { %1375 = vmatpush1.bf16.msra.mxu1 %v1535_v60  ;;  %1145 = vmatprep.mubr.bf16.mxu1 %v1548_v2 }
  0x5c   : > { %1367 = vmatmul.mubr.msk.bf16.vlgmr.msra.gmra.mrb[8].mxu1 %vm215_vm0, %v1539_v62 }
 0x11f   : > { %v579_v63 = vpop.f32.mrb[0].mxu1  ;;  %v1042_v1 = vpop.f32.mrb[4].mxu0 }
 0x120   : > { %v581_v0 = vpop.f32.mrb[1].mxu1  ;;  %v1044_v4 = vpop.f32.mrb[5].mxu0 }
 0x121   : > { %v583_v3 = vpop.f32.mrb[2].mxu1  ;;  %v1046_v6 = vpop.f32.mrb[6].mxu0 }
 0x122   : > { %v585_v5 = vpop.f32.mrb[3].mxu1  ;;  %v1047_v57 = vpop.f32.mrb[7].mxu0 }
 0x127   : > { %v589_v58 = vpop.f32.mrb[4].mxu1  ;;  %v1137_v9 = vpop.f32.mrb[0].mxu0 }
 0x128   : > { %v1380_v7 = vadd.f32 %v1042_v1, %v589_v58  ;;  %v591_v8 = vpop.f32.mrb[5].mxu1  ;;  %v1376_v14 = vadd.f32 %v1137_v9, %v579_v63  ;;  %v1139_v2 = vpop.f32.mrb[1].mxu0 }
 0x129   : > { %v1382_v10 = vadd.f32 %v1044_v4, %v591_v8  ;;  %v593_v11 = vpop.f32.mrb[6].mxu1  ;;  %v1377_v16 = vadd.f32 %v1139_v2, %v581_v0  ;;  %v1141_v17 = vpop.f32.mrb[2].mxu0 }
 0x12a   : > { %v594_v15 = vpop.f32.mrb[7].mxu1  ;;  %v1160_v18 = vmax.f32 %v1376_v14, 0.0  ;;  %v1378_v19 = vadd.f32 %v1141_v17, %v583_v3  ;;  %v1143_v20 = vpop.f32.mrb[3].mxu0 }
 0x12b   : > { %v1161_v22 = vmax.f32 %v1377_v16, 0.0  ;;  %v1379_v23 = vadd.f32 %v1143_v20, %v585_v5 }
 0x12c   : > { %1166 = vst [vmem:[%s143_s24] sm:$0xff] %v1160_v18  ;;  %v1162_v24 = vmax.f32 %v1378_v19, 0.0 }
 0x12d   : > { %1168 = vst.msk [vmem:[%s143_s24 + $0x8] sm:$0xff] %vm1167_vm5, %v1161_v22  ;;  %v1163_v25 = vmax.f32 %v1379_v23, 0.0 }
 0x12e   : > { %1169 = vst [vmem:[%s143_s24 + $0x10] sm:$0xff] %v1162_v24 }
 0x12f   : > { %v1147_v21 = vpop.f32.mrb[8].mxu1  ;;  %1170 = vst.msk [vmem:[%s143_s24 + $0x18] sm:$0xff] %vm1167_vm5, %v1163_v25 }
 0x130   : > { %v1381_v26 = vadd.f32 %v1380_v7, %v1147_v21  ;;  %v1149_v27 = vpop.f32.mrb[9].mxu1 }
 0x131   : > { %v1383_v28 = vadd.f32 %v1382_v10, %v1149_v27  ;;  %v1151_v29 = vpop.f32.mrb[10].mxu1 }
 0x132   : > { %v1164_v30 = vmax.f32 %v1381_v26, 0.0  ;;  %v1152_v31 = vpop.f32.mrb[11].mxu1 }
 0x133   : > { %v1165_v32 = vmax.f32 %v1383_v28, 0.0 }
 0x134   : > { %1171 = vst [vmem:[%s143_s24 + $0x20] sm:$0x1f] %v1164_v30 }
 0x135   : > { %1173 = vst.msk [vmem:[%s143_s24 + $0x28] sm:$0x1f] %vm1172_vm6, %v1165_v32 }
 0x136 PF: > { %s12_s9 = sadd.s32 1, %s1546_s9  }
 0x137   : > { %p9_p4 = scmp.ge.s32.totalorder %s12_s9, 4  }
 0x139   :  { %11 = sbr.rel (!%p9_p4) target bundleno = 1 (0x1), region = 66 }

// kernel: squeezenet_forward.48
= control target key start
LH: loop header
LB: loop body
LE: loop exit
PB: predicated region body
PF: predicated region fallthrough
CT: control target
= control target key end

     0   :  { %vm16_vm0 = vcmask 392192   ;;  %v487_v31 = vmov 0.0   ;;  %s608_s1 = inlined_call_operand.vmem [shape: bf16[384,48], index: 1, kind: input, shape index: {}]   ;;  %s609_s0 = inlined_call_operand.vmem [shape: bf16[24,384], index: 0, kind: input, shape index: {}]   ;;  %s610_s2 = inlined_call_operand.vmem [shape: f32[24,48], index: 2, kind: output, shape index: {}]  }
   0x1   :  { %v456_v0 = vld [vmem:[%s608_s1 + $0x40] sm:$0xff]   ;;  %v459_v3 = vld [vmem:[%s608_s1 + $0x48] sm:$0xff]   ;;  %v462_v6 = vld [vmem:[%s608_s1 + $0x50] sm:$0xff]   ;;  %17 = vst.msk [vmem:[#allocation2] sm:$0xff] %vm16_vm0, %v487_v31 }
   0x2   :  { %v457_v1 = vld [vmem:[%s608_s1] sm:$0xff]   ;;  %397 = vmatprep.subr.bf16.mxu0 %v456_v0  ;;  %v460_v4 = vld [vmem:[%s608_s1 + $0x8] sm:$0xff]   ;;  %v463_v7 = vld [vmem:[%s608_s1 + $0x10] sm:$0xff]   ;;  %18 = vst.msk [vmem:[#allocation2 + $0x8] sm:$0xff] %vm16_vm0, %v487_v31 }
   0x3   :  { %v458_v2 = vld [vmem:[%s608_s1 + $0x80] sm:$0xff]   ;;  %398 = vmatpush3.bf16.msra.mxu0 %v457_v1  ;;  %v461_v5 = vld [vmem:[%s608_s1 + $0x88] sm:$0xff]   ;;  %v464_v8 = vld [vmem:[%s608_s1 + $0x90] sm:$0xff]   ;;  %19 = vst.msk [vmem:[#allocation2 + $0x10] sm:$0xff] %vm16_vm0, %v487_v31 }
   0x4   :  { %435 = vmatprep.subr.bf16.mxu1 %v458_v2  ;;  %399 = vmatprep.subr.bf16.mxu0 %v459_v3  ;;  %v465_v9 = vld [vmem:[%s608_s1 + $0x58] sm:$0xff]   ;;  %v468_v12 = vld [vmem:[%s608_s1 + $0x60] sm:$0xff]   ;;  %v471_v15 = vld [vmem:[%s608_s1 + $0x68] sm:$0xff]  }
   0x5   :  { %436 = vmatpush3.bf16.msra.mxu1 %v458_v2  ;;  %v466_v10 = vld [vmem:[%s608_s1 + $0x18] sm:$0xff]   ;;  %v470_v13 = vld [vmem:[%s608_s1 + $0xa0] sm:$0xff]   ;;  %v473_v16 = vld [vmem:[%s608_s1 + $0xa8] sm:$0xff]  }
   0x6   :  { %437 = vmatprep.subr.bf16.mxu1 %v461_v5  ;;  %v467_v11 = vld [vmem:[%s608_s1 + $0x98] sm:$0xff]   ;;  %v469_v14 = vld [vmem:[%s608_s1 + $0x20] sm:$0xff]   ;;  %v472_v17 = vld [vmem:[%s608_s1 + $0x28] sm:$0xff]  }
   0x7   :  { %400 = vmatpush3.bf16.msra.mxu0 %v460_v4  ;;  %v474_v18 = vld [vmem:[%s608_s1 + $0x70] sm:$0xff]   ;;  %v477_v21 = vld [vmem:[%s608_s1 + $0x78] sm:$0xff]   ;;  %v480_v27 = vld [vmem:[%s609_s0] ss:$12 sps:$4 sm:$0xff]  }
   0x8   :  { %401 = vmatprep.subr.bf16.mxu0 %v462_v6  ;;  %v476_v19 = vld [vmem:[%s608_s1 + $0xb0] sm:$0xff]   ;;  %v479_v23 = vld [vmem:[%s608_s1 + $0xb8] sm:$0xff]   ;;  %v484_v29 = vld [vmem:[%s609_s0 + $0x20] ss:$0 sps:$4 sm:$0xff]  }
   0x9   :  { %438 = vmatpush3.bf16.msra.mxu1 %v461_v5  ;;  %v475_v20 = vld [vmem:[%s608_s1 + $0x30] sm:$0xff]   ;;  %v478_v25 = vld [vmem:[%s608_s1 + $0x38] sm:$0xff]   ;;  %v20_v38 = vld [vmem:[#allocation2] sm:$0xff] }
   0xa   :  { %439 = vmatprep.subr.bf16.mxu1 %v464_v8  ;;  %v482_v22 = vld [vmem:[%s609_s0 + $0x4] ss:$12 sps:$4 sm:$0xff]   ;;  %v483_v24 = vld [vmem:[%s609_s0 + $0x8] ss:$12 sps:$4 sm:$0xff]   ;;  %v27_v26 = vld [vmem:[%s609_s0 + $0x18] sm:$0xff] }
   0xb   :  { %402 = vmatpush3.bf16.msra.mxu0 %v463_v7  ;;  %280 = vmatprep.mubr.bf16.mxu0 %v482_v22  ;;  %v371_v28 = vcombine.high %v27_v26, %v27_v26  ;;  %v370_v30 = vcombine.low %v27_v26, %v27_v26  ;;  %v21_v43 = vld [vmem:[#allocation2 + $0x8] sm:$0xff]  ;;  %v22_v52 = vld [vmem:[#allocation2 + $0x10] sm:$0xff] }
   0xc   :  { %403 = vmatprep.subr.bf16.mxu0 %v465_v9  ;;  %451 = vmatprep.mubr.bf16.mxu1 %v483_v24 }
   0xd   :  { %440 = vmatpush3.bf16.msra.mxu1 %v464_v8 }
   0xe   :  { %441 = vmatprep.subr.bf16.mxu1 %v467_v11 }
   0xf   :  { %404 = vmatpush3.bf16.msra.mxu0 %v466_v10 }
  0x10   :  { %405 = vmatprep.subr.bf16.mxu0 %v468_v12 }
  0x11   :  { %442 = vmatpush3.bf16.msra.mxu1 %v467_v11 }
  0x12   :  { %443 = vmatprep.subr.bf16.mxu1 %v470_v13 }
  0x13   :  { %406 = vmatpush3.bf16.msra.mxu0 %v469_v14 }
  0x14   :  { %407 = vmatprep.subr.bf16.mxu0 %v471_v15 }
  0x15   :  { %444 = vmatpush3.bf16.msra.mxu1 %v470_v13 }
  0x16   :  { %445 = vmatprep.subr.bf16.mxu1 %v473_v16 }
  0x17   :  { %408 = vmatpush3.bf16.msra.mxu0 %v472_v17 }
  0x18   :  { %409 = vmatprep.subr.bf16.mxu0 %v474_v18 }
  0x19   :  { %446 = vmatpush3.bf16.msra.mxu1 %v473_v16 }
  0x1a   :  { %447 = vmatprep.subr.bf16.mxu1 %v476_v19 }
  0x1b   :  { %410 = vmatpush3.bf16.msra.mxu0 %v475_v20 }
  0x1c   :  { %411 = vmatprep.subr.bf16.mxu0 %v477_v21 }
  0x1d   :  { %448 = vmatpush3.bf16.msra.mxu1 %v476_v19 }
  0x1e   :  { %449 = vmatprep.subr.bf16.mxu1 %v479_v23 }
  0x1f   :  { %412 = vmatpush3.bf16.msra.mxu0 %v478_v25 }
  0x21   :  { %450 = vmatpush3.bf16.msra.mxu1 %v479_v23 }
  0x22   :  { %281 = vmatmul.mubr.bf16.vlgmr.msra.gmra.mrb[0].mxu0 %v480_v27 }
  0x23   :  { %288 = vmatprep.mubr.bf16.mxu0 %v371_v28 }
  0x24   :  { %452 = vmatmul.mubr.bf16.vlgmr.msra.gmra.mrb[0].mxu1 %v484_v29 }
  0x2a   :  { %289 = vmatmul.mubr.bf16.gmra.mrb[4].mxu0 %v370_v30 }
  0xf5   :  { %v413_v32 = vpop.f32.mrb[0].mxu0 }
  0xf6   :  { %v414_v33 = vpop.f32.mrb[1].mxu0 }
  0xf7   :  { %v415_v34 = vadd.f32 %v414_v33, %v413_v32  ;;  %v416_v35 = vpop.f32.mrb[2].mxu0  ;;  %v453_v36 = vpop.f32.mrb[0].mxu1 }
  0xf8   :  { %v417_v37 = vpop.f32.mrb[3].mxu0  ;;  %v330_v39 = vpop.f32.mrb[1].mxu1 }
  0xf9   :  { %v418_v40 = vadd.f32 %v417_v37, %v416_v35  ;;  %v331_v41 = vadd.f32 %v415_v34, %v330_v39  ;;  %v454_v42 = vpop.f32.mrb[2].mxu1 }
  0xfa   :  { %v333_v44 = vpop.f32.mrb[3].mxu1 }
  0xfb   :  { %v344_v45 = vadd.f32 %v331_v41, %v20_v38  ;;  %v334_v46 = vadd.f32 %v418_v40, %v333_v44 }
  0xfd   :  { %348 = vst.msk [vmem:[#allocation2] sm:$0xff] %vm16_vm0, %v344_v45  ;;  %v345_v47 = vadd.f32 %v334_v46, %v21_v43  ;;  %v419_v48 = vpop.f32.mrb[4].mxu0 }
  0xfe   :  { %v420_v49 = vpop.f32.mrb[5].mxu0 }
  0xff   :  { %349 = vst.msk [vmem:[#allocation2 + $0x8] sm:$0xff] %vm16_vm0, %v345_v47  ;;  %v421_v50 = vadd.f32 %v420_v49, %v419_v48  ;;  %v422_v51 = vpop.f32.mrb[6].mxu0 }
 0x100   :  { %v423_v53 = vpop.f32.mrb[7].mxu0 }
 0x101   :  { %v339_v54 = vadd.f32 %v453_v36, %v421_v50 }
 0x103   :  { %v346_v55 = vadd.f32 %v339_v54, %v22_v52 }
 0x104   :  { %v354_v56 = vld [vmem:[#allocation2] sm:$0xff] }
 0x105   :  { %v357_v57 = vmax.f32 %v354_v56, 0.0  ;;  %350 = vst.msk [vmem:[#allocation2 + $0x10] sm:$0xff] %vm16_vm0, %v346_v55 }
 0x106   :  { %v355_v58 = vld [vmem:[#allocation2 + $0x8] sm:$0xff] }
 0x107   :  { %360 = vst.msk [vmem:[%s610_s2] sm:$0xff] %vm16_vm0, %v357_v57  ;;  %v358_v59 = vmax.f32 %v355_v58, 0.0 }
 0x109   :  { %361 = vst.msk [vmem:[%s610_s2 + $0x8] sm:$0xff] %vm16_vm0, %v358_v59 }
 0x10c   :  { %v356_v60 = vld [vmem:[#allocation2 + $0x10] sm:$0xff] }
 0x10d   :  { %v359_v61 = vmax.f32 %v356_v60, 0.0 }
 0x10f   :  { %362 = vst.msk [vmem:[%s610_s2 + $0x10] sm:$0xff] %vm16_vm0, %v359_v61 }

// kernel: squeezenet_forward.51
= control target key start
LH: loop header
LB: loop body
LE: loop exit
PB: predicated region body
PF: predicated region fallthrough
CT: control target
= control target key end

     0   :  { %vm16_vm0 = vcmask 523264   ;;  %v487_v31 = vmov 0.0   ;;  %s608_s1 = inlined_call_operand.vmem [shape: bf16[384,64], index: 1, kind: input, shape index: {}]   ;;  %s609_s0 = inlined_call_operand.vmem [shape: bf16[24,384], index: 0, kind: input, shape index: {}]   ;;  %s610_s2 = inlined_call_operand.vmem [shape: f32[24,64], index: 2, kind: output, shape index: {}]  }
   0x1   :  { %v456_v0 = vld [vmem:[%s608_s1 + $0x40] sm:$0xff]   ;;  %v459_v3 = vld [vmem:[%s608_s1 + $0x48] sm:$0xff]   ;;  %v462_v6 = vld [vmem:[%s608_s1 + $0x50] sm:$0xff]   ;;  %17 = vst.msk [vmem:[#allocation2] sm:$0xff] %vm16_vm0, %v487_v31 }
   0x2   :  { %v457_v1 = vld [vmem:[%s608_s1] sm:$0xff]   ;;  %397 = vmatprep.subr.bf16.mxu0 %v456_v0  ;;  %v460_v4 = vld [vmem:[%s608_s1 + $0x8] sm:$0xff]   ;;  %v463_v7 = vld [vmem:[%s608_s1 + $0x10] sm:$0xff]   ;;  %18 = vst.msk [vmem:[#allocation2 + $0x8] sm:$0xff] %vm16_vm0, %v487_v31 }
   0x3   :  { %v458_v2 = vld [vmem:[%s608_s1 + $0x80] sm:$0xff]   ;;  %398 = vmatpush3.bf16.msra.mxu0 %v457_v1  ;;  %v461_v5 = vld [vmem:[%s608_s1 + $0x88] sm:$0xff]   ;;  %v464_v8 = vld [vmem:[%s608_s1 + $0x90] sm:$0xff]   ;;  %19 = vst.msk [vmem:[#allocation2 + $0x10] sm:$0xff] %vm16_vm0, %v487_v31 }
   0x4   :  { %435 = vmatprep.subr.bf16.mxu1 %v458_v2  ;;  %399 = vmatprep.subr.bf16.mxu0 %v459_v3  ;;  %v465_v9 = vld [vmem:[%s608_s1 + $0x58] sm:$0xff]   ;;  %v468_v12 = vld [vmem:[%s608_s1 + $0x60] sm:$0xff]   ;;  %v471_v15 = vld [vmem:[%s608_s1 + $0x68] sm:$0xff]  }
   0x5   :  { %436 = vmatpush3.bf16.msra.mxu1 %v458_v2  ;;  %v466_v10 = vld [vmem:[%s608_s1 + $0x18] sm:$0xff]   ;;  %v470_v13 = vld [vmem:[%s608_s1 + $0xa0] sm:$0xff]   ;;  %v473_v16 = vld [vmem:[%s608_s1 + $0xa8] sm:$0xff]  }
   0x6   :  { %437 = vmatprep.subr.bf16.mxu1 %v461_v5  ;;  %v467_v11 = vld [vmem:[%s608_s1 + $0x98] sm:$0xff]   ;;  %v469_v14 = vld [vmem:[%s608_s1 + $0x20] sm:$0xff]   ;;  %v472_v17 = vld [vmem:[%s608_s1 + $0x28] sm:$0xff]  }
   0x7   :  { %400 = vmatpush3.bf16.msra.mxu0 %v460_v4  ;;  %v474_v18 = vld [vmem:[%s608_s1 + $0x70] sm:$0xff]   ;;  %v477_v21 = vld [vmem:[%s608_s1 + $0x78] sm:$0xff]   ;;  %v480_v27 = vld [vmem:[%s609_s0] ss:$12 sps:$4 sm:$0xff]  }
   0x8   :  { %401 = vmatprep.subr.bf16.mxu0 %v462_v6  ;;  %v476_v19 = vld [vmem:[%s608_s1 + $0xb0] sm:$0xff]   ;;  %v479_v23 = vld [vmem:[%s608_s1 + $0xb8] sm:$0xff]   ;;  %v484_v29 = vld [vmem:[%s609_s0 + $0x20] ss:$0 sps:$4 sm:$0xff]  }
   0x9   :  { %438 = vmatpush3.bf16.msra.mxu1 %v461_v5  ;;  %v475_v20 = vld [vmem:[%s608_s1 + $0x30] sm:$0xff]   ;;  %v478_v25 = vld [vmem:[%s608_s1 + $0x38] sm:$0xff]   ;;  %v20_v38 = vld [vmem:[#allocation2] sm:$0xff] }
   0xa   :  { %439 = vmatprep.subr.bf16.mxu1 %v464_v8  ;;  %v482_v22 = vld [vmem:[%s609_s0 + $0x4] ss:$12 sps:$4 sm:$0xff]   ;;  %v483_v24 = vld [vmem:[%s609_s0 + $0x8] ss:$12 sps:$4 sm:$0xff]   ;;  %v27_v26 = vld [vmem:[%s609_s0 + $0x18] sm:$0xff] }
   0xb   :  { %402 = vmatpush3.bf16.msra.mxu0 %v463_v7  ;;  %280 = vmatprep.mubr.bf16.mxu0 %v482_v22  ;;  %v371_v28 = vcombine.high %v27_v26, %v27_v26  ;;  %v370_v30 = vcombine.low %v27_v26, %v27_v26  ;;  %v21_v43 = vld [vmem:[#allocation2 + $0x8] sm:$0xff]  ;;  %v22_v52 = vld [vmem:[#allocation2 + $0x10] sm:$0xff] }
   0xc   :  { %403 = vmatprep.subr.bf16.mxu0 %v465_v9  ;;  %451 = vmatprep.mubr.bf16.mxu1 %v483_v24 }
   0xd   :  { %440 = vmatpush3.bf16.msra.mxu1 %v464_v8 }
   0xe   :  { %441 = vmatprep.subr.bf16.mxu1 %v467_v11 }
   0xf   :  { %404 = vmatpush3.bf16.msra.mxu0 %v466_v10 }
  0x10   :  { %405 = vmatprep.subr.bf16.mxu0 %v468_v12 }
  0x11   :  { %442 = vmatpush3.bf16.msra.mxu1 %v467_v11 }
  0x12   :  { %443 = vmatprep.subr.bf16.mxu1 %v470_v13 }
  0x13   :  { %406 = vmatpush3.bf16.msra.mxu0 %v469_v14 }
  0x14   :  { %407 = vmatprep.subr.bf16.mxu0 %v471_v15 }
  0x15   :  { %444 = vmatpush3.bf16.msra.mxu1 %v470_v13 }
  0x16   :  { %445 = vmatprep.subr.bf16.mxu1 %v473_v16 }
  0x17   :  { %408 = vmatpush3.bf16.msra.mxu0 %v472_v17 }
  0x18   :  { %409 = vmatprep.subr.bf16.mxu0 %v474_v18 }
  0x19   :  { %446 = vmatpush3.bf16.msra.mxu1 %v473_v16 }
  0x1a   :  { %447 = vmatprep.subr.bf16.mxu1 %v476_v19 }
  0x1b   :  { %410 = vmatpush3.bf16.msra.mxu0 %v475_v20 }
  0x1c   :  { %411 = vmatprep.subr.bf16.mxu0 %v477_v21 }
  0x1d   :  { %448 = vmatpush3.bf16.msra.mxu1 %v476_v19 }
  0x1e   :  { %449 = vmatprep.subr.bf16.mxu1 %v479_v23 }
  0x1f   :  { %412 = vmatpush3.bf16.msra.mxu0 %v478_v25 }
  0x21   :  { %450 = vmatpush3.bf16.msra.mxu1 %v479_v23 }
  0x22   :  { %281 = vmatmul.mubr.bf16.vlgmr.msra.gmra.mrb[0].mxu0 %v480_v27 }
  0x23   :  { %288 = vmatprep.mubr.bf16.mxu0 %v371_v28 }
  0x24   :  { %452 = vmatmul.mubr.bf16.vlgmr.msra.gmra.mrb[0].mxu1 %v484_v29 }
  0x2a   :  { %289 = vmatmul.mubr.bf16.gmra.mrb[4].mxu0 %v370_v30 }
  0xf5   :  { %v413_v32 = vpop.f32.mrb[0].mxu0 }
  0xf6   :  { %v414_v33 = vpop.f32.mrb[1].mxu0 }
  0xf7   :  { %v415_v34 = vadd.f32 %v414_v33, %v413_v32  ;;  %v416_v35 = vpop.f32.mrb[2].mxu0  ;;  %v453_v36 = vpop.f32.mrb[0].mxu1 }
  0xf8   :  { %v417_v37 = vpop.f32.mrb[3].mxu0  ;;  %v330_v39 = vpop.f32.mrb[1].mxu1 }
  0xf9   :  { %v418_v40 = vadd.f32 %v417_v37, %v416_v35  ;;  %v331_v41 = vadd.f32 %v415_v34, %v330_v39  ;;  %v454_v42 = vpop.f32.mrb[2].mxu1 }
  0xfa   :  { %v333_v44 = vpop.f32.mrb[3].mxu1 }
  0xfb   :  { %v344_v45 = vadd.f32 %v331_v41, %v20_v38  ;;  %v334_v46 = vadd.f32 %v418_v40, %v333_v44 }
  0xfd   :  { %348 = vst.msk [vmem:[#allocation2] sm:$0xff] %vm16_vm0, %v344_v45  ;;  %v345_v47 = vadd.f32 %v334_v46, %v21_v43  ;;  %v419_v48 = vpop.f32.mrb[4].mxu0 }
  0xfe   :  { %v420_v49 = vpop.f32.mrb[5].mxu0 }
  0xff   :  { %349 = vst.msk [vmem:[#allocation2 + $0x8] sm:$0xff] %vm16_vm0, %v345_v47  ;;  %v421_v50 = vadd.f32 %v420_v49, %v419_v48  ;;  %v422_v51 = vpop.f32.mrb[6].mxu0 }
 0x100   :  { %v423_v53 = vpop.f32.mrb[7].mxu0 }
 0x101   :  { %v339_v54 = vadd.f32 %v453_v36, %v421_v50 }
 0x103   :  { %v346_v55 = vadd.f32 %v339_v54, %v22_v52 }
 0x104   :  { %v354_v56 = vld [vmem:[#allocation2] sm:$0xff] }
 0x105   :  { %v357_v57 = vmax.f32 %v354_v56, 0.0  ;;  %350 = vst.msk [vmem:[#allocation2 + $0x10] sm:$0xff] %vm16_vm0, %v346_v55 }
 0x106   :  { %v355_v58 = vld [vmem:[#allocation2 + $0x8] sm:$0xff] }
 0x107   :  { %360 = vst.msk [vmem:[%s610_s2] sm:$0xff] %vm16_vm0, %v357_v57  ;;  %v358_v59 = vmax.f32 %v355_v58, 0.0 }
 0x109   :  { %361 = vst.msk [vmem:[%s610_s2 + $0x8] sm:$0xff] %vm16_vm0, %v358_v59 }
 0x10c   :  { %v356_v60 = vld [vmem:[#allocation2 + $0x10] sm:$0xff] }
 0x10d   :  { %v359_v61 = vmax.f32 %v356_v60, 0.0 }
 0x10f   :  { %362 = vst.msk [vmem:[%s610_s2 + $0x10] sm:$0xff] %vm16_vm0, %v359_v61 }

// kernel: squeezenet_forward.52
= control target key start
LH: loop header
LB: loop body
LE: loop exit
PB: predicated region body
PF: predicated region fallthrough
CT: control target
= control target key end

     0   :  { %v217_v1 = vmov 0   ;;  %vm87_vm0 = vcmask 523264   ;;  %s281_s1 = inlined_call_operand.vmem [shape: bf16[64,256], index: 1, kind: input, shape index: {}]   ;;  %s282_s0 = inlined_call_operand.vmem [shape: bf16[24,64], index: 0, kind: input, shape index: {}]   ;;  %s283_s2 = inlined_call_operand.vmem [shape: f32[24,256], index: 2, kind: output, shape index: {}]  }
   0x1   :  { %v203_v0 = vld [vmem:[%s281_s1 + $0x4] ss:$8 sps:$4 sm:$0xff]   ;;  %126 = vmatprep.mubr.bf16.mxu0 %v217_v1  ;;  %136 = vmatprep.mubr.bf16.mxu1 %v217_v1  ;;  %v205_v2 = vld [vmem:[%s281_s1] ss:$8 sps:$4 sm:$0xff]   ;;  %v206_v3 = vld [vmem:[%s281_s1 + $0x14] ss:$8 sps:$4 sm:$0xff]  }
   0x2   :  { %94 = vmatprep.subr.bf16.mxu0 %v203_v0  ;;  %194 = vmatprep.subr.bf16.mxu1 %v203_v0  ;;  %v208_v4 = vld [vmem:[%s281_s1 + $0x10] ss:$8 sps:$4 sm:$0xff]   ;;  %v209_v5 = vld [vmem:[%s281_s1 + $0x24] ss:$8 sps:$4 sm:$0xff]   ;;  %v211_v6 = vld [vmem:[%s281_s1 + $0x20] ss:$8 sps:$4 sm:$0xff]  }
   0x3   :  { %95 = vmatpush1.bf16.msra.mxu0 %v205_v2  ;;  %198 = vmatpush1.bf16.msra.mxu1 %v205_v2  ;;  %v212_v7 = vld [vmem:[%s281_s1 + $0x34] ss:$8 sps:$4 sm:$0xff]   ;;  %v214_v8 = vld [vmem:[%s281_s1 + $0x30] ss:$8 sps:$4 sm:$0xff]   ;;  %v215_v9 = vld [vmem:[%s282_s0] sm:$0xff]  }
   0x4   :  { %96 = vmatprep.subr.bf16.mxu0 %v206_v3  ;;  %195 = vmatprep.subr.bf16.mxu1 %v206_v3  ;;  %v216_v10 = vld [vmem:[%s282_s0 + $0x8] ss:$0 sps:$4 sm:$0xff]  }
   0x7   :  { %97 = vmatpush1.bf16.msra.mxu0 %v208_v4  ;;  %199 = vmatpush1.bf16.msra.mxu1 %v208_v4 }
   0x8   :  { %98 = vmatprep.subr.bf16.mxu0 %v209_v5  ;;  %196 = vmatprep.subr.bf16.mxu1 %v209_v5 }
   0xb   :  { %99 = vmatpush1.bf16.msra.mxu0 %v211_v6  ;;  %200 = vmatpush1.bf16.msra.mxu1 %v211_v6 }
   0xc   :  { %100 = vmatprep.subr.bf16.mxu0 %v212_v7  ;;  %197 = vmatprep.subr.bf16.mxu1 %v212_v7 }
   0xf   :  { %101 = vmatpush1.bf16.msra.mxu0 %v214_v8  ;;  %201 = vmatpush1.bf16.msra.mxu1 %v214_v8 }
  0x12   :  { %192 = vmatmul.mubr.msk.bf16.vlgmr.msra.gmra.mrb[0].mxu0 %vm87_vm0, %v215_v9  ;;  %193 = vmatmul.mubr.msk.bf16.vlgmr.msra.gmra.mrb[0].mxu1 %vm87_vm0, %v216_v10 }
  0xe5   :  { %v128_v11 = vpop.f32.mrb[0].mxu0  ;;  %v138_v12 = vpop.f32.mrb[0].mxu1 }
  0xe6   :  { %v166_v13 = vmax.f32 %v128_v11, 0.0  ;;  %v170_v14 = vmax.f32 %v138_v12, 0.0  ;;  %v130_v15 = vpop.f32.mrb[1].mxu0  ;;  %v140_v16 = vpop.f32.mrb[1].mxu1 }
  0xe7   :  { %v167_v17 = vmax.f32 %v130_v15, 0.0  ;;  %v171_v18 = vmax.f32 %v140_v16, 0.0  ;;  %v132_v19 = vpop.f32.mrb[2].mxu0  ;;  %v142_v20 = vpop.f32.mrb[2].mxu1 }
  0xe8   :  { %172 = vst [vmem:[%s283_s2] sm:$0xff] %v166_v13  ;;  %176 = vst [vmem:[%s283_s2 + $0x20] sm:$0xff] %v170_v14  ;;  %v168_v21 = vmax.f32 %v132_v19, 0.0  ;;  %v134_v22 = vpop.f32.mrb[3].mxu0  ;;  %v143_v23 = vpop.f32.mrb[3].mxu1 }
  0xe9   :  { %173 = vst [vmem:[%s283_s2 + $0x8] sm:$0xff] %v167_v17  ;;  %177 = vst [vmem:[%s283_s2 + $0x28] sm:$0xff] %v171_v18  ;;  %v169_v24 = vmax.f32 %v134_v22, 0.0 }
  0xea   :  { %174 = vst [vmem:[%s283_s2 + $0x10] sm:$0xff] %v168_v21 }
  0xeb   :  { %175 = vst [vmem:[%s283_s2 + $0x18] sm:$0xff] %v169_v24 }

// kernel: squeezenet_forward.53
= control target key start
LH: loop header
LB: loop body
LE: loop exit
PB: predicated region body
PF: predicated region fallthrough
CT: control target
= control target key end

     0   :  { %s1733_s9 = smov 0   ;;  %s2068_s0 = inlined_call_operand.vmem [shape: bf16[2,42,64], index: 0, kind: input, shape index: {}]   ;;  %s2069_s1 = inlined_call_operand.vmem [shape: bf16[9,64,256], index: 1, kind: input, shape index: {}]   ;;  %s2070_s2 = inlined_call_operand.vmem [shape: f32[2,21,256], index: 2, kind: output, shape index: {}]  }
   0x1 LB: > { %s1335_s10 = sadd.s32 4294967295, %s1715_s9   ;;  %p1339_p0 = scmp.ge.s32.totalorder %s1715_s9, 1  ;;  %s1715_s9 = sphi %s1733_s9, %s12_s9  }
   0x2   : > { %p112_p1 = scmp.lt.s32.totalorder %s1715_s9, 3 }
   0x4   : > { %p113_p2 = pnand %p1339_p0, %p112_p1 }
   0x5   : > { %v1589_v0 = vld [vmem:[%s2069_s1 + $0x44] ss:$8 sps:$4 sm:$0xff] (!%p113_p2)   ;;  %p134_p3 = scmp.lt.s32.totalorder (!%p113_p2), %s1335_s10, 1  ;;  %v1717_v2 = vmov (!%p113_p2), 0   ;;  %v1593_v3 = vld [vmem:[%s2069_s1 + $0x40] ss:$8 sps:$4 sm:$0xff] (!%p113_p2)  }
   0x6   : > { %116 = sbr.rel (%p113_p2) target bundleno = 309 (0x135), region = 28  ;;  %v1591_v1 = vld [vmem:[%s2069_s1 + $0x104] ss:$8 sps:$4 sm:$0xff] (!%p113_p2)   ;;  %268 = vmatprep.mubr.bf16.mxu1 (!%p113_p2), %v1717_v2  ;;  %742 = vmatprep.mubr.bf16.mxu0 (!%p113_p2), %v1717_v2  ;;  %v1594_v4 = vld [vmem:[%s2069_s1 + $0x100] ss:$8 sps:$4 sm:$0xff] (!%p113_p2)   ;;  %vm229_vm0 = vcmask (!%p113_p2), 523264  }
   0x7   : > { %236 = vmatprep.subr.bf16.mxu1 (!%p113_p2), %v1589_v0  ;;  %710 = vmatprep.subr.bf16.mxu0 (!%p113_p2), %v1591_v1  ;;  %v1595_v5 = vld [vmem:[%s2069_s1 + $0x54] ss:$8 sps:$4 sm:$0xff] (!%p113_p2)   ;;  %v1599_v7 = vld [vmem:[%s2069_s1 + $0x50] ss:$8 sps:$4 sm:$0xff] (!%p113_p2)   ;;  %v1601_v9 = vld [vmem:[%s2069_s1 + $0x64] ss:$8 sps:$4 sm:$0xff] (!%p113_p2)  }
   0x8   : > { %237 = vmatpush1.bf16.msra.mxu1 (!%p113_p2), %v1593_v3  ;;  %711 = vmatpush1.bf16.msra.mxu0 (!%p113_p2), %v1594_v4  ;;  %v1597_v6 = vld [vmem:[%s2069_s1 + $0x114] ss:$8 sps:$4 sm:$0xff] (!%p113_p2)   ;;  %v1600_v8 = vld [vmem:[%s2069_s1 + $0x110] ss:$8 sps:$4 sm:$0xff] (!%p113_p2)   ;;  %v1603_v10 = vld [vmem:[%s2069_s1 + $0x124] ss:$8 sps:$4 sm:$0xff] (!%p113_p2)  }
   0x9   : > { %238 = vmatprep.subr.bf16.mxu1 (!%p113_p2), %v1595_v5  ;;  %712 = vmatprep.subr.bf16.mxu0 (!%p113_p2), %v1597_v6  ;;  %v1605_v11 = vld [vmem:[%s2069_s1 + $0x60] ss:$8 sps:$4 sm:$0xff] (!%p113_p2)   ;;  %v1607_v13 = vld [vmem:[%s2069_s1 + $0x74] ss:$8 sps:$4 sm:$0xff] (!%p113_p2)   ;;  %v1611_v15 = vld [vmem:[%s2069_s1 + $0x70] ss:$8 sps:$4 sm:$0xff] (!%p113_p2)  }
   0xa   : > { %v1606_v12 = vld [vmem:[%s2069_s1 + $0x120] ss:$8 sps:$4 sm:$0xff] (!%p113_p2)   ;;  %v1609_v14 = vld [vmem:[%s2069_s1 + $0x134] ss:$8 sps:$4 sm:$0xff] (!%p113_p2)   ;;  %v1612_v18 = vld [vmem:[%s2069_s1 + $0x130] ss:$8 sps:$4 sm:$0xff] (!%p113_p2)  }
   0xb   : > { %v1617_v21 = vld [vmem:[%s2069_s1 + $0x4] ss:$8 sps:$4 sm:$0xff] (!%p113_p2)   ;;  %v1621_v28 = vld [vmem:[%s2069_s1 + $0x140] ss:$8 sps:$4 sm:$0xff] (!%p113_p2)   ;;  %vm173_vm1 = vsmask.f32 (!%p113_p2), 7424 }
   0xc   : > { %239 = vmatpush1.bf16.msra.mxu1 (!%p113_p2), %v1599_v7  ;;  %713 = vmatpush1.bf16.msra.mxu0 (!%p113_p2), %v1600_v8  ;;  %v1623_v31 = vld [vmem:[%s2069_s1 + $0x144] ss:$8 sps:$4 sm:$0xff] (!%p113_p2)   ;;  %v1615_v33 = vld [vmem:[%s2069_s1] ss:$8 sps:$4 sm:$0xff] (!%p113_p2)   ;;  %v1626_v34 = vld [vmem:[%s2069_s1 + $0x14] ss:$8 sps:$4 sm:$0xff] (!%p113_p2)  }
   0xd   : > { %s2072_s10 = smov (!%p134_p3, %s1335_s10), 1  ;;  %240 = vmatprep.subr.bf16.mxu1 %v1601_v9  ;;  %714 = vmatprep.subr.bf16.mxu0 %v1603_v10  ;;  %v1627_v35 = vld [vmem:[%s2069_s1 + $0x150] ss:$8 sps:$4 sm:$0xff]   ;;  %v1629_v38 = vld [vmem:[%s2069_s1 + $0x154] ss:$8 sps:$4 sm:$0xff]   ;;  %vm915_vm2 = vcmask 1044480  }
   0xe   : > { %s1578_s25 = smul.u32 24, %s2072_s10  ;;  %v1624_v39 = vld [vmem:[%s2069_s1 + $0x10] ss:$8 sps:$4 sm:$0xff]   ;;  %v1632_v41 = vld [vmem:[%s2069_s1 + $0x24] ss:$8 sps:$4 sm:$0xff]   ;;  %vm399_vm3 = vcmask 1046528  }
   0xf   : > { %v1636_v43 = vld [vmem:[%s2069_s1 + $0x164] ss:$8 sps:$4 sm:$0xff]   ;;  %v1634_v47 = vld [vmem:[%s2069_s1 + $0x160] ss:$8 sps:$4 sm:$0xff]   ;;  %v1642_v49 = vld [vmem:[%s2069_s1 + $0x174] ss:$8 sps:$4 sm:$0xff]  }
  0x10   : > { %s1785_s12 = scalar_lea.vmem %s2068_s0, %s1578_s25  ;;  %241 = vmatpush1.bf16.msra.mxu1 %v1605_v11  ;;  %715 = vmatpush1.bf16.msra.mxu0 %v1606_v12  ;;  %v1630_v50 = vld [vmem:[%s2069_s1 + $0x20] ss:$8 sps:$4 sm:$0xff]   ;;  %v1639_v51 = vld [vmem:[%s2069_s1 + $0x34] ss:$8 sps:$4 sm:$0xff]   ;;  %v1640_v53 = vld [vmem:[%s2069_s1 + $0x170] ss:$8 sps:$4 sm:$0xff]  }
  0x11   : > { %v145_v16 = vld [vmem:[%s1785_s12] sm:$0xf]  ;;  %v1798_v17 = vld [vmem:[%s1785_s12 + $0x4] sm:$0xf]  ;;  %242 = vmatprep.subr.bf16.mxu1 %v1607_v13  ;;  %716 = vmatprep.subr.bf16.mxu0 %v1609_v14  ;;  %v1819_v26 = vld [vmem:[%s1785_s12 + $0x8] sm:$0xf] }
  0x12   : > { %v1804_v19 = vcombine.low %v145_v16, %v1798_v17  ;;  %v1807_v20 = vld [vmem:[%s1785_s12 + $0x8] ss:$0 sps:$4 sm:$0x77]   ;;  %v1813_v22 = vld [vmem:[%s1785_s12 + $0x4] sm:$0xf] }
  0x13   : > { %v182_v25 = vshll.u32 %v1807_v20, 16  ;;  %v1420_v27 = vcombine.low %v1813_v22, %v1819_v26  ;;  %v186_v40 = vshrl.u32 %v1807_v20, 16  ;;  %v1633_v42 = vld [vmem:[%s1785_s12 + $0xc] ss:$0 sps:$4 sm:$0x77]  }
  0x14   : > { %v175_v23 = vshrl.u32 %v1804_v19, 16  ;;  %v177_v24 = vshll.u32 %v1804_v19, 16  ;;  %243 = vmatpush1.bf16.msra.mxu1 %v1611_v15  ;;  %717 = vmatpush1.bf16.msra.mxu0 %v1612_v18  ;;  %v782_v46 = vshll.u32 %v1633_v42, 16  ;;  %v1648_v55 = vld [vmem:[%s2069_s1 + $0x184] ss:$8 sps:$4 sm:$0xff]   ;;  %v786_v63 = vshrl.u32 %v1633_v42, 16 }
  0x15   : > { %v184_v30 = vrot.slane %v182_v25, 1  ;;  %331 = vmatprep.subr.bf16.mxu1 %v1617_v21  ;;  %835 = vmatprep.subr.bf16.mxu0 %v1623_v31  ;;  %v778_v37 = vshll.u32 %v1420_v27, 16  ;;  %v776_v44 = vshrl.u32 %v1420_v27, 16  ;;  %v1637_v56 = vld [vmem:[%s2069_s1 + $0x30] ss:$8 sps:$4 sm:$0xff]  }
  0x16   : > { %v179_v29 = vrot.slane %v177_v24, 1  ;;  %v784_v52 = vrot.slane %v782_v46, 1  ;;  %v1645_v57 = vld [vmem:[%s2069_s1 + $0x84] ss:$8 sps:$4 sm:$0xff]   ;;  %v1646_v59 = vld [vmem:[%s2069_s1 + $0x180] ss:$8 sps:$4 sm:$0xff]  }
  0x17   : > { %1430 = vmatmul.mubr.msk.bf16.vlgmr.msra.gmra.mrb[0].mxu0 %vm229_vm0, %v1420_v27  ;;  %v780_v45 = vrot.slane %v778_v37, 1  ;;  %v188_v48 = vor.u32 %v186_v40, %v184_v30  ;;  %v1654_v60 = vld [vmem:[%s2069_s1 + $0x194] ss:$8 sps:$4 sm:$0xff]   ;;  %v1643_v61 = vld [vmem:[%s2069_s1 + $0x80] ss:$8 sps:$4 sm:$0xff]  }
  0x18   : > { %v180_v32 = vor.u32 %v179_v29, %v175_v23  ;;  %836 = vmatpush1.bf16.msra.mxu0 %v1621_v28  ;;  %752 = vmatprep.mubr.bf16.mxu0 %v1717_v2  ;;  %v1651_v62 = vld [vmem:[%s2069_s1 + $0x94] ss:$8 sps:$4 sm:$0xff]   ;;  %v1649_v0 = vld [vmem:[%s2069_s1 + $0x90] ss:$8 sps:$4 sm:$0xff]   ;;  %v1660_v3 = vld [vmem:[%s2069_s1 + $0x1a4] ss:$8 sps:$4 sm:$0xff]   ;;  %v788_v6 = vor.u32 %v786_v63, %v784_v52 }
  0x19   : > { %837 = vmatprep.subr.bf16.mxu0 %v1629_v38  ;;  %v781_v54 = vor.u32 %v780_v45, %v776_v44  ;;  %v1652_v1 = vld [vmem:[%s2069_s1 + $0x190] ss:$8 sps:$4 sm:$0xff]   ;;  %v1657_v4 = vld [vmem:[%s2069_s1 + $0xa4] ss:$8 sps:$4 sm:$0xff]   ;;  %v1658_v5 = vld [vmem:[%s2069_s1 + $0x1a0] ss:$8 sps:$4 sm:$0xff]  }
  0x1a   : > { %v185_v36 = vsel %vm173_vm1, %v180_v32, %v184_v30  ;;  %v382_v7 = vld [vmem:[%s1785_s12] sm:$0xe]  ;;  %v892_v8 = vld [vmem:[%s1785_s12 + $0x4] sm:$0x8]  ;;  %v1921_v9 = vld [vmem:[%s1785_s12 + $0x8] sm:$0xf] }
  0x1b   : > { %1360 = vmatmul.mubr.msk.bf16.vlgmr.msra.gmra.mrb[0].mxu1 %vm229_vm0, %v185_v36  ;;  %v785_v58 = vsel %vm173_vm1, %v781_v54, %v784_v52  ;;  %v1924_v10 = vld [vmem:[%s1785_s12 + $0xc] sm:$0xf]  ;;  %v895_v11 = vld [vmem:[%s1785_s12 + $0x10] sm:$0x3]  ;;  %v1928_v12 = vcombine.low %v892_v8, %v1921_v9  ;;  %v1655_v13 = vld [vmem:[%s2069_s1 + $0xa0] ss:$8 sps:$4 sm:$0xff]   ;;  %v1380_v16 = vcombine.low %v382_v7, %v1798_v17 }
  0x1c   : > { %332 = vmatpush1.bf16.msra.mxu1 %v1615_v33  ;;  %278 = vmatprep.mubr.bf16.mxu1 %v1717_v2  ;;  %v1666_v14 = vld [vmem:[%s2069_s1 + $0x1b4] ss:$8 sps:$4 sm:$0xff]   ;;  %v1937_v15 = vcombine.low %v1924_v10, %v895_v11  ;;  %v1941_v18 = vld [vmem:[%s1785_s12 + $0x8] ss:$0 sps:$4 sm:$0xff]   ;;  %v506_v21 = vld [vmem:[%s1785_s12] sm:$0x8] }
  0x1d   : > { %333 = vmatprep.subr.bf16.mxu1 %v1626_v34  ;;  %838 = vmatpush1.bf16.msra.mxu0 %v1627_v35  ;;  %v1664_v23 = vld [vmem:[%s2069_s1 + $0x1b0] ss:$8 sps:$4 sm:$0xff]   ;;  %v916_v24 = vrot.slane %v1928_v12, 3  ;;  %v509_v25 = vld [vmem:[%s1785_s12 + $0xc] sm:$0x3]  ;;  %v400_v29 = vrot.slane %v1380_v16, 1  ;;  %v1400_v33 = vcombine.low %v506_v21, %v1813_v22  ;;  %v1496_v16 = vcombine.low %v1921_v9, %v1924_v10 }
  0x1e   : > { %839 = vmatprep.subr.bf16.mxu0 %v1636_v43  ;;  %v917_v17 = vrot.slane %v1937_v15, 3  ;;  %v1676_v27 = vld [vmem:[%s2069_s1 + $0x1c4] ss:$8 sps:$4 sm:$0xff]   ;;  %v1661_v28 = vld [vmem:[%s2069_s1 + $0xb0] ss:$8 sps:$4 sm:$0xff]   ;;  %v401_v30 = vrot.slane %v1941_v18, 1  ;;  %v1401_v35 = vcombine.low %v1819_v26, %v509_v25 }
  0x1f   : > { %1431 = vmatmul.mubr.msk.bf16.gmra.mrb[4].mxu0 %vm229_vm0, %v1633_v42  ;;  %v1674_v32 = vld [vmem:[%s2069_s1 + $0x1c0] ss:$8 sps:$4 sm:$0xff]   ;;  %v1682_v34 = vld [vmem:[%s2069_s1 + $0x1d4] ss:$8 sps:$4 sm:$0xff]   ;;  %v1032_v38 = vshrl.u32 %v1928_v12, 16  ;;  %v1040_v40 = vshrl.u32 %v1937_v15, 16 }
  0x20   : > { %334 = vmatpush1.bf16.msra.mxu1 %v1624_v39  ;;  %867 = vmatprep.mubr.bf16.mxu0 %v1717_v2  ;;  %v918_v31 = vsel %vm915_vm2, %v916_v24, %v917_v17  ;;  %v402_v36 = vsel %vm399_vm3, %v400_v29, %v401_v30  ;;  %v1669_v37 = vld [vmem:[%s2069_s1 + $0xc0] ss:$8 sps:$4 sm:$0xff]   ;;  %v1679_v22 = vld [vmem:[%s2069_s1 + $0xd4] ss:$8 sps:$4 sm:$0xff]   ;;  %v1680_v26 = vld [vmem:[%s2069_s1 + $0x1d0] ss:$8 sps:$4 sm:$0xff]  }
  0x21   : > { %335 = vmatprep.subr.bf16.mxu1 %v1632_v41  ;;  %840 = vmatpush1.bf16.msra.mxu0 %v1634_v47  ;;  %v1035_v39 = vshll.u32 %v1928_v12, 16  ;;  %v1043_v41 = vshll.u32 %v1937_v15, 16  ;;  %v531_v42 = vshrl.u32 %v1400_v33, 16  ;;  %v534_v43 = vshll.u32 %v1400_v33, 16  ;;  %v1688_v44 = vld [vmem:[%s2069_s1 + $0x1e4] ss:$8 sps:$4 sm:$0xff]  }
  0x22   : > { %841 = vmatprep.subr.bf16.mxu0 %v1642_v49  ;;  %v539_v45 = vshrl.u32 %v1401_v35, 16  ;;  %v542_v46 = vshll.u32 %v1401_v35, 16  ;;  %v1677_v47 = vld [vmem:[%s2069_s1 + $0xd0] ss:$8 sps:$4 sm:$0xff]   ;;  %v1686_v49 = vld [vmem:[%s2069_s1 + $0x1e0] ss:$8 sps:$4 sm:$0xff]  }
  0x23   : > { %1361 = vmatmul.mubr.msk.bf16.gmra.mrb[4].mxu1 %vm229_vm0, %v188_v48  ;;  %v1685_v48 = vld [vmem:[%s2069_s1 + $0xe4] ss:$8 sps:$4 sm:$0xff]   ;;  %v1042_v52 = vrot.slane %v1040_v40, 3  ;;  %v1694_v54 = vld [vmem:[%s2069_s1 + $0x1f4] ss:$8 sps:$4 sm:$0xff]  }
  0x24   : > { %336 = vmatpush1.bf16.msra.mxu1 %v1630_v50  ;;  %363 = vmatprep.mubr.bf16.mxu1 %v1717_v2  ;;  %v1034_v50 = vrot.slane %v1032_v38, 3  ;;  %vm529_vm4 = vsmask.f32 4352  ;;  %v1700_v7 = vld [vmem:[%s2069_s1 + $0x214] ss:$8 sps:$4 sm:$0xff]  }
  0x25   : > { %337 = vmatprep.subr.bf16.mxu1 %v1639_v51  ;;  %842 = vmatpush1.bf16.msra.mxu0 %v1640_v53  ;;  %v1037_v51 = vrot.slane %v1035_v39, 4  ;;  %v1045_v53 = vrot.slane %v1043_v41, 4  ;;  %v1698_v11 = vld [vmem:[%s2069_s1 + $0x210] ss:$8 sps:$4 sm:$0xff]   ;;  %v1703_v12 = vld [vmem:[%s2069_s1 + $0x224] ss:$8 sps:$4 sm:$0xff]  }
  0x26   : > { %965 = vmatprep.subr.bf16.mxu0 %v1648_v55  ;;  %v533_v55 = vrot.slane %v531_v42, 3  ;;  %v1704_v15 = vld [vmem:[%s2069_s1 + $0x230] ss:$8 sps:$4 sm:$0xff]  }
  0x27   : > { %v1046_v63 = vor.u32 %v1045_v53, %v1042_v52  ;;  %v1708_v18 = vld [vmem:[%s1785_s12 + $0x10] ss:$0 sps:$4 sm:$0x77]   ;;  %s1579_s12 = smul.u32 48, %s2072_s10 }
  0x28   : > { %338 = vmatpush1.bf16.msra.mxu1 %v1637_v56  ;;  %1448 = vmatmul.mubr.msk.bf16.vlgmr.msra.gmra.mrb[0].mxu0 %vm229_vm0, %v785_v58  ;;  %v536_v56 = vrot.slane %v534_v43, 4  ;;  %v544_v58 = vrot.slane %v542_v46, 4 }
  0x29   : > { %449 = vmatprep.subr.bf16.mxu1 %v1645_v57  ;;  %966 = vmatpush1.bf16.msra.mxu0 %v1646_v59  ;;  %v541_v57 = vrot.slane %v539_v45, 3  ;;  %v1683_v59 = vld [vmem:[%s2069_s1 + $0xe0] ss:$8 sps:$4 sm:$0xff]   ;;  %s143_s7 = scalar_lea.vmem %s2070_s2, %s1579_s12 }
  0x2a   : > { %877 = vmatprep.mubr.bf16.mxu0 %v1717_v2  ;;  %967 = vmatprep.subr.bf16.mxu0 %v1654_v60  ;;  %v1691_v60 = vld [vmem:[%s2069_s1 + $0xf4] ss:$8 sps:$4 sm:$0xff]  }
  0x2b   : > { %1370 = vmatmul.mubr.msk.bf16.vlgmr.msra.gmra.mrb[0].mxu1 %vm229_vm0, %v1804_v19  ;;  %v1663_v19 = vld [vmem:[%s2069_s1 + $0xb4] ss:$8 sps:$4 sm:$0xff]  }
  0x2c   : > { %450 = vmatpush1.bf16.msra.mxu1 %v1643_v61  ;;  %373 = vmatprep.mubr.bf16.mxu1 %v1717_v2  ;;  %v1692_v61 = vld [vmem:[%s2069_s1 + $0x1f0] ss:$8 sps:$4 sm:$0xff]  }
  0x2d   : > { %451 = vmatprep.subr.bf16.mxu1 %v1651_v62  ;;  %968 = vmatpush1.bf16.msra.mxu0 %v1652_v1  ;;  %v1038_v62 = vor.u32 %v1037_v51, %v1034_v50  ;;  %v1689_v1 = vld [vmem:[%s2069_s1 + $0xf0] ss:$8 sps:$4 sm:$0xff]  }
  0x2e   : > { %969 = vmatprep.subr.bf16.mxu0 %v1660_v3  ;;  %v537_v3 = vor.u32 %v536_v56, %v533_v55 }
  0x30   : > { %452 = vmatpush1.bf16.msra.mxu1 %v1649_v0  ;;  %1449 = vmatmul.mubr.msk.bf16.gmra.mrb[4].mxu0 %vm229_vm0, %v788_v6  ;;  %v1697_v0 = vld [vmem:[%s2069_s1 + $0x204] ss:$8 sps:$4 sm:$0xff]   ;;  %v1695_v6 = vld [vmem:[%s2069_s1 + $0x200] ss:$8 sps:$4 sm:$0xff]  }
  0x31   : > { %453 = vmatprep.subr.bf16.mxu1 %v1657_v4  ;;  %970 = vmatpush1.bf16.msra.mxu0 %v1658_v5  ;;  %v545_v4 = vor.u32 %v544_v58, %v541_v57  ;;  %v1047_v5 = vsel %vm529_vm4, %v1038_v62, %v1046_v63 }
  0x32   : > { %997 = vmatprep.mubr.bf16.mxu0 %v1717_v2  ;;  %971 = vmatprep.subr.bf16.mxu0 %v1666_v14  ;;  %v1706_v14 = vld [vmem:[%s2069_s1 + $0x234] ss:$8 sps:$4 sm:$0xff]  }
  0x33   : > { %1371 = vmatmul.mubr.msk.bf16.gmra.mrb[4].mxu1 %vm229_vm0, %v1807_v20  ;;  %v1671_v20 = vld [vmem:[%s2069_s1 + $0xc4] ss:$8 sps:$4 sm:$0xff]   ;;  %v546_v8 = vsel %vm529_vm4, %v537_v3, %v545_v4 }
  0x34   : > { %454 = vmatpush1.bf16.msra.mxu1 %v1655_v13  ;;  %481 = vmatprep.mubr.bf16.mxu1 %v1717_v2  ;;  %v1701_v13 = vld [vmem:[%s2069_s1 + $0x220] ss:$8 sps:$4 sm:$0xff]  }
  0x35   : > { %455 = vmatprep.subr.bf16.mxu1 %v1663_v19  ;;  %972 = vmatpush1.bf16.msra.mxu0 %v1664_v23 }
  0x36   : > { %1094 = vmatprep.subr.bf16.mxu0 %v1676_v27 }
  0x38   : > { %456 = vmatpush1.bf16.msra.mxu1 %v1661_v28  ;;  %1468 = vmatmul.mubr.msk.bf16.vlgmr.msra.gmra.mrb[0].mxu0 %vm229_vm0, %v918_v31 }
  0x39   : > { %593 = vmatprep.subr.bf16.mxu1 %v1671_v20  ;;  %1095 = vmatpush1.bf16.msra.mxu0 %v1674_v32 }
  0x3a   : > { %1007 = vmatprep.mubr.bf16.mxu0 %v1717_v2  ;;  %1096 = vmatprep.subr.bf16.mxu0 %v1682_v34 }
  0x3b   : > { %1390 = vmatmul.mubr.msk.bf16.vlgmr.msra.gmra.mrb[0].mxu1 %vm229_vm0, %v402_v36 }
  0x3c   : > { %594 = vmatpush1.bf16.msra.mxu1 %v1669_v37  ;;  %491 = vmatprep.mubr.bf16.mxu1 %v1717_v2 }
  0x3d   : > { %595 = vmatprep.subr.bf16.mxu1 %v1679_v22  ;;  %1097 = vmatpush1.bf16.msra.mxu0 %v1680_v26 }
  0x3e   : > { %1098 = vmatprep.subr.bf16.mxu0 %v1688_v44 }
  0x40   : > { %596 = vmatpush1.bf16.msra.mxu1 %v1677_v47  ;;  %1469 = vmatmul.mubr.msk.bf16.gmra.mrb[4].mxu0 %vm229_vm0, %v917_v17 }
  0x41   : > { %597 = vmatprep.subr.bf16.mxu1 %v1685_v48  ;;  %1099 = vmatpush1.bf16.msra.mxu0 %v1686_v49 }
  0x42   : > { %1126 = vmatprep.mubr.bf16.mxu0 %v1717_v2  ;;  %1100 = vmatprep.subr.bf16.mxu0 %v1694_v54 }
  0x43   : > { %1391 = vmatmul.mubr.msk.bf16.gmra.mrb[4].mxu1 %vm229_vm0, %v401_v30 }
  0x44   : > { %598 = vmatpush1.bf16.msra.mxu1 %v1683_v59  ;;  %625 = vmatprep.mubr.bf16.mxu1 %v1717_v2 }
  0x45   : > { %599 = vmatprep.subr.bf16.mxu1 %v1691_v60  ;;  %1101 = vmatpush1.bf16.msra.mxu0 %v1692_v61 }
  0x46   : > { %1211 = vmatprep.subr.bf16.mxu0 %v1697_v0 }
  0x48   : > { %600 = vmatpush1.bf16.msra.mxu1 %v1689_v1  ;;  %1486 = vmatmul.mubr.msk.bf16.vlgmr.msra.gmra.mrb[0].mxu0 %vm229_vm0, %v1047_v5 }
  0x49   : > { %1510 = vmatprep.subr.bf16.mxu1 %v1697_v0  ;;  %1212 = vmatpush1.bf16.msra.mxu0 %v1695_v6 }
  0x4a   : > { %1136 = vmatprep.mubr.bf16.mxu0 %v1717_v2  ;;  %1213 = vmatprep.subr.bf16.mxu0 %v1700_v7 }
  0x4b   : > { %1410 = vmatmul.mubr.msk.bf16.vlgmr.msra.gmra.mrb[0].mxu1 %vm229_vm0, %v546_v8 }
  0x4c   : > { %1514 = vmatpush1.bf16.msra.mxu1 %v1695_v6  ;;  %635 = vmatprep.mubr.bf16.mxu1 %v1717_v2 }
  0x4d   : > { %1511 = vmatprep.subr.bf16.mxu1 %v1700_v7  ;;  %1214 = vmatpush1.bf16.msra.mxu0 %v1698_v11 }
  0x4e   : > { %1215 = vmatprep.subr.bf16.mxu0 %v1703_v12 }
  0x50   : > { %1515 = vmatpush1.bf16.msra.mxu1 %v1698_v11  ;;  %1487 = vmatmul.mubr.msk.bf16.gmra.mrb[4].mxu0 %vm229_vm0, %v1046_v63 }
  0x51   : > { %1512 = vmatprep.subr.bf16.mxu1 %v1703_v12  ;;  %1216 = vmatpush1.bf16.msra.mxu0 %v1701_v13 }
  0x52   : > { %1243 = vmatprep.mubr.bf16.mxu0 %v1717_v2  ;;  %1217 = vmatprep.subr.bf16.mxu0 %v1706_v14 }
  0x53   : > { %1411 = vmatmul.mubr.msk.bf16.gmra.mrb[4].mxu1 %vm229_vm0, %v545_v4 }
  0x54   : > { %1516 = vmatpush1.bf16.msra.mxu1 %v1701_v13  ;;  %1253 = vmatprep.mubr.bf16.mxu1 %v1717_v2 }
  0x55   : > { %1513 = vmatprep.subr.bf16.mxu1 %v1706_v14  ;;  %1218 = vmatpush1.bf16.msra.mxu0 %v1704_v15 }
  0x58   : > { %1517 = vmatpush1.bf16.msra.mxu1 %v1704_v15  ;;  %1506 = vmatmul.mubr.msk.bf16.vlgmr.msra.gmra.mrb[0].mxu0 %vm229_vm0, %v1496_v16 }
  0x5b   : > { %1507 = vmatmul.mubr.msk.bf16.vlgmr.msra.gmra.mrb[8].mxu1 %vm229_vm0, %v1708_v18 }
 0x11e   : > { %v627_v19 = vpop.f32.mrb[0].mxu1 }
 0x11f   : > { %v629_v21 = vpop.f32.mrb[1].mxu1 }
 0x120   : > { %v631_v23 = vpop.f32.mrb[2].mxu1 }
 0x121   : > { %v633_v24 = vpop.f32.mrb[3].mxu1 }
 0x123   : > { %v1138_v17 = vpop.f32.mrb[4].mxu0 }
 0x124   : > { %v1140_v25 = vpop.f32.mrb[5].mxu0 }
 0x125   : > { %v1142_v2 = vpop.f32.mrb[6].mxu0 }
 0x126   : > { %v637_v27 = vpop.f32.mrb[4].mxu1  ;;  %v1143_v30 = vpop.f32.mrb[7].mxu0 }
 0x127   : > { %v1522_v28 = vadd.f32 %v1138_v17, %v637_v27  ;;  %v639_v29 = vpop.f32.mrb[5].mxu1 }
 0x128   : > { %v1524_v9 = vadd.f32 %v1140_v25, %v639_v29  ;;  %v641_v10 = vpop.f32.mrb[6].mxu1 }
 0x129   : > { %v642_v20 = vpop.f32.mrb[7].mxu1 }
 0x12b   : > { %v1245_v31 = vpop.f32.mrb[0].mxu0 }
 0x12c   : > { %v1518_v32 = vadd.f32 %v1245_v31, %v627_v19  ;;  %v1247_v33 = vpop.f32.mrb[1].mxu0 }
 0x12d   : > { %v1519_v35 = vadd.f32 %v1247_v33, %v629_v21  ;;  %v1249_v36 = vpop.f32.mrb[2].mxu0 }
 0x12e   : > { %v1255_v34 = vpop.f32.mrb[8].mxu1  ;;  %v1268_v37 = vmax.f32 %v1518_v32, 0.0  ;;  %v1520_v26 = vadd.f32 %v1249_v36, %v631_v23  ;;  %v1251_v39 = vpop.f32.mrb[3].mxu0 }
 0x12f   : > { %v1523_v22 = vadd.f32 %v1522_v28, %v1255_v34  ;;  %v1257_v38 = vpop.f32.mrb[9].mxu1  ;;  %v1269_v40 = vmax.f32 %v1519_v35, 0.0  ;;  %v1521_v43 = vadd.f32 %v1251_v39, %v633_v24 }
 0x130   : > { %v1525_v41 = vadd.f32 %v1524_v9, %v1257_v38  ;;  %v1259_v42 = vpop.f32.mrb[10].mxu1  ;;  %1274 = vst [vmem:[%s143_s7] sm:$0xff] %v1268_v37  ;;  %v1270_v45 = vmax.f32 %v1520_v26, 0.0 }
 0x131   : > { %v1272_v44 = vmax.f32 %v1523_v22, 0.0  ;;  %v1260_v46 = vpop.f32.mrb[11].mxu1  ;;  %1275 = vst [vmem:[%s143_s7 + $0x8] sm:$0xff] %v1269_v40  ;;  %v1271_v48 = vmax.f32 %v1521_v43, 0.0 }
 0x132   : > { %v1273_v47 = vmax.f32 %v1525_v41, 0.0  ;;  %1276 = vst [vmem:[%s143_s7 + $0x10] sm:$0xff] %v1270_v45 }
 0x133   : > { %1278 = vst [vmem:[%s143_s7 + $0x20] sm:$0x1f] %v1272_v44  ;;  %1277 = vst [vmem:[%s143_s7 + $0x18] sm:$0xff] %v1271_v48 }
 0x134   : > { %1279 = vst [vmem:[%s143_s7 + $0x28] sm:$0x1f] %v1273_v47 }
 0x135 PF: > { %s12_s9 = sadd.s32 1, %s1715_s9  }
 0x136   : > { %p9_p4 = scmp.ge.s32.totalorder %s12_s9, 4  }
 0x138   :  { %11 = sbr.rel (!%p9_p4) target bundleno = 1 (0x1), region = 66 }

// kernel: squeezenet_forward.54
= control target key start
LH: loop header
LB: loop body
LE: loop exit
PB: predicated region body
PF: predicated region fallthrough
CT: control target
= control target key end

     0   :  { %s214_s0 = inlined_call_operand.vmem [shape: f32[9,8,512], index: 0, kind: input, shape index: {}]   ;;  %s215_s1 = inlined_call_operand.vmem [shape: f32[8,512], index: 1, kind: output, shape index: {}]  }
   0x1   :  { %v8_v0 = vld [vmem:[%s214_s0] sm:$0xff]  ;;  %v9_v6 = vld [vmem:[%s214_s0 + $0x8] sm:$0xff]  ;;  %v10_v15 = vld [vmem:[%s214_s0 + $0x10] sm:$0xff] }
   0x2   :  { %v12_v1 = vld [vmem:[%s214_s0 + $0x20] sm:$0xff]  ;;  %v13_v7 = vld [vmem:[%s214_s0 + $0x28] sm:$0xff]  ;;  %v14_v16 = vld [vmem:[%s214_s0 + $0x30] sm:$0xff] }
   0x3   :  { %v16_v2 = vld [vmem:[%s214_s0 + $0x40] sm:$0xff]  ;;  %v44_v3 = vmax.f32 %v8_v0, %v12_v1  ;;  %v17_v8 = vld [vmem:[%s214_s0 + $0x48] sm:$0xff]  ;;  %v52_v10 = vmax.f32 %v9_v6, %v13_v7  ;;  %v18_v17 = vld [vmem:[%s214_s0 + $0x50] sm:$0xff]  ;;  %v60_v20 = vmax.f32 %v10_v15, %v14_v16 }
   0x4   :  { %v20_v4 = vld [vmem:[%s214_s0 + $0x60] sm:$0xff]  ;;  %v21_v13 = vld [vmem:[%s214_s0 + $0x68] sm:$0xff]  ;;  %v22_v24 = vld [vmem:[%s214_s0 + $0x70] sm:$0xff] }
   0x5   :  { %v45_v5 = vmax.f32 %v44_v3, %v16_v2  ;;  %v24_v9 = vld [vmem:[%s214_s0 + $0x80] sm:$0xff]  ;;  %v53_v14 = vmax.f32 %v52_v10, %v17_v8  ;;  %v25_v19 = vld [vmem:[%s214_s0 + $0x88] sm:$0xff]  ;;  %v61_v26 = vmax.f32 %v60_v20, %v18_v17  ;;  %v11_v27 = vld [vmem:[%s214_s0 + $0x18] sm:$0xff] }
   0x6   :  { %v28_v11 = vld [vmem:[%s214_s0 + $0xa0] sm:$0xff]  ;;  %v29_v22 = vld [vmem:[%s214_s0 + $0xa8] sm:$0xff]  ;;  %v15_v28 = vld [vmem:[%s214_s0 + $0x38] sm:$0xff] }
   0x7   :  { %v46_v12 = vmax.f32 %v45_v5, %v20_v4  ;;  %v32_v21 = vld [vmem:[%s214_s0 + $0xc0] sm:$0xff]  ;;  %v54_v23 = vmax.f32 %v53_v14, %v21_v13  ;;  %v19_v29 = vld [vmem:[%s214_s0 + $0x58] sm:$0xff]  ;;  %v26_v32 = vld [vmem:[%s214_s0 + $0x90] sm:$0xff]  ;;  %v68_v33 = vmax.f32 %v11_v27, %v15_v28  ;;  %v62_v36 = vmax.f32 %v61_v26, %v22_v24 }
   0x8   :  { %v36_v30 = vld [vmem:[%s214_s0 + $0xe0] sm:$0xff]  ;;  %v33_v35 = vld [vmem:[%s214_s0 + $0xc8] sm:$0xff]  ;;  %v23_v37 = vld [vmem:[%s214_s0 + $0x78] sm:$0xff] }
   0x9   :  { %v47_v18 = vmax.f32 %v46_v12, %v24_v9  ;;  %v55_v31 = vmax.f32 %v54_v23, %v25_v19  ;;  %v40_v38 = vld [vmem:[%s214_s0 + $0x100] sm:$0xff]  ;;  %v30_v40 = vld [vmem:[%s214_s0 + $0xb0] sm:$0xff]  ;;  %v69_v41 = vmax.f32 %v68_v33, %v19_v29  ;;  %v37_v43 = vld [vmem:[%s214_s0 + $0xe8] sm:$0xff]  ;;  %v63_v44 = vmax.f32 %v62_v36, %v26_v32 }
   0xa   :  { %v27_v45 = vld [vmem:[%s214_s0 + $0x98] sm:$0xff]  ;;  %v34_v47 = vld [vmem:[%s214_s0 + $0xd0] sm:$0xff]  ;;  %v41_v50 = vld [vmem:[%s214_s0 + $0x108] sm:$0xff] }
   0xb   :  { %v48_v25 = vmax.f32 %v47_v18, %v28_v11  ;;  %v56_v39 = vmax.f32 %v55_v31, %v29_v22  ;;  %v70_v48 = vmax.f32 %v69_v41, %v23_v37  ;;  %v64_v51 = vmax.f32 %v63_v44, %v30_v40  ;;  %v31_v52 = vld [vmem:[%s214_s0 + $0xb8] sm:$0xff]  ;;  %v38_v54 = vld [vmem:[%s214_s0 + $0xf0] sm:$0xff] }
   0xc   :  { %v35_v57 = vld [vmem:[%s214_s0 + $0xd8] sm:$0xff]  ;;  %v42_v59 = vld [vmem:[%s214_s0 + $0x110] sm:$0xff] }
   0xd   :  { %v49_v34 = vmax.f32 %v48_v25, %v32_v21  ;;  %v57_v46 = vmax.f32 %v56_v39, %v33_v35  ;;  %v71_v55 = vmax.f32 %v70_v48, %v27_v45  ;;  %v65_v56 = vmax.f32 %v64_v51, %v34_v47  ;;  %v39_v62 = vld [vmem:[%s214_s0 + $0xf8] sm:$0xff] }
   0xe   :  { %v43_v1 = vld [vmem:[%s214_s0 + $0x118] sm:$0xff] }
   0xf   :  { %v50_v42 = vmax.f32 %v49_v34, %v36_v30  ;;  %v58_v53 = vmax.f32 %v57_v46, %v37_v43  ;;  %v72_v60 = vmax.f32 %v71_v55, %v31_v52  ;;  %v66_v61 = vmax.f32 %v65_v56, %v38_v54 }
  0x11   :  { %v51_v49 = vmax.f32 %v50_v42, %v40_v38  ;;  %v59_v58 = vmax.f32 %v58_v53, %v41_v50  ;;  %v73_v63 = vmax.f32 %v72_v60, %v35_v57  ;;  %v67_v0 = vmax.f32 %v66_v61, %v42_v59 }
  0x13   :  { %76 = vst [vmem:[%s215_s1] sm:$0xff] %v51_v49  ;;  %77 = vst [vmem:[%s215_s1 + $0x8] sm:$0xff] %v59_v58  ;;  %v74_v2 = vmax.f32 %v73_v63, %v39_v62 }
  0x14   :  { %78 = vst [vmem:[%s215_s1 + $0x10] sm:$0xff] %v67_v0 }
  0x15   :  { %v75_v3 = vmax.f32 %v74_v2, %v43_v1 }
  0x17   :  { %79 = vst [vmem:[%s215_s1 + $0x18] sm:$0xff] %v75_v3 }

// kernel: squeezenet_forward.55
= control target key start
LH: loop header
LB: loop body
LE: loop exit
PB: predicated region body
PF: predicated region fallthrough
CT: control target
= control target key end

     0   :  { %vm16_vm0 = vcmask 523264   ;;  %v501_v38 = vmov 0.0   ;;  %s625_s1 = inlined_call_operand.vmem [shape: bf16[512,64], index: 1, kind: input, shape index: {}]   ;;  %s626_s0 = inlined_call_operand.vmem [shape: bf16[8,512], index: 0, kind: input, shape index: {}]   ;;  %s627_s2 = inlined_call_operand.vmem [shape: f32[8,64], index: 2, kind: output, shape index: {}]  }
   0x1   :  { %v465_v0 = vld [vmem:[%s625_s1 + $0x40] sm:$0xff]   ;;  %v469_v4 = vld [vmem:[%s625_s1 + $0x48] sm:$0xff]   ;;  %v473_v8 = vld [vmem:[%s625_s1 + $0x50] sm:$0xff]   ;;  %17 = vst.msk [vmem:[#allocation2] sm:$0xff] %vm16_vm0, %v501_v38 }
   0x2   :  { %v466_v1 = vld [vmem:[%s625_s1 + $0xc0] sm:$0xff]   ;;  %420 = vmatprep.subr.bf16.mxu0 %v465_v0  ;;  %v470_v5 = vld [vmem:[%s625_s1 + $0xc8] sm:$0xff]   ;;  %v474_v9 = vld [vmem:[%s625_s1 + $0xd0] sm:$0xff]  }
   0x3   :  { %v467_v2 = vld [vmem:[%s625_s1] sm:$0xff]   ;;  %442 = vmatprep.subr.bf16.mxu1 %v466_v1  ;;  %v471_v6 = vld [vmem:[%s625_s1 + $0x8] sm:$0xff]   ;;  %v475_v10 = vld [vmem:[%s625_s1 + $0x10] sm:$0xff]  }
   0x4   :  { %v468_v3 = vld [vmem:[%s625_s1 + $0x80] sm:$0xff]   ;;  %421 = vmatpush3.bf16.msra.mxu0 %v467_v2  ;;  %v472_v7 = vld [vmem:[%s625_s1 + $0x88] sm:$0xff]   ;;  %v476_v11 = vld [vmem:[%s625_s1 + $0x90] sm:$0xff]  }
   0x5   :  { %443 = vmatpush3.bf16.msra.mxu1 %v468_v3  ;;  %422 = vmatprep.subr.bf16.mxu0 %v469_v4  ;;  %v477_v12 = vld [vmem:[%s625_s1 + $0x58] sm:$0xff]   ;;  %v481_v16 = vld [vmem:[%s625_s1 + $0x60] sm:$0xff]   ;;  %v485_v20 = vld [vmem:[%s625_s1 + $0x68] sm:$0xff]  }
   0x6   :  { %444 = vmatprep.subr.bf16.mxu1 %v470_v5  ;;  %v478_v13 = vld [vmem:[%s625_s1 + $0xd8] sm:$0xff]   ;;  %v482_v17 = vld [vmem:[%s625_s1 + $0xe0] sm:$0xff]   ;;  %v486_v21 = vld [vmem:[%s625_s1 + $0xe8] sm:$0xff]  }
   0x7   :  { %v479_v14 = vld [vmem:[%s625_s1 + $0x18] sm:$0xff]   ;;  %v483_v18 = vld [vmem:[%s625_s1 + $0x20] sm:$0xff]   ;;  %v487_v22 = vld [vmem:[%s625_s1 + $0x28] sm:$0xff]  }
   0x8   :  { %423 = vmatpush3.bf16.msra.mxu0 %v471_v6  ;;  %v480_v15 = vld [vmem:[%s625_s1 + $0x98] sm:$0xff]   ;;  %v484_v19 = vld [vmem:[%s625_s1 + $0xa0] sm:$0xff]   ;;  %v488_v23 = vld [vmem:[%s625_s1 + $0xa8] sm:$0xff]  }
   0x9   :  { %445 = vmatpush3.bf16.msra.mxu1 %v472_v7  ;;  %424 = vmatprep.subr.bf16.mxu0 %v473_v8  ;;  %v489_v24 = vld [vmem:[%s625_s1 + $0x70] sm:$0xff]   ;;  %v493_v28 = vld [vmem:[%s625_s1 + $0x78] sm:$0xff]   ;;  %v19_v32 = vld [vmem:[%s626_s0] sm:$0xff] }
   0xa   :  { %446 = vmatprep.subr.bf16.mxu1 %v474_v9  ;;  %v490_v25 = vld [vmem:[%s625_s1 + $0xf0] sm:$0xff]   ;;  %v494_v29 = vld [vmem:[%s625_s1 + $0xf8] sm:$0xff]   ;;  %v20_v33 = vld [vmem:[%s626_s0 + $0x8] sm:$0xff]  ;;  %v384_v34 = vcombine.low %v19_v32, %v19_v32  ;;  %v385_v35 = vcombine.high %v19_v32, %v19_v32 }
   0xb   :  { %v491_v26 = vld [vmem:[%s625_s1 + $0x30] sm:$0xff]   ;;  %v495_v30 = vld [vmem:[%s625_s1 + $0x38] sm:$0xff]   ;;  %v386_v36 = vcombine.low %v20_v33, %v20_v33  ;;  %v387_v37 = vcombine.high %v20_v33, %v20_v33  ;;  %v18_v47 = vld [vmem:[#allocation2] sm:$0xff] }
   0xc   :  { %425 = vmatpush3.bf16.msra.mxu0 %v475_v10  ;;  %v492_v27 = vld [vmem:[%s625_s1 + $0xb0] sm:$0xff]   ;;  %v496_v31 = vld [vmem:[%s625_s1 + $0xb8] sm:$0xff]   ;;  %323 = vmatprep.mubr.bf16.mxu0 %v385_v35 }
   0xd   :  { %447 = vmatpush3.bf16.msra.mxu1 %v476_v11  ;;  %426 = vmatprep.subr.bf16.mxu0 %v477_v12 }
   0xe   :  { %448 = vmatprep.subr.bf16.mxu1 %v478_v13  ;;  %363 = vmatprep.mubr.bf16.mxu1 %v387_v37 }
  0x10   :  { %427 = vmatpush3.bf16.msra.mxu0 %v479_v14 }
  0x11   :  { %449 = vmatpush3.bf16.msra.mxu1 %v480_v15  ;;  %428 = vmatprep.subr.bf16.mxu0 %v481_v16 }
  0x12   :  { %450 = vmatprep.subr.bf16.mxu1 %v482_v17 }
  0x14   :  { %429 = vmatpush3.bf16.msra.mxu0 %v483_v18 }
  0x15   :  { %451 = vmatpush3.bf16.msra.mxu1 %v484_v19  ;;  %430 = vmatprep.subr.bf16.mxu0 %v485_v20 }
  0x16   :  { %452 = vmatprep.subr.bf16.mxu1 %v486_v21 }
  0x18   :  { %431 = vmatpush3.bf16.msra.mxu0 %v487_v22 }
  0x19   :  { %453 = vmatpush3.bf16.msra.mxu1 %v488_v23  ;;  %432 = vmatprep.subr.bf16.mxu0 %v489_v24 }
  0x1a   :  { %454 = vmatprep.subr.bf16.mxu1 %v490_v25 }
  0x1c   :  { %433 = vmatpush3.bf16.msra.mxu0 %v491_v26 }
  0x1d   :  { %455 = vmatpush3.bf16.msra.mxu1 %v492_v27  ;;  %434 = vmatprep.subr.bf16.mxu0 %v493_v28 }
  0x1e   :  { %456 = vmatprep.subr.bf16.mxu1 %v494_v29 }
  0x20   :  { %435 = vmatpush3.bf16.msra.mxu0 %v495_v30 }
  0x21   :  { %457 = vmatpush3.bf16.msra.mxu1 %v496_v31 }
  0x23   :  { %324 = vmatmul.mubr.bf16.vlgmr.msra.gmra.mrb[0].mxu0 %v384_v34 }
  0x24   :  { %364 = vmatmul.mubr.bf16.vlgmr.msra.gmra.mrb[0].mxu1 %v386_v36 }
  0xf6   :  { %v436_v39 = vpop.f32.mrb[0].mxu0 }
  0xf7   :  { %v458_v40 = vpop.f32.mrb[0].mxu1  ;;  %v437_v41 = vpop.f32.mrb[1].mxu0 }
  0xf8   :  { %v459_v42 = vpop.f32.mrb[1].mxu1  ;;  %v438_v43 = vadd.f32 %v437_v41, %v436_v39  ;;  %v439_v45 = vpop.f32.mrb[2].mxu0 }
  0xf9   :  { %v460_v44 = vadd.f32 %v459_v42, %v458_v40  ;;  %v461_v46 = vpop.f32.mrb[2].mxu1  ;;  %v440_v48 = vpop.f32.mrb[3].mxu0 }
  0xfa   :  { %v462_v49 = vpop.f32.mrb[3].mxu1 }
  0xfb   :  { %v366_v50 = vadd.f32 %v460_v44, %v438_v43 }
  0xfd   :  { %v371_v51 = vadd.f32 %v366_v50, %v18_v47 }
  0xff   :  { %373 = vst.msk [vmem:[#allocation2] sm:$0xff] %vm16_vm0, %v371_v51 }
 0x106   :  { %v377_v52 = vld [vmem:[#allocation2] sm:$0xff] }
 0x107   :  { %v378_v53 = vmax.f32 %v377_v52, 0.0 }
 0x109   :  { %379 = vst.msk [vmem:[%s627_s2] sm:$0xff] %vm16_vm0, %v378_v53 }

// kernel: squeezenet_forward.56
= control target key start
LH: loop header
LB: loop body
LE: loop exit
PB: predicated region body
PF: predicated region fallthrough
CT: control target
= control target key end

     0   :  { %v153_v1 = vmov 0   ;;  %vm69_vm0 = vcmask 523264   ;;  %s202_s1 = inlined_call_operand.vmem [shape: bf16[64,256], index: 1, kind: input, shape index: {}]   ;;  %s203_s0 = inlined_call_operand.vmem [shape: bf16[8,64], index: 0, kind: input, shape index: {}]   ;;  %s204_s2 = inlined_call_operand.vmem [shape: f32[8,256], index: 2, kind: output, shape index: {}]  }
   0x1   :  { %v141_v0 = vld [vmem:[%s202_s1 + $0x4] ss:$8 sps:$4 sm:$0xff]   ;;  %105 = vmatprep.mubr.bf16.mxu0 %v153_v1  ;;  %v143_v2 = vld [vmem:[%s202_s1] ss:$8 sps:$4 sm:$0xff]   ;;  %v144_v3 = vld [vmem:[%s202_s1 + $0x14] ss:$8 sps:$4 sm:$0xff]  }
   0x2   :  { %73 = vmatprep.subr.bf16.mxu0 %v141_v0  ;;  %v146_v4 = vld [vmem:[%s202_s1 + $0x10] ss:$8 sps:$4 sm:$0xff]   ;;  %v147_v5 = vld [vmem:[%s202_s1 + $0x24] ss:$8 sps:$4 sm:$0xff]   ;;  %v149_v6 = vld [vmem:[%s202_s1 + $0x20] ss:$8 sps:$4 sm:$0xff]  }
   0x3   :  { %74 = vmatpush1.bf16.msra.mxu0 %v143_v2  ;;  %v150_v7 = vld [vmem:[%s202_s1 + $0x34] ss:$8 sps:$4 sm:$0xff]   ;;  %v152_v8 = vld [vmem:[%s202_s1 + $0x30] ss:$8 sps:$4 sm:$0xff]   ;;  %v20_v9 = vld [vmem:[%s203_s0] sm:$0xf] }
   0x4   :  { %75 = vmatprep.subr.bf16.mxu0 %v144_v3 }
   0x7   :  { %76 = vmatpush1.bf16.msra.mxu0 %v146_v4 }
   0x8   :  { %77 = vmatprep.subr.bf16.mxu0 %v147_v5 }
   0xb   :  { %78 = vmatpush1.bf16.msra.mxu0 %v149_v6 }
   0xc   :  { %79 = vmatprep.subr.bf16.mxu0 %v150_v7 }
   0xf   :  { %80 = vmatpush1.bf16.msra.mxu0 %v152_v8 }
  0x12   :  { %139 = vmatmul.mubr.msk.bf16.vlgmr.msra.gmra.mrb[0].mxu0 %vm69_vm0, %v20_v9 }
  0xe5   :  { %v107_v10 = vpop.f32.mrb[0].mxu0 }
  0xe6   :  { %v123_v11 = vmax.f32 %v107_v10, 0.0  ;;  %v109_v12 = vpop.f32.mrb[1].mxu0 }
  0xe7   :  { %v124_v13 = vmax.f32 %v109_v12, 0.0  ;;  %v111_v14 = vpop.f32.mrb[2].mxu0 }
  0xe8   :  { %125 = vst [vmem:[%s204_s2] sm:$0xff] %v123_v11  ;;  %v112_v15 = vpop.f32.mrb[3].mxu0 }
  0xe9   :  { %126 = vst [vmem:[%s204_s2 + $0x8] sm:$0xff] %v124_v13 }

// kernel: squeezenet_forward.57
= control target key start
LH: loop header
LB: loop body
LE: loop exit
PB: predicated region body
PF: predicated region fallthrough
CT: control target
= control target key end

     0   :  { %s1463_s9 = smov 0   ;;  %s1731_s0 = inlined_call_operand.vmem [shape: bf16[2,20,64], index: 0, kind: input, shape index: {}]   ;;  %s1732_s1 = inlined_call_operand.vmem [shape: bf16[9,64,256], index: 1, kind: input, shape index: {}]   ;;  %s1733_s2 = inlined_call_operand.vmem [shape: f32[2,5,256], index: 2, kind: output, shape index: {}]  }
   0x1 LB: > { %s1123_s10 = sadd.s32 4294967295, %s1445_s9   ;;  %p1127_p0 = scmp.ge.s32.totalorder %s1445_s9, 1  ;;  %s1445_s9 = sphi %s1463_s9, %s12_s9  }
   0x2   : > { %p112_p1 = scmp.lt.s32.totalorder %s1445_s9, 3 }
   0x4   : > { %p113_p2 = pnand %p1127_p0, %p112_p1 }
   0x5   : > { %v1325_v0 = vld [vmem:[%s1732_s1 + $0x44] ss:$8 sps:$4 sm:$0xff] (!%p113_p2)   ;;  %p134_p3 = scmp.lt.s32.totalorder (!%p113_p2), %s1123_s10, 1  ;;  %v1447_v2 = vmov (!%p113_p2), 0   ;;  %v1329_v3 = vld [vmem:[%s1732_s1 + $0x40] ss:$8 sps:$4 sm:$0xff] (!%p113_p2)  }
   0x6   : > { %116 = sbr.rel (%p113_p2) target bundleno = 305 (0x131), region = 28  ;;  %v1327_v1 = vld [vmem:[%s1732_s1 + $0x104] ss:$8 sps:$4 sm:$0xff] (!%p113_p2)   ;;  %249 = vmatprep.mubr.bf16.mxu1 (!%p113_p2), %v1447_v2  ;;  %644 = vmatprep.mubr.bf16.mxu0 (!%p113_p2), %v1447_v2  ;;  %v1330_v4 = vld [vmem:[%s1732_s1 + $0x100] ss:$8 sps:$4 sm:$0xff] (!%p113_p2)   ;;  %vm213_vm0 = vcmask (!%p113_p2), 523264  }
   0x7   : > { %217 = vmatprep.subr.bf16.mxu1 (!%p113_p2), %v1325_v0  ;;  %612 = vmatprep.subr.bf16.mxu0 (!%p113_p2), %v1327_v1  ;;  %v1331_v5 = vld [vmem:[%s1732_s1 + $0x54] ss:$8 sps:$4 sm:$0xff] (!%p113_p2)   ;;  %v1335_v7 = vld [vmem:[%s1732_s1 + $0x50] ss:$8 sps:$4 sm:$0xff] (!%p113_p2)   ;;  %v1337_v9 = vld [vmem:[%s1732_s1 + $0x64] ss:$8 sps:$4 sm:$0xff] (!%p113_p2)  }
   0x8   : > { %218 = vmatpush1.bf16.msra.mxu1 (!%p113_p2), %v1329_v3  ;;  %613 = vmatpush1.bf16.msra.mxu0 (!%p113_p2), %v1330_v4  ;;  %v1333_v6 = vld [vmem:[%s1732_s1 + $0x114] ss:$8 sps:$4 sm:$0xff] (!%p113_p2)   ;;  %v1336_v8 = vld [vmem:[%s1732_s1 + $0x110] ss:$8 sps:$4 sm:$0xff] (!%p113_p2)   ;;  %v1339_v10 = vld [vmem:[%s1732_s1 + $0x124] ss:$8 sps:$4 sm:$0xff] (!%p113_p2)  }
   0x9   : > { %219 = vmatprep.subr.bf16.mxu1 (!%p113_p2), %v1331_v5  ;;  %614 = vmatprep.subr.bf16.mxu0 (!%p113_p2), %v1333_v6  ;;  %v1341_v11 = vld [vmem:[%s1732_s1 + $0x60] ss:$8 sps:$4 sm:$0xff] (!%p113_p2)   ;;  %v1343_v13 = vld [vmem:[%s1732_s1 + $0x74] ss:$8 sps:$4 sm:$0xff] (!%p113_p2)   ;;  %v1347_v15 = vld [vmem:[%s1732_s1 + $0x70] ss:$8 sps:$4 sm:$0xff] (!%p113_p2)  }
   0xa   : > { %v1342_v12 = vld [vmem:[%s1732_s1 + $0x120] ss:$8 sps:$4 sm:$0xff] (!%p113_p2)   ;;  %v1345_v14 = vld [vmem:[%s1732_s1 + $0x134] ss:$8 sps:$4 sm:$0xff] (!%p113_p2)   ;;  %v1348_v16 = vld [vmem:[%s1732_s1 + $0x130] ss:$8 sps:$4 sm:$0xff] (!%p113_p2)  }
   0xb   : > { %v1351_v17 = vld [vmem:[%s1732_s1 + $0x4] ss:$8 sps:$4 sm:$0xff] (!%p113_p2)   ;;  %v1352_v22 = vld [vmem:[%s1732_s1 + $0x140] ss:$8 sps:$4 sm:$0xff] (!%p113_p2)   ;;  %v1362_v26 = vld [vmem:[%s1732_s1 + $0x154] ss:$8 sps:$4 sm:$0xff] (!%p113_p2)  }
   0xc   : > { %220 = vmatpush1.bf16.msra.mxu1 (!%p113_p2), %v1335_v7  ;;  %615 = vmatpush1.bf16.msra.mxu0 (!%p113_p2), %v1336_v8  ;;  %v1354_v18 = vld [vmem:[%s1732_s1 + $0x144] ss:$8 sps:$4 sm:$0xff] (!%p113_p2)   ;;  %v1349_v28 = vld [vmem:[%s1732_s1] ss:$8 sps:$4 sm:$0xff] (!%p113_p2)   ;;  %v1359_v29 = vld [vmem:[%s1732_s1 + $0x14] ss:$8 sps:$4 sm:$0xff] (!%p113_p2)  }
   0xd   : > { %s1735_s10 = smov (!%p134_p3, %s1123_s10), 1  ;;  %221 = vmatprep.subr.bf16.mxu1 %v1337_v9  ;;  %616 = vmatprep.subr.bf16.mxu0 %v1339_v10  ;;  %v1360_v31 = vld [vmem:[%s1732_s1 + $0x150] ss:$8 sps:$4 sm:$0xff]   ;;  %v1368_v32 = vld [vmem:[%s1732_s1 + $0x164] ss:$8 sps:$4 sm:$0xff]  }
   0xe   : > { %s1315_s29 = smul.u32 12, %s1735_s10  ;;  %v1357_v33 = vld [vmem:[%s1732_s1 + $0x10] ss:$8 sps:$4 sm:$0xff]   ;;  %v1365_v34 = vld [vmem:[%s1732_s1 + $0x24] ss:$8 sps:$4 sm:$0xff]   ;;  %s1284_s5 = sshll.u32 %s1735_s10, 4 }
   0xf   : > { %v1366_v37 = vld [vmem:[%s1732_s1 + $0x160] ss:$8 sps:$4 sm:$0xff]   ;;  %v1374_v38 = vld [vmem:[%s1732_s1 + $0x174] ss:$8 sps:$4 sm:$0xff]   ;;  %v1372_v43 = vld [vmem:[%s1732_s1 + $0x170] ss:$8 sps:$4 sm:$0xff]   ;;  %s143_s7 = scalar_lea.vmem %s1733_s2, %s1284_s5 }
  0x10   : > { %s1521_s16 = scalar_lea.vmem %s1731_s0, %s1315_s29  ;;  %222 = vmatpush1.bf16.msra.mxu1 %v1341_v11  ;;  %617 = vmatpush1.bf16.msra.mxu0 %v1342_v12  ;;  %v1363_v39 = vld [vmem:[%s1732_s1 + $0x20] ss:$8 sps:$4 sm:$0xff]   ;;  %v1371_v40 = vld [vmem:[%s1732_s1 + $0x34] ss:$8 sps:$4 sm:$0xff]   ;;  %v1380_v44 = vld [vmem:[%s1732_s1 + $0x184] ss:$8 sps:$4 sm:$0xff]  }
  0x11   : > { %223 = vmatprep.subr.bf16.mxu1 %v1343_v13  ;;  %618 = vmatprep.subr.bf16.mxu0 %v1345_v14  ;;  %v1536_v19 = vld [vmem:[%s1521_s16] sm:$0x7]  ;;  %v1356_v21 = vld [vmem:[%s1521_s16] sm:$0x38]   ;;  %v1369_v45 = vld [vmem:[%s1732_s1 + $0x30] ss:$8 sps:$4 sm:$0xff]  }
  0x12   : > { %v1139_v20 = vcombine.low %v1536_v19, %v1536_v19  ;;  %v568_v25 = vrot.slane %v1356_v21, 3  ;;  %v665_v35 = vshrl.u32 %v1356_v21, 16  ;;  %v668_v36 = vshll.u32 %v1356_v21, 16  ;;  %v1377_v46 = vld [vmem:[%s1732_s1 + $0x84] ss:$8 sps:$4 sm:$0xff]  }
  0x13   : > { %v1378_v48 = vld [vmem:[%s1732_s1 + $0x180] ss:$8 sps:$4 sm:$0xff]   ;;  %v1386_v49 = vld [vmem:[%s1732_s1 + $0x194] ss:$8 sps:$4 sm:$0xff]   ;;  %v1384_v52 = vld [vmem:[%s1732_s1 + $0x190] ss:$8 sps:$4 sm:$0xff]  }
  0x14   : > { %224 = vmatpush1.bf16.msra.mxu1 %v1347_v15  ;;  %619 = vmatpush1.bf16.msra.mxu0 %v1348_v16  ;;  %v167_v23 = vshrl.u32 %v1139_v20, 16  ;;  %v169_v24 = vshll.u32 %v1139_v20, 16  ;;  %v667_v41 = vrot.slane %v665_v35, 3  ;;  %v670_v42 = vrot.slane %v668_v36, 4  ;;  %v1375_v50 = vld [vmem:[%s1732_s1 + $0x80] ss:$8 sps:$4 sm:$0xff]  }
  0x15   : > { %301 = vmatprep.subr.bf16.mxu1 %v1351_v17  ;;  %715 = vmatprep.subr.bf16.mxu0 %v1354_v18  ;;  %v1383_v51 = vld [vmem:[%s1732_s1 + $0x94] ss:$8 sps:$4 sm:$0xff]   ;;  %v1392_v53 = vld [vmem:[%s1732_s1 + $0x1a4] ss:$8 sps:$4 sm:$0xff]   ;;  %v1381_v54 = vld [vmem:[%s1732_s1 + $0x90] ss:$8 sps:$4 sm:$0xff]  }
  0x16   : > { %v171_v27 = vrot.slane %v169_v24, 1  ;;  %v671_v47 = vor.u32 %v670_v42, %v667_v41  ;;  %v1389_v55 = vld [vmem:[%s1732_s1 + $0xa4] ss:$8 sps:$4 sm:$0xff]   ;;  %v1390_v56 = vld [vmem:[%s1732_s1 + $0x1a0] ss:$8 sps:$4 sm:$0xff]  }
  0x17   : > { %1211 = vmatmul.mubr.msk.bf16.vlgmr.msra.gmra.mrb[0].mxu0 %vm213_vm0, %v568_v25  ;;  %v1398_v57 = vld [vmem:[%s1732_s1 + $0x1b4] ss:$8 sps:$4 sm:$0xff]   ;;  %v1387_v58 = vld [vmem:[%s1732_s1 + $0xa0] ss:$8 sps:$4 sm:$0xff]   ;;  %v1396_v61 = vld [vmem:[%s1732_s1 + $0x1b0] ss:$8 sps:$4 sm:$0xff]  }
  0x18   : > { %v172_v30 = vor.u32 %v171_v27, %v167_v23  ;;  %716 = vmatpush1.bf16.msra.mxu0 %v1352_v22  ;;  %747 = vmatprep.mubr.bf16.mxu0 %v1447_v2  ;;  %v1395_v59 = vld [vmem:[%s1732_s1 + $0xb4] ss:$8 sps:$4 sm:$0xff]   ;;  %v1406_v60 = vld [vmem:[%s1521_s16 + $0x4] ss:$0 sps:$4 sm:$0xee]  }
  0x19   : > { %717 = vmatprep.subr.bf16.mxu0 %v1362_v26  ;;  %v1404_v62 = vld [vmem:[%s1732_s1 + $0x1c4] ss:$8 sps:$4 sm:$0xff]   ;;  %v1405_v63 = vld [vmem:[%s1521_s16] ss:$0 sps:$4 sm:$0xee]   ;;  %v771_v3 = vrot.slane %v1406_v60, 1 }
  0x1a   : > { %1148 = vmatmul.mubr.msk.bf16.vlgmr.msra.gmra.mrb[0].mxu1 %vm213_vm0, %v172_v30  ;;  %v1393_v0 = vld [vmem:[%s1732_s1 + $0xb0] ss:$8 sps:$4 sm:$0xff]   ;;  %v1401_v1 = vld [vmem:[%s1732_s1 + $0xc4] ss:$8 sps:$4 sm:$0xff]   ;;  %v1402_v4 = vld [vmem:[%s1732_s1 + $0x1c0] ss:$8 sps:$4 sm:$0xff]  }
  0x1b   : > { %302 = vmatpush1.bf16.msra.mxu1 %v1349_v28  ;;  %333 = vmatprep.mubr.bf16.mxu1 %v1447_v2  ;;  %v1412_v5 = vld [vmem:[%s1732_s1 + $0x1d4] ss:$8 sps:$4 sm:$0xff]   ;;  %v355_v6 = vrot.slane %v1405_v63, 1  ;;  %v1399_v7 = vld [vmem:[%s1732_s1 + $0xc0] ss:$8 sps:$4 sm:$0xff]   ;;  %v868_v13 = vshrl.u32 %v1406_v60, 16 }
  0x1c   : > { %303 = vmatprep.subr.bf16.mxu1 %v1359_v29  ;;  %718 = vmatpush1.bf16.msra.mxu0 %v1360_v31  ;;  %v1409_v8 = vld [vmem:[%s1732_s1 + $0xd4] ss:$8 sps:$4 sm:$0xff]   ;;  %v1410_v9 = vld [vmem:[%s1732_s1 + $0x1d0] ss:$8 sps:$4 sm:$0xff]   ;;  %v1418_v10 = vld [vmem:[%s1732_s1 + $0x1e4] ss:$8 sps:$4 sm:$0xff]  }
  0x1d   : > { %719 = vmatprep.subr.bf16.mxu0 %v1368_v32  ;;  %v1425_v11 = vld [vmem:[%s1521_s16] sm:$0x1c]   ;;  %v1407_v12 = vld [vmem:[%s1732_s1 + $0xd0] ss:$8 sps:$4 sm:$0xff]   ;;  %v871_v14 = vshll.u32 %v1406_v60, 16  ;;  %v870_v21 = vrot.slane %v868_v13, 1 }
  0x1e   : > { %v1415_v15 = vld [vmem:[%s1732_s1 + $0xe4] ss:$8 sps:$4 sm:$0xff]   ;;  %v1416_v16 = vld [vmem:[%s1732_s1 + $0x1e0] ss:$8 sps:$4 sm:$0xff]   ;;  %v1424_v17 = vld [vmem:[%s1732_s1 + $0x1f4] ss:$8 sps:$4 sm:$0xff]  }
  0x1f   : > { %304 = vmatpush1.bf16.msra.mxu1 %v1357_v33  ;;  %v459_v18 = vshrl.u32 %v1425_v11, 16  ;;  %v1413_v20 = vld [vmem:[%s1732_s1 + $0xe0] ss:$8 sps:$4 sm:$0xff]   ;;  %v873_v22 = vrot.slane %v871_v14, 2  ;;  %v1421_v23 = vld [vmem:[%s1732_s1 + $0xf4] ss:$8 sps:$4 sm:$0xff]  }
  0x20   : > { %305 = vmatprep.subr.bf16.mxu1 %v1365_v34  ;;  %720 = vmatpush1.bf16.msra.mxu0 %v1366_v37  ;;  %v1422_v24 = vld [vmem:[%s1732_s1 + $0x1f0] ss:$8 sps:$4 sm:$0xff]   ;;  %v1428_v25 = vld [vmem:[%s1732_s1 + $0x204] ss:$8 sps:$4 sm:$0xff]   ;;  %v1426_v30 = vld [vmem:[%s1732_s1 + $0x200] ss:$8 sps:$4 sm:$0xff]  }
  0x21   : > { %721 = vmatprep.subr.bf16.mxu0 %v1374_v38  ;;  %v461_v26 = vrot.slane %v459_v18, 2  ;;  %v1419_v28 = vld [vmem:[%s1732_s1 + $0xf0] ss:$8 sps:$4 sm:$0xff]   ;;  %v874_v29 = vor.u32 %v873_v22, %v870_v21  ;;  %v1431_v31 = vld [vmem:[%s1732_s1 + $0x214] ss:$8 sps:$4 sm:$0xff]  }
  0x22   : > { %v1429_v33 = vld [vmem:[%s1732_s1 + $0x210] ss:$8 sps:$4 sm:$0xff]   ;;  %v1434_v34 = vld [vmem:[%s1732_s1 + $0x224] ss:$8 sps:$4 sm:$0xff]   ;;  %v1432_v35 = vld [vmem:[%s1732_s1 + $0x220] ss:$8 sps:$4 sm:$0xff]  }
  0x23   : > { %306 = vmatpush1.bf16.msra.mxu1 %v1363_v39  ;;  %v1437_v36 = vld [vmem:[%s1732_s1 + $0x234] ss:$8 sps:$4 sm:$0xff]   ;;  %v1438_v37 = vld [vmem:[%s1521_s16 + $0x4] sm:$0x1c]  }
  0x24   : > { %307 = vmatprep.subr.bf16.mxu1 %v1371_v40  ;;  %722 = vmatpush1.bf16.msra.mxu0 %v1372_v43  ;;  %v977_v38 = vrot.slane %v1438_v37, 2 }
  0x25   : > { %815 = vmatprep.subr.bf16.mxu0 %v1380_v44 }
  0x27   : > { %308 = vmatpush1.bf16.msra.mxu1 %v1369_v45  ;;  %1228 = vmatmul.mubr.msk.bf16.vlgmr.msra.gmra.mrb[0].mxu0 %vm213_vm0, %v671_v47 }
  0x28   : > { %399 = vmatprep.subr.bf16.mxu1 %v1377_v46  ;;  %816 = vmatpush1.bf16.msra.mxu0 %v1378_v48 }
  0x29   : > { %817 = vmatprep.subr.bf16.mxu0 %v1386_v49  ;;  %847 = vmatprep.mubr.bf16.mxu0 %v1447_v2 }
  0x2a   : > { %1157 = vmatmul.mubr.msk.bf16.vlgmr.msra.gmra.mrb[0].mxu1 %vm213_vm0, %v1536_v19  ;;  %v462_v19 = vshll.u32 %v1425_v11, 16 }
  0x2b   : > { %400 = vmatpush1.bf16.msra.mxu1 %v1375_v50  ;;  %431 = vmatprep.mubr.bf16.mxu1 %v1447_v2 }
  0x2c   : > { %401 = vmatprep.subr.bf16.mxu1 %v1383_v51  ;;  %818 = vmatpush1.bf16.msra.mxu0 %v1384_v52  ;;  %v464_v27 = vrot.slane %v462_v19, 3 }
  0x2d   : > { %819 = vmatprep.subr.bf16.mxu0 %v1392_v53 }
  0x2e   : > { %v465_v32 = vor.u32 %v464_v27, %v461_v26 }
  0x2f   : > { %402 = vmatpush1.bf16.msra.mxu1 %v1381_v54 }
  0x30   : > { %403 = vmatprep.subr.bf16.mxu1 %v1389_v55  ;;  %820 = vmatpush1.bf16.msra.mxu0 %v1390_v56 }
  0x31   : > { %821 = vmatprep.subr.bf16.mxu0 %v1398_v57 }
  0x33   : > { %404 = vmatpush1.bf16.msra.mxu1 %v1387_v58 }
  0x34   : > { %405 = vmatprep.subr.bf16.mxu1 %v1395_v59  ;;  %822 = vmatpush1.bf16.msra.mxu0 %v1396_v61 }
  0x35   : > { %918 = vmatprep.subr.bf16.mxu0 %v1404_v62 }
  0x37   : > { %406 = vmatpush1.bf16.msra.mxu1 %v1393_v0  ;;  %1246 = vmatmul.mubr.msk.bf16.vlgmr.msra.gmra.mrb[0].mxu0 %vm213_vm0, %v771_v3 }
  0x38   : > { %509 = vmatprep.subr.bf16.mxu1 %v1401_v1  ;;  %919 = vmatpush1.bf16.msra.mxu0 %v1402_v4 }
  0x39   : > { %920 = vmatprep.subr.bf16.mxu0 %v1412_v5  ;;  %950 = vmatprep.mubr.bf16.mxu0 %v1447_v2 }
  0x3a   : > { %1175 = vmatmul.mubr.msk.bf16.vlgmr.msra.gmra.mrb[0].mxu1 %vm213_vm0, %v355_v6 }
  0x3b   : > { %510 = vmatpush1.bf16.msra.mxu1 %v1399_v7  ;;  %541 = vmatprep.mubr.bf16.mxu1 %v1447_v2 }
  0x3c   : > { %511 = vmatprep.subr.bf16.mxu1 %v1409_v8  ;;  %921 = vmatpush1.bf16.msra.mxu0 %v1410_v9 }
  0x3d   : > { %922 = vmatprep.subr.bf16.mxu0 %v1418_v10 }
  0x3f   : > { %512 = vmatpush1.bf16.msra.mxu1 %v1407_v12 }
  0x40   : > { %513 = vmatprep.subr.bf16.mxu1 %v1415_v15  ;;  %923 = vmatpush1.bf16.msra.mxu0 %v1416_v16 }
  0x41   : > { %924 = vmatprep.subr.bf16.mxu0 %v1424_v17 }
  0x43   : > { %514 = vmatpush1.bf16.msra.mxu1 %v1413_v20 }
  0x44   : > { %515 = vmatprep.subr.bf16.mxu1 %v1421_v23  ;;  %925 = vmatpush1.bf16.msra.mxu0 %v1422_v24 }
  0x45   : > { %1021 = vmatprep.subr.bf16.mxu0 %v1428_v25 }
  0x47   : > { %516 = vmatpush1.bf16.msra.mxu1 %v1419_v28  ;;  %1263 = vmatmul.mubr.msk.bf16.vlgmr.msra.gmra.mrb[0].mxu0 %vm213_vm0, %v874_v29 }
  0x48   : > { %1022 = vmatpush1.bf16.msra.mxu0 %v1426_v30  ;;  %1053 = vmatprep.mubr.bf16.mxu0 %v1447_v2  ;;  %v1435_v2 = vld [vmem:[%s1732_s1 + $0x230] ss:$8 sps:$4 sm:$0xff]  }
  0x49   : > { %1023 = vmatprep.subr.bf16.mxu0 %v1431_v31 }
  0x4a   : > { %1193 = vmatmul.mubr.msk.bf16.vlgmr.msra.gmra.mrb[0].mxu1 %vm213_vm0, %v465_v32 }
  0x4c   : > { %1024 = vmatpush1.bf16.msra.mxu0 %v1429_v33 }
  0x4d   : > { %1025 = vmatprep.subr.bf16.mxu0 %v1434_v34 }
  0x50   : > { %1026 = vmatpush1.bf16.msra.mxu0 %v1432_v35 }
  0x51   : > { %1027 = vmatprep.subr.bf16.mxu0 %v1437_v36 }
  0x54   : > { %1028 = vmatpush1.bf16.msra.mxu0 %v1435_v2 }
  0x57   : > { %1281 = vmatmul.mubr.msk.bf16.vlgmr.msra.gmra.mrb[0].mxu0 %vm213_vm0, %v977_v38 }
 0x11d   : > { %v543_v39 = vpop.f32.mrb[0].mxu1 }
 0x11e   : > { %v545_v40 = vpop.f32.mrb[1].mxu1 }
 0x11f   : > { %v547_v41 = vpop.f32.mrb[2].mxu1 }
 0x120   : > { %v548_v42 = vpop.f32.mrb[3].mxu1 }
 0x12a   : > { %v1055_v43 = vpop.f32.mrb[0].mxu0 }
 0x12b   : > { %v1285_v44 = vadd.f32 %v1055_v43, %v543_v39  ;;  %v1057_v45 = vpop.f32.mrb[1].mxu0 }
 0x12c   : > { %v1286_v46 = vadd.f32 %v1057_v45, %v545_v40  ;;  %v1059_v47 = vpop.f32.mrb[2].mxu0 }
 0x12d   : > { %v1064_v48 = vmax.f32 %v1285_v44, 0.0  ;;  %v1060_v49 = vpop.f32.mrb[3].mxu0 }
 0x12e   : > { %v1065_v50 = vmax.f32 %v1286_v46, 0.0 }
 0x12f   : > { %1066 = vst [vmem:[%s143_s7] sm:$0x1f] %v1064_v48 }
 0x130   : > { %1067 = vst [vmem:[%s143_s7 + $0x8] sm:$0x1f] %v1065_v50 }
 0x131 PF: > { %s12_s9 = sadd.s32 1, %s1445_s9  }
 0x132   : > { %p9_p4 = scmp.ge.s32.totalorder %s12_s9, 4  }
 0x134   :  { %11 = sbr.rel (!%p9_p4) target bundleno = 1 (0x1), region = 66 }

// kernel: squeezenet_forward.58
= control target key start
LH: loop header
LB: loop body
LE: loop exit
PB: predicated region body
PF: predicated region fallthrough
CT: control target
= control target key end

     0   :  { %s193_s6 = smov 0   ;;  %s213_s0 = inlined_call_operand.vmem [shape: f32[2,1,512], index: 0, kind: input, shape index: {}]   ;;  %s214_s1 = inlined_call_operand.vmem [shape: f32[2,1,512], index: 1, kind: output, shape index: {}]  }
   0x1 LB: > { %s172_s7 = sadd.s32 4294967295, %s195_s6   ;;  %p176_p0 = scmp.ge.s32.totalorder %s195_s6, 1  ;;  %s195_s6 = sphi %s193_s6, %s11_s6  }
   0x2   : > { %p86_p1 = scmp.lt.s32.totalorder %s195_s6, 3 }
   0x4   : > { %p87_p2 = pnand %p176_p0, %p86_p1 }
   0x5   : > { %p104_p3 = scmp.lt.s32.totalorder (!%p87_p2), %s172_s7, 1  ;;  %v114_v0 = vlaneseq (!%p87_p2) }
   0x6   : > { %90 = sbr.rel (%p87_p2) target bundleno = 18 (0x12), region = 24 }
   0x7   : > { %vm116_vm0 = vcmp.lt.s32.totalorder (!%p87_p2), %v114_v0, 512 }
   0xd   : > { %s216_s7 = smov (!%p104_p3, %s172_s7), 1 }
   0xe   : > { %s177_s8 = sshll.u32 %s216_s7, 2 }
   0xf   : > { %s107_s11 = scalar_lea.vmem %s213_s0, %s177_s8  ;;  %s111_s14 = scalar_lea.vmem %s214_s1, %s177_s8 }
  0x10   : > { %v112_v1 = vld [vmem:[%s107_s11] sm:$0xf] }
  0x11   : > { %118 = vst.msk [vmem:[%s111_s14] sm:$0xf] %vm116_vm0, %v112_v1 }
  0x12 PF: > { %s11_s6 = sadd.s32 1, %s195_s6  }
  0x13   : > { %p8_p4 = scmp.ge.s32.totalorder %s11_s6, 4  }
  0x15   :  { %10 = sbr.rel (!%p8_p4) target bundleno = 1 (0x1), region = 54 }

// kernel: squeezenet_forward.59
= control target key start
LH: loop header
LB: loop body
LE: loop exit
PB: predicated region body
PF: predicated region fallthrough
CT: control target
= control target key end

     0   :  { %vm16_vm0 = vcmask 130048   ;;  %v500_v38 = vmov 0.0   ;;  %s624_s1 = inlined_call_operand.vmem [shape: bf16[512,16], index: 1, kind: input, shape index: {}]   ;;  %s625_s0 = inlined_call_operand.vmem [shape: bf16[8,512], index: 0, kind: input, shape index: {}]   ;;  %s626_s2 = inlined_call_operand.vmem [shape: f32[8,16], index: 2, kind: output, shape index: {}]  }
   0x1   :  { %v464_v0 = vld [vmem:[%s624_s1 + $0x40] sm:$0xff]   ;;  %v468_v4 = vld [vmem:[%s624_s1 + $0x48] sm:$0xff]   ;;  %v472_v8 = vld [vmem:[%s624_s1 + $0x50] sm:$0xff]   ;;  %17 = vst.msk [vmem:[#allocation2] sm:$0xff] %vm16_vm0, %v500_v38 }
   0x2   :  { %v465_v1 = vld [vmem:[%s624_s1 + $0xc0] sm:$0xff]   ;;  %419 = vmatprep.subr.bf16.mxu0 %v464_v0  ;;  %v469_v5 = vld [vmem:[%s624_s1 + $0xc8] sm:$0xff]   ;;  %v473_v9 = vld [vmem:[%s624_s1 + $0xd0] sm:$0xff]  }
   0x3   :  { %v466_v2 = vld [vmem:[%s624_s1] sm:$0xff]   ;;  %441 = vmatprep.subr.bf16.mxu1 %v465_v1  ;;  %v470_v6 = vld [vmem:[%s624_s1 + $0x8] sm:$0xff]   ;;  %v474_v10 = vld [vmem:[%s624_s1 + $0x10] sm:$0xff]  }
   0x4   :  { %v467_v3 = vld [vmem:[%s624_s1 + $0x80] sm:$0xff]   ;;  %420 = vmatpush3.bf16.msra.mxu0 %v466_v2  ;;  %v471_v7 = vld [vmem:[%s624_s1 + $0x88] sm:$0xff]   ;;  %v475_v11 = vld [vmem:[%s624_s1 + $0x90] sm:$0xff]  }
   0x5   :  { %442 = vmatpush3.bf16.msra.mxu1 %v467_v3  ;;  %421 = vmatprep.subr.bf16.mxu0 %v468_v4  ;;  %v476_v12 = vld [vmem:[%s624_s1 + $0x58] sm:$0xff]   ;;  %v480_v16 = vld [vmem:[%s624_s1 + $0x60] sm:$0xff]   ;;  %v484_v20 = vld [vmem:[%s624_s1 + $0x68] sm:$0xff]  }
   0x6   :  { %443 = vmatprep.subr.bf16.mxu1 %v469_v5  ;;  %v477_v13 = vld [vmem:[%s624_s1 + $0xd8] sm:$0xff]   ;;  %v481_v17 = vld [vmem:[%s624_s1 + $0xe0] sm:$0xff]   ;;  %v485_v21 = vld [vmem:[%s624_s1 + $0xe8] sm:$0xff]  }
   0x7   :  { %v478_v14 = vld [vmem:[%s624_s1 + $0x18] sm:$0xff]   ;;  %v482_v18 = vld [vmem:[%s624_s1 + $0x20] sm:$0xff]   ;;  %v486_v22 = vld [vmem:[%s624_s1 + $0x28] sm:$0xff]  }
   0x8   :  { %422 = vmatpush3.bf16.msra.mxu0 %v470_v6  ;;  %v479_v15 = vld [vmem:[%s624_s1 + $0x98] sm:$0xff]   ;;  %v483_v19 = vld [vmem:[%s624_s1 + $0xa0] sm:$0xff]   ;;  %v487_v23 = vld [vmem:[%s624_s1 + $0xa8] sm:$0xff]  }
   0x9   :  { %444 = vmatpush3.bf16.msra.mxu1 %v471_v7  ;;  %423 = vmatprep.subr.bf16.mxu0 %v472_v8  ;;  %v488_v24 = vld [vmem:[%s624_s1 + $0x70] sm:$0xff]   ;;  %v492_v28 = vld [vmem:[%s624_s1 + $0x78] sm:$0xff]   ;;  %v19_v32 = vld [vmem:[%s625_s0] sm:$0xff] }
   0xa   :  { %445 = vmatprep.subr.bf16.mxu1 %v473_v9  ;;  %v489_v25 = vld [vmem:[%s624_s1 + $0xf0] sm:$0xff]   ;;  %v493_v29 = vld [vmem:[%s624_s1 + $0xf8] sm:$0xff]   ;;  %v20_v33 = vld [vmem:[%s625_s0 + $0x8] sm:$0xff]  ;;  %v383_v34 = vcombine.low %v19_v32, %v19_v32  ;;  %v384_v35 = vcombine.high %v19_v32, %v19_v32 }
   0xb   :  { %v490_v26 = vld [vmem:[%s624_s1 + $0x30] sm:$0xff]   ;;  %v494_v30 = vld [vmem:[%s624_s1 + $0x38] sm:$0xff]   ;;  %v385_v36 = vcombine.low %v20_v33, %v20_v33  ;;  %v386_v37 = vcombine.high %v20_v33, %v20_v33  ;;  %v18_v47 = vld [vmem:[#allocation2] sm:$0xff] }
   0xc   :  { %424 = vmatpush3.bf16.msra.mxu0 %v474_v10  ;;  %v491_v27 = vld [vmem:[%s624_s1 + $0xb0] sm:$0xff]   ;;  %v495_v31 = vld [vmem:[%s624_s1 + $0xb8] sm:$0xff]   ;;  %323 = vmatprep.mubr.bf16.mxu0 %v384_v35 }
   0xd   :  { %446 = vmatpush3.bf16.msra.mxu1 %v475_v11  ;;  %425 = vmatprep.subr.bf16.mxu0 %v476_v12 }
   0xe   :  { %447 = vmatprep.subr.bf16.mxu1 %v477_v13  ;;  %363 = vmatprep.mubr.bf16.mxu1 %v386_v37 }
  0x10   :  { %426 = vmatpush3.bf16.msra.mxu0 %v478_v14 }
  0x11   :  { %448 = vmatpush3.bf16.msra.mxu1 %v479_v15  ;;  %427 = vmatprep.subr.bf16.mxu0 %v480_v16 }
  0x12   :  { %449 = vmatprep.subr.bf16.mxu1 %v481_v17 }
  0x14   :  { %428 = vmatpush3.bf16.msra.mxu0 %v482_v18 }
  0x15   :  { %450 = vmatpush3.bf16.msra.mxu1 %v483_v19  ;;  %429 = vmatprep.subr.bf16.mxu0 %v484_v20 }
  0x16   :  { %451 = vmatprep.subr.bf16.mxu1 %v485_v21 }
  0x18   :  { %430 = vmatpush3.bf16.msra.mxu0 %v486_v22 }
  0x19   :  { %452 = vmatpush3.bf16.msra.mxu1 %v487_v23  ;;  %431 = vmatprep.subr.bf16.mxu0 %v488_v24 }
  0x1a   :  { %453 = vmatprep.subr.bf16.mxu1 %v489_v25 }
  0x1c   :  { %432 = vmatpush3.bf16.msra.mxu0 %v490_v26 }
  0x1d   :  { %454 = vmatpush3.bf16.msra.mxu1 %v491_v27  ;;  %433 = vmatprep.subr.bf16.mxu0 %v492_v28 }
  0x1e   :  { %455 = vmatprep.subr.bf16.mxu1 %v493_v29 }
  0x20   :  { %434 = vmatpush3.bf16.msra.mxu0 %v494_v30 }
  0x21   :  { %456 = vmatpush3.bf16.msra.mxu1 %v495_v31 }
  0x23   :  { %324 = vmatmul.mubr.bf16.vlgmr.msra.gmra.mrb[0].mxu0 %v383_v34 }
  0x24   :  { %364 = vmatmul.mubr.bf16.vlgmr.msra.gmra.mrb[0].mxu1 %v385_v36 }
  0xf6   :  { %v435_v39 = vpop.f32.mrb[0].mxu0 }
  0xf7   :  { %v457_v40 = vpop.f32.mrb[0].mxu1  ;;  %v436_v41 = vpop.f32.mrb[1].mxu0 }
  0xf8   :  { %v458_v42 = vpop.f32.mrb[1].mxu1  ;;  %v437_v43 = vadd.f32 %v436_v41, %v435_v39  ;;  %v438_v45 = vpop.f32.mrb[2].mxu0 }
  0xf9   :  { %v459_v44 = vadd.f32 %v458_v42, %v457_v40  ;;  %v460_v46 = vpop.f32.mrb[2].mxu1  ;;  %v439_v48 = vpop.f32.mrb[3].mxu0 }
  0xfa   :  { %v461_v49 = vpop.f32.mrb[3].mxu1 }
  0xfb   :  { %v366_v50 = vadd.f32 %v459_v44, %v437_v43 }
  0xfd   :  { %v371_v51 = vadd.f32 %v366_v50, %v18_v47 }
  0xff   :  { %373 = vst.msk [vmem:[#allocation2] sm:$0xff] %vm16_vm0, %v371_v51 }
 0x106   :  { %v377_v52 = vld [vmem:[#allocation2] sm:$0xff] }
 0x107   :  { %378 = vst.msk [vmem:[%s626_s2] sm:$0xff] %vm16_vm0, %v377_v52 }

</bundles_post_ra>
